<compile_context>
chip_gen: v7x
topology: tpu7x:2x2x1
jax: 0.10.0
libtpu: 0.0.40
codegen_flags: <defaults>
</compile_context>

<pallas_src>
import functools

import jax
import jax.numpy as jnp
from jax.experimental import pallas as pl
from jax.experimental.pallas import tpu as pltpu


def _round_up(v, m):
    return (v + m - 1) // m * m


@functools.lru_cache(maxsize=None)
def _fold_batch():
    """True on single-TensorCore chips: fold the batch into one grid-free call."""
    try:
        kind = jax.devices()[0].device_kind.lower()
    except Exception:
        return True
    return "v7" not in kind          # v7x has 2 TCs/chip -> keep per-batch parallel grid


# ---------------------------------------------------------------------------
# Pallas kernels
# ---------------------------------------------------------------------------
def _conv_pool_kernel(xc_ref, w_ref, b_ref, o_ref):
    """conv (single im2col matmul) + 2x2 maxpool + bias + ReLU.

    xc_ref: (4*R, K) bf16 -- 4 quadrant blocks of R rows each (R multiple of 8)
    w_ref : (K, Cout)  bf16
    b_ref : (1, Cout)  f32
    o_ref : (R, Cout)  bf16   (pooled activations)
    """
    r = o_ref.shape[0]
    m = jnp.dot(xc_ref[...], w_ref[...], preferred_element_type=jnp.float32)
    acc = m[0:r, :]
    acc = jnp.maximum(acc, m[r:2 * r, :])       # incremental 2x2 max pool
    acc = jnp.maximum(acc, m[2 * r:3 * r, :])
    acc = jnp.maximum(acc, m[3 * r:4 * r, :])
    acc = jnp.maximum(acc + b_ref[...], 0.0)    # bias + ReLU (valid: bias const per quadrant)
    o_ref[...] = acc.astype(o_ref.dtype)


def _conv3_head_kernel(xc_ref, w3_ref, b3_ref, w1_ref, b1_ref, w2_ref, b2_ref,
                       o_ref):
    """conv3 + bias + ReLU + pool + fc1 + ReLU + fc2 + softmax for the whole batch.

    xc_ref: (4*R, K3) bf16, R = round_up(4*N, 8); within each quadrant block the
            valid rows are ordered (pooled_pixel p, batch b) = p*N + b.
    w1_ref: (4, 128, 512) bf16 -- w1_ref[p] holds the fc1 rows of pooled pixel p.
    o_ref : (N, nclass) f32 softmax probabilities.
    """
    n = o_ref.shape[0]
    r = xc_ref.shape[0] // 4
    m = jnp.dot(xc_ref[...], w3_ref[...], preferred_element_type=jnp.float32)
    acc = m[0:r, :]
    acc = jnp.maximum(acc, m[r:2 * r, :])
    acc = jnp.maximum(acc, m[2 * r:3 * r, :])
    acc = jnp.maximum(acc, m[3 * r:4 * r, :])
    x3 = jnp.maximum(acc + b3_ref[...], 0.0)             # (R, 128) f32

    # fc1 without flattening: h[b] = sum_p x3[p*N + b] @ w1[p]
    h = jnp.dot(x3[0:n, :].astype(jnp.bfloat16), w1_ref[0],
                preferred_element_type=jnp.float32)
    for p in range(1, 4):
        h = h + jnp.dot(x3[p * n:(p + 1) * n, :].astype(jnp.bfloat16),
                        w1_ref[p], preferred_element_type=jnp.float32)
    h = jnp.maximum(h + b1_ref[...], 0.0).astype(jnp.bfloat16)       # fc1 + ReLU

    logits = jnp.dot(h, w2_ref[...], preferred_element_type=jnp.float32)
    logits = logits + b2_ref[...]                                     # fc2
    mx = jnp.max(logits, axis=1, keepdims=True)                       # softmax(dim=1)
    e = jnp.exp(logits - mx)
    o_ref[...] = (e / jnp.sum(e, axis=1, keepdims=True)).astype(o_ref.dtype)


# ---------------------------------------------------------------------------
# JAX glue + wrappers
# ---------------------------------------------------------------------------
def _im2col_quadrants(x, kh, kw):
    """Quadrant-structured im2col.

    x: (N,H,W,C) -> ([4 x (N, Hp*Wp, K)], Hp, Wp).  Quadrant q = 2*dy + dx holds the
    (i, j, c)-ordered patch of conv-output pixel (2*hp+dy, 2*wp+dx) -- i.e. the four
    conv outputs a 2x2/stride-2 (floor mode) max pool combines.
    """
    n, h, w, c = x.shape
    ho, wo = h - kh + 1, w - kw + 1
    hp, wp = ho // 2, wo // 2
    k = kh * kw * c
    pats = jnp.concatenate(
        [x[:, i:i + ho, j:j + wo, :] for i in range(kh) for j in range(kw)],
        axis=-1)                                              # (N, Ho, Wo, K)
    quads = [
        pats[:, dy::2, dx::2, :][:, :hp, :wp, :].reshape(n, hp * wp, k)
        for dy in (0, 1) for dx in (0, 1)
    ]
    return quads, hp, wp


def conv_relu_pool(x, w, b):
    """x: (N,H,W,Cin) bf16, w: (KH,KW,Cin,Cout) f32, b: (1,Cout) f32 -> (N,Hp,Wp,Cout) bf16."""
    n = x.shape[0]
    kh, kw, _, cout = w.shape
    k = kh * kw * x.shape[3]
    quads, hp, wp = _im2col_quadrants(x, kh, kw)
    mq = hp * wp
    mq_pad = _round_up(mq, 8)
    quads = [jnp.pad(q, ((0, 0), (0, mq_pad - mq), (0, 0))) for q in quads]
    w_col = w.reshape(k, cout).astype(jnp.bfloat16)

    if _fold_batch():
        # Single-TC chips: fold the batch into M, one grid-free call, one dot.
        xc = jnp.concatenate(quads, axis=0).reshape(4 * n * mq_pad, k)
        out = pl.pallas_call(
            _conv_pool_kernel,
            out_shape=jax.ShapeDtypeStruct((n * mq_pad, cout), jnp.bfloat16),
        )(xc, w_col, b)
        out = out.reshape(n, mq_pad, cout)
    else:
        # v7x: per-batch "parallel" grid step so both TensorCores split the batch.
        xc = jnp.concatenate(quads, axis=1)                   # (N, 4*mq_pad, K)
        out = pl.pallas_call(
            _conv_pool_kernel,
            out_shape=jax.ShapeDtypeStruct((n, mq_pad, cout), jnp.bfloat16),
            grid=(n,),
            in_specs=[
                pl.BlockSpec((None, 4 * mq_pad, k), lambda i: (i, 0, 0)),
                pl.BlockSpec((k, cout), lambda i: (0, 0)),
                pl.BlockSpec((1, cout), lambda i: (0, 0)),
            ],
            out_specs=pl.BlockSpec((None, mq_pad, cout), lambda i: (i, 0, 0)),
            compiler_params=pltpu.CompilerParams(
                dimension_semantics=("parallel",)),
        )(xc, w_col, b)
    return out[:, :mq, :].reshape(n, hp, wp, cout)


def conv3_and_head(x, w3, b3, w1, b1, w2, b2):
    """x: (N,9,9,64) bf16 -> (N, nclass) f32 softmax probabilities."""
    n = x.shape[0]
    kh, kw, cin, c3 = w3.shape
    k3 = kh * kw * cin
    d1, nclass = w1.shape[1], w2.shape[1]

    quads, hp, wp = _im2col_quadrants(x, kh, kw)              # 4 x (N, 4, K3)
    npix = hp * wp                                            # = 4 pooled pixels
    rows = n * npix
    rows_pad = _round_up(rows, 8)
    blocks = []
    for q in quads:
        qb = jnp.transpose(q, (1, 0, 2)).reshape(rows, k3)    # row = p*N + b
        blocks.append(jnp.pad(qb, ((0, rows_pad - rows), (0, 0))))
    xc = jnp.concatenate(blocks, axis=0)                      # (4*rows_pad, K3)

    w3_col = w3.reshape(k3, c3).astype(jnp.bfloat16)
    # fc1 rows are stored in torch's NCHW-flatten order (c*4 + p); regroup per pooled
    # pixel p so the kernel accumulates fc1 without flattening the activation.
    w1p = w1.reshape(c3, npix, d1).transpose(1, 0, 2).astype(jnp.bfloat16)  # (4,128,512)
    w2b = w2.astype(jnp.bfloat16)

    return pl.pallas_call(
        _conv3_head_kernel,
        out_shape=jax.ShapeDtypeStruct((n, nclass), jnp.float32),
    )(xc, w3_col, b3, w1p, b1, w2b, b2)


def init_params(key):
    def uni(k, shape, fan_in):
        bound = 1.0 / float(fan_in) ** 0.5
        return jax.random.uniform(k, shape, jnp.float32, -bound, bound)

    ks = jax.random.split(key, 10)
    return {
        "cw1": uni(ks[0], (5, 5, 1, 32), 5 * 5 * 1),
        "cb1": uni(ks[1], (1, 32), 5 * 5 * 1),
        "cw2": uni(ks[2], (5, 5, 32, 64), 5 * 5 * 32),
        "cb2": uni(ks[3], (1, 64), 5 * 5 * 32),
        "cw3": uni(ks[4], (5, 5, 64, 128), 5 * 5 * 64),
        "cb3": uni(ks[5], (1, 128), 5 * 5 * 64),
        "fw1": uni(ks[6], (512, 512), 512),     # _to_linear = 128*2*2 = 512
        "fb1": uni(ks[7], (1, 512), 512),
        "fw2": uni(ks[8], (512, 2), 512),
        "fb2": uni(ks[9], (1, 2), 512),
    }


def net_forward(x_nchw, p):
    x = jnp.transpose(x_nchw, (0, 2, 3, 1)).astype(jnp.bfloat16)   # NCHW -> NHWC
    x = conv_relu_pool(x, p["cw1"], p["cb1"])       # (N, 23, 23, 32)
    x = conv_relu_pool(x, p["cw2"], p["cb2"])       # (N,  9,  9, 64)
    return conv3_and_head(x, p["cw3"], p["cb3"],
                          p["fw1"], p["fb1"], p["fw2"], p["fb2"])   # (N, 2)


# ---------------------------------------------------------------------------
if __name__ == "__main__":
    key = jax.random.PRNGKey(0)
    k_x, k_p = jax.random.split(key)
    # Input must be 50x50: fc1's input size (512) is derived from it.
    x = jax.random.normal(k_x, (2, 1, 50, 50), jnp.float32)
    params = init_params(k_p)

    out = jax.jit(net_forward)(x, params)
    out = jax.block_until_ready(out)

    assert out.shape == (2, 2)
    assert bool(jnp.all(jnp.isfinite(out)))
    assert bool(jnp.allclose(jnp.sum(out, axis=1), 1.0, atol=1e-3))
    print("KERNEL_OK")
</pallas_src>

<mosaic_0001>
module attributes {stable_mosaic.version = 11 : i64} {
  func.func @_conv_pool_kernel(%arg0: memref<4288x25xbf16, #tpu.memory_space<vmem>>, %arg1: memref<25x32xbf16, #tpu.memory_space<vmem>>, %arg2: memref<1x32xf32, #tpu.memory_space<vmem>>, %arg3: memref<1072x32xbf16, #tpu.memory_space<vmem>>) attributes {dimension_semantics = [], scalar_prefetch = 0 : i64, scratch_operands = 0 : i64, tpu.core_type = #tpu.core_type<tc>} {
    %c0 = arith.constant 0 : index
    %c0_0 = arith.constant 0 : index
    %0 = vector.load %arg0[%c0, %c0_0] : memref<4288x25xbf16, #tpu.memory_space<vmem>>, vector<4288x25xbf16>
    %c0_1 = arith.constant 0 : index
    %c0_2 = arith.constant 0 : index
    %1 = vector.load %arg1[%c0_1, %c0_2] : memref<25x32xbf16, #tpu.memory_space<vmem>>, vector<25x32xbf16>
    %cst = arith.constant dense<0.000000e+00> : vector<4288x32xf32>
    %2 = tpu.matmul %0, %1, %cst {dimension_numbers = #tpu.dot_dimension_numbers<[1], [0], [0], [1], [0, 0, 1, 1], [], []>} : vector<4288x25xbf16>, vector<25x32xbf16>, vector<4288x32xf32> -> vector<4288x32xf32>
    %3 = vector.extract_strided_slice %2 {offsets = [0, 0], sizes = [1072, 32], strides = [1, 1]} : vector<4288x32xf32> to vector<1072x32xf32>
    %4 = vector.extract_strided_slice %2 {offsets = [1072, 0], sizes = [1072, 32], strides = [1, 1]} : vector<4288x32xf32> to vector<1072x32xf32>
    %5 = arith.maximumf %3, %4 : vector<1072x32xf32>
    %6 = vector.extract_strided_slice %2 {offsets = [2144, 0], sizes = [1072, 32], strides = [1, 1]} : vector<4288x32xf32> to vector<1072x32xf32>
    %7 = arith.maximumf %5, %6 : vector<1072x32xf32>
    %8 = vector.extract_strided_slice %2 {offsets = [3216, 0], sizes = [1072, 32], strides = [1, 1]} : vector<4288x32xf32> to vector<1072x32xf32>
    %9 = arith.maximumf %7, %8 : vector<1072x32xf32>
    %c0_3 = arith.constant 0 : index
    %c0_4 = arith.constant 0 : index
    %10 = vector.load %arg2[%c0_3, %c0_4] : memref<1x32xf32, #tpu.memory_space<vmem>>, vector<1x32xf32>
    %11 = vector.broadcast %10 : vector<1x32xf32> to vector<1072x32xf32>
    %12 = arith.addf %9, %11 : vector<1072x32xf32>
    %cst_5 = arith.constant 0.000000e+00 : f32
    %13 = vector.broadcast %cst_5 : f32 to vector<1072x32xf32>
    %14 = arith.maximumf %12, %13 : vector<1072x32xf32>
    %15 = arith.truncf %14 : vector<1072x32xf32> to vector<1072x32xbf16>
    %c0_6 = arith.constant 0 : index
    %c0_7 = arith.constant 0 : index
    %16 = vector.load %arg3[%c0_6, %c0_7] : memref<1072x32xbf16, #tpu.memory_space<vmem>>, vector<1072x32xbf16>
    tpu.vector_store %arg3[%c0_6, %c0_7], %15 {strides = array<i32>} : memref<1072x32xbf16, #tpu.memory_space<vmem>>, vector<1072x32xbf16>,
    return
  }
}

module attributes {stable_mosaic.version = 11 : i64} {
  func.func @_conv_pool_kernel(%arg0: memref<704x800xbf16, #tpu.memory_space<vmem>>, %arg1: memref<800x64xbf16, #tpu.memory_space<vmem>>, %arg2: memref<1x64xf32, #tpu.memory_space<vmem>>, %arg3: memref<176x64xbf16, #tpu.memory_space<vmem>>) attributes {dimension_semantics = [], scalar_prefetch = 0 : i64, scratch_operands = 0 : i64, tpu.core_type = #tpu.core_type<tc>} {
    %c0 = arith.constant 0 : index
    %c0_0 = arith.constant 0 : index
    %0 = vector.load %arg0[%c0, %c0_0] : memref<704x800xbf16, #tpu.memory_space<vmem>>, vector<704x800xbf16>
    %c0_1 = arith.constant 0 : index
    %c0_2 = arith.constant 0 : index
    %1 = vector.load %arg1[%c0_1, %c0_2] : memref<800x64xbf16, #tpu.memory_space<vmem>>, vector<800x64xbf16>
    %cst = arith.constant dense<0.000000e+00> : vector<704x64xf32>
    %2 = tpu.matmul %0, %1, %cst {dimension_numbers = #tpu.dot_dimension_numbers<[1], [0], [0], [1], [0, 0, 1, 1], [], []>} : vector<704x800xbf16>, vector<800x64xbf16>, vector<704x64xf32> -> vector<704x64xf32>
    %3 = vector.extract_strided_slice %2 {offsets = [0, 0], sizes = [176, 64], strides = [1, 1]} : vector<704x64xf32> to vector<176x64xf32>
    %4 = vector.extract_strided_slice %2 {offsets = [176, 0], sizes = [176, 64], strides = [1, 1]} : vector<704x64xf32> to vector<176x64xf32>
    %5 = arith.maximumf %3, %4 : vector<176x64xf32>
    %6 = vector.extract_strided_slice %2 {offsets = [352, 0], sizes = [176, 64], strides = [1, 1]} : vector<704x64xf32> to vector<176x64xf32>
    %7 = arith.maximumf %5, %6 : vector<176x64xf32>
    %8 = vector.extract_strided_slice %2 {offsets = [528, 0], sizes = [176, 64], strides = [1, 1]} : vector<704x64xf32> to vector<176x64xf32>
    %9 = arith.maximumf %7, %8 : vector<176x64xf32>
    %c0_3 = arith.constant 0 : index
    %c0_4 = arith.constant 0 : index
    %10 = vector.load %arg2[%c0_3, %c0_4] : memref<1x64xf32, #tpu.memory_space<vmem>>, vector<1x64xf32>
    %11 = vector.broadcast %10 : vector<1x64xf32> to vector<176x64xf32>
    %12 = arith.addf %9, %11 : vector<176x64xf32>
    %cst_5 = arith.constant 0.000000e+00 : f32
    %13 = vector.broadcast %cst_5 : f32 to vector<176x64xf32>
    %14 = arith.maximumf %12, %13 : vector<176x64xf32>
    %15 = arith.truncf %14 : vector<176x64xf32> to vector<176x64xbf16>
    %c0_6 = arith.constant 0 : index
    %c0_7 = arith.constant 0 : index
    %16 = vector.load %arg3[%c0_6, %c0_7] : memref<176x64xbf16, #tpu.memory_space<vmem>>, vector<176x64xbf16>
    tpu.vector_store %arg3[%c0_6, %c0_7], %15 {strides = array<i32>} : memref<176x64xbf16, #tpu.memory_space<vmem>>, vector<176x64xbf16>,
    return
  }
}

module attributes {stable_mosaic.version = 11 : i64} {
  func.func @_conv3_head_kernel(%arg0: memref<32x1600xbf16, #tpu.memory_space<vmem>>, %arg1: memref<1600x128xbf16, #tpu.memory_space<vmem>>, %arg2: memref<1x128xf32, #tpu.memory_space<vmem>>, %arg3: memref<4x128x512xbf16, #tpu.memory_space<vmem>>, %arg4: memref<1x512xf32, #tpu.memory_space<vmem>>, %arg5: memref<512x2xbf16, #tpu.memory_space<vmem>>, %arg6: memref<1x2xf32, #tpu.memory_space<vmem>>, %arg7: memref<2x2xf32, #tpu.memory_space<vmem>>) attributes {dimension_semantics = [], scalar_prefetch = 0 : i64, scratch_operands = 0 : i64, tpu.core_type = #tpu.core_type<tc>} {
    %c0 = arith.constant 0 : index
    %c0_0 = arith.constant 0 : index
    %0 = vector.load %arg0[%c0, %c0_0] : memref<32x1600xbf16, #tpu.memory_space<vmem>>, vector<32x1600xbf16>
    %c0_1 = arith.constant 0 : index
    %c0_2 = arith.constant 0 : index
    %1 = vector.load %arg1[%c0_1, %c0_2] : memref<1600x128xbf16, #tpu.memory_space<vmem>>, vector<1600x128xbf16>
    %cst = arith.constant dense<0.000000e+00> : vector<32x128xf32>
    %2 = tpu.matmul %0, %1, %cst {dimension_numbers = #tpu.dot_dimension_numbers<[1], [0], [0], [1], [0, 0, 1, 1], [], []>} : vector<32x1600xbf16>, vector<1600x128xbf16>, vector<32x128xf32> -> vector<32x128xf32>
    %3 = vector.extract_strided_slice %2 {offsets = [0, 0], sizes = [8, 128], strides = [1, 1]} : vector<32x128xf32> to vector<8x128xf32>
    %4 = vector.extract_strided_slice %2 {offsets = [8, 0], sizes = [8, 128], strides = [1, 1]} : vector<32x128xf32> to vector<8x128xf32>
    %5 = arith.maximumf %3, %4 : vector<8x128xf32>
    %6 = vector.extract_strided_slice %2 {offsets = [16, 0], sizes = [8, 128], strides = [1, 1]} : vector<32x128xf32> to vector<8x128xf32>
    %7 = arith.maximumf %5, %6 : vector<8x128xf32>
    %8 = vector.extract_strided_slice %2 {offsets = [24, 0], sizes = [8, 128], strides = [1, 1]} : vector<32x128xf32> to vector<8x128xf32>
    %9 = arith.maximumf %7, %8 : vector<8x128xf32>
    %c0_3 = arith.constant 0 : index
    %c0_4 = arith.constant 0 : index
    %10 = vector.load %arg2[%c0_3, %c0_4] : memref<1x128xf32, #tpu.memory_space<vmem>>, vector<1x128xf32>
    %11 = vector.broadcast %10 : vector<1x128xf32> to vector<8x128xf32>
    %12 = arith.addf %9, %11 : vector<8x128xf32>
    %cst_5 = arith.constant 0.000000e+00 : f32
    %13 = vector.broadcast %cst_5 : f32 to vector<8x128xf32>
    %14 = arith.maximumf %12, %13 : vector<8x128xf32>
    %15 = vector.extract_strided_slice %14 {offsets = [0, 0], sizes = [2, 128], strides = [1, 1]} : vector<8x128xf32> to vector<2x128xf32>
    %16 = arith.truncf %15 : vector<2x128xf32> to vector<2x128xbf16>
    %c0_6 = arith.constant 0 : index
    %c0_7 = arith.constant 0 : index
    %c0_8 = arith.constant 0 : index
    %17 = vector.load %arg3[%c0_6, %c0_7, %c0_8] : memref<4x128x512xbf16, #tpu.memory_space<vmem>>, vector<1x128x512xbf16>
    %18 = vector.shape_cast %17 : vector<1x128x512xbf16> to vector<128x512xbf16>
    %cst_9 = arith.constant dense<0.000000e+00> : vector<2x512xf32>
    %19 = tpu.matmul %16, %18, %cst_9 {dimension_numbers = #tpu.dot_dimension_numbers<[1], [0], [0], [1], [0, 0, 1, 1], [], []>} : vector<2x128xbf16>, vector<128x512xbf16>, vector<2x512xf32> -> vector<2x512xf32>
    %20 = vector.extract_strided_slice %14 {offsets = [2, 0], sizes = [2, 128], strides = [1, 1]} : vector<8x128xf32> to vector<2x128xf32>
    %21 = arith.truncf %20 : vector<2x128xf32> to vector<2x128xbf16>
    %c1 = arith.constant 1 : index
    %c0_10 = arith.constant 0 : index
    %c0_11 = arith.constant 0 : index
    %22 = vector.load %arg3[%c1, %c0_10, %c0_11] : memref<4x128x512xbf16, #tpu.memory_space<vmem>>, vector<1x128x512xbf16>
    %23 = vector.shape_cast %22 : vector<1x128x512xbf16> to vector<128x512xbf16>
    %cst_12 = arith.constant dense<0.000000e+00> : vector<2x512xf32>
    %24 = tpu.matmul %21, %23, %cst_12 {dimension_numbers = #tpu.dot_dimension_numbers<[1], [0], [0], [1], [0, 0, 1, 1], [], []>} : vector<2x128xbf16>, vector<128x512xbf16>, vector<2x512xf32> -> vector<2x512xf32>
    %25 = arith.addf %19, %24 : vector<2x512xf32>
    %26 = vector.extract_strided_slice %14 {offsets = [4, 0], sizes = [2, 128], strides = [1, 1]} : vector<8x128xf32> to vector<2x128xf32>
    %27 = arith.truncf %26 : vector<2x128xf32> to vector<2x128xbf16>
    %c2 = arith.constant 2 : index
    %c0_13 = arith.constant 0 : index
    %c0_14 = arith.constant 0 : index
    %28 = vector.load %arg3[%c2, %c0_13, %c0_14] : memref<4x128x512xbf16, #tpu.memory_space<vmem>>, vector<1x128x512xbf16>
    %29 = vector.shape_cast %28 : vector<1x128x512xbf16> to vector<128x512xbf16>
    %cst_15 = arith.constant dense<0.000000e+00> : vector<2x512xf32>
    %30 = tpu.matmul %27, %29, %cst_15 {dimension_numbers = #tpu.dot_dimension_numbers<[1], [0], [0], [1], [0, 0, 1, 1], [], []>} : vector<2x128xbf16>, vector<128x512xbf16>, vector<2x512xf32> -> vector<2x512xf32>
    %31 = arith.addf %25, %30 : vector<2x512xf32>
    %32 = vector.extract_strided_slice %14 {offsets = [6, 0], sizes = [2, 128], strides = [1, 1]} : vector<8x128xf32> to vector<2x128xf32>
    %33 = arith.truncf %32 : vector<2x128xf32> to vector<2x128xbf16>
    %c3 = arith.constant 3 : index
    %c0_16 = arith.constant 0 : index
    %c0_17 = arith.constant 0 : index
    %34 = vector.load %arg3[%c3, %c0_16, %c0_17] : memref<4x128x512xbf16, #tpu.memory_space<vmem>>, vector<1x128x512xbf16>
    %35 = vector.shape_cast %34 : vector<1x128x512xbf16> to vector<128x512xbf16>
    %cst_18 = arith.constant dense<0.000000e+00> : vector<2x512xf32>
    %36 = tpu.matmul %33, %35, %cst_18 {dimension_numbers = #tpu.dot_dimension_numbers<[1], [0], [0], [1], [0, 0, 1, 1], [], []>} : vector<2x128xbf16>, vector<128x512xbf16>, vector<2x512xf32> -> vector<2x512xf32>
    %37 = arith.addf %31, %36 : vector<2x512xf32>
    %c0_19 = arith.constant 0 : index
    %c0_20 = arith.constant 0 : index
    %38 = vector.load %arg4[%c0_19, %c0_20] : memref<1x512xf32, #tpu.memory_space<vmem>>, vector<1x512xf32>
    %39 = vector.broadcast %38 : vector<1x512xf32> to vector<2x512xf32>
    %40 = arith.addf %37, %39 : vector<2x512xf32>
    %cst_21 = arith.constant 0.000000e+00 : f32
    %41 = vector.broadcast %cst_21 : f32 to vector<2x512xf32>
    %42 = arith.maximumf %40, %41 : vector<2x512xf32>
    %43 = arith.truncf %42 : vector<2x512xf32> to vector<2x512xbf16>
    %c0_22 = arith.constant 0 : index
    %c0_23 = arith.constant 0 : index
    %44 = vector.load %arg5[%c0_22, %c0_23] : memref<512x2xbf16, #tpu.memory_space<vmem>>, vector<512x2xbf16>
    %cst_24 = arith.constant dense<0.000000e+00> : vector<2x2xf32>
    %45 = tpu.matmul %43, %44, %cst_24 {dimension_numbers = #tpu.dot_dimension_numbers<[1], [0], [0], [1], [0, 0, 1, 1], [], []>} : vector<2x512xbf16>, vector<512x2xbf16>, vector<2x2xf32> -> vector<2x2xf32>
    %c0_25 = arith.constant 0 : index
    %c0_26 = arith.constant 0 : index
    %46 = vector.load %arg6[%c0_25, %c0_26] : memref<1x2xf32, #tpu.memory_space<vmem>>, vector<1x2xf32>
    %47 = vector.broadcast %46 : vector<1x2xf32> to vector<2x2xf32>
    %48 = arith.addf %45, %47 : vector<2x2xf32>
    %cst_27 = arith.constant dense<0xFF800000> : vector<2xf32>
    %49 = vector.multi_reduction <maximumf>, %48, %cst_27 [1] : vector<2x2xf32> to vector<2xf32>
    %50 = vector.shape_cast %49 : vector<2xf32> to vector<2x1xf32>
    %51 = vector.broadcast %50 : vector<2x1xf32> to vector<2x2xf32>
    %52 = arith.subf %48, %51 : vector<2x2xf32>
    %53 = math.exp %52 : vector<2x2xf32>
    %cst_28 = arith.constant dense<0.000000e+00> : vector<2xf32>
    %54 = vector.multi_reduction <add>, %53, %cst_28 [1] : vector<2x2xf32> to vector<2xf32>
    %55 = vector.shape_cast %54 : vector<2xf32> to vector<2x1xf32>
    %56 = vector.broadcast %55 : vector<2x1xf32> to vector<2x2xf32>
    %57 = arith.divf %53, %56 : vector<2x2xf32>
    %c0_29 = arith.constant 0 : index
    %c0_30 = arith.constant 0 : index
    %58 = vector.load %arg7[%c0_29, %c0_30] : memref<2x2xf32, #tpu.memory_space<vmem>>, vector<2x2xf32>
    tpu.vector_store %arg7[%c0_29, %c0_30], %57 {strides = array<i32>} : memref<2x2xf32, #tpu.memory_space<vmem>>, vector<2x2xf32>,
    return
  }
}

</mosaic_0001>

<bundles_post_ra>
// kernel: net_forward.3
= control target key start
LH: loop header
LB: loop body
LE: loop exit
PB: predicated region body
PF: predicated region fallthrough
CT: control target
= control target key end

     0   :  { %vm2711_vm0 = vcmask 1043456   ;;  %vm2712_vm1 = vcmask 1044480   ;;  %vm1906_vm2 = vcmask 203776   ;;  %v8141_v1 = vmov 65535   ;;  %s10729_s1 = inlined_call_operand.vmem [shape: bf16[25,32], index: 1, kind: input, shape index: {}]   ;;  %s10730_s0 = inlined_call_operand.vmem [shape: bf16[4288,25], index: 0, kind: input, shape index: {}]   ;;  %s10731_s2 = inlined_call_operand.vmem [shape: f32[1,32], index: 2, kind: input, shape index: {}]   ;;  %s10732_s3 = inlined_call_operand.vmem [shape: bf16[1072,32], index: 3, kind: output, shape index: {}]  }
   0x1   :  { %v7869_v0 = vld [vmem:[%s10729_s1] sm:$0xff]   ;;  %v2713_v2 = vsel %vm2711_vm0, 4294967295, %v8141_v1  ;;  %v7870_v3 = vld [vmem:[%s10729_s1 + $0x8] sm:$0x1f]   ;;  %v7873_v7 = vld [vmem:[%s10730_s0 + $0x430] sm:$0xff]   ;;  %vm6108_vm3 = vcmask 257024  }
   0x2   :  { %7324 = vmatprep.subr.bf16.mxu0 %v7869_v0  ;;  %7864 = vmatprep.subr.bf16.mxu1 %v7869_v0  ;;  %v2714_v4 = vsel %vm2712_vm1, %v2713_v2, 0  ;;  %v7871_v5 = vld [vmem:[%s10730_s0] sm:$0xff]   ;;  %v7872_v8 = vld [vmem:[%s10730_s0 + $0x8] sm:$0xff]   ;;  %v7874_v9 = vld [vmem:[%s10730_s0 + $0x438] sm:$0xff]  }
   0x3   :  { %7325 = vmatpush3.bf16.msra.mxu0 %v7869_v0  ;;  %7866 = vmatpush3.bf16.msra.mxu1 %v7869_v0  ;;  %v2716_v6 = vand.u32 %v7870_v3, %v2714_v4  ;;  %v7875_v10 = vld [vmem:[%s10730_s0 + $0x10] sm:$0xff]   ;;  %v7877_v11 = vld [vmem:[%s10730_s0 + $0x440] sm:$0xff]   ;;  %v7876_v12 = vld [vmem:[%s10730_s0 + $0x18] sm:$0xff]  }
   0x4   :  { %7328 = vmatprep.mubr.msk.bf16.mxu0 %vm1906_vm2, %v7871_v5  ;;  %7596 = vmatprep.mubr.msk.bf16.mxu1 %vm1906_vm2, %v7873_v7  ;;  %v7878_v13 = vld [vmem:[%s10730_s0 + $0x448] sm:$0xff]   ;;  %v7879_v14 = vld [vmem:[%s10730_s0 + $0x20] sm:$0xff]   ;;  %v7881_v15 = vld [vmem:[%s10730_s0 + $0x450] sm:$0xff]  }
   0x5   :  { %7326 = vmatprep.subr.bf16.mxu0 %v2716_v6  ;;  %7865 = vmatprep.subr.bf16.mxu1 %v2716_v6  ;;  %v7880_v16 = vld [vmem:[%s10730_s0 + $0x28] sm:$0xff]   ;;  %v7882_v17 = vld [vmem:[%s10730_s0 + $0x458] sm:$0xff]   ;;  %v7883_v18 = vld [vmem:[%s10730_s0 + $0x30] sm:$0xff]  }
   0x6   :  { %v7885_v19 = vld [vmem:[%s10730_s0 + $0x460] sm:$0xff]   ;;  %v7884_v20 = vld [vmem:[%s10730_s0 + $0x38] sm:$0xff]   ;;  %v7886_v21 = vld [vmem:[%s10730_s0 + $0x468] sm:$0xff]  }
   0x7   :  { %7327 = vmatpush3.bf16.msra.mxu0 %v2716_v6  ;;  %7867 = vmatpush3.bf16.msra.mxu1 %v2716_v6  ;;  %v7887_v22 = vld [vmem:[%s10730_s0 + $0x40] sm:$0xff]   ;;  %v7889_v23 = vld [vmem:[%s10730_s0 + $0x470] sm:$0xff]   ;;  %v7888_v24 = vld [vmem:[%s10730_s0 + $0x48] sm:$0xff]  }
   0x8   :  { %v7890_v25 = vld [vmem:[%s10730_s0 + $0x478] sm:$0xff]   ;;  %v7891_v26 = vld [vmem:[%s10730_s0 + $0x50] sm:$0xff]   ;;  %v7893_v27 = vld [vmem:[%s10730_s0 + $0x480] sm:$0xff]  }
   0x9   :  { %v7892_v28 = vld [vmem:[%s10730_s0 + $0x58] sm:$0xff]   ;;  %v7894_v29 = vld [vmem:[%s10730_s0 + $0x488] sm:$0xff]   ;;  %v7895_v30 = vld [vmem:[%s10730_s0 + $0x60] sm:$0xff]  }
   0xa   :  { %7329 = vmatmul.mubr.msk.bf16.vlgmr.msra.gmra.mrb[0].mxu0 %vm1906_vm2, %v7872_v8  ;;  %7597 = vmatmul.mubr.msk.bf16.vlgmr.msra.gmra.mrb[0].mxu1 %vm1906_vm2, %v7874_v9  ;;  %v7897_v31 = vld [vmem:[%s10730_s0 + $0x490] sm:$0xff]   ;;  %v7896_v32 = vld [vmem:[%s10730_s0 + $0x68] sm:$0xff]   ;;  %v7898_v33 = vld [vmem:[%s10730_s0 + $0x498] sm:$0xff]  }
   0xb   :  { %7332 = vmatprep.mubr.msk.bf16.mxu0 %vm1906_vm2, %v7875_v10  ;;  %7600 = vmatprep.mubr.msk.bf16.mxu1 %vm1906_vm2, %v7877_v11  ;;  %v7899_v34 = vld [vmem:[%s10730_s0 + $0x70] sm:$0xff]   ;;  %v7901_v35 = vld [vmem:[%s10730_s0 + $0x4a0] sm:$0xff]   ;;  %v7900_v36 = vld [vmem:[%s10730_s0 + $0x78] sm:$0xff]  }
   0xc   :  { %v7902_v37 = vld [vmem:[%s10730_s0 + $0x4a8] sm:$0xff]   ;;  %v7903_v38 = vld [vmem:[%s10730_s0 + $0x80] sm:$0xff]   ;;  %v7905_v39 = vld [vmem:[%s10730_s0 + $0x4b0] sm:$0xff]  }
   0xd   :  { %v7904_v40 = vld [vmem:[%s10730_s0 + $0x88] sm:$0xff]   ;;  %v7906_v41 = vld [vmem:[%s10730_s0 + $0x4b8] sm:$0xff]   ;;  %v7907_v42 = vld [vmem:[%s10730_s0 + $0x90] sm:$0xff]  }
   0xe   :  { %v7909_v43 = vld [vmem:[%s10730_s0 + $0x4c0] sm:$0xff]   ;;  %v7908_v44 = vld [vmem:[%s10730_s0 + $0x98] sm:$0xff]   ;;  %v7910_v45 = vld [vmem:[%s10730_s0 + $0x4c8] sm:$0xff]  }
   0xf   :  { %v7911_v46 = vld [vmem:[%s10730_s0 + $0xa0] sm:$0xff]   ;;  %v7913_v47 = vld [vmem:[%s10730_s0 + $0x4d0] sm:$0xff]   ;;  %v7912_v48 = vld [vmem:[%s10730_s0 + $0xa8] sm:$0xff]  }
  0x10   :  { %v7914_v49 = vld [vmem:[%s10730_s0 + $0x4d8] sm:$0xff]   ;;  %v7915_v50 = vld [vmem:[%s10730_s0 + $0xb0] sm:$0xff]   ;;  %v7917_v51 = vld [vmem:[%s10730_s0 + $0x4e0] sm:$0xff]  }
  0x11   :  { %v7916_v52 = vld [vmem:[%s10730_s0 + $0xb8] sm:$0xff]   ;;  %v7918_v53 = vld [vmem:[%s10730_s0 + $0x4e8] sm:$0xff]   ;;  %v7919_v54 = vld [vmem:[%s10730_s0 + $0xc0] sm:$0xff]  }
  0x12   :  { %7333 = vmatmul.mubr.msk.bf16.gmra.mrb[4].mxu0 %vm1906_vm2, %v7876_v12  ;;  %7601 = vmatmul.mubr.msk.bf16.gmra.mrb[4].mxu1 %vm1906_vm2, %v7878_v13  ;;  %v7921_v55 = vld [vmem:[%s10730_s0 + $0x4f0] sm:$0xff]   ;;  %v7920_v56 = vld [vmem:[%s10730_s0 + $0xc8] sm:$0xff]   ;;  %v7922_v57 = vld [vmem:[%s10730_s0 + $0x4f8] sm:$0xff]  }
  0x13   :  { %7336 = vmatprep.mubr.msk.bf16.mxu0 %vm1906_vm2, %v7879_v14  ;;  %7604 = vmatprep.mubr.msk.bf16.mxu1 %vm1906_vm2, %v7881_v15  ;;  %v7923_v58 = vld [vmem:[%s10730_s0 + $0xd0] sm:$0xff]   ;;  %v7925_v59 = vld [vmem:[%s10730_s0 + $0x500] sm:$0xff]   ;;  %v7924_v60 = vld [vmem:[%s10730_s0 + $0xd8] sm:$0xff]  }
  0x14   :  { %v7926_v61 = vld [vmem:[%s10730_s0 + $0x508] sm:$0xff]   ;;  %v7927_v62 = vld [vmem:[%s10730_s0 + $0xe0] sm:$0xff]   ;;  %v7929_v63 = vld [vmem:[%s10730_s0 + $0x510] sm:$0xff]  }
  0x15   :  { %v7928_v0 = vld [vmem:[%s10730_s0 + $0xe8] sm:$0xff]   ;;  %v7930_v1 = vld [vmem:[%s10730_s0 + $0x518] sm:$0xff]   ;;  %v7931_v2 = vld [vmem:[%s10730_s0 + $0xf0] sm:$0xff]  }
  0x16   :  { %v7933_v3 = vld [vmem:[%s10730_s0 + $0x520] sm:$0xff]   ;;  %v7932_v4 = vld [vmem:[%s10730_s0 + $0xf8] sm:$0xff]   ;;  %v7934_v5 = vld [vmem:[%s10730_s0 + $0x528] sm:$0xff]  }
  0x17   :  { %v7935_v6 = vld [vmem:[%s10730_s0 + $0x100] sm:$0xff]   ;;  %v7937_v7 = vld [vmem:[%s10730_s0 + $0x530] sm:$0xff]   ;;  %v7936_v8 = vld [vmem:[%s10730_s0 + $0x108] sm:$0xff]  }
  0x18   :  { %v7938_v9 = vld [vmem:[%s10730_s0 + $0x538] sm:$0xff]   ;;  %v7939_v10 = vld [vmem:[%s10730_s0 + $0x110] sm:$0xff]   ;;  %v7941_v11 = vld [vmem:[%s10730_s0 + $0x540] sm:$0xff]  }
  0x19   :  { %v7940_v12 = vld [vmem:[%s10730_s0 + $0x118] sm:$0xff]   ;;  %v7942_v13 = vld [vmem:[%s10730_s0 + $0x548] sm:$0xff]   ;;  %v7943_v14 = vld [vmem:[%s10730_s0 + $0x120] sm:$0xff]  }
  0x1a   :  { %7337 = vmatmul.mubr.msk.bf16.gmra.mrb[8].mxu0 %vm1906_vm2, %v7880_v16  ;;  %7605 = vmatmul.mubr.msk.bf16.gmra.mrb[8].mxu1 %vm1906_vm2, %v7882_v17  ;;  %v7945_v15 = vld [vmem:[%s10730_s0 + $0x550] sm:$0xff]   ;;  %v7944_v16 = vld [vmem:[%s10730_s0 + $0x128] sm:$0xff]   ;;  %v7946_v17 = vld [vmem:[%s10730_s0 + $0x558] sm:$0xff]  }
  0x1b   :  { %7340 = vmatprep.mubr.msk.bf16.mxu0 %vm1906_vm2, %v7883_v18  ;;  %7608 = vmatprep.mubr.msk.bf16.mxu1 %vm1906_vm2, %v7885_v19  ;;  %v7947_v18 = vld [vmem:[%s10730_s0 + $0x130] sm:$0xff]   ;;  %v7949_v19 = vld [vmem:[%s10730_s0 + $0x560] sm:$0xff]  }
  0x22   :  { %7341 = vmatmul.mubr.msk.bf16.gmra.mrb[12].mxu0 %vm1906_vm2, %v7884_v20  ;;  %7609 = vmatmul.mubr.msk.bf16.gmra.mrb[12].mxu1 %vm1906_vm2, %v7886_v21  ;;  %v7948_v20 = vld [vmem:[%s10730_s0 + $0x138] sm:$0xff]   ;;  %v7950_v21 = vld [vmem:[%s10730_s0 + $0x568] sm:$0xff]  }
  0x23   :  { %7344 = vmatprep.mubr.msk.bf16.mxu0 %vm1906_vm2, %v7887_v22  ;;  %7612 = vmatprep.mubr.msk.bf16.mxu1 %vm1906_vm2, %v7889_v23  ;;  %v7951_v22 = vld [vmem:[%s10730_s0 + $0x140] sm:$0xff]   ;;  %v7953_v23 = vld [vmem:[%s10730_s0 + $0x570] sm:$0xff]  }
  0x2a   :  { %7345 = vmatmul.mubr.msk.bf16.gmra.mrb[16].mxu0 %vm1906_vm2, %v7888_v24  ;;  %7613 = vmatmul.mubr.msk.bf16.gmra.mrb[16].mxu1 %vm1906_vm2, %v7890_v25  ;;  %v7952_v24 = vld [vmem:[%s10730_s0 + $0x148] sm:$0xff]   ;;  %v7954_v25 = vld [vmem:[%s10730_s0 + $0x578] sm:$0xff]  }
  0x2b   :  { %7348 = vmatprep.mubr.msk.bf16.mxu0 %vm1906_vm2, %v7891_v26  ;;  %7616 = vmatprep.mubr.msk.bf16.mxu1 %vm1906_vm2, %v7893_v27  ;;  %v7955_v26 = vld [vmem:[%s10730_s0 + $0x150] sm:$0xff]   ;;  %v7957_v27 = vld [vmem:[%s10730_s0 + $0x580] sm:$0xff]  }
  0x32   :  { %7349 = vmatmul.mubr.msk.bf16.gmra.mrb[20].mxu0 %vm1906_vm2, %v7892_v28  ;;  %7617 = vmatmul.mubr.msk.bf16.gmra.mrb[20].mxu1 %vm1906_vm2, %v7894_v29  ;;  %v7956_v28 = vld [vmem:[%s10730_s0 + $0x158] sm:$0xff]   ;;  %v7958_v29 = vld [vmem:[%s10730_s0 + $0x588] sm:$0xff]  }
  0x33   :  { %7352 = vmatprep.mubr.msk.bf16.mxu0 %vm1906_vm2, %v7895_v30  ;;  %7620 = vmatprep.mubr.msk.bf16.mxu1 %vm1906_vm2, %v7897_v31  ;;  %v7959_v30 = vld [vmem:[%s10730_s0 + $0x160] sm:$0xff]   ;;  %v7961_v31 = vld [vmem:[%s10730_s0 + $0x590] sm:$0xff]  }
  0x3a   :  { %7353 = vmatmul.mubr.msk.bf16.gmra.mrb[24].mxu0 %vm1906_vm2, %v7896_v32  ;;  %7621 = vmatmul.mubr.msk.bf16.gmra.mrb[24].mxu1 %vm1906_vm2, %v7898_v33  ;;  %v7960_v32 = vld [vmem:[%s10730_s0 + $0x168] sm:$0xff]   ;;  %v7962_v33 = vld [vmem:[%s10730_s0 + $0x598] sm:$0xff]  }
  0x3b   :  { %7356 = vmatprep.mubr.msk.bf16.mxu0 %vm1906_vm2, %v7899_v34  ;;  %7624 = vmatprep.mubr.msk.bf16.mxu1 %vm1906_vm2, %v7901_v35  ;;  %v7963_v34 = vld [vmem:[%s10730_s0 + $0x170] sm:$0xff]   ;;  %v7965_v35 = vld [vmem:[%s10730_s0 + $0x5a0] sm:$0xff]  }
  0x42   :  { %7357 = vmatmul.mubr.msk.bf16.gmra.mrb[28].mxu0 %vm1906_vm2, %v7900_v36  ;;  %7625 = vmatmul.mubr.msk.bf16.gmra.mrb[28].mxu1 %vm1906_vm2, %v7902_v37  ;;  %v7964_v36 = vld [vmem:[%s10730_s0 + $0x178] sm:$0xff]   ;;  %v7966_v37 = vld [vmem:[%s10730_s0 + $0x5a8] sm:$0xff]  }
  0x43   :  { %7360 = vmatprep.mubr.msk.bf16.mxu0 %vm1906_vm2, %v7903_v38  ;;  %7628 = vmatprep.mubr.msk.bf16.mxu1 %vm1906_vm2, %v7905_v39  ;;  %v7967_v38 = vld [vmem:[%s10730_s0 + $0x180] sm:$0xff]   ;;  %v7969_v39 = vld [vmem:[%s10730_s0 + $0x5b0] sm:$0xff]  }
  0x4a   :  { %7361 = vmatmul.mubr.msk.bf16.gmra.mrb[32].mxu0 %vm1906_vm2, %v7904_v40  ;;  %7629 = vmatmul.mubr.msk.bf16.gmra.mrb[32].mxu1 %vm1906_vm2, %v7906_v41  ;;  %v7968_v40 = vld [vmem:[%s10730_s0 + $0x188] sm:$0xff]   ;;  %v7970_v41 = vld [vmem:[%s10730_s0 + $0x5b8] sm:$0xff]  }
  0x4b   :  { %7364 = vmatprep.mubr.msk.bf16.mxu0 %vm1906_vm2, %v7907_v42  ;;  %7632 = vmatprep.mubr.msk.bf16.mxu1 %vm1906_vm2, %v7909_v43  ;;  %v7971_v42 = vld [vmem:[%s10730_s0 + $0x190] sm:$0xff]   ;;  %v7973_v43 = vld [vmem:[%s10730_s0 + $0x5c0] sm:$0xff]  }
  0x52   :  { %7365 = vmatmul.mubr.msk.bf16.gmra.mrb[36].mxu0 %vm1906_vm2, %v7908_v44  ;;  %7633 = vmatmul.mubr.msk.bf16.gmra.mrb[36].mxu1 %vm1906_vm2, %v7910_v45  ;;  %v7972_v44 = vld [vmem:[%s10730_s0 + $0x198] sm:$0xff]   ;;  %v7974_v45 = vld [vmem:[%s10730_s0 + $0x5c8] sm:$0xff]  }
  0x53   :  { %7368 = vmatprep.mubr.msk.bf16.mxu0 %vm1906_vm2, %v7911_v46  ;;  %7636 = vmatprep.mubr.msk.bf16.mxu1 %vm1906_vm2, %v7913_v47  ;;  %v7975_v46 = vld [vmem:[%s10730_s0 + $0x1a0] sm:$0xff]   ;;  %v7977_v47 = vld [vmem:[%s10730_s0 + $0x5d0] sm:$0xff]  }
  0x5a   :  { %7369 = vmatmul.mubr.msk.bf16.gmra.mrb[40].mxu0 %vm1906_vm2, %v7912_v48  ;;  %7637 = vmatmul.mubr.msk.bf16.gmra.mrb[40].mxu1 %vm1906_vm2, %v7914_v49  ;;  %v7976_v48 = vld [vmem:[%s10730_s0 + $0x1a8] sm:$0xff]   ;;  %v7978_v49 = vld [vmem:[%s10730_s0 + $0x5d8] sm:$0xff]  }
  0x5b   :  { %7372 = vmatprep.mubr.msk.bf16.mxu0 %vm1906_vm2, %v7915_v50  ;;  %7640 = vmatprep.mubr.msk.bf16.mxu1 %vm1906_vm2, %v7917_v51  ;;  %v7979_v50 = vld [vmem:[%s10730_s0 + $0x1b0] sm:$0xff]   ;;  %v7981_v51 = vld [vmem:[%s10730_s0 + $0x5e0] sm:$0xff]  }
  0x62   :  { %7373 = vmatmul.mubr.msk.bf16.gmra.mrb[44].mxu0 %vm1906_vm2, %v7916_v52  ;;  %7641 = vmatmul.mubr.msk.bf16.gmra.mrb[44].mxu1 %vm1906_vm2, %v7918_v53  ;;  %v7980_v52 = vld [vmem:[%s10730_s0 + $0x1b8] sm:$0xff]   ;;  %v7982_v53 = vld [vmem:[%s10730_s0 + $0x5e8] sm:$0xff]  }
  0x63   :  { %7376 = vmatprep.mubr.msk.bf16.mxu0 %vm1906_vm2, %v7919_v54  ;;  %7644 = vmatprep.mubr.msk.bf16.mxu1 %vm1906_vm2, %v7921_v55 }
  0x6a   :  { %7377 = vmatmul.mubr.msk.bf16.gmra.mrb[48].mxu0 %vm1906_vm2, %v7920_v56  ;;  %7645 = vmatmul.mubr.msk.bf16.gmra.mrb[48].mxu1 %vm1906_vm2, %v7922_v57 }
  0x6b   :  { %7380 = vmatprep.mubr.msk.bf16.mxu0 %vm1906_vm2, %v7923_v58  ;;  %7648 = vmatprep.mubr.msk.bf16.mxu1 %vm1906_vm2, %v7925_v59 }
  0x72   :  { %7381 = vmatmul.mubr.msk.bf16.gmra.mrb[52].mxu0 %vm1906_vm2, %v7924_v60  ;;  %7649 = vmatmul.mubr.msk.bf16.gmra.mrb[52].mxu1 %vm1906_vm2, %v7926_v61  ;;  %v7983_v60 = vld [vmem:[%s10730_s0 + $0x1c0] sm:$0xff]   ;;  %v7985_v61 = vld [vmem:[%s10730_s0 + $0x5f0] sm:$0xff]  }
  0x73   :  { %7384 = vmatprep.mubr.msk.bf16.mxu0 %vm1906_vm2, %v7927_v62  ;;  %7652 = vmatprep.mubr.msk.bf16.mxu1 %vm1906_vm2, %v7929_v63 }
  0x7a   :  { %7385 = vmatmul.mubr.msk.bf16.gmra.mrb[56].mxu0 %vm1906_vm2, %v7928_v0  ;;  %7653 = vmatmul.mubr.msk.bf16.gmra.mrb[56].mxu1 %vm1906_vm2, %v7930_v1  ;;  %v7984_v0 = vld [vmem:[%s10730_s0 + $0x1c8] sm:$0xff]   ;;  %v7986_v1 = vld [vmem:[%s10730_s0 + $0x5f8] sm:$0xff]  }
  0x7b   :  { %7388 = vmatprep.mubr.msk.bf16.mxu0 %vm1906_vm2, %v7931_v2  ;;  %7656 = vmatprep.mubr.msk.bf16.mxu1 %vm1906_vm2, %v7933_v3 }
  0x82   :  { %7389 = vmatmul.mubr.msk.bf16.gmra.mrb[60].mxu0 %vm1906_vm2, %v7932_v4  ;;  %7657 = vmatmul.mubr.msk.bf16.gmra.mrb[60].mxu1 %vm1906_vm2, %v7934_v5 }
  0x83   :  { %7392 = vmatprep.mubr.msk.bf16.mxu0 %vm1906_vm2, %v7935_v6  ;;  %7660 = vmatprep.mubr.msk.bf16.mxu1 %vm1906_vm2, %v7937_v7 }
  0x8a   :  { %7393 = vmatmul.mubr.msk.bf16.gmra.mrb[64].mxu0 %vm1906_vm2, %v7936_v8  ;;  %7661 = vmatmul.mubr.msk.bf16.gmra.mrb[64].mxu1 %vm1906_vm2, %v7938_v9  ;;  %v7987_v8 = vld [vmem:[%s10730_s0 + $0x1d0] sm:$0xff]   ;;  %v7989_v9 = vld [vmem:[%s10730_s0 + $0x600] sm:$0xff]  }
  0x8b   :  { %7396 = vmatprep.mubr.msk.bf16.mxu0 %vm1906_vm2, %v7939_v10  ;;  %7664 = vmatprep.mubr.msk.bf16.mxu1 %vm1906_vm2, %v7941_v11 }
  0x92   :  { %7397 = vmatmul.mubr.msk.bf16.gmra.mrb[68].mxu0 %vm1906_vm2, %v7940_v12  ;;  %7665 = vmatmul.mubr.msk.bf16.gmra.mrb[68].mxu1 %vm1906_vm2, %v7942_v13  ;;  %v7988_v12 = vld [vmem:[%s10730_s0 + $0x1d8] sm:$0xff]   ;;  %v7990_v13 = vld [vmem:[%s10730_s0 + $0x608] sm:$0xff]  }
  0x93   :  { %7400 = vmatprep.mubr.msk.bf16.mxu0 %vm1906_vm2, %v7943_v14  ;;  %7668 = vmatprep.mubr.msk.bf16.mxu1 %vm1906_vm2, %v7945_v15 }
  0x9a   :  { %7401 = vmatmul.mubr.msk.bf16.gmra.mrb[72].mxu0 %vm1906_vm2, %v7944_v16  ;;  %7669 = vmatmul.mubr.msk.bf16.gmra.mrb[72].mxu1 %vm1906_vm2, %v7946_v17 }
  0x9b   :  { %7404 = vmatprep.mubr.msk.bf16.mxu0 %vm1906_vm2, %v7947_v18  ;;  %7672 = vmatprep.mubr.msk.bf16.mxu1 %vm1906_vm2, %v7949_v19 }
  0xa2   :  { %7405 = vmatmul.mubr.msk.bf16.gmra.mrb[76].mxu0 %vm1906_vm2, %v7948_v20  ;;  %7673 = vmatmul.mubr.msk.bf16.gmra.mrb[76].mxu1 %vm1906_vm2, %v7950_v21  ;;  %v7991_v20 = vld [vmem:[%s10730_s0 + $0x1e0] sm:$0xff]   ;;  %v7993_v21 = vld [vmem:[%s10730_s0 + $0x610] sm:$0xff]  }
  0xa3   :  { %7408 = vmatprep.mubr.msk.bf16.mxu0 %vm1906_vm2, %v7951_v22  ;;  %7676 = vmatprep.mubr.msk.bf16.mxu1 %vm1906_vm2, %v7953_v23 }
  0xaa   :  { %7409 = vmatmul.mubr.msk.bf16.gmra.mrb[80].mxu0 %vm1906_vm2, %v7952_v24  ;;  %7677 = vmatmul.mubr.msk.bf16.gmra.mrb[80].mxu1 %vm1906_vm2, %v7954_v25 }
  0xab   :  { %7412 = vmatprep.mubr.msk.bf16.mxu0 %vm1906_vm2, %v7955_v26  ;;  %7680 = vmatprep.mubr.msk.bf16.mxu1 %vm1906_vm2, %v7957_v27 }
  0xb2   :  { %7413 = vmatmul.mubr.msk.bf16.gmra.mrb[84].mxu0 %vm1906_vm2, %v7956_v28  ;;  %7681 = vmatmul.mubr.msk.bf16.gmra.mrb[84].mxu1 %vm1906_vm2, %v7958_v29  ;;  %v7992_v28 = vld [vmem:[%s10730_s0 + $0x1e8] sm:$0xff]   ;;  %v7994_v29 = vld [vmem:[%s10730_s0 + $0x618] sm:$0xff]  }
  0xb3   :  { %7416 = vmatprep.mubr.msk.bf16.mxu0 %vm1906_vm2, %v7959_v30  ;;  %7684 = vmatprep.mubr.msk.bf16.mxu1 %vm1906_vm2, %v7961_v31 }
  0xba   :  { %7417 = vmatmul.mubr.msk.bf16.gmra.mrb[88].mxu0 %vm1906_vm2, %v7960_v32  ;;  %7685 = vmatmul.mubr.msk.bf16.gmra.mrb[88].mxu1 %vm1906_vm2, %v7962_v33  ;;  %v7995_v32 = vld [vmem:[%s10730_s0 + $0x1f0] sm:$0xff]   ;;  %v7997_v33 = vld [vmem:[%s10730_s0 + $0x620] sm:$0xff]  }
  0xbb   :  { %7420 = vmatprep.mubr.msk.bf16.mxu0 %vm1906_vm2, %v7963_v34  ;;  %7688 = vmatprep.mubr.msk.bf16.mxu1 %vm1906_vm2, %v7965_v35 }
  0xc2   :  { %7421 = vmatmul.mubr.msk.bf16.gmra.mrb[92].mxu0 %vm1906_vm2, %v7964_v36  ;;  %7689 = vmatmul.mubr.msk.bf16.gmra.mrb[92].mxu1 %vm1906_vm2, %v7966_v37 }
  0xc3   :  { %7424 = vmatprep.mubr.msk.bf16.mxu0 %vm1906_vm2, %v7967_v38  ;;  %7692 = vmatprep.mubr.msk.bf16.mxu1 %vm1906_vm2, %v7969_v39 }
  0xca   :  { %7425 = vmatmul.mubr.msk.bf16.gmra.mrb[96].mxu0 %vm1906_vm2, %v7968_v40  ;;  %7693 = vmatmul.mubr.msk.bf16.gmra.mrb[96].mxu1 %vm1906_vm2, %v7970_v41  ;;  %v7996_v40 = vld [vmem:[%s10730_s0 + $0x1f8] sm:$0xff]   ;;  %v7998_v41 = vld [vmem:[%s10730_s0 + $0x628] sm:$0xff]  }
  0xcb   :  { %7428 = vmatprep.mubr.msk.bf16.mxu0 %vm1906_vm2, %v7971_v42  ;;  %7696 = vmatprep.mubr.msk.bf16.mxu1 %vm1906_vm2, %v7973_v43 }
  0xd2   :  { %7429 = vmatmul.mubr.msk.bf16.gmra.mrb[100].mxu0 %vm1906_vm2, %v7972_v44  ;;  %7697 = vmatmul.mubr.msk.bf16.gmra.mrb[100].mxu1 %vm1906_vm2, %v7974_v45  ;;  %v7999_v44 = vld [vmem:[%s10730_s0 + $0x200] sm:$0xff]   ;;  %v8001_v45 = vld [vmem:[%s10730_s0 + $0x630] sm:$0xff]  }
  0xd3   :  { %7432 = vmatprep.mubr.msk.bf16.mxu0 %vm1906_vm2, %v7975_v46  ;;  %7700 = vmatprep.mubr.msk.bf16.mxu1 %vm1906_vm2, %v7977_v47 }
  0xda   :  { %7433 = vmatmul.mubr.msk.bf16.gmra.mrb[104].mxu0 %vm1906_vm2, %v7976_v48  ;;  %7701 = vmatmul.mubr.msk.bf16.gmra.mrb[104].mxu1 %vm1906_vm2, %v7978_v49 }
  0xdb   :  { %7436 = vmatprep.mubr.msk.bf16.mxu0 %vm1906_vm2, %v7979_v50  ;;  %7704 = vmatprep.mubr.msk.bf16.mxu1 %vm1906_vm2, %v7981_v51 }
  0xdd   :  { %v8614_v54 = vpop.f32.mrb[0].mxu0  ;;  %v8616_v55 = vpop.f32.mrb[0].mxu1 }
  0xde   :  { %v8618_v56 = vpop.f32.mrb[1].mxu0  ;;  %v8620_v57 = vpop.f32.mrb[1].mxu1 }
  0xdf   :  { %v8622_v58 = vpop.f32.mrb[2].mxu0  ;;  %v8624_v59 = vpop.f32.mrb[2].mxu1 }
  0xe0   :  { %v8632_v62 = vpop.f32.mrb[3].mxu0  ;;  %v8634_v63 = vpop.f32.mrb[3].mxu1 }
  0xe2   :  { %7437 = vmatmul.mubr.msk.bf16.gmra.mrb[108].mxu0 %vm1906_vm2, %v7980_v52  ;;  %7705 = vmatmul.mubr.msk.bf16.gmra.mrb[108].mxu1 %vm1906_vm2, %v7982_v53  ;;  %v8000_v52 = vld [vmem:[%s10730_s0 + $0x208] sm:$0xff]   ;;  %v8002_v53 = vld [vmem:[%s10730_s0 + $0x638] sm:$0xff]  }
  0xe3   :  { %7440 = vmatprep.mubr.msk.bf16.mxu0 %vm1906_vm2, %v7983_v60  ;;  %7708 = vmatprep.mubr.msk.bf16.mxu1 %vm1906_vm2, %v7985_v61 }
  0xe5   :  { %v8646_v2 = vpop.f32.mrb[4].mxu0  ;;  %v8648_v3 = vpop.f32.mrb[4].mxu1 }
  0xe6   :  { %v8650_v4 = vpop.f32.mrb[5].mxu0  ;;  %v8652_v5 = vpop.f32.mrb[5].mxu1 }
  0xe7   :  { %v8654_v6 = vpop.f32.mrb[6].mxu0  ;;  %v8656_v7 = vpop.f32.mrb[6].mxu1 }
  0xe8   :  { %v8664_v10 = vpop.f32.mrb[7].mxu0  ;;  %v8666_v11 = vpop.f32.mrb[7].mxu1 }
  0xea   :  { %7441 = vmatmul.mubr.msk.bf16.gmra.mrb[112].mxu0 %vm1906_vm2, %v7984_v0  ;;  %7709 = vmatmul.mubr.msk.bf16.gmra.mrb[112].mxu1 %vm1906_vm2, %v7986_v1  ;;  %v8003_v0 = vld [vmem:[%s10730_s0 + $0x210] sm:$0xff]   ;;  %v8005_v1 = vld [vmem:[%s10730_s0 + $0x640] sm:$0xff]  }
  0xeb   :  { %7444 = vmatprep.mubr.msk.bf16.mxu0 %vm1906_vm2, %v7987_v8  ;;  %7712 = vmatprep.mubr.msk.bf16.mxu1 %vm1906_vm2, %v7989_v9 }
  0xed   :  { %v8678_v14 = vpop.f32.mrb[8].mxu0  ;;  %v8680_v15 = vpop.f32.mrb[8].mxu1 }
  0xee   :  { %v8682_v16 = vpop.f32.mrb[9].mxu0  ;;  %v8684_v17 = vpop.f32.mrb[9].mxu1 }
  0xef   :  { %v8686_v18 = vpop.f32.mrb[10].mxu0  ;;  %v8688_v19 = vpop.f32.mrb[10].mxu1 }
  0xf0   :  { %v8696_v22 = vpop.f32.mrb[11].mxu0  ;;  %v8698_v23 = vpop.f32.mrb[11].mxu1 }
  0xf2   :  { %7445 = vmatmul.mubr.msk.bf16.gmra.mrb[116].mxu0 %vm1906_vm2, %v7988_v12  ;;  %7713 = vmatmul.mubr.msk.bf16.gmra.mrb[116].mxu1 %vm1906_vm2, %v7990_v13 }
  0xf3   :  { %7448 = vmatprep.mubr.msk.bf16.mxu0 %vm1906_vm2, %v7991_v20  ;;  %7716 = vmatprep.mubr.msk.bf16.mxu1 %vm1906_vm2, %v7993_v21 }
  0xf5   :  { %v8704_v24 = vpop.f32.mrb[12].mxu0  ;;  %v8706_v25 = vpop.f32.mrb[12].mxu1 }
  0xf6   :  { %v8708_v26 = vpop.f32.mrb[13].mxu0  ;;  %v8710_v27 = vpop.f32.mrb[13].mxu1 }
  0xf7   :  { %v8718_v30 = vpop.f32.mrb[14].mxu0  ;;  %v8720_v31 = vpop.f32.mrb[14].mxu1 }
  0xf8   :  { %v8728_v34 = vpop.f32.mrb[15].mxu0  ;;  %v8730_v35 = vpop.f32.mrb[15].mxu1 }
  0xfa   :  { %7449 = vmatmul.mubr.msk.bf16.gmra.mrb[120].mxu0 %vm1906_vm2, %v7992_v28  ;;  %7717 = vmatmul.mubr.msk.bf16.gmra.mrb[120].mxu1 %vm1906_vm2, %v7994_v29  ;;  %v8004_v28 = vld [vmem:[%s10730_s0 + $0x218] sm:$0xff]   ;;  %v8006_v29 = vld [vmem:[%s10730_s0 + $0x648] sm:$0xff]  }
  0xfb   :  { %7452 = vmatprep.mubr.msk.bf16.mxu0 %vm1906_vm2, %v7995_v32  ;;  %7720 = vmatprep.mubr.msk.bf16.mxu1 %vm1906_vm2, %v7997_v33 }
  0xfd   :  { %v8736_v36 = vpop.f32.mrb[16].mxu0  ;;  %v8738_v37 = vpop.f32.mrb[16].mxu1 }
  0xfe   :  { %v8740_v38 = vpop.f32.mrb[17].mxu0  ;;  %v8742_v39 = vpop.f32.mrb[17].mxu1 }
  0xff   :  { %v8750_v42 = vpop.f32.mrb[18].mxu0  ;;  %v8752_v43 = vpop.f32.mrb[18].mxu1 }
 0x100   :  { %v8760_v46 = vpop.f32.mrb[19].mxu0  ;;  %v8762_v47 = vpop.f32.mrb[19].mxu1 }
 0x102   :  { %7453 = vmatmul.mubr.msk.bf16.gmra.mrb[124].mxu0 %vm1906_vm2, %v7996_v40  ;;  %7721 = vmatmul.mubr.msk.bf16.gmra.mrb[124].mxu1 %vm1906_vm2, %v7998_v41  ;;  %v8007_v40 = vld [vmem:[%s10730_s0 + $0x220] sm:$0xff]   ;;  %v8009_v41 = vld [vmem:[%s10730_s0 + $0x650] sm:$0xff]  }
 0x103   :  { %7456 = vmatprep.mubr.msk.bf16.mxu0 %vm1906_vm2, %v7999_v44  ;;  %7724 = vmatprep.mubr.msk.bf16.mxu1 %vm1906_vm2, %v8001_v45 }
 0x105   :  { %v8768_v48 = vpop.f32.mrb[20].mxu0  ;;  %v8770_v49 = vpop.f32.mrb[20].mxu1 }
 0x106   :  { %10733 = vst [vmem:[#allocation2_spill] sm:$0xff] %v8770_v49  ;;  %v8772_v50 = vpop.f32.mrb[21].mxu0  ;;  %v8774_v51 = vpop.f32.mrb[21].mxu1 }
 0x107   :  { %v8782_v60 = vpop.f32.mrb[22].mxu0  ;;  %v8784_v61 = vpop.f32.mrb[22].mxu1 }
 0x108   :  { %10734 = vst [vmem:[#allocation3_spill] sm:$0xff] %v8782_v60  ;;  %10735 = vst [vmem:[#allocation4_spill] sm:$0xff] %v8784_v61  ;;  %v8792_v8 = vpop.f32.mrb[23].mxu0  ;;  %v8794_v9 = vpop.f32.mrb[23].mxu1 }
 0x10a   :  { %7457 = vmatmul.mubr.msk.bf16.gmra.mrb[128].mxu0 %vm1906_vm2, %v8000_v52  ;;  %7725 = vmatmul.mubr.msk.bf16.gmra.mrb[128].mxu1 %vm1906_vm2, %v8002_v53 }
 0x10b   :  { %7460 = vmatprep.mubr.msk.bf16.mxu0 %vm1906_vm2, %v8003_v0  ;;  %7728 = vmatprep.mubr.msk.bf16.mxu1 %vm1906_vm2, %v8005_v1 }
 0x10d   :  { %v8800_v12 = vpop.f32.mrb[24].mxu0  ;;  %v8802_v13 = vpop.f32.mrb[24].mxu1 }
 0x10e   :  { %10736 = vst [vmem:[#allocation5_spill] sm:$0xff] %v8800_v12  ;;  %10737 = vst [vmem:[#allocation6_spill] sm:$0xff] %v8802_v13  ;;  %v8804_v20 = vpop.f32.mrb[25].mxu0  ;;  %v8806_v21 = vpop.f32.mrb[25].mxu1 }
 0x10f   :  { %v8814_v32 = vpop.f32.mrb[26].mxu0  ;;  %v8816_v33 = vpop.f32.mrb[26].mxu1 }
 0x110   :  { %10738 = vst [vmem:[#allocation7_spill] sm:$0xff] %v8814_v32  ;;  %10739 = vst [vmem:[#allocation8_spill] sm:$0xff] %v8816_v33  ;;  %v8824_v44 = vpop.f32.mrb[27].mxu0  ;;  %v8826_v45 = vpop.f32.mrb[27].mxu1  ;;  %v8008_v33 = vld [vmem:[%s10730_s0 + $0x228] sm:$0xff]  }
 0x111   :  { %10740 = vst [vmem:[#allocation9_spill] sm:$0xff] %v8824_v44  ;;  %10741 = vst [vmem:[#allocation10_spill] sm:$0xff] %v8826_v45 }
 0x112   :  { %7461 = vmatmul.mubr.msk.bf16.gmra.mrb[132].mxu0 %vm1906_vm2, %v8004_v28  ;;  %7729 = vmatmul.mubr.msk.bf16.gmra.mrb[132].mxu1 %vm1906_vm2, %v8006_v29  ;;  %v8010_v28 = vld [vmem:[%s10730_s0 + $0x658] sm:$0xff]  }
 0x113   :  { %7464 = vmatprep.mubr.msk.bf16.mxu0 %vm1906_vm2, %v8007_v40  ;;  %7732 = vmatprep.mubr.msk.bf16.mxu1 %vm1906_vm2, %v8009_v41  ;;  %v8011_v41 = vld [vmem:[%s10730_s0 + $0x230] sm:$0xff]  }
 0x115   :  { %v8832_v52 = vpop.f32.mrb[28].mxu0  ;;  %v8834_v53 = vpop.f32.mrb[28].mxu1 }
 0x116   :  { %10742 = vst [vmem:[#allocation11_spill] sm:$0xff] %v8832_v52  ;;  %10743 = vst [vmem:[#allocation12_spill] sm:$0xff] %v8834_v53  ;;  %v8836_v0 = vpop.f32.mrb[29].mxu0  ;;  %v8838_v1 = vpop.f32.mrb[29].mxu1  ;;  %v8013_v53 = vld [vmem:[%s10730_s0 + $0x660] sm:$0xff]  }
 0x117   :  { %10744 = vst [vmem:[#allocation13_spill] sm:$0xff] %v8836_v0  ;;  %10745 = vst [vmem:[#allocation14_spill] sm:$0xff] %v8838_v1  ;;  %v8846_v29 = vpop.f32.mrb[30].mxu0  ;;  %v8848_v40 = vpop.f32.mrb[30].mxu1  ;;  %v9690_v0 = vld [vmem:[%s10731_s2] ss:$0 sm:$0xff] }
 0x118   :  { %10746 = vst [vmem:[#allocation15_spill] sm:$0xff] %v8846_v29  ;;  %10747 = vst [vmem:[#allocation16_spill] sm:$0xff] %v8848_v40  ;;  %v8856_v52 = vpop.f32.mrb[31].mxu0  ;;  %v8858_v32 = vpop.f32.mrb[31].mxu1 }
 0x119   :  { %10748 = vst [vmem:[#allocation17_spill] sm:$0xff] %v8856_v52  ;;  %10749 = vst [vmem:[#allocation18_spill] sm:$0xff] %v8858_v32  ;;  %v8012_v32 = vld [vmem:[%s10730_s0 + $0x238] sm:$0xff]  }
 0x11a   :  { %7465 = vmatmul.mubr.msk.bf16.gmra.mrb[136].mxu0 %vm1906_vm2, %v8008_v33  ;;  %7733 = vmatmul.mubr.msk.bf16.gmra.mrb[136].mxu1 %vm1906_vm2, %v8010_v28  ;;  %v8014_v33 = vld [vmem:[%s10730_s0 + $0x668] sm:$0xff]  }
 0x11b   :  { %7468 = vmatprep.mubr.msk.bf16.mxu0 %vm1906_vm2, %v8011_v41  ;;  %7736 = vmatprep.mubr.msk.bf16.mxu1 %vm1906_vm2, %v8013_v53  ;;  %v8015_v53 = vld [vmem:[%s10730_s0 + $0x240] sm:$0xff]  }
 0x11d   :  { %v8864_v40 = vpop.f32.mrb[32].mxu0  ;;  %v8866_v29 = vpop.f32.mrb[32].mxu1 }
 0x11e   :  { %10750 = vst [vmem:[#allocation19_spill] sm:$0xff] %v8864_v40  ;;  %10751 = vst [vmem:[#allocation20_spill] sm:$0xff] %v8866_v29  ;;  %v8868_v13 = vpop.f32.mrb[33].mxu0  ;;  %v8870_v1 = vpop.f32.mrb[33].mxu1  ;;  %v8017_v29 = vld [vmem:[%s10730_s0 + $0x670] sm:$0xff]  }
 0x11f   :  { %10752 = vst [vmem:[#allocation21_spill] sm:$0xff] %v8868_v13  ;;  %10753 = vst [vmem:[#allocation22_spill] sm:$0xff] %v8870_v1  ;;  %v8878_v28 = vpop.f32.mrb[34].mxu0  ;;  %v8880_v41 = vpop.f32.mrb[34].mxu1 }
 0x120   :  { %10754 = vst [vmem:[#allocation23_spill] sm:$0xff] %v8878_v28  ;;  %10755 = vst [vmem:[#allocation24_spill] sm:$0xff] %v8880_v41  ;;  %v8888_v40 = vpop.f32.mrb[35].mxu0  ;;  %v8890_v1 = vpop.f32.mrb[35].mxu1 }
 0x121   :  { %10756 = vst [vmem:[#allocation25_spill] sm:$0xff] %v8888_v40  ;;  %10757 = vst [vmem:[#allocation26_spill] sm:$0xff] %v8890_v1  ;;  %v8016_v1 = vld [vmem:[%s10730_s0 + $0x248] sm:$0xff]  }
 0x122   :  { %7469 = vmatmul.mubr.msk.bf16.gmra.mrb[140].mxu0 %vm1906_vm2, %v8012_v32  ;;  %7737 = vmatmul.mubr.msk.bf16.gmra.mrb[140].mxu1 %vm1906_vm2, %v8014_v33  ;;  %v8018_v32 = vld [vmem:[%s10730_s0 + $0x678] sm:$0xff]  }
 0x123   :  { %7472 = vmatprep.mubr.msk.bf16.mxu0 %vm1906_vm2, %v8015_v53  ;;  %7740 = vmatprep.mubr.msk.bf16.mxu1 %vm1906_vm2, %v8017_v29  ;;  %v8019_v29 = vld [vmem:[%s10730_s0 + $0x250] sm:$0xff]  }
 0x125   :  { %v8896_v41 = vpop.f32.mrb[36].mxu0  ;;  %v8898_v28 = vpop.f32.mrb[36].mxu1 }
 0x126   :  { %10758 = vst [vmem:[#allocation27_spill] sm:$0xff] %v8896_v41  ;;  %10759 = vst [vmem:[#allocation28_spill] sm:$0xff] %v8898_v28  ;;  %v8900_v13 = vpop.f32.mrb[37].mxu0  ;;  %v8902_v52 = vpop.f32.mrb[37].mxu1  ;;  %v8021_v28 = vld [vmem:[%s10730_s0 + $0x680] sm:$0xff]  }
 0x127   :  { %10760 = vst [vmem:[#allocation29_spill] sm:$0xff] %v8900_v13  ;;  %10761 = vst [vmem:[#allocation30_spill] sm:$0xff] %v8902_v52  ;;  %v8910_v33 = vpop.f32.mrb[38].mxu0  ;;  %v8912_v53 = vpop.f32.mrb[38].mxu1 }
 0x128   :  { %10762 = vst [vmem:[#allocation31_spill] sm:$0xff] %v8910_v33  ;;  %10763 = vst [vmem:[#allocation32_spill] sm:$0xff] %v8912_v53  ;;  %v8920_v41 = vpop.f32.mrb[39].mxu0  ;;  %v8922_v52 = vpop.f32.mrb[39].mxu1 }
 0x129   :  { %10764 = vst [vmem:[#allocation33_spill] sm:$0xff] %v8920_v41  ;;  %10765 = vst [vmem:[#allocation34_spill] sm:$0xff] %v8922_v52  ;;  %v8020_v52 = vld [vmem:[%s10730_s0 + $0x258] sm:$0xff]  }
 0x12a   :  { %7473 = vmatmul.mubr.msk.bf16.gmra.mrb[144].mxu0 %vm1906_vm2, %v8016_v1  ;;  %7741 = vmatmul.mubr.msk.bf16.gmra.mrb[144].mxu1 %vm1906_vm2, %v8018_v32  ;;  %v8022_v1 = vld [vmem:[%s10730_s0 + $0x688] sm:$0xff]  }
 0x12b   :  { %7476 = vmatprep.mubr.msk.bf16.mxu0 %vm1906_vm2, %v8019_v29  ;;  %7744 = vmatprep.mubr.msk.bf16.mxu1 %vm1906_vm2, %v8021_v28  ;;  %v8023_v28 = vld [vmem:[%s10730_s0 + $0x260] sm:$0xff]  }
 0x12d   :  { %v8928_v53 = vpop.f32.mrb[40].mxu0  ;;  %v8930_v33 = vpop.f32.mrb[40].mxu1 }
 0x12e   :  { %10766 = vst [vmem:[#allocation35_spill] sm:$0xff] %v8928_v53  ;;  %10767 = vst [vmem:[#allocation36_spill] sm:$0xff] %v8930_v33  ;;  %v8932_v13 = vpop.f32.mrb[41].mxu0  ;;  %v8934_v40 = vpop.f32.mrb[41].mxu1  ;;  %v8025_v33 = vld [vmem:[%s10730_s0 + $0x690] sm:$0xff]  }
 0x12f   :  { %10768 = vst [vmem:[#allocation37_spill] sm:$0xff] %v8932_v13  ;;  %10769 = vst [vmem:[#allocation38_spill] sm:$0xff] %v8934_v40  ;;  %v8942_v32 = vpop.f32.mrb[42].mxu0  ;;  %v8944_v29 = vpop.f32.mrb[42].mxu1 }
 0x130   :  { %10770 = vst [vmem:[#allocation39_spill] sm:$0xff] %v8942_v32  ;;  %10771 = vst [vmem:[#allocation40_spill] sm:$0xff] %v8944_v29  ;;  %v8952_v53 = vpop.f32.mrb[43].mxu0  ;;  %v8954_v40 = vpop.f32.mrb[43].mxu1 }
 0x131   :  { %10772 = vst [vmem:[#allocation41_spill] sm:$0xff] %v8952_v53  ;;  %10773 = vst [vmem:[#allocation42_spill] sm:$0xff] %v8954_v40  ;;  %v8024_v40 = vld [vmem:[%s10730_s0 + $0x268] sm:$0xff]  }
 0x132   :  { %7477 = vmatmul.mubr.msk.bf16.gmra.mrb[148].mxu0 %vm1906_vm2, %v8020_v52  ;;  %7745 = vmatmul.mubr.msk.bf16.gmra.mrb[148].mxu1 %vm1906_vm2, %v8022_v1  ;;  %v8026_v52 = vld [vmem:[%s10730_s0 + $0x698] sm:$0xff]  }
 0x133   :  { %7480 = vmatprep.mubr.msk.bf16.mxu0 %vm1906_vm2, %v8023_v28  ;;  %7748 = vmatprep.mubr.msk.bf16.mxu1 %vm1906_vm2, %v8025_v33  ;;  %v8027_v33 = vld [vmem:[%s10730_s0 + $0x270] sm:$0xff]  }
 0x135   :  { %v8960_v29 = vpop.f32.mrb[44].mxu0  ;;  %v8962_v32 = vpop.f32.mrb[44].mxu1 }
 0x136   :  { %10774 = vst [vmem:[#allocation43_spill] sm:$0xff] %v8960_v29  ;;  %10775 = vst [vmem:[#allocation44_spill] sm:$0xff] %v8962_v32  ;;  %v8964_v13 = vpop.f32.mrb[45].mxu0  ;;  %v8966_v41 = vpop.f32.mrb[45].mxu1  ;;  %v8029_v32 = vld [vmem:[%s10730_s0 + $0x6a0] sm:$0xff]  }
 0x137   :  { %10776 = vst [vmem:[#allocation45_spill] sm:$0xff] %v8964_v13  ;;  %10777 = vst [vmem:[#allocation46_spill] sm:$0xff] %v8966_v41  ;;  %v8974_v1 = vpop.f32.mrb[46].mxu0  ;;  %v8976_v28 = vpop.f32.mrb[46].mxu1 }
 0x138   :  { %10778 = vst [vmem:[#allocation47_spill] sm:$0xff] %v8974_v1  ;;  %10779 = vst [vmem:[#allocation48_spill] sm:$0xff] %v8976_v28  ;;  %v8984_v29 = vpop.f32.mrb[47].mxu0  ;;  %v8986_v41 = vpop.f32.mrb[47].mxu1 }
 0x139   :  { %10780 = vst [vmem:[#allocation49_spill] sm:$0xff] %v8984_v29  ;;  %10781 = vst [vmem:[#allocation50_spill] sm:$0xff] %v8986_v41  ;;  %v8028_v41 = vld [vmem:[%s10730_s0 + $0x278] sm:$0xff]  }
 0x13a   :  { %7481 = vmatmul.mubr.msk.bf16.gmra.mrb[152].mxu0 %vm1906_vm2, %v8024_v40  ;;  %7749 = vmatmul.mubr.msk.bf16.gmra.mrb[152].mxu1 %vm1906_vm2, %v8026_v52  ;;  %v8030_v40 = vld [vmem:[%s10730_s0 + $0x6a8] sm:$0xff]  }
 0x13b   :  { %7484 = vmatprep.mubr.msk.bf16.mxu0 %vm1906_vm2, %v8027_v33  ;;  %7752 = vmatprep.mubr.msk.bf16.mxu1 %vm1906_vm2, %v8029_v32  ;;  %v8031_v32 = vld [vmem:[%s10730_s0 + $0x280] sm:$0xff]  }
 0x13d   :  { %v8992_v28 = vpop.f32.mrb[48].mxu0  ;;  %v8994_v1 = vpop.f32.mrb[48].mxu1 }
 0x13e   :  { %10782 = vst [vmem:[#allocation51_spill] sm:$0xff] %v8992_v28  ;;  %10783 = vst [vmem:[#allocation52_spill] sm:$0xff] %v8994_v1  ;;  %v8996_v13 = vpop.f32.mrb[49].mxu0  ;;  %v8998_v53 = vpop.f32.mrb[49].mxu1  ;;  %v8033_v1 = vld [vmem:[%s10730_s0 + $0x6b0] sm:$0xff]  }
 0x13f   :  { %10784 = vst [vmem:[#allocation53_spill] sm:$0xff] %v8996_v13  ;;  %10785 = vst [vmem:[#allocation54_spill] sm:$0xff] %v8998_v53  ;;  %v9006_v52 = vpop.f32.mrb[50].mxu0  ;;  %v9008_v33 = vpop.f32.mrb[50].mxu1 }
 0x140   :  { %10786 = vst [vmem:[#allocation55_spill] sm:$0xff] %v9006_v52  ;;  %10787 = vst [vmem:[#allocation56_spill] sm:$0xff] %v9008_v33  ;;  %v9016_v28 = vpop.f32.mrb[51].mxu0  ;;  %v9018_v53 = vpop.f32.mrb[51].mxu1 }
 0x141   :  { %10788 = vst [vmem:[#allocation57_spill] sm:$0xff] %v9016_v28  ;;  %10789 = vst [vmem:[#allocation58_spill] sm:$0xff] %v9018_v53  ;;  %v8032_v53 = vld [vmem:[%s10730_s0 + $0x288] sm:$0xff]  }
 0x142   :  { %7485 = vmatmul.mubr.msk.bf16.gmra.mrb[156].mxu0 %vm1906_vm2, %v8028_v41  ;;  %7753 = vmatmul.mubr.msk.bf16.gmra.mrb[156].mxu1 %vm1906_vm2, %v8030_v40  ;;  %v8034_v41 = vld [vmem:[%s10730_s0 + $0x6b8] sm:$0xff]  }
 0x143   :  { %7488 = vmatprep.mubr.msk.bf16.mxu0 %vm1906_vm2, %v8031_v32  ;;  %7756 = vmatprep.mubr.msk.bf16.mxu1 %vm1906_vm2, %v8033_v1  ;;  %v8035_v1 = vld [vmem:[%s10730_s0 + $0x290] sm:$0xff]  }
 0x145   :  { %v9024_v33 = vpop.f32.mrb[52].mxu0  ;;  %v9026_v52 = vpop.f32.mrb[52].mxu1 }
 0x146   :  { %10790 = vst [vmem:[#allocation59_spill] sm:$0xff] %v9024_v33  ;;  %10791 = vst [vmem:[#allocation60_spill] sm:$0xff] %v9026_v52  ;;  %v9028_v13 = vpop.f32.mrb[53].mxu0  ;;  %v9030_v29 = vpop.f32.mrb[53].mxu1  ;;  %v8037_v52 = vld [vmem:[%s10730_s0 + $0x6c0] sm:$0xff]  }
 0x147   :  { %10792 = vst [vmem:[#allocation61_spill] sm:$0xff] %v9028_v13  ;;  %10793 = vst [vmem:[#allocation62_spill] sm:$0xff] %v9030_v29  ;;  %v9038_v40 = vpop.f32.mrb[54].mxu0  ;;  %v9040_v32 = vpop.f32.mrb[54].mxu1 }
 0x148   :  { %10794 = vst [vmem:[#allocation63_spill] sm:$0xff] %v9038_v40  ;;  %10795 = vst [vmem:[#allocation64_spill] sm:$0xff] %v9040_v32  ;;  %v9048_v33 = vpop.f32.mrb[55].mxu0  ;;  %v9050_v29 = vpop.f32.mrb[55].mxu1 }
 0x149   :  { %10796 = vst [vmem:[#allocation65_spill] sm:$0xff] %v9048_v33  ;;  %10797 = vst [vmem:[#allocation66_spill] sm:$0xff] %v9050_v29  ;;  %v8036_v29 = vld [vmem:[%s10730_s0 + $0x298] sm:$0xff]  }
 0x14a   :  { %7489 = vmatmul.mubr.msk.bf16.gmra.mrb[160].mxu0 %vm1906_vm2, %v8032_v53  ;;  %7757 = vmatmul.mubr.msk.bf16.gmra.mrb[160].mxu1 %vm1906_vm2, %v8034_v41  ;;  %v8038_v53 = vld [vmem:[%s10730_s0 + $0x6c8] sm:$0xff]  }
 0x14b   :  { %7492 = vmatprep.mubr.msk.bf16.mxu0 %vm1906_vm2, %v8035_v1  ;;  %7760 = vmatprep.mubr.msk.bf16.mxu1 %vm1906_vm2, %v8037_v52  ;;  %v8039_v52 = vld [vmem:[%s10730_s0 + $0x2a0] sm:$0xff]  }
 0x14d   :  { %v9056_v32 = vpop.f32.mrb[56].mxu0  ;;  %v9058_v40 = vpop.f32.mrb[56].mxu1 }
 0x14e   :  { %10798 = vst [vmem:[#allocation67_spill] sm:$0xff] %v9056_v32  ;;  %10799 = vst [vmem:[#allocation68_spill] sm:$0xff] %v9058_v40  ;;  %v9060_v13 = vpop.f32.mrb[57].mxu0  ;;  %v9062_v28 = vpop.f32.mrb[57].mxu1  ;;  %v8041_v40 = vld [vmem:[%s10730_s0 + $0x6d0] sm:$0xff]  }
 0x14f   :  { %10800 = vst [vmem:[#allocation69_spill] sm:$0xff] %v9060_v13  ;;  %10801 = vst [vmem:[#allocation70_spill] sm:$0xff] %v9062_v28  ;;  %v9070_v41 = vpop.f32.mrb[58].mxu0  ;;  %v9072_v1 = vpop.f32.mrb[58].mxu1 }
 0x150   :  { %10802 = vst [vmem:[#allocation71_spill] sm:$0xff] %v9070_v41  ;;  %10803 = vst [vmem:[#allocation72_spill] sm:$0xff] %v9072_v1  ;;  %v9080_v32 = vpop.f32.mrb[59].mxu0  ;;  %v9082_v28 = vpop.f32.mrb[59].mxu1 }
 0x151   :  { %10804 = vst [vmem:[#allocation73_spill] sm:$0xff] %v9080_v32  ;;  %10805 = vst [vmem:[#allocation74_spill] sm:$0xff] %v9082_v28  ;;  %v8040_v28 = vld [vmem:[%s10730_s0 + $0x2a8] sm:$0xff]  }
 0x152   :  { %7493 = vmatmul.mubr.msk.bf16.gmra.mrb[164].mxu0 %vm1906_vm2, %v8036_v29  ;;  %7761 = vmatmul.mubr.msk.bf16.gmra.mrb[164].mxu1 %vm1906_vm2, %v8038_v53  ;;  %v8042_v29 = vld [vmem:[%s10730_s0 + $0x6d8] sm:$0xff]  }
 0x153   :  { %7496 = vmatprep.mubr.msk.bf16.mxu0 %vm1906_vm2, %v8039_v52  ;;  %7764 = vmatprep.mubr.msk.bf16.mxu1 %vm1906_vm2, %v8041_v40  ;;  %v8043_v40 = vld [vmem:[%s10730_s0 + $0x2b0] sm:$0xff]  }
 0x155   :  { %v9088_v1 = vpop.f32.mrb[60].mxu0  ;;  %v9090_v41 = vpop.f32.mrb[60].mxu1 }
 0x156   :  { %10806 = vst [vmem:[#allocation75_spill] sm:$0xff] %v9088_v1  ;;  %10807 = vst [vmem:[#allocation76_spill] sm:$0xff] %v9090_v41  ;;  %v9092_v13 = vpop.f32.mrb[61].mxu0  ;;  %v9094_v33 = vpop.f32.mrb[61].mxu1  ;;  %v8045_v41 = vld [vmem:[%s10730_s0 + $0x6e0] sm:$0xff]  }
 0x157   :  { %10808 = vst [vmem:[#allocation77_spill] sm:$0xff] %v9092_v13  ;;  %10809 = vst [vmem:[#allocation78_spill] sm:$0xff] %v9094_v33  ;;  %v9102_v53 = vpop.f32.mrb[62].mxu0  ;;  %v9104_v52 = vpop.f32.mrb[62].mxu1 }
 0x158   :  { %10810 = vst [vmem:[#allocation79_spill] sm:$0xff] %v9102_v53  ;;  %10811 = vst [vmem:[#allocation80_spill] sm:$0xff] %v9104_v52  ;;  %v9112_v1 = vpop.f32.mrb[63].mxu0  ;;  %v9114_v33 = vpop.f32.mrb[63].mxu1 }
 0x159   :  { %10812 = vst [vmem:[#allocation81_spill] sm:$0xff] %v9112_v1  ;;  %10813 = vst [vmem:[#allocation82_spill] sm:$0xff] %v9114_v33  ;;  %v8044_v33 = vld [vmem:[%s10730_s0 + $0x2b8] sm:$0xff]  }
 0x15a   :  { %7497 = vmatmul.mubr.msk.bf16.gmra.mrb[168].mxu0 %vm1906_vm2, %v8040_v28  ;;  %7765 = vmatmul.mubr.msk.bf16.gmra.mrb[168].mxu1 %vm1906_vm2, %v8042_v29  ;;  %v8046_v28 = vld [vmem:[%s10730_s0 + $0x6e8] sm:$0xff]  }
 0x15b   :  { %7500 = vmatprep.mubr.msk.bf16.mxu0 %vm1906_vm2, %v8043_v40  ;;  %7768 = vmatprep.mubr.msk.bf16.mxu1 %vm1906_vm2, %v8045_v41  ;;  %v8047_v41 = vld [vmem:[%s10730_s0 + $0x2c0] sm:$0xff]  }
 0x15d   :  { %v9120_v52 = vpop.f32.mrb[64].mxu0  ;;  %v9122_v53 = vpop.f32.mrb[64].mxu1 }
 0x15e   :  { %10814 = vst [vmem:[#allocation83_spill] sm:$0xff] %v9120_v52  ;;  %10815 = vst [vmem:[#allocation84_spill] sm:$0xff] %v9122_v53  ;;  %v9124_v13 = vpop.f32.mrb[65].mxu0  ;;  %v9126_v32 = vpop.f32.mrb[65].mxu1  ;;  %v8049_v53 = vld [vmem:[%s10730_s0 + $0x6f0] sm:$0xff]  }
 0x15f   :  { %10816 = vst [vmem:[#allocation85_spill] sm:$0xff] %v9124_v13  ;;  %10817 = vst [vmem:[#allocation86_spill] sm:$0xff] %v9126_v32  ;;  %v9134_v29 = vpop.f32.mrb[66].mxu0  ;;  %v9136_v40 = vpop.f32.mrb[66].mxu1 }
 0x160   :  { %10818 = vst [vmem:[#allocation87_spill] sm:$0xff] %v9134_v29  ;;  %10819 = vst [vmem:[#allocation88_spill] sm:$0xff] %v9136_v40  ;;  %v9144_v52 = vpop.f32.mrb[67].mxu0  ;;  %v9146_v32 = vpop.f32.mrb[67].mxu1 }
 0x161   :  { %10820 = vst [vmem:[#allocation89_spill] sm:$0xff] %v9144_v52  ;;  %10821 = vst [vmem:[#allocation90_spill] sm:$0xff] %v9146_v32  ;;  %v8048_v32 = vld [vmem:[%s10730_s0 + $0x2c8] sm:$0xff]  }
 0x162   :  { %7501 = vmatmul.mubr.msk.bf16.gmra.mrb[172].mxu0 %vm1906_vm2, %v8044_v33  ;;  %7769 = vmatmul.mubr.msk.bf16.gmra.mrb[172].mxu1 %vm1906_vm2, %v8046_v28  ;;  %v8050_v33 = vld [vmem:[%s10730_s0 + $0x6f8] sm:$0xff]  }
 0x163   :  { %7504 = vmatprep.mubr.msk.bf16.mxu0 %vm1906_vm2, %v8047_v41  ;;  %7772 = vmatprep.mubr.msk.bf16.mxu1 %vm1906_vm2, %v8049_v53  ;;  %v8051_v53 = vld [vmem:[%s10730_s0 + $0x2d0] sm:$0xff]  }
 0x165   :  { %v9152_v40 = vpop.f32.mrb[68].mxu0  ;;  %v9154_v29 = vpop.f32.mrb[68].mxu1 }
 0x166   :  { %10822 = vst [vmem:[#allocation91_spill] sm:$0xff] %v9152_v40  ;;  %10823 = vst [vmem:[#allocation92_spill] sm:$0xff] %v9154_v29  ;;  %v9156_v13 = vpop.f32.mrb[69].mxu0  ;;  %v9158_v1 = vpop.f32.mrb[69].mxu1  ;;  %v8053_v29 = vld [vmem:[%s10730_s0 + $0x700] sm:$0xff]  }
 0x167   :  { %10824 = vst [vmem:[#allocation93_spill] sm:$0xff] %v9156_v13  ;;  %10825 = vst [vmem:[#allocation94_spill] sm:$0xff] %v9158_v1  ;;  %v9166_v28 = vpop.f32.mrb[70].mxu0  ;;  %v9168_v41 = vpop.f32.mrb[70].mxu1 }
 0x168   :  { %10826 = vst [vmem:[#allocation95_spill] sm:$0xff] %v9166_v28  ;;  %10827 = vst [vmem:[#allocation96_spill] sm:$0xff] %v9168_v41  ;;  %v9176_v40 = vpop.f32.mrb[71].mxu0  ;;  %v9178_v1 = vpop.f32.mrb[71].mxu1 }
 0x169   :  { %10828 = vst [vmem:[#allocation97_spill] sm:$0xff] %v9176_v40  ;;  %10829 = vst [vmem:[#allocation98_spill] sm:$0xff] %v9178_v1  ;;  %v8052_v1 = vld [vmem:[%s10730_s0 + $0x2d8] sm:$0xff]  }
 0x16a   :  { %7505 = vmatmul.mubr.msk.bf16.gmra.mrb[176].mxu0 %vm1906_vm2, %v8048_v32  ;;  %7773 = vmatmul.mubr.msk.bf16.gmra.mrb[176].mxu1 %vm1906_vm2, %v8050_v33  ;;  %v8054_v32 = vld [vmem:[%s10730_s0 + $0x708] sm:$0xff]  }
 0x16b   :  { %7508 = vmatprep.mubr.msk.bf16.mxu0 %vm1906_vm2, %v8051_v53  ;;  %7776 = vmatprep.mubr.msk.bf16.mxu1 %vm1906_vm2, %v8053_v29  ;;  %v8055_v29 = vld [vmem:[%s10730_s0 + $0x2e0] sm:$0xff]  }
 0x16d   :  { %v9184_v41 = vpop.f32.mrb[72].mxu0  ;;  %v9186_v28 = vpop.f32.mrb[72].mxu1 }
 0x16e   :  { %10830 = vst [vmem:[#allocation99_spill] sm:$0xff] %v9184_v41  ;;  %10831 = vst [vmem:[#allocation100_spill] sm:$0xff] %v9186_v28  ;;  %v9188_v13 = vpop.f32.mrb[73].mxu0  ;;  %v9190_v52 = vpop.f32.mrb[73].mxu1  ;;  %v8057_v28 = vld [vmem:[%s10730_s0 + $0x710] sm:$0xff]  }
 0x16f   :  { %10832 = vst [vmem:[#allocation101_spill] sm:$0xff] %v9188_v13  ;;  %10833 = vst [vmem:[#allocation102_spill] sm:$0xff] %v9190_v52  ;;  %v9198_v33 = vpop.f32.mrb[74].mxu0  ;;  %v9200_v53 = vpop.f32.mrb[74].mxu1 }
 0x170   :  { %10834 = vst [vmem:[#allocation103_spill] sm:$0xff] %v9198_v33  ;;  %10835 = vst [vmem:[#allocation104_spill] sm:$0xff] %v9200_v53  ;;  %v9208_v41 = vpop.f32.mrb[75].mxu0  ;;  %v9210_v52 = vpop.f32.mrb[75].mxu1 }
 0x171   :  { %10836 = vst [vmem:[#allocation105_spill] sm:$0xff] %v9208_v41  ;;  %10837 = vst [vmem:[#allocation106_spill] sm:$0xff] %v9210_v52  ;;  %v8056_v52 = vld [vmem:[%s10730_s0 + $0x2e8] sm:$0xff]  }
 0x172   :  { %7509 = vmatmul.mubr.msk.bf16.gmra.mrb[180].mxu0 %vm1906_vm2, %v8052_v1  ;;  %7777 = vmatmul.mubr.msk.bf16.gmra.mrb[180].mxu1 %vm1906_vm2, %v8054_v32  ;;  %v8058_v1 = vld [vmem:[%s10730_s0 + $0x718] sm:$0xff]  }
 0x173   :  { %7512 = vmatprep.mubr.msk.bf16.mxu0 %vm1906_vm2, %v8055_v29  ;;  %7780 = vmatprep.mubr.msk.bf16.mxu1 %vm1906_vm2, %v8057_v28  ;;  %v8059_v28 = vld [vmem:[%s10730_s0 + $0x2f0] sm:$0xff]  }
 0x175   :  { %v9216_v53 = vpop.f32.mrb[76].mxu0  ;;  %v9218_v33 = vpop.f32.mrb[76].mxu1 }
 0x176   :  { %10838 = vst [vmem:[#allocation107_spill] sm:$0xff] %v9216_v53  ;;  %10839 = vst [vmem:[#allocation108_spill] sm:$0xff] %v9218_v33  ;;  %v9220_v13 = vpop.f32.mrb[77].mxu0  ;;  %v9222_v40 = vpop.f32.mrb[77].mxu1  ;;  %v8061_v33 = vld [vmem:[%s10730_s0 + $0x720] sm:$0xff]  }
 0x177   :  { %10840 = vst [vmem:[#allocation109_spill] sm:$0xff] %v9220_v13  ;;  %10841 = vst [vmem:[#allocation110_spill] sm:$0xff] %v9222_v40  ;;  %v9230_v32 = vpop.f32.mrb[78].mxu0  ;;  %v9232_v29 = vpop.f32.mrb[78].mxu1 }
 0x178   :  { %10842 = vst [vmem:[#allocation111_spill] sm:$0xff] %v9230_v32  ;;  %10843 = vst [vmem:[#allocation112_spill] sm:$0xff] %v9232_v29  ;;  %v9240_v53 = vpop.f32.mrb[79].mxu0  ;;  %v9242_v40 = vpop.f32.mrb[79].mxu1 }
 0x179   :  { %10844 = vst [vmem:[#allocation113_spill] sm:$0xff] %v9240_v53  ;;  %10845 = vst [vmem:[#allocation114_spill] sm:$0xff] %v9242_v40  ;;  %v8060_v40 = vld [vmem:[%s10730_s0 + $0x2f8] sm:$0xff]  }
 0x17a   :  { %7513 = vmatmul.mubr.msk.bf16.gmra.mrb[184].mxu0 %vm1906_vm2, %v8056_v52  ;;  %7781 = vmatmul.mubr.msk.bf16.gmra.mrb[184].mxu1 %vm1906_vm2, %v8058_v1  ;;  %v8062_v52 = vld [vmem:[%s10730_s0 + $0x728] sm:$0xff]  }
 0x17b   :  { %7516 = vmatprep.mubr.msk.bf16.mxu0 %vm1906_vm2, %v8059_v28  ;;  %7784 = vmatprep.mubr.msk.bf16.mxu1 %vm1906_vm2, %v8061_v33  ;;  %v8063_v33 = vld [vmem:[%s10730_s0 + $0x300] sm:$0xff]  }
 0x17d   :  { %v9248_v29 = vpop.f32.mrb[80].mxu0  ;;  %v9250_v32 = vpop.f32.mrb[80].mxu1 }
 0x17e   :  { %10846 = vst [vmem:[#allocation115_spill] sm:$0xff] %v9248_v29  ;;  %10847 = vst [vmem:[#allocation116_spill] sm:$0xff] %v9250_v32  ;;  %v9252_v13 = vpop.f32.mrb[81].mxu0  ;;  %v9254_v41 = vpop.f32.mrb[81].mxu1  ;;  %v8065_v32 = vld [vmem:[%s10730_s0 + $0x730] sm:$0xff]  }
 0x17f   :  { %10848 = vst [vmem:[#allocation117_spill] sm:$0xff] %v9252_v13  ;;  %10849 = vst [vmem:[#allocation118_spill] sm:$0xff] %v9254_v41  ;;  %v9262_v1 = vpop.f32.mrb[82].mxu0  ;;  %v9264_v28 = vpop.f32.mrb[82].mxu1 }
 0x180   :  { %10850 = vst [vmem:[#allocation119_spill] sm:$0xff] %v9262_v1  ;;  %10851 = vst [vmem:[#allocation120_spill] sm:$0xff] %v9264_v28  ;;  %v9272_v29 = vpop.f32.mrb[83].mxu0  ;;  %v9274_v41 = vpop.f32.mrb[83].mxu1 }
 0x181   :  { %10852 = vst [vmem:[#allocation121_spill] sm:$0xff] %v9272_v29  ;;  %10853 = vst [vmem:[#allocation122_spill] sm:$0xff] %v9274_v41  ;;  %v8064_v41 = vld [vmem:[%s10730_s0 + $0x308] sm:$0xff]  }
 0x182   :  { %7517 = vmatmul.mubr.msk.bf16.gmra.mrb[188].mxu0 %vm1906_vm2, %v8060_v40  ;;  %7785 = vmatmul.mubr.msk.bf16.gmra.mrb[188].mxu1 %vm1906_vm2, %v8062_v52  ;;  %v8066_v40 = vld [vmem:[%s10730_s0 + $0x738] sm:$0xff]  }
 0x183   :  { %7520 = vmatprep.mubr.msk.bf16.mxu0 %vm1906_vm2, %v8063_v33  ;;  %7788 = vmatprep.mubr.msk.bf16.mxu1 %vm1906_vm2, %v8065_v32  ;;  %v8067_v32 = vld [vmem:[%s10730_s0 + $0x310] sm:$0xff]  }
 0x185   :  { %v9280_v28 = vpop.f32.mrb[84].mxu0  ;;  %v9282_v1 = vpop.f32.mrb[84].mxu1 }
 0x186   :  { %10854 = vst [vmem:[#allocation123_spill] sm:$0xff] %v9280_v28  ;;  %10855 = vst [vmem:[#allocation124_spill] sm:$0xff] %v9282_v1  ;;  %v9284_v13 = vpop.f32.mrb[85].mxu0  ;;  %v9286_v53 = vpop.f32.mrb[85].mxu1  ;;  %v8069_v1 = vld [vmem:[%s10730_s0 + $0x740] sm:$0xff]  }
 0x187   :  { %10856 = vst [vmem:[#allocation125_spill] sm:$0xff] %v9284_v13  ;;  %10857 = vst [vmem:[#allocation126_spill] sm:$0xff] %v9286_v53  ;;  %v9294_v52 = vpop.f32.mrb[86].mxu0  ;;  %v9296_v33 = vpop.f32.mrb[86].mxu1 }
 0x188   :  { %10858 = vst [vmem:[#allocation127_spill] sm:$0xff] %v9294_v52  ;;  %10859 = vst [vmem:[#allocation128_spill] sm:$0xff] %v9296_v33  ;;  %v9304_v28 = vpop.f32.mrb[87].mxu0  ;;  %v9306_v53 = vpop.f32.mrb[87].mxu1 }
 0x189   :  { %10860 = vst [vmem:[#allocation129_spill] sm:$0xff] %v9304_v28  ;;  %10861 = vst [vmem:[#allocation130_spill] sm:$0xff] %v9306_v53  ;;  %v8068_v53 = vld [vmem:[%s10730_s0 + $0x318] sm:$0xff]  }
 0x18a   :  { %7521 = vmatmul.mubr.msk.bf16.gmra.mrb[192].mxu0 %vm1906_vm2, %v8064_v41  ;;  %7789 = vmatmul.mubr.msk.bf16.gmra.mrb[192].mxu1 %vm1906_vm2, %v8066_v40  ;;  %v8070_v41 = vld [vmem:[%s10730_s0 + $0x748] sm:$0xff]  }
 0x18b   :  { %7524 = vmatprep.mubr.msk.bf16.mxu0 %vm1906_vm2, %v8067_v32  ;;  %7792 = vmatprep.mubr.msk.bf16.mxu1 %vm1906_vm2, %v8069_v1  ;;  %v8071_v1 = vld [vmem:[%s10730_s0 + $0x320] sm:$0xff]  }
 0x18d   :  { %v9312_v33 = vpop.f32.mrb[88].mxu0  ;;  %v9314_v52 = vpop.f32.mrb[88].mxu1 }
 0x18e   :  { %10862 = vst [vmem:[#allocation131_spill] sm:$0xff] %v9312_v33  ;;  %10863 = vst [vmem:[#allocation132_spill] sm:$0xff] %v9314_v52  ;;  %v9316_v13 = vpop.f32.mrb[89].mxu0  ;;  %v9318_v29 = vpop.f32.mrb[89].mxu1  ;;  %v8073_v52 = vld [vmem:[%s10730_s0 + $0x750] sm:$0xff]  }
 0x18f   :  { %10864 = vst [vmem:[#allocation133_spill] sm:$0xff] %v9316_v13  ;;  %10865 = vst [vmem:[#allocation134_spill] sm:$0xff] %v9318_v29  ;;  %v9326_v40 = vpop.f32.mrb[90].mxu0  ;;  %v9328_v32 = vpop.f32.mrb[90].mxu1 }
 0x190   :  { %10866 = vst [vmem:[#allocation135_spill] sm:$0xff] %v9326_v40  ;;  %10867 = vst [vmem:[#allocation136_spill] sm:$0xff] %v9328_v32  ;;  %v9336_v33 = vpop.f32.mrb[91].mxu0  ;;  %v9338_v29 = vpop.f32.mrb[91].mxu1 }
 0x191   :  { %10868 = vst [vmem:[#allocation137_spill] sm:$0xff] %v9336_v33  ;;  %10869 = vst [vmem:[#allocation138_spill] sm:$0xff] %v9338_v29  ;;  %v8072_v29 = vld [vmem:[%s10730_s0 + $0x328] sm:$0xff]  }
 0x192   :  { %7525 = vmatmul.mubr.msk.bf16.gmra.mrb[196].mxu0 %vm1906_vm2, %v8068_v53  ;;  %7793 = vmatmul.mubr.msk.bf16.gmra.mrb[196].mxu1 %vm1906_vm2, %v8070_v41  ;;  %v8074_v53 = vld [vmem:[%s10730_s0 + $0x758] sm:$0xff]  }
 0x193   :  { %7528 = vmatprep.mubr.msk.bf16.mxu0 %vm1906_vm2, %v8071_v1  ;;  %7796 = vmatprep.mubr.msk.bf16.mxu1 %vm1906_vm2, %v8073_v52  ;;  %v8075_v52 = vld [vmem:[%s10730_s0 + $0x330] sm:$0xff]  }
 0x195   :  { %v9344_v32 = vpop.f32.mrb[92].mxu0  ;;  %v9346_v40 = vpop.f32.mrb[92].mxu1 }
 0x196   :  { %10870 = vst [vmem:[#allocation139_spill] sm:$0xff] %v9344_v32  ;;  %10871 = vst [vmem:[#allocation140_spill] sm:$0xff] %v9346_v40  ;;  %v9348_v13 = vpop.f32.mrb[93].mxu0  ;;  %v9350_v28 = vpop.f32.mrb[93].mxu1  ;;  %v8077_v40 = vld [vmem:[%s10730_s0 + $0x760] sm:$0xff]  }
 0x197   :  { %10872 = vst [vmem:[#allocation141_spill] sm:$0xff] %v9348_v13  ;;  %10873 = vst [vmem:[#allocation142_spill] sm:$0xff] %v9350_v28  ;;  %v9358_v41 = vpop.f32.mrb[94].mxu0  ;;  %v9360_v1 = vpop.f32.mrb[94].mxu1 }
 0x198   :  { %10874 = vst [vmem:[#allocation143_spill] sm:$0xff] %v9358_v41  ;;  %10875 = vst [vmem:[#allocation144_spill] sm:$0xff] %v9360_v1  ;;  %v9368_v32 = vpop.f32.mrb[95].mxu0  ;;  %v9370_v28 = vpop.f32.mrb[95].mxu1 }
 0x199   :  { %10876 = vst [vmem:[#allocation145_spill] sm:$0xff] %v9368_v32  ;;  %10877 = vst [vmem:[#allocation146_spill] sm:$0xff] %v9370_v28  ;;  %v8076_v28 = vld [vmem:[%s10730_s0 + $0x338] sm:$0xff]  }
 0x19a   :  { %7529 = vmatmul.mubr.msk.bf16.gmra.mrb[200].mxu0 %vm1906_vm2, %v8072_v29  ;;  %7797 = vmatmul.mubr.msk.bf16.gmra.mrb[200].mxu1 %vm1906_vm2, %v8074_v53  ;;  %v8078_v29 = vld [vmem:[%s10730_s0 + $0x768] sm:$0xff]  }
 0x19b   :  { %7532 = vmatprep.mubr.msk.bf16.mxu0 %vm1906_vm2, %v8075_v52  ;;  %7800 = vmatprep.mubr.msk.bf16.mxu1 %vm1906_vm2, %v8077_v40  ;;  %v8079_v40 = vld [vmem:[%s10730_s0 + $0x340] sm:$0xff]  }
 0x19d   :  { %v9376_v1 = vpop.f32.mrb[96].mxu0  ;;  %v9378_v41 = vpop.f32.mrb[96].mxu1 }
 0x19e   :  { %10878 = vst [vmem:[#allocation147_spill] sm:$0xff] %v9376_v1  ;;  %10879 = vst [vmem:[#allocation148_spill] sm:$0xff] %v9378_v41  ;;  %v9380_v13 = vpop.f32.mrb[97].mxu0  ;;  %v9382_v33 = vpop.f32.mrb[97].mxu1  ;;  %v8081_v41 = vld [vmem:[%s10730_s0 + $0x770] sm:$0xff]  }
 0x19f   :  { %10880 = vst [vmem:[#allocation149_spill] sm:$0xff] %v9380_v13  ;;  %10881 = vst [vmem:[#allocation150_spill] sm:$0xff] %v9382_v33  ;;  %v9390_v53 = vpop.f32.mrb[98].mxu0  ;;  %v9392_v52 = vpop.f32.mrb[98].mxu1 }
 0x1a0   :  { %10882 = vst [vmem:[#allocation151_spill] sm:$0xff] %v9390_v53  ;;  %10883 = vst [vmem:[#allocation152_spill] sm:$0xff] %v9392_v52  ;;  %v9400_v1 = vpop.f32.mrb[99].mxu0  ;;  %v9402_v33 = vpop.f32.mrb[99].mxu1 }
 0x1a1   :  { %10884 = vst [vmem:[#allocation153_spill] sm:$0xff] %v9400_v1  ;;  %10885 = vst [vmem:[#allocation154_spill] sm:$0xff] %v9402_v33  ;;  %v8080_v33 = vld [vmem:[%s10730_s0 + $0x348] sm:$0xff]  }
 0x1a2   :  { %7533 = vmatmul.mubr.msk.bf16.gmra.mrb[204].mxu0 %vm1906_vm2, %v8076_v28  ;;  %7801 = vmatmul.mubr.msk.bf16.gmra.mrb[204].mxu1 %vm1906_vm2, %v8078_v29  ;;  %v8082_v28 = vld [vmem:[%s10730_s0 + $0x778] sm:$0xff]  }
 0x1a3   :  { %7536 = vmatprep.mubr.msk.bf16.mxu0 %vm1906_vm2, %v8079_v40  ;;  %7804 = vmatprep.mubr.msk.bf16.mxu1 %vm1906_vm2, %v8081_v41  ;;  %v8083_v41 = vld [vmem:[%s10730_s0 + $0x350] sm:$0xff]  }
 0x1a5   :  { %v9408_v52 = vpop.f32.mrb[100].mxu0  ;;  %v9410_v53 = vpop.f32.mrb[100].mxu1 }
 0x1a6   :  { %10886 = vst [vmem:[#allocation155_spill] sm:$0xff] %v9408_v52  ;;  %10887 = vst [vmem:[#allocation156_spill] sm:$0xff] %v9410_v53  ;;  %v9412_v13 = vpop.f32.mrb[101].mxu0  ;;  %v9414_v32 = vpop.f32.mrb[101].mxu1  ;;  %v8085_v53 = vld [vmem:[%s10730_s0 + $0x780] sm:$0xff]  }
 0x1a7   :  { %10888 = vst [vmem:[#allocation157_spill] sm:$0xff] %v9412_v13  ;;  %10889 = vst [vmem:[#allocation158_spill] sm:$0xff] %v9414_v32  ;;  %v9422_v29 = vpop.f32.mrb[102].mxu0  ;;  %v9424_v40 = vpop.f32.mrb[102].mxu1 }
 0x1a8   :  { %10890 = vst [vmem:[#allocation159_spill] sm:$0xff] %v9422_v29  ;;  %10891 = vst [vmem:[#allocation160_spill] sm:$0xff] %v9424_v40  ;;  %v9432_v52 = vpop.f32.mrb[103].mxu0  ;;  %v9434_v32 = vpop.f32.mrb[103].mxu1 }
 0x1a9   :  { %10892 = vst [vmem:[#allocation161_spill] sm:$0xff] %v9432_v52  ;;  %10893 = vst [vmem:[#allocation162_spill] sm:$0xff] %v9434_v32  ;;  %v8084_v32 = vld [vmem:[%s10730_s0 + $0x358] sm:$0xff]  }
 0x1aa   :  { %7537 = vmatmul.mubr.msk.bf16.gmra.mrb[208].mxu0 %vm1906_vm2, %v8080_v33  ;;  %7805 = vmatmul.mubr.msk.bf16.gmra.mrb[208].mxu1 %vm1906_vm2, %v8082_v28  ;;  %v8086_v33 = vld [vmem:[%s10730_s0 + $0x788] sm:$0xff]  }
 0x1ab   :  { %7540 = vmatprep.mubr.msk.bf16.mxu0 %vm1906_vm2, %v8083_v41  ;;  %7808 = vmatprep.mubr.msk.bf16.mxu1 %vm1906_vm2, %v8085_v53  ;;  %v8087_v53 = vld [vmem:[%s10730_s0 + $0x360] sm:$0xff]  }
 0x1ad   :  { %v9440_v40 = vpop.f32.mrb[104].mxu0  ;;  %v9442_v29 = vpop.f32.mrb[104].mxu1 }
 0x1ae   :  { %10894 = vst [vmem:[#allocation163_spill] sm:$0xff] %v9440_v40  ;;  %10895 = vst [vmem:[#allocation164_spill] sm:$0xff] %v9442_v29  ;;  %v9444_v13 = vpop.f32.mrb[105].mxu0  ;;  %v9446_v1 = vpop.f32.mrb[105].mxu1  ;;  %v8089_v29 = vld [vmem:[%s10730_s0 + $0x790] sm:$0xff]  }
 0x1af   :  { %10896 = vst [vmem:[#allocation165_spill] sm:$0xff] %v9444_v13  ;;  %10897 = vst [vmem:[#allocation166_spill] sm:$0xff] %v9446_v1  ;;  %v9454_v28 = vpop.f32.mrb[106].mxu0  ;;  %v9456_v41 = vpop.f32.mrb[106].mxu1 }
 0x1b0   :  { %10898 = vst [vmem:[#allocation167_spill] sm:$0xff] %v9454_v28  ;;  %10899 = vst [vmem:[#allocation168_spill] sm:$0xff] %v9456_v41  ;;  %v9464_v40 = vpop.f32.mrb[107].mxu0  ;;  %v9466_v1 = vpop.f32.mrb[107].mxu1 }
 0x1b1   :  { %10900 = vst [vmem:[#allocation169_spill] sm:$0xff] %v9464_v40  ;;  %10901 = vst [vmem:[#allocation170_spill] sm:$0xff] %v9466_v1  ;;  %v8088_v1 = vld [vmem:[%s10730_s0 + $0x368] sm:$0xff]  }
 0x1b2   :  { %7541 = vmatmul.mubr.msk.bf16.gmra.mrb[212].mxu0 %vm1906_vm2, %v8084_v32  ;;  %7809 = vmatmul.mubr.msk.bf16.gmra.mrb[212].mxu1 %vm1906_vm2, %v8086_v33  ;;  %v8090_v32 = vld [vmem:[%s10730_s0 + $0x798] sm:$0xff]  }
 0x1b3   :  { %7544 = vmatprep.mubr.msk.bf16.mxu0 %vm1906_vm2, %v8087_v53  ;;  %7812 = vmatprep.mubr.msk.bf16.mxu1 %vm1906_vm2, %v8089_v29  ;;  %v8091_v29 = vld [vmem:[%s10730_s0 + $0x370] sm:$0xff]  }
 0x1b5   :  { %v9472_v41 = vpop.f32.mrb[108].mxu0  ;;  %v9474_v28 = vpop.f32.mrb[108].mxu1 }
 0x1b6   :  { %10902 = vst [vmem:[#allocation171_spill] sm:$0xff] %v9472_v41  ;;  %10903 = vst [vmem:[#allocation172_spill] sm:$0xff] %v9474_v28  ;;  %v9476_v13 = vpop.f32.mrb[109].mxu0  ;;  %v9478_v52 = vpop.f32.mrb[109].mxu1  ;;  %v8093_v28 = vld [vmem:[%s10730_s0 + $0x7a0] sm:$0xff]  }
 0x1b7   :  { %10904 = vst [vmem:[#allocation173_spill] sm:$0xff] %v9476_v13  ;;  %10905 = vst [vmem:[#allocation174_spill] sm:$0xff] %v9478_v52  ;;  %v9486_v33 = vpop.f32.mrb[110].mxu0  ;;  %v9488_v53 = vpop.f32.mrb[110].mxu1 }
 0x1b8   :  { %10906 = vst [vmem:[#allocation175_spill] sm:$0xff] %v9486_v33  ;;  %10907 = vst [vmem:[#allocation176_spill] sm:$0xff] %v9488_v53  ;;  %v9496_v41 = vpop.f32.mrb[111].mxu0  ;;  %v9498_v52 = vpop.f32.mrb[111].mxu1 }
 0x1b9   :  { %10908 = vst [vmem:[#allocation177_spill] sm:$0xff] %v9496_v41  ;;  %10909 = vst [vmem:[#allocation178_spill] sm:$0xff] %v9498_v52  ;;  %v8092_v52 = vld [vmem:[%s10730_s0 + $0x378] sm:$0xff]  }
 0x1ba   :  { %7545 = vmatmul.mubr.msk.bf16.gmra.mrb[216].mxu0 %vm1906_vm2, %v8088_v1  ;;  %7813 = vmatmul.mubr.msk.bf16.gmra.mrb[216].mxu1 %vm1906_vm2, %v8090_v32  ;;  %v8094_v1 = vld [vmem:[%s10730_s0 + $0x7a8] sm:$0xff]  }
 0x1bb   :  { %7548 = vmatprep.mubr.msk.bf16.mxu0 %vm1906_vm2, %v8091_v29  ;;  %7816 = vmatprep.mubr.msk.bf16.mxu1 %vm1906_vm2, %v8093_v28  ;;  %v8095_v28 = vld [vmem:[%s10730_s0 + $0x380] sm:$0xff]  }
 0x1bd   :  { %v9504_v53 = vpop.f32.mrb[112].mxu0  ;;  %v9506_v33 = vpop.f32.mrb[112].mxu1 }
 0x1be   :  { %10910 = vst [vmem:[#allocation179_spill] sm:$0xff] %v9504_v53  ;;  %10911 = vst [vmem:[#allocation180_spill] sm:$0xff] %v9506_v33  ;;  %v9508_v13 = vpop.f32.mrb[113].mxu0  ;;  %v9510_v40 = vpop.f32.mrb[113].mxu1  ;;  %v8097_v33 = vld [vmem:[%s10730_s0 + $0x7b0] sm:$0xff]  }
 0x1bf   :  { %10912 = vst [vmem:[#allocation181_spill] sm:$0xff] %v9508_v13  ;;  %10913 = vst [vmem:[#allocation182_spill] sm:$0xff] %v9510_v40  ;;  %v9518_v32 = vpop.f32.mrb[114].mxu0  ;;  %v9520_v29 = vpop.f32.mrb[114].mxu1 }
 0x1c0   :  { %10914 = vst [vmem:[#allocation183_spill] sm:$0xff] %v9518_v32  ;;  %10915 = vst [vmem:[#allocation184_spill] sm:$0xff] %v9520_v29  ;;  %v9528_v53 = vpop.f32.mrb[115].mxu0  ;;  %v9530_v40 = vpop.f32.mrb[115].mxu1 }
 0x1c1   :  { %10916 = vst [vmem:[#allocation185_spill] sm:$0xff] %v9528_v53  ;;  %10917 = vst [vmem:[#allocation186_spill] sm:$0xff] %v9530_v40  ;;  %v8096_v40 = vld [vmem:[%s10730_s0 + $0x388] sm:$0xff]  }
 0x1c2   :  { %7549 = vmatmul.mubr.msk.bf16.gmra.mrb[220].mxu0 %vm1906_vm2, %v8092_v52  ;;  %7817 = vmatmul.mubr.msk.bf16.gmra.mrb[220].mxu1 %vm1906_vm2, %v8094_v1  ;;  %v8098_v52 = vld [vmem:[%s10730_s0 + $0x7b8] sm:$0xff]  }
 0x1c3   :  { %7552 = vmatprep.mubr.msk.bf16.mxu0 %vm1906_vm2, %v8095_v28  ;;  %7820 = vmatprep.mubr.msk.bf16.mxu1 %vm1906_vm2, %v8097_v33  ;;  %v8099_v33 = vld [vmem:[%s10730_s0 + $0x390] sm:$0xff]  }
 0x1c5   :  { %v9536_v29 = vpop.f32.mrb[116].mxu0  ;;  %v9538_v32 = vpop.f32.mrb[116].mxu1 }
 0x1c6   :  { %10918 = vst [vmem:[#allocation187_spill] sm:$0xff] %v9536_v29  ;;  %10919 = vst [vmem:[#allocation188_spill] sm:$0xff] %v9538_v32  ;;  %v9540_v13 = vpop.f32.mrb[117].mxu0  ;;  %v9542_v41 = vpop.f32.mrb[117].mxu1  ;;  %v8101_v32 = vld [vmem:[%s10730_s0 + $0x7c0] sm:$0xff]  }
 0x1c7   :  { %10920 = vst [vmem:[#allocation189_spill] sm:$0xff] %v9540_v13  ;;  %10921 = vst [vmem:[#allocation190_spill] sm:$0xff] %v9542_v41  ;;  %v9550_v1 = vpop.f32.mrb[118].mxu0  ;;  %v9552_v28 = vpop.f32.mrb[118].mxu1 }
 0x1c8   :  { %10922 = vst [vmem:[#allocation191_spill] sm:$0xff] %v9550_v1  ;;  %10923 = vst [vmem:[#allocation192_spill] sm:$0xff] %v9552_v28  ;;  %v9560_v29 = vpop.f32.mrb[119].mxu0  ;;  %v9562_v41 = vpop.f32.mrb[119].mxu1 }
 0x1c9   :  { %10924 = vst [vmem:[#allocation193_spill] sm:$0xff] %v9560_v29  ;;  %10925 = vst [vmem:[#allocation194_spill] sm:$0xff] %v9562_v41  ;;  %v8100_v41 = vld [vmem:[%s10730_s0 + $0x398] sm:$0xff]  }
 0x1ca   :  { %7553 = vmatmul.mubr.msk.bf16.gmra.mrb[224].mxu0 %vm1906_vm2, %v8096_v40  ;;  %7821 = vmatmul.mubr.msk.bf16.gmra.mrb[224].mxu1 %vm1906_vm2, %v8098_v52  ;;  %v8102_v40 = vld [vmem:[%s10730_s0 + $0x7c8] sm:$0xff]  }
 0x1cb   :  { %7556 = vmatprep.mubr.msk.bf16.mxu0 %vm1906_vm2, %v8099_v33  ;;  %7824 = vmatprep.mubr.msk.bf16.mxu1 %vm1906_vm2, %v8101_v32  ;;  %v8103_v32 = vld [vmem:[%s10730_s0 + $0x3a0] sm:$0xff]  }
 0x1cd   :  { %v9568_v28 = vpop.f32.mrb[120].mxu0  ;;  %v9570_v1 = vpop.f32.mrb[120].mxu1 }
 0x1ce   :  { %10926 = vst [vmem:[#allocation195_spill] sm:$0xff] %v9568_v28  ;;  %10927 = vst [vmem:[#allocation196_spill] sm:$0xff] %v9570_v1  ;;  %v9572_v13 = vpop.f32.mrb[121].mxu0  ;;  %v9574_v53 = vpop.f32.mrb[121].mxu1  ;;  %v8105_v1 = vld [vmem:[%s10730_s0 + $0x7d0] sm:$0xff]  }
 0x1cf   :  { %10928 = vst [vmem:[#allocation197_spill] sm:$0xff] %v9572_v13  ;;  %10929 = vst [vmem:[#allocation198_spill] sm:$0xff] %v9574_v53  ;;  %v9582_v52 = vpop.f32.mrb[122].mxu0  ;;  %v9584_v33 = vpop.f32.mrb[122].mxu1 }
 0x1d0   :  { %10930 = vst [vmem:[#allocation199_spill] sm:$0xff] %v9582_v52  ;;  %10931 = vst [vmem:[#allocation200_spill] sm:$0xff] %v9584_v33  ;;  %v9592_v28 = vpop.f32.mrb[123].mxu0  ;;  %v9594_v53 = vpop.f32.mrb[123].mxu1 }
 0x1d1   :  { %10932 = vst [vmem:[#allocation201_spill] sm:$0xff] %v9592_v28  ;;  %10933 = vst [vmem:[#allocation202_spill] sm:$0xff] %v9594_v53  ;;  %v8104_v53 = vld [vmem:[%s10730_s0 + $0x3a8] sm:$0xff]  }
 0x1d2   :  { %7557 = vmatmul.mubr.msk.bf16.gmra.mrb[228].mxu0 %vm1906_vm2, %v8100_v41  ;;  %7825 = vmatmul.mubr.msk.bf16.gmra.mrb[228].mxu1 %vm1906_vm2, %v8102_v40  ;;  %v8106_v41 = vld [vmem:[%s10730_s0 + $0x7d8] sm:$0xff]  }
 0x1d3   :  { %7560 = vmatprep.mubr.msk.bf16.mxu0 %vm1906_vm2, %v8103_v32  ;;  %7828 = vmatprep.mubr.msk.bf16.mxu1 %vm1906_vm2, %v8105_v1  ;;  %v8107_v1 = vld [vmem:[%s10730_s0 + $0x3b0] sm:$0xff]  }
 0x1d5   :  { %v9600_v33 = vpop.f32.mrb[124].mxu0  ;;  %v9602_v52 = vpop.f32.mrb[124].mxu1 }
 0x1d6   :  { %10934 = vst [vmem:[#allocation203_spill] sm:$0xff] %v9600_v33  ;;  %10935 = vst [vmem:[#allocation204_spill] sm:$0xff] %v9602_v52  ;;  %v9604_v13 = vpop.f32.mrb[125].mxu0  ;;  %v9606_v29 = vpop.f32.mrb[125].mxu1  ;;  %v8109_v52 = vld [vmem:[%s10730_s0 + $0x7e0] sm:$0xff]  }
 0x1d7   :  { %10936 = vst [vmem:[#allocation205_spill] sm:$0xff] %v9604_v13  ;;  %10937 = vst [vmem:[#allocation206_spill] sm:$0xff] %v9606_v29  ;;  %v9614_v40 = vpop.f32.mrb[126].mxu0  ;;  %v9616_v32 = vpop.f32.mrb[126].mxu1 }
 0x1d8   :  { %10938 = vst [vmem:[#allocation207_spill] sm:$0xff] %v9614_v40  ;;  %10939 = vst [vmem:[#allocation208_spill] sm:$0xff] %v9616_v32  ;;  %v9624_v33 = vpop.f32.mrb[127].mxu0  ;;  %v9626_v29 = vpop.f32.mrb[127].mxu1 }
 0x1d9   :  { %10940 = vst [vmem:[#allocation209_spill] sm:$0xff] %v9624_v33  ;;  %10941 = vst [vmem:[#allocation210_spill] sm:$0xff] %v9626_v29  ;;  %v8108_v29 = vld [vmem:[%s10730_s0 + $0x3b8] sm:$0xff]  }
 0x1da   :  { %7561 = vmatmul.mubr.msk.bf16.gmra.mrb[232].mxu0 %vm1906_vm2, %v8104_v53  ;;  %7829 = vmatmul.mubr.msk.bf16.gmra.mrb[232].mxu1 %vm1906_vm2, %v8106_v41  ;;  %v8110_v53 = vld [vmem:[%s10730_s0 + $0x7e8] sm:$0xff]  }
 0x1db   :  { %7564 = vmatprep.mubr.msk.bf16.mxu0 %vm1906_vm2, %v8107_v1  ;;  %7832 = vmatprep.mubr.msk.bf16.mxu1 %vm1906_vm2, %v8109_v52  ;;  %v8111_v52 = vld [vmem:[%s10730_s0 + $0x3c0] sm:$0xff]  }
 0x1dd   :  { %v9632_v32 = vpop.f32.mrb[128].mxu0  ;;  %v9634_v40 = vpop.f32.mrb[128].mxu1 }
 0x1de   :  { %10942 = vst [vmem:[#allocation211_spill] sm:$0xff] %v9632_v32  ;;  %10943 = vst [vmem:[#allocation212_spill] sm:$0xff] %v9634_v40  ;;  %v9636_v13 = vpop.f32.mrb[129].mxu0  ;;  %v9638_v28 = vpop.f32.mrb[129].mxu1  ;;  %v8113_v40 = vld [vmem:[%s10730_s0 + $0x7f0] sm:$0xff]  }
 0x1df   :  { %10944 = vst [vmem:[#allocation213_spill] sm:$0xff] %v9636_v13  ;;  %10945 = vst [vmem:[#allocation214_spill] sm:$0xff] %v9638_v28  ;;  %v9646_v41 = vpop.f32.mrb[130].mxu0  ;;  %v9648_v1 = vpop.f32.mrb[130].mxu1 }
 0x1e0   :  { %10946 = vst [vmem:[#allocation215_spill] sm:$0xff] %v9646_v41  ;;  %10947 = vst [vmem:[#allocation216_spill] sm:$0xff] %v9648_v1  ;;  %v9656_v32 = vpop.f32.mrb[131].mxu0  ;;  %v9658_v28 = vpop.f32.mrb[131].mxu1 }
 0x1e1   :  { %10948 = vst [vmem:[#allocation217_spill] sm:$0xff] %v9656_v32  ;;  %10949 = vst [vmem:[#allocation218_spill] sm:$0xff] %v9658_v28  ;;  %v8112_v28 = vld [vmem:[%s10730_s0 + $0x3c8] sm:$0xff]  }
 0x1e2   :  { %7565 = vmatmul.mubr.msk.bf16.gmra.mrb[236].mxu0 %vm1906_vm2, %v8108_v29  ;;  %7833 = vmatmul.mubr.msk.bf16.gmra.mrb[236].mxu1 %vm1906_vm2, %v8110_v53  ;;  %v8114_v29 = vld [vmem:[%s10730_s0 + $0x7f8] sm:$0xff]  }
 0x1e3   :  { %7568 = vmatprep.mubr.msk.bf16.mxu0 %vm1906_vm2, %v8111_v52  ;;  %7836 = vmatprep.mubr.msk.bf16.mxu1 %vm1906_vm2, %v8113_v40  ;;  %v8115_v40 = vld [vmem:[%s10730_s0 + $0x3d0] sm:$0xff]  }
 0x1e5   :  { %v7462_v1 = vpop.f32.mrb[132].mxu0  ;;  %v7730_v41 = vpop.f32.mrb[132].mxu1 }
 0x1e6   :  { %v4895_v13 = vmax.f32 %v8618_v56, %v7462_v1  ;;  %v9665_v33 = vpop.f32.mrb[133].mxu0  ;;  %v9667_v12 = vpop.f32.mrb[133].mxu1  ;;  %v8117_v56 = vld [vmem:[%s10730_s0 + $0x800] sm:$0xff]  }
 0x1e7   :  { %10950 = vst [vmem:[#allocation219_spill] sm:$0xff] %v9665_v33  ;;  %10951 = vst [vmem:[#allocation220_spill] sm:$0xff] %v9667_v12  ;;  %v7463_v53 = vpop.f32.mrb[134].mxu0  ;;  %v7731_v52 = vpop.f32.mrb[134].mxu1 }
 0x1e8   :  { %v5029_v1 = vmax.f32 %v4895_v13, %v8620_v57  ;;  %v4896_v12 = vmax.f32 %v8632_v62, %v7463_v53  ;;  %v9683_v33 = vpop.f32.mrb[135].mxu0  ;;  %v9685_v32 = vpop.f32.mrb[135].mxu1 }
 0x1e9   :  { %10952 = vst [vmem:[#allocation221_spill] sm:$0xff] %v9683_v33  ;;  %10953 = vst [vmem:[#allocation222_spill] sm:$0xff] %v9685_v32 }
 0x1ea   :  { %v5163_v61 = vmax.f32 %v5029_v1, %v7730_v41  ;;  %v5030_v45 = vmax.f32 %v4896_v12, %v8634_v63  ;;  %7569 = vmatmul.mubr.msk.bf16.gmra.mrb[240].mxu0 %vm1906_vm2, %v8112_v28  ;;  %7837 = vmatmul.mubr.msk.bf16.gmra.mrb[240].mxu1 %vm1906_vm2, %v8114_v29  ;;  %v8116_v12 = vld [vmem:[%s10730_s0 + $0x3d8] sm:$0xff]   ;;  %v8118_v28 = vld [vmem:[%s10730_s0 + $0x808] sm:$0xff]  }
 0x1eb   :  { %7572 = vmatprep.mubr.msk.bf16.mxu0 %vm1906_vm2, %v8115_v40  ;;  %7840 = vmatprep.mubr.msk.bf16.mxu1 %vm1906_vm2, %v8117_v56 }
 0x1ec   :  { %v5304_v57 = vadd.f32 %v9690_v0, %v5163_v61  ;;  %v5164_v62 = vmax.f32 %v5030_v45, %v7731_v52  ;;  %v8119_v52 = vld [vmem:[%s10730_s0 + $0x3e0] sm:$0xff]  }
 0x1ed   :  { %v7466_v13 = vpop.f32.mrb[136].mxu0  ;;  %v7734_v53 = vpop.f32.mrb[136].mxu1 }
 0x1ee   :  { %v5438_v32 = vmax.f32 %v5304_v57, 0.0  ;;  %v5305_v33 = vadd.f32 %v9690_v0, %v5164_v62  ;;  %v4899_v41 = vmax.f32 %v8650_v4, %v7466_v13  ;;  %v3296_v1 = vpop.f32.mrb[137].mxu0  ;;  %v4368_v63 = vpop.f32.mrb[137].mxu1  ;;  %v8121_v4 = vld [vmem:[%s10730_s0 + $0x810] sm:$0xff]  }
 0x1ef   :  { %v4897_v61 = vmax.f32 %v8614_v54, %v3296_v1  ;;  %v7467_v45 = vpop.f32.mrb[138].mxu0  ;;  %v7735_v29 = vpop.f32.mrb[138].mxu1 }
 0x1f0   :  { %v6920_v40 = vpack.c.bf16 %v5438_v32, %v5438_v32  ;;  %v5439_v56 = vmax.f32 %v5305_v33, 0.0  ;;  %v5033_v57 = vmax.f32 %v4899_v41, %v8652_v5  ;;  %v4900_v62 = vmax.f32 %v8664_v10, %v7467_v45  ;;  %v3299_v13 = vpop.f32.mrb[139].mxu0  ;;  %v4371_v60 = vpop.f32.mrb[139].mxu1  ;;  %v8120_v45 = vld [vmem:[%s10730_s0 + $0x3e8] sm:$0xff]  }
 0x1f1   :  { %v5031_v54 = vmax.f32 %v4897_v61, %v8616_v55  ;;  %v4898_v1 = vmax.f32 %v8622_v58, %v3299_v13 }
 0x1f2   :  { %6109 = vst.msk [vmem:[%s10732_s3] sm:$0xf] %vm6108_vm3, %v6920_v40  ;;  %v6921_v49 = vpack.c.bf16 %v5439_v56, %v5439_v56  ;;  %v5167_v44 = vmax.f32 %v5033_v57, %v7734_v53  ;;  %v5034_v32 = vmax.f32 %v4900_v62, %v8666_v11  ;;  %7573 = vmatmul.mubr.msk.bf16.gmra.mrb[244].mxu0 %vm1906_vm2, %v8116_v12  ;;  %v8125_v40 = vld [vmem:[%s10730_s0 + $0x820] sm:$0xff]  }
 0x1f3   :  { %7841 = vmatmul.mubr.msk.bf16.gmra.mrb[244].mxu1 %vm1906_vm2, %v8118_v28  ;;  %v5165_v5 = vmax.f32 %v5031_v54, %v4368_v63  ;;  %v5032_v10 = vmax.f32 %v4898_v1, %v8624_v59  ;;  %7576 = vmatprep.mubr.msk.bf16.mxu0 %vm1906_vm2, %v8119_v52 }
 0x1f4   :  { %7844 = vmatprep.mubr.msk.bf16.mxu1 %vm1906_vm2, %v8121_v4  ;;  %6110 = vst.msk [vmem:[%s10732_s3 + $0x4] sm:$0xf] %vm6108_vm3, %v6921_v49  ;;  %v5308_v55 = vadd.f32 %v9690_v0, %v5167_v44  ;;  %v5168_v58 = vmax.f32 %v5034_v32, %v7735_v29  ;;  %v8122_v49 = vld [vmem:[%s10730_s0 + $0x818] sm:$0xff]  }
 0x1f5   :  { %v5306_v11 = vadd.f32 %v9690_v0, %v5165_v5  ;;  %v5166_v33 = vmax.f32 %v5032_v10, %v4371_v60  ;;  %v7470_v53 = vpop.f32.mrb[140].mxu0  ;;  %v7738_v41 = vpop.f32.mrb[140].mxu1 }
 0x1f6   :  { %v5442_v63 = vmax.f32 %v5308_v55, 0.0  ;;  %v5309_v59 = vadd.f32 %v9690_v0, %v5168_v58  ;;  %v4903_v12 = vmax.f32 %v8682_v16, %v7470_v53  ;;  %v3312_v28 = vpop.f32.mrb[141].mxu0  ;;  %v4384_v61 = vpop.f32.mrb[141].mxu1  ;;  %v8123_v16 = vld [vmem:[%s10730_s0 + $0x3f0] sm:$0xff]  }
 0x1f7   :  { %v5440_v44 = vmax.f32 %v5306_v11, 0.0  ;;  %v5307_v60 = vadd.f32 %v9690_v0, %v5166_v33  ;;  %v4901_v29 = vmax.f32 %v8646_v2, %v3312_v28  ;;  %v7471_v52 = vpop.f32.mrb[142].mxu0  ;;  %v7739_v4 = vpop.f32.mrb[142].mxu1 }
 0x1f8   :  { %v6924_v56 = vpack.c.bf16 %v5442_v63, %v5442_v63  ;;  %v5443_v57 = vmax.f32 %v5309_v59, 0.0  ;;  %v5037_v62 = vmax.f32 %v4903_v12, %v8684_v17  ;;  %v4904_v13 = vmax.f32 %v8696_v22, %v7471_v52  ;;  %v3315_v54 = vpop.f32.mrb[143].mxu0  ;;  %v4387_v1 = vpop.f32.mrb[143].mxu1 }
 0x1f9   :  { %v6922_v32 = vpack.c.bf16 %v5440_v44, %v5440_v44  ;;  %v5441_v2 = vmax.f32 %v5307_v60, 0.0  ;;  %v5035_v5 = vmax.f32 %v4901_v29, %v8648_v3  ;;  %v4902_v10 = vmax.f32 %v8654_v6, %v3315_v54 }
 0x1fa   :  { %6113 = vst.msk [vmem:[%s10732_s3 + $0x10] sm:$0xf] %vm6108_vm3, %v6924_v56  ;;  %v6925_v55 = vpack.c.bf16 %v5443_v57, %v5443_v57  ;;  %v5171_v58 = vmax.f32 %v5037_v62, %v7738_v41  ;;  %v5038_v11 = vmax.f32 %v4904_v13, %v8698_v23  ;;  %7577 = vmatmul.mubr.msk.bf16.gmra.mrb[248].mxu0 %vm1906_vm2, %v8120_v45  ;;  %v8124_v45 = vld [vmem:[%s10730_s0 + $0x3f8] sm:$0xff]  }
 0x1fb   :  { %7845 = vmatmul.mubr.msk.bf16.gmra.mrb[248].mxu1 %vm1906_vm2, %v8122_v49  ;;  %6111 = vst.msk [vmem:[%s10732_s3 + $0x8] sm:$0xf] %vm6108_vm3, %v6922_v32  ;;  %v6923_v3 = vpack.c.bf16 %v5441_v2, %v5441_v2  ;;  %v5169_v6 = vmax.f32 %v5035_v5, %v4384_v61  ;;  %v5036_v17 = vmax.f32 %v4902_v10, %v8656_v7  ;;  %v8126_v49 = vld [vmem:[%s10730_s0 + $0x828] sm:$0xff]  }
 0x1fc   :  { %7580 = vmatprep.mubr.msk.bf16.mxu0 %vm1906_vm2, %v8123_v16  ;;  %7848 = vmatprep.mubr.msk.bf16.mxu1 %vm1906_vm2, %v8125_v40  ;;  %6114 = vst.msk [vmem:[%s10732_s3 + $0x14] sm:$0xf] %vm6108_vm3, %v6925_v55  ;;  %v5312_v22 = vadd.f32 %v9690_v0, %v5171_v58  ;;  %v5172_v23 = vmax.f32 %v5038_v11, %v7739_v4  ;;  %v8129_v16 = vld [vmem:[%s10730_s0 + $0x830] sm:$0xff]  }
 0x1fd   :  { %6112 = vst.msk [vmem:[%s10732_s3 + $0xc] sm:$0xf] %vm6108_vm3, %v6923_v3  ;;  %v5310_v33 = vadd.f32 %v9690_v0, %v5169_v6  ;;  %v5170_v7 = vmax.f32 %v5036_v17, %v4387_v1  ;;  %v7474_v53 = vpop.f32.mrb[144].mxu0  ;;  %v7742_v41 = vpop.f32.mrb[144].mxu1 }
 0x1fe   :  { %v5446_v63 = vmax.f32 %v5312_v22, 0.0  ;;  %v5313_v59 = vadd.f32 %v9690_v0, %v5172_v23  ;;  %v4907_v12 = vmax.f32 %v8708_v26, %v7474_v53  ;;  %v3328_v28 = vpop.f32.mrb[145].mxu0  ;;  %v4400_v61 = vpop.f32.mrb[145].mxu1  ;;  %v8127_v26 = vld [vmem:[%s10730_s0 + $0x400] sm:$0xff]   ;;  %v8130_v53 = vld [vmem:[%s10730_s0 + $0x838] sm:$0xff]  }
 0x1ff   :  { %v5444_v44 = vmax.f32 %v5310_v33, 0.0  ;;  %v5311_v60 = vadd.f32 %v9690_v0, %v5170_v7  ;;  %v4905_v29 = vmax.f32 %v8678_v14, %v3328_v28  ;;  %v7475_v52 = vpop.f32.mrb[146].mxu0  ;;  %v7743_v4 = vpop.f32.mrb[146].mxu1  ;;  %v8128_v7 = vld [vmem:[%s10730_s0 + $0x408] sm:$0xff]  }
 0x200   :  { %v6928_v40 = vpack.c.bf16 %v5446_v63, %v5446_v63  ;;  %v5447_v56 = vmax.f32 %v5313_v59, 0.0  ;;  %v5041_v57 = vmax.f32 %v4907_v12, %v8710_v27  ;;  %v4908_v62 = vmax.f32 %v8728_v34, %v7475_v52  ;;  %v3331_v13 = vpop.f32.mrb[147].mxu0  ;;  %v4403_v54 = vpop.f32.mrb[147].mxu1 }
 0x201   :  { %v6926_v1 = vpack.c.bf16 %v5444_v44, %v5444_v44  ;;  %v5445_v14 = vmax.f32 %v5311_v60, 0.0  ;;  %v5039_v32 = vmax.f32 %v4905_v29, %v8680_v15  ;;  %v4906_v2 = vmax.f32 %v8686_v18, %v3331_v13 }
 0x202   :  { %6117 = vst.msk [vmem:[%s10732_s3 + $0x20] sm:$0xf] %vm6108_vm3, %v6928_v40  ;;  %v6929_v5 = vpack.c.bf16 %v5447_v56, %v5447_v56  ;;  %v5175_v10 = vmax.f32 %v5041_v57, %v7742_v41  ;;  %v5042_v55 = vmax.f32 %v4908_v62, %v8730_v35  ;;  %7581 = vmatmul.mubr.msk.bf16.gmra.mrb[252].mxu0 %vm1906_vm2, %v8124_v45 }
 0x203   :  { %7849 = vmatmul.mubr.msk.bf16.gmra.mrb[252].mxu1 %vm1906_vm2, %v8126_v49  ;;  %6115 = vst.msk [vmem:[%s10732_s3 + $0x18] sm:$0xf] %vm6108_vm3, %v6926_v1  ;;  %v6927_v15 = vpack.c.bf16 %v5445_v14, %v5445_v14  ;;  %v5173_v18 = vmax.f32 %v5039_v32, %v4400_v61  ;;  %v5040_v27 = vmax.f32 %v4906_v2, %v8688_v19  ;;  %v8133_v61 = vld [vmem:[%s10730_s0 + $0x840] sm:$0xff]  }
 0x204   :  { %7584 = vmatprep.mubr.msk.bf16.mxu0 %vm1906_vm2, %v8127_v26  ;;  %7852 = vmatprep.mubr.msk.bf16.mxu1 %vm1906_vm2, %v8129_v16  ;;  %6118 = vst.msk [vmem:[%s10732_s3 + $0x24] sm:$0xf] %vm6108_vm3, %v6929_v5  ;;  %v5316_v34 = vadd.f32 %v9690_v0, %v5175_v10  ;;  %v5176_v35 = vmax.f32 %v5042_v55, %v7743_v4  ;;  %v8132_v10 = vld [vmem:[%s10730_s0 + $0x418] sm:$0xff]   ;;  %v8134_v55 = vld [vmem:[%s10730_s0 + $0x848] sm:$0xff]  }
 0x205   :  { %6116 = vst.msk [vmem:[%s10732_s3 + $0x1c] sm:$0xf] %vm6108_vm3, %v6927_v15  ;;  %v5314_v58 = vadd.f32 %v9690_v0, %v5173_v18  ;;  %v5174_v19 = vmax.f32 %v5040_v27, %v4403_v54  ;;  %v7478_v11 = vpop.f32.mrb[148].mxu0  ;;  %v7746_v3 = vpop.f32.mrb[148].mxu1 }
 0x206   :  { %v5450_v6 = vmax.f32 %v5316_v34, 0.0  ;;  %v5317_v17 = vadd.f32 %v9690_v0, %v5176_v35  ;;  %v4911_v22 = vmax.f32 %v8740_v38, %v7478_v11  ;;  %v3344_v23 = vpop.f32.mrb[149].mxu0  ;;  %v4416_v33 = vpop.f32.mrb[149].mxu1  ;;  %v8131_v38 = vld [vmem:[%s10730_s0 + $0x410] sm:$0xff]  }
 0x207   :  { %v5448_v41 = vmax.f32 %v5314_v58, 0.0  ;;  %v5315_v63 = vadd.f32 %v9690_v0, %v5174_v19  ;;  %v4909_v59 = vmax.f32 %v8704_v24, %v3344_v23  ;;  %v7479_v12 = vpop.f32.mrb[150].mxu0  ;;  %v7747_v28 = vpop.f32.mrb[150].mxu1  ;;  %v8137_v58 = vld [vmem:[%s10730_s0 + $0x850] sm:$0xff]  }
 0x208   :  { %v6932_v45 = vpack.c.bf16 %v5450_v6, %v5450_v6  ;;  %v5451_v49 = vmax.f32 %v5317_v17, 0.0  ;;  %v5045_v44 = vmax.f32 %v4911_v22, %v8742_v39  ;;  %v4912_v60 = vmax.f32 %v8760_v46, %v7479_v12  ;;  %v3347_v29 = vpop.f32.mrb[151].mxu0  ;;  %v4419_v52 = vpop.f32.mrb[151].mxu1 }
 0x209   :  { %v6930_v4 = vpack.c.bf16 %v5448_v41, %v5448_v41  ;;  %v5449_v24 = vmax.f32 %v5315_v63, 0.0  ;;  %v5043_v26 = vmax.f32 %v4909_v59, %v8706_v25  ;;  %v4910_v16 = vmax.f32 %v8718_v30, %v3347_v29  ;;  %v8138_v29 = vld [vmem:[%s10730_s0 + $0x858] sm:$0xff]  }
 0x20a   :  { %6121 = vst.msk [vmem:[%s10732_s3 + $0x30] sm:$0xf] %vm6108_vm3, %v6932_v45  ;;  %v6933_v40 = vpack.c.bf16 %v5451_v49, %v5451_v49  ;;  %v5179_v56 = vmax.f32 %v5045_v44, %v7746_v3  ;;  %v5046_v57 = vmax.f32 %v4912_v60, %v8762_v47  ;;  %7585 = vmatmul.mubr.msk.bf16.gmra.mrb[0].mxu0 %vm1906_vm2, %v8128_v7  ;;  %v8136_v60 = vld [vmem:[%s10730_s0 + $0x428] sm:$0xff]  }
 0x20b   :  { %7853 = vmatmul.mubr.msk.bf16.gmra.mrb[0].mxu1 %vm1906_vm2, %v8130_v53  ;;  %6119 = vst.msk [vmem:[%s10732_s3 + $0x28] sm:$0xf] %vm6108_vm3, %v6930_v4  ;;  %v6931_v25 = vpack.c.bf16 %v5449_v24, %v5449_v24  ;;  %v5177_v30 = vmax.f32 %v5043_v26, %v4416_v33  ;;  %v5044_v39 = vmax.f32 %v4910_v16, %v8720_v31 }
 0x20c   :  { %7588 = vmatprep.mubr.msk.bf16.mxu0 %vm1906_vm2, %v8131_v38  ;;  %7856 = vmatprep.mubr.msk.bf16.mxu1 %vm1906_vm2, %v8133_v61  ;;  %6122 = vst.msk [vmem:[%s10732_s3 + $0x34] sm:$0xf] %vm6108_vm3, %v6933_v40  ;;  %v5320_v46 = vadd.f32 %v9690_v0, %v5179_v56  ;;  %v5180_v47 = vmax.f32 %v5046_v57, %v7747_v28  ;;  %v10954_v57 = vld [vmem:[#allocation9_spill] sm:$0xff] }
 0x20d   :  { %6120 = vst.msk [vmem:[%s10732_s3 + $0x2c] sm:$0xf] %vm6108_vm3, %v6931_v25  ;;  %v5318_v62 = vadd.f32 %v9690_v0, %v5177_v30  ;;  %v5178_v31 = vmax.f32 %v5044_v39, %v4419_v52  ;;  %v7482_v13 = vpop.f32.mrb[152].mxu0  ;;  %v7750_v54 = vpop.f32.mrb[152].mxu1 }
 0x20e   :  { %v5454_v1 = vmax.f32 %v5320_v46, 0.0  ;;  %v5321_v14 = vadd.f32 %v9690_v0, %v5180_v47  ;;  %v4915_v32 = vmax.f32 %v8772_v50, %v7482_v13  ;;  %v3360_v2 = vpop.f32.mrb[153].mxu0  ;;  %v4432_v5 = vpop.f32.mrb[153].mxu1  ;;  %v8135_v50 = vld [vmem:[%s10730_s0 + $0x420] sm:$0xff]   ;;  %v10956_v13 = vld [vmem:[#allocation3_spill] sm:$0xff] }
 0x20f   :  { %v5452_v15 = vmax.f32 %v5318_v62, 0.0  ;;  %v5319_v18 = vadd.f32 %v9690_v0, %v5178_v31  ;;  %v4913_v27 = vmax.f32 %v8736_v36, %v3360_v2  ;;  %v7483_v34 = vpop.f32.mrb[154].mxu0  ;;  %v7751_v35 = vpop.f32.mrb[154].mxu1  ;;  %v10955_v62 = vld [vmem:[#allocation2_spill] sm:$0xff] }
 0x210   :  { %v6936_v19 = vpack.c.bf16 %v5454_v1, %v5454_v1  ;;  %v5455_v11 = vmax.f32 %v5321_v14, 0.0  ;;  %v5049_v3 = vmax.f32 %v4915_v32, %v8774_v51  ;;  %v4916_v6 = vmax.f32 %v8792_v8, %v7483_v34  ;;  %v3363_v17 = vpop.f32.mrb[155].mxu0  ;;  %v4435_v22 = vpop.f32.mrb[155].mxu1  ;;  %v10957_v14 = vld [vmem:[#allocation10_spill] sm:$0xff] }
 0x211   :  { %v6934_v23 = vpack.c.bf16 %v5452_v15, %v5452_v15  ;;  %v5453_v36 = vmax.f32 %v5319_v18, 0.0  ;;  %v5047_v33 = vmax.f32 %v4913_v27, %v8738_v37  ;;  %v4914_v7 = vmax.f32 %v8750_v42, %v3363_v17 }
 0x212   :  { %6125 = vst.msk [vmem:[%s10732_s3 + $0x40] sm:$0xf] %vm6108_vm3, %v6936_v19  ;;  %v6937_v53 = vpack.c.bf16 %v5455_v11, %v5455_v11  ;;  %v5183_v41 = vmax.f32 %v5049_v3, %v7750_v54  ;;  %v5050_v63 = vmax.f32 %v4916_v6, %v8794_v9  ;;  %7589 = vmatmul.mubr.msk.bf16.gmra.mrb[4].mxu0 %vm1906_vm2, %v8132_v10  ;;  %v10959_v19 = vld [vmem:[#allocation13_spill] sm:$0xff] }
 0x213   :  { %7857 = vmatmul.mubr.msk.bf16.gmra.mrb[4].mxu1 %vm1906_vm2, %v8134_v55  ;;  %6123 = vst.msk [vmem:[%s10732_s3 + $0x38] sm:$0xf] %vm6108_vm3, %v6934_v23  ;;  %v6935_v37 = vpack.c.bf16 %v5453_v36, %v5453_v36  ;;  %v5181_v42 = vmax.f32 %v5047_v33, %v4432_v5  ;;  %v5048_v51 = vmax.f32 %v4914_v7, %v8752_v43  ;;  %v10958_v5 = vld [vmem:[#allocation4_spill] sm:$0xff]  ;;  %v10960_v23 = vld [vmem:[#allocation5_spill] sm:$0xff] }
 0x214   :  { %7592 = vmatprep.mubr.msk.bf16.mxu0 %vm1906_vm2, %v8135_v50  ;;  %7860 = vmatprep.mubr.msk.bf16.mxu1 %vm1906_vm2, %v8137_v58  ;;  %6126 = vst.msk [vmem:[%s10732_s3 + $0x44] sm:$0xf] %vm6108_vm3, %v6937_v53  ;;  %v5324_v8 = vadd.f32 %v9690_v0, %v5183_v41  ;;  %v5184_v9 = vmax.f32 %v5050_v63, %v7751_v35  ;;  %v10961_v63 = vld [vmem:[#allocation14_spill] sm:$0xff] }
 0x215   :  { %6124 = vst.msk [vmem:[%s10732_s3 + $0x3c] sm:$0xf] %vm6108_vm3, %v6935_v37  ;;  %v5322_v59 = vadd.f32 %v9690_v0, %v5181_v42  ;;  %v5182_v43 = vmax.f32 %v5048_v51, %v4435_v22  ;;  %v7486_v12 = vpop.f32.mrb[156].mxu0  ;;  %v7754_v28 = vpop.f32.mrb[156].mxu1  ;;  %v10962_v42 = vld [vmem:[#allocation17_spill] sm:$0xff] }
 0x216   :  { %v5458_v38 = vmax.f32 %v5324_v8, 0.0  ;;  %v5325_v61 = vadd.f32 %v9690_v0, %v5184_v9  ;;  %v4919_v45 = vmax.f32 %v8804_v20, %v7486_v12  ;;  %v3376_v49 = vpop.f32.mrb[157].mxu0  ;;  %v4448_v44 = vpop.f32.mrb[157].mxu1  ;;  %v10963_v12 = vld [vmem:[#allocation6_spill] sm:$0xff] }
 0x217   :  { %v5456_v52 = vmax.f32 %v5322_v59, 0.0  ;;  %v5323_v4 = vadd.f32 %v9690_v0, %v5182_v43  ;;  %v4917_v24 = vmax.f32 %v8768_v48, %v3376_v49  ;;  %v7487_v26 = vpop.f32.mrb[158].mxu0  ;;  %v7755_v16 = vpop.f32.mrb[158].mxu1 }
 0x218   :  { %v6940_v40 = vpack.c.bf16 %v5458_v38, %v5458_v38  ;;  %v5459_v56 = vmax.f32 %v5325_v61, 0.0  ;;  %v5053_v20 = vmax.f32 %v4919_v45, %v8806_v21  ;;  %v4920_v25 = vmax.f32 %v10954_v57, %v7487_v26  ;;  %v3379_v30 = vpop.f32.mrb[159].mxu0  ;;  %v4451_v39 = vpop.f32.mrb[159].mxu1  ;;  %v10964_v38 = vld [vmem:[#allocation7_spill] sm:$0xff] }
 0x219   :  { %v6938_v46 = vpack.c.bf16 %v5456_v52, %v5456_v52  ;;  %v5457_v47 = vmax.f32 %v5323_v4, 0.0  ;;  %v5051_v31 = vmax.f32 %v4917_v24, %v10955_v62  ;;  %v4918_v54 = vmax.f32 %v10956_v13, %v3379_v30  ;;  %v10966_v4 = vld [vmem:[#allocation8_spill] sm:$0xff] }
 0x21a   :  { %6129 = vst.msk [vmem:[%s10732_s3 + $0x50] sm:$0xf] %vm6108_vm3, %v6940_v40  ;;  %v6941_v48 = vpack.c.bf16 %v5459_v56, %v5459_v56  ;;  %v5187_v1 = vmax.f32 %v5053_v20, %v7754_v28  ;;  %v5054_v32 = vmax.f32 %v4920_v25, %v10957_v14  ;;  %7593 = vmatmul.mubr.msk.bf16.gmra.mrb[8].mxu0 %vm1906_vm2, %v8136_v60 }
 0x21b   :  { %7861 = vmatmul.mubr.msk.bf16.gmra.mrb[8].mxu1 %vm1906_vm2, %v8138_v29  ;;  %6127 = vst.msk [vmem:[%s10732_s3 + $0x48] sm:$0xf] %vm6108_vm3, %v6938_v46  ;;  %v6939_v21 = vpack.c.bf16 %v5457_v47, %v5457_v47  ;;  %v5185_v2 = vmax.f32 %v5051_v31, %v4448_v44  ;;  %v5052_v10 = vmax.f32 %v4918_v54, %v10958_v5  ;;  %v10965_v44 = vld [vmem:[#allocation18_spill] sm:$0xff]  ;;  %v10968_v54 = vld [vmem:[#allocation11_spill] sm:$0xff] }
 0x21c   :  { %6130 = vst.msk [vmem:[%s10732_s3 + $0x54] sm:$0xf] %vm6108_vm3, %v6941_v48  ;;  %v5328_v55 = vadd.f32 %v9690_v0, %v5187_v1  ;;  %v5188_v15 = vmax.f32 %v5054_v32, %v7755_v16 }
 0x21d   :  { %6128 = vst.msk [vmem:[%s10732_s3 + $0x4c] sm:$0xf] %vm6108_vm3, %v6939_v21  ;;  %v5326_v18 = vadd.f32 %v9690_v0, %v5185_v2  ;;  %v5186_v27 = vmax.f32 %v5052_v10, %v4451_v39  ;;  %v7490_v34 = vpop.f32.mrb[160].mxu0  ;;  %v7758_v35 = vpop.f32.mrb[160].mxu1  ;;  %v10967_v39 = vld [vmem:[#allocation21_spill] sm:$0xff]  ;;  %v10969_v2 = vld [vmem:[#allocation22_spill] sm:$0xff] }
 0x21e   :  { %v5462_v50 = vmax.f32 %v5328_v55, 0.0  ;;  %v5329_v58 = vadd.f32 %v9690_v0, %v5188_v15  ;;  %v4923_v11 = vmax.f32 %v10959_v19, %v7490_v34  ;;  %v3392_v3 = vpop.f32.mrb[161].mxu0  ;;  %v4464_v6 = vpop.f32.mrb[161].mxu1  ;;  %v10970_v10 = vld [vmem:[#allocation25_spill] sm:$0xff] }
 0x21f   :  { %v5460_v17 = vmax.f32 %v5326_v18, 0.0  ;;  %v5327_v22 = vadd.f32 %v9690_v0, %v5186_v27  ;;  %v4921_v36 = vmax.f32 %v10960_v23, %v3392_v3  ;;  %v7491_v33 = vpop.f32.mrb[162].mxu0  ;;  %v7759_v7 = vpop.f32.mrb[162].mxu1 }
 0x220   :  { %v6944_v53 = vpack.c.bf16 %v5462_v50, %v5462_v50  ;;  %v5463_v41 = vmax.f32 %v5329_v58, 0.0  ;;  %v5057_v37 = vmax.f32 %v4923_v11, %v10961_v63  ;;  %v4924_v51 = vmax.f32 %v10962_v42, %v7491_v33  ;;  %v3395_v8 = vpop.f32.mrb[163].mxu0  ;;  %v4467_v9 = vpop.f32.mrb[163].mxu1  ;;  %v10972_v58 = vld [vmem:[#allocation15_spill] sm:$0xff] }
 0x221   :  { %v6942_v59 = vpack.c.bf16 %v5460_v17, %v5460_v17  ;;  %v5461_v43 = vmax.f32 %v5327_v22, 0.0  ;;  %v5055_v28 = vmax.f32 %v4921_v36, %v10963_v12  ;;  %v4922_v61 = vmax.f32 %v10964_v38, %v3395_v8  ;;  %v10974_v36 = vld [vmem:[#allocation16_spill] sm:$0xff] }
 0x222   :  { %6133 = vst.msk [vmem:[%s10732_s3 + $0x60] sm:$0xf] %vm6108_vm3, %v6944_v53  ;;  %v6945_v45 = vpack.c.bf16 %v5463_v41, %v5463_v41  ;;  %v5191_v49 = vmax.f32 %v5057_v37, %v7758_v35  ;;  %v5058_v60 = vmax.f32 %v4924_v51, %v10965_v44  ;;  %v10971_v35 = vld [vmem:[#allocation12_spill] sm:$0xff] }
 0x223   :  { %6131 = vst.msk [vmem:[%s10732_s3 + $0x58] sm:$0xf] %vm6108_vm3, %v6942_v59  ;;  %v6943_v29 = vpack.c.bf16 %v5461_v43, %v5461_v43  ;;  %v5189_v52 = vmax.f32 %v5055_v28, %v4464_v6  ;;  %v5056_v24 = vmax.f32 %v4922_v61, %v10966_v4  ;;  %v10973_v6 = vld [vmem:[#allocation26_spill] sm:$0xff]  ;;  %v10976_v61 = vld [vmem:[#allocation19_spill] sm:$0xff] }
 0x224   :  { %6134 = vst.msk [vmem:[%s10732_s3 + $0x64] sm:$0xf] %vm6108_vm3, %v6945_v45  ;;  %v5332_v26 = vadd.f32 %v9690_v0, %v5191_v49  ;;  %v5192_v16 = vmax.f32 %v5058_v60, %v7759_v7 }
 0x225   :  { %6132 = vst.msk [vmem:[%s10732_s3 + $0x5c] sm:$0xf] %vm6108_vm3, %v6943_v29  ;;  %v5330_v40 = vadd.f32 %v9690_v0, %v5189_v52  ;;  %v5190_v56 = vmax.f32 %v5056_v24, %v4467_v9  ;;  %v7494_v20 = vpop.f32.mrb[164].mxu0  ;;  %v7762_v57 = vpop.f32.mrb[164].mxu1  ;;  %v10975_v9 = vld [vmem:[#allocation29_spill] sm:$0xff]  ;;  %v10977_v52 = vld [vmem:[#allocation30_spill] sm:$0xff] }
 0x226   :  { %v5466_v25 = vmax.f32 %v5332_v26, 0.0  ;;  %v5333_v30 = vadd.f32 %v9690_v0, %v5192_v16  ;;  %v4927_v46 = vmax.f32 %v10967_v39, %v7494_v20  ;;  %v3408_v47 = vpop.f32.mrb[165].mxu0  ;;  %v4480_v62 = vpop.f32.mrb[165].mxu1  ;;  %v10978_v24 = vld [vmem:[#allocation33_spill] sm:$0xff] }
 0x227   :  { %v5464_v31 = vmax.f32 %v5330_v40, 0.0  ;;  %v5331_v13 = vadd.f32 %v9690_v0, %v5190_v56  ;;  %v4925_v48 = vmax.f32 %v10968_v54, %v3408_v47  ;;  %v7495_v1 = vpop.f32.mrb[166].mxu0  ;;  %v7763_v14 = vpop.f32.mrb[166].mxu1 }
 0x228   :  { %v6948_v32 = vpack.c.bf16 %v5466_v25, %v5466_v25  ;;  %v5467_v21 = vmax.f32 %v5333_v30, 0.0  ;;  %v5061_v5 = vmax.f32 %v4927_v46, %v10969_v2  ;;  %v4928_v55 = vmax.f32 %v10970_v10, %v7495_v1  ;;  %v3411_v15 = vpop.f32.mrb[167].mxu0  ;;  %v4483_v18 = vpop.f32.mrb[167].mxu1  ;;  %v10980_v30 = vld [vmem:[#allocation23_spill] sm:$0xff] }
 0x229   :  { %v6946_v27 = vpack.c.bf16 %v5464_v31, %v5464_v31  ;;  %v5465_v34 = vmax.f32 %v5331_v13, 0.0  ;;  %v5059_v50 = vmax.f32 %v4925_v48, %v10971_v35  ;;  %v4926_v19 = vmax.f32 %v10972_v58, %v3411_v15  ;;  %v10982_v48 = vld [vmem:[#allocation24_spill] sm:$0xff] }
 0x22a   :  { %6137 = vst.msk [vmem:[%s10732_s3 + $0x70] sm:$0xf] %vm6108_vm3, %v6948_v32  ;;  %v6949_v11 = vpack.c.bf16 %v5467_v21, %v5467_v21  ;;  %v5195_v3 = vmax.f32 %v5061_v5, %v7762_v57  ;;  %v5062_v17 = vmax.f32 %v4928_v55, %v10973_v6  ;;  %v10979_v57 = vld [vmem:[#allocation20_spill] sm:$0xff] }
 0x22b   :  { %6135 = vst.msk [vmem:[%s10732_s3 + $0x68] sm:$0xf] %vm6108_vm3, %v6946_v27  ;;  %v6947_v22 = vpack.c.bf16 %v5465_v34, %v5465_v34  ;;  %v5193_v23 = vmax.f32 %v5059_v50, %v4480_v62  ;;  %v5060_v33 = vmax.f32 %v4926_v19, %v10974_v36  ;;  %v10981_v62 = vld [vmem:[#allocation34_spill] sm:$0xff]  ;;  %v10984_v19 = vld [vmem:[#allocation27_spill] sm:$0xff] }
 0x22c   :  { %6138 = vst.msk [vmem:[%s10732_s3 + $0x74] sm:$0xf] %vm6108_vm3, %v6949_v11  ;;  %v5336_v7 = vadd.f32 %v9690_v0, %v5195_v3  ;;  %v5196_v53 = vmax.f32 %v5062_v17, %v7763_v14 }
 0x22d   :  { %6136 = vst.msk [vmem:[%s10732_s3 + $0x6c] sm:$0xf] %vm6108_vm3, %v6947_v22  ;;  %v5334_v41 = vadd.f32 %v9690_v0, %v5193_v23  ;;  %v5194_v63 = vmax.f32 %v5060_v33, %v4483_v18  ;;  %v7498_v37 = vpop.f32.mrb[168].mxu0  ;;  %v7766_v42 = vpop.f32.mrb[168].mxu1  ;;  %v10983_v18 = vld [vmem:[#allocation37_spill] sm:$0xff]  ;;  %v10985_v23 = vld [vmem:[#allocation38_spill] sm:$0xff] }
 0x22e   :  { %v5470_v51 = vmax.f32 %v5336_v7, 0.0  ;;  %v5337_v8 = vadd.f32 %v9690_v0, %v5196_v53  ;;  %v4931_v59 = vmax.f32 %v10975_v9, %v7498_v37  ;;  %v3424_v43 = vpop.f32.mrb[169].mxu0  ;;  %v4496_v12 = vpop.f32.mrb[169].mxu1  ;;  %v10986_v33 = vld [vmem:[#allocation41_spill] sm:$0xff] }
 0x22f   :  { %v5468_v28 = vmax.f32 %v5334_v41, 0.0  ;;  %v5335_v38 = vadd.f32 %v9690_v0, %v5194_v63  ;;  %v4929_v45 = vmax.f32 %v10976_v61, %v3424_v43  ;;  %v7499_v49 = vpop.f32.mrb[170].mxu0  ;;  %v7767_v44 = vpop.f32.mrb[170].mxu1 }
 0x230   :  { %v6952_v60 = vpack.c.bf16 %v5470_v51, %v5470_v51  ;;  %v5471_v29 = vmax.f32 %v5337_v8, 0.0  ;;  %v5065_v4 = vmax.f32 %v4931_v59, %v10977_v52  ;;  %v4932_v26 = vmax.f32 %v10978_v24, %v7499_v49  ;;  %v3427_v16 = vpop.f32.mrb[171].mxu0  ;;  %v4499_v40 = vpop.f32.mrb[171].mxu1  ;;  %v10988_v8 = vld [vmem:[#allocation31_spill] sm:$0xff] }
 0x231   :  { %v6950_v56 = vpack.c.bf16 %v5468_v28, %v5468_v28  ;;  %v5469_v20 = vmax.f32 %v5335_v38, 0.0  ;;  %v5063_v25 = vmax.f32 %v4929_v45, %v10979_v57  ;;  %v4930_v39 = vmax.f32 %v10980_v30, %v3427_v16  ;;  %v10990_v45 = vld [vmem:[#allocation32_spill] sm:$0xff] }
 0x232   :  { %6141 = vst.msk [vmem:[%s10732_s3 + $0x80] sm:$0xf] %vm6108_vm3, %v6952_v60  ;;  %v6953_v46 = vpack.c.bf16 %v5471_v29, %v5471_v29  ;;  %v5199_v47 = vmax.f32 %v5065_v4, %v7766_v42  ;;  %v5066_v31 = vmax.f32 %v4932_v26, %v10981_v62  ;;  %v10987_v42 = vld [vmem:[#allocation28_spill] sm:$0xff] }
 0x233   :  { %6139 = vst.msk [vmem:[%s10732_s3 + $0x78] sm:$0xf] %vm6108_vm3, %v6950_v56  ;;  %v6951_v13 = vpack.c.bf16 %v5469_v20, %v5469_v20  ;;  %v5197_v54 = vmax.f32 %v5063_v25, %v4496_v12  ;;  %v5064_v1 = vmax.f32 %v4930_v39, %v10982_v48  ;;  %v10989_v12 = vld [vmem:[#allocation42_spill] sm:$0xff]  ;;  %v10992_v39 = vld [vmem:[#allocation35_spill] sm:$0xff] }
 0x234   :  { %6142 = vst.msk [vmem:[%s10732_s3 + $0x84] sm:$0xf] %vm6108_vm3, %v6953_v46  ;;  %v5340_v14 = vadd.f32 %v9690_v0, %v5199_v47  ;;  %v5200_v32 = vmax.f32 %v5066_v31, %v7767_v44 }
 0x235   :  { %6140 = vst.msk [vmem:[%s10732_s3 + $0x7c] sm:$0xf] %vm6108_vm3, %v6951_v13  ;;  %v5338_v21 = vadd.f32 %v9690_v0, %v5197_v54  ;;  %v5198_v2 = vmax.f32 %v5064_v1, %v4499_v40  ;;  %v7502_v5 = vpop.f32.mrb[172].mxu0  ;;  %v7770_v10 = vpop.f32.mrb[172].mxu1  ;;  %v10991_v40 = vld [vmem:[#allocation45_spill] sm:$0xff]  ;;  %v10993_v54 = vld [vmem:[#allocation46_spill] sm:$0xff] }
 0x236   :  { %v5474_v55 = vmax.f32 %v5340_v14, 0.0  ;;  %v5341_v15 = vadd.f32 %v9690_v0, %v5200_v32  ;;  %v4935_v27 = vmax.f32 %v10983_v18, %v7502_v5  ;;  %v3440_v34 = vpop.f32.mrb[173].mxu0  ;;  %v4512_v35 = vpop.f32.mrb[173].mxu1  ;;  %v10994_v1 = vld [vmem:[#allocation49_spill] sm:$0xff] }
 0x237   :  { %v5472_v50 = vmax.f32 %v5338_v21, 0.0  ;;  %v5339_v58 = vadd.f32 %v9690_v0, %v5198_v2  ;;  %v4933_v11 = vmax.f32 %v10984_v19, %v3440_v34  ;;  %v7503_v3 = vpop.f32.mrb[174].mxu0  ;;  %v7771_v6 = vpop.f32.mrb[174].mxu1 }
 0x238   :  { %v6956_v17 = vpack.c.bf16 %v5474_v55, %v5474_v55  ;;  %v5475_v22 = vmax.f32 %v5341_v15, 0.0  ;;  %v5069_v36 = vmax.f32 %v4935_v27, %v10985_v23  ;;  %v4936_v7 = vmax.f32 %v10986_v33, %v7503_v3  ;;  %v3443_v53 = vpop.f32.mrb[175].mxu0  ;;  %v4515_v41 = vpop.f32.mrb[175].mxu1  ;;  %v10996_v15 = vld [vmem:[#allocation39_spill] sm:$0xff] }
 0x239   :  { %v6954_v63 = vpack.c.bf16 %v5472_v50, %v5472_v50  ;;  %v5473_v37 = vmax.f32 %v5339_v58, 0.0  ;;  %v5067_v51 = vmax.f32 %v4933_v11, %v10987_v42  ;;  %v4934_v9 = vmax.f32 %v10988_v8, %v3443_v53  ;;  %v10998_v11 = vld [vmem:[#allocation40_spill] sm:$0xff] }
 0x23a   :  { %6145 = vst.msk [vmem:[%s10732_s3 + $0x90] sm:$0xf] %vm6108_vm3, %v6956_v17  ;;  %v6957_v59 = vpack.c.bf16 %v5475_v22, %v5475_v22  ;;  %v5203_v43 = vmax.f32 %v5069_v36, %v7770_v10  ;;  %v5070_v28 = vmax.f32 %v4936_v7, %v10989_v12  ;;  %v10995_v10 = vld [vmem:[#allocation36_spill] sm:$0xff] }
 0x23b   :  { %6143 = vst.msk [vmem:[%s10732_s3 + $0x88] sm:$0xf] %vm6108_vm3, %v6954_v63  ;;  %v6955_v38 = vpack.c.bf16 %v5473_v37, %v5473_v37  ;;  %v5201_v61 = vmax.f32 %v5067_v51, %v4512_v35  ;;  %v5068_v49 = vmax.f32 %v4934_v9, %v10990_v45  ;;  %v10997_v35 = vld [vmem:[#allocation50_spill] sm:$0xff]  ;;  %v11000_v9 = vld [vmem:[#allocation43_spill] sm:$0xff] }
 0x23c   :  { %6146 = vst.msk [vmem:[%s10732_s3 + $0x94] sm:$0xf] %vm6108_vm3, %v6957_v59  ;;  %v5344_v44 = vadd.f32 %v9690_v0, %v5203_v43  ;;  %v5204_v60 = vmax.f32 %v5070_v28, %v7771_v6 }
 0x23d   :  { %6144 = vst.msk [vmem:[%s10732_s3 + $0x8c] sm:$0xf] %vm6108_vm3, %v6955_v38  ;;  %v5342_v29 = vadd.f32 %v9690_v0, %v5201_v61  ;;  %v5202_v52 = vmax.f32 %v5068_v49, %v4515_v41  ;;  %v7506_v4 = vpop.f32.mrb[176].mxu0  ;;  %v7774_v24 = vpop.f32.mrb[176].mxu1  ;;  %v10999_v41 = vld [vmem:[#allocation53_spill] sm:$0xff]  ;;  %v11001_v61 = vld [vmem:[#allocation54_spill] sm:$0xff] }
 0x23e   :  { %v5478_v26 = vmax.f32 %v5344_v44, 0.0  ;;  %v5345_v16 = vadd.f32 %v9690_v0, %v5204_v60  ;;  %v4939_v56 = vmax.f32 %v10991_v40, %v7506_v4  ;;  %v3456_v20 = vpop.f32.mrb[177].mxu0  ;;  %v4528_v57 = vpop.f32.mrb[177].mxu1  ;;  %v11002_v49 = vld [vmem:[#allocation57_spill] sm:$0xff] }
 0x23f   :  { %v5476_v25 = vmax.f32 %v5342_v29, 0.0  ;;  %v5343_v30 = vadd.f32 %v9690_v0, %v5202_v52  ;;  %v4937_v46 = vmax.f32 %v10992_v39, %v3456_v20  ;;  %v7507_v47 = vpop.f32.mrb[178].mxu0  ;;  %v7775_v62 = vpop.f32.mrb[178].mxu1 }
 0x240   :  { %v6960_v31 = vpack.c.bf16 %v5478_v26, %v5478_v26  ;;  %v5479_v13 = vmax.f32 %v5345_v16, 0.0  ;;  %v5073_v48 = vmax.f32 %v4939_v56, %v10993_v54  ;;  %v4940_v14 = vmax.f32 %v10994_v1, %v7507_v47  ;;  %v3459_v32 = vpop.f32.mrb[179].mxu0  ;;  %v4531_v21 = vpop.f32.mrb[179].mxu1  ;;  %v11004_v16 = vld [vmem:[#allocation47_spill] sm:$0xff] }
 0x241   :  { %v6958_v2 = vpack.c.bf16 %v5476_v25, %v5476_v25  ;;  %v5477_v5 = vmax.f32 %v5343_v30, 0.0  ;;  %v5071_v55 = vmax.f32 %v4937_v46, %v10995_v10  ;;  %v4938_v18 = vmax.f32 %v10996_v15, %v3459_v32  ;;  %v11006_v46 = vld [vmem:[#allocation48_spill] sm:$0xff] }
 0x242   :  { %6149 = vst.msk [vmem:[%s10732_s3 + $0xa0] sm:$0xf] %vm6108_vm3, %v6960_v31  ;;  %v6961_v27 = vpack.c.bf16 %v5479_v13, %v5479_v13  ;;  %v5207_v34 = vmax.f32 %v5073_v48, %v7774_v24  ;;  %v5074_v50 = vmax.f32 %v4940_v14, %v10997_v35  ;;  %v11003_v24 = vld [vmem:[#allocation44_spill] sm:$0xff] }
 0x243   :  { %6147 = vst.msk [vmem:[%s10732_s3 + $0x98] sm:$0xf] %vm6108_vm3, %v6958_v2  ;;  %v6959_v58 = vpack.c.bf16 %v5477_v5, %v5477_v5  ;;  %v5205_v19 = vmax.f32 %v5071_v55, %v4528_v57  ;;  %v5072_v3 = vmax.f32 %v4938_v18, %v10998_v11  ;;  %v11005_v57 = vld [vmem:[#allocation58_spill] sm:$0xff]  ;;  %v11008_v18 = vld [vmem:[#allocation51_spill] sm:$0xff] }
 0x244   :  { %6150 = vst.msk [vmem:[%s10732_s3 + $0xa4] sm:$0xf] %vm6108_vm3, %v6961_v27  ;;  %v5348_v6 = vadd.f32 %v9690_v0, %v5207_v34  ;;  %v5208_v17 = vmax.f32 %v5074_v50, %v7775_v62 }
 0x245   :  { %6148 = vst.msk [vmem:[%s10732_s3 + $0x9c] sm:$0xf] %vm6108_vm3, %v6959_v58  ;;  %v5346_v22 = vadd.f32 %v9690_v0, %v5205_v19  ;;  %v5206_v23 = vmax.f32 %v5072_v3, %v4531_v21  ;;  %v7510_v36 = vpop.f32.mrb[180].mxu0  ;;  %v7778_v33 = vpop.f32.mrb[180].mxu1  ;;  %v11007_v21 = vld [vmem:[#allocation61_spill] sm:$0xff]  ;;  %v11009_v19 = vld [vmem:[#allocation62_spill] sm:$0xff] }
 0x246   :  { %v5482_v7 = vmax.f32 %v5348_v6, 0.0  ;;  %v5349_v53 = vadd.f32 %v9690_v0, %v5208_v17  ;;  %v4943_v63 = vmax.f32 %v10999_v41, %v7510_v36  ;;  %v3472_v37 = vpop.f32.mrb[181].mxu0  ;;  %v4544_v42 = vpop.f32.mrb[181].mxu1  ;;  %v11010_v3 = vld [vmem:[#allocation65_spill] sm:$0xff] }
 0x247   :  { %v5480_v51 = vmax.f32 %v5346_v22, 0.0  ;;  %v5347_v8 = vadd.f32 %v9690_v0, %v5206_v23  ;;  %v4941_v59 = vmax.f32 %v11000_v9, %v3472_v37  ;;  %v7511_v43 = vpop.f32.mrb[182].mxu0  ;;  %v7779_v12 = vpop.f32.mrb[182].mxu1 }
 0x248   :  { %v6964_v28 = vpack.c.bf16 %v5482_v7, %v5482_v7  ;;  %v5483_v38 = vmax.f32 %v5349_v53, 0.0  ;;  %v5077_v45 = vmax.f32 %v4943_v63, %v11001_v61  ;;  %v4944_v44 = vmax.f32 %v11002_v49, %v7511_v43  ;;  %v3475_v60 = vpop.f32.mrb[183].mxu0  ;;  %v4547_v29 = vpop.f32.mrb[183].mxu1  ;;  %v11012_v53 = vld [vmem:[#allocation55_spill] sm:$0xff] }
 0x249   :  { %v6962_v52 = vpack.c.bf16 %v5480_v51, %v5480_v51  ;;  %v5481_v4 = vmax.f32 %v5347_v8, 0.0  ;;  %v5075_v26 = vmax.f32 %v4941_v59, %v11003_v24  ;;  %v4942_v40 = vmax.f32 %v11004_v16, %v3475_v60  ;;  %v11014_v59 = vld [vmem:[#allocation56_spill] sm:$0xff] }
 0x24a   :  { %6153 = vst.msk [vmem:[%s10732_s3 + $0xb0] sm:$0xf] %vm6108_vm3, %v6964_v28  ;;  %v6965_v56 = vpack.c.bf16 %v5483_v38, %v5483_v38  ;;  %v5211_v20 = vmax.f32 %v5077_v45, %v7778_v33  ;;  %v5078_v25 = vmax.f32 %v4944_v44, %v11005_v57  ;;  %v11011_v33 = vld [vmem:[#allocation52_spill] sm:$0xff]  ;;  %v10143_v38 = vld [vmem:[%s10731_s2] ss:$0 sm:$0xff] }
 0x24b   :  { %6151 = vst.msk [vmem:[%s10732_s3 + $0xa8] sm:$0xf] %vm6108_vm3, %v6962_v52  ;;  %v6963_v30 = vpack.c.bf16 %v5481_v4, %v5481_v4  ;;  %v5209_v39 = vmax.f32 %v5075_v26, %v4544_v42  ;;  %v5076_v47 = vmax.f32 %v4942_v40, %v11006_v46  ;;  %v11013_v42 = vld [vmem:[#allocation66_spill] sm:$0xff]  ;;  %v11016_v40 = vld [vmem:[#allocation59_spill] sm:$0xff] }
 0x24c   :  { %6154 = vst.msk [vmem:[%s10732_s3 + $0xb4] sm:$0xf] %vm6108_vm3, %v6965_v56  ;;  %v5352_v62 = vadd.f32 %v9690_v0, %v5211_v20  ;;  %v5212_v31 = vmax.f32 %v5078_v25, %v7779_v12 }
 0x24d   :  { %6152 = vst.msk [vmem:[%s10732_s3 + $0xac] sm:$0xf] %vm6108_vm3, %v6963_v30  ;;  %v5350_v13 = vadd.f32 %v9690_v0, %v5209_v39  ;;  %v5210_v54 = vmax.f32 %v5076_v47, %v4547_v29  ;;  %v7514_v48 = vpop.f32.mrb[184].mxu0  ;;  %v7782_v1 = vpop.f32.mrb[184].mxu1  ;;  %v11017_v39 = vld [vmem:[#allocation70_spill] sm:$0xff]  ;;  %v11018_v47 = vld [vmem:[#allocation73_spill] sm:$0xff] }
 0x24e   :  { %v5486_v14 = vmax.f32 %v5352_v62, 0.0  ;;  %v5353_v32 = vadd.f32 %v9690_v0, %v5212_v31  ;;  %v4947_v2 = vmax.f32 %v11007_v21, %v7514_v48  ;;  %v3488_v5 = vpop.f32.mrb[185].mxu0  ;;  %v4560_v10 = vpop.f32.mrb[185].mxu1 }
 0x24f   :  { %v5484_v55 = vmax.f32 %v5350_v13, 0.0  ;;  %v5351_v15 = vadd.f32 %v9690_v0, %v5210_v54  ;;  %v4945_v27 = vmax.f32 %v11008_v18, %v3488_v5  ;;  %v7515_v34 = vpop.f32.mrb[186].mxu0  ;;  %v7783_v35 = vpop.f32.mrb[186].mxu1 }
 0x250   :  { %v6968_v50 = vpack.c.bf16 %v5486_v14, %v5486_v14  ;;  %v5487_v58 = vmax.f32 %v5353_v32, 0.0  ;;  %v5081_v11 = vmax.f32 %v4947_v2, %v11009_v19  ;;  %v4948_v6 = vmax.f32 %v11010_v3, %v7515_v34  ;;  %v3491_v17 = vpop.f32.mrb[187].mxu0  ;;  %v4563_v22 = vpop.f32.mrb[187].mxu1  ;;  %v11020_v32 = vld [vmem:[#allocation63_spill] sm:$0xff] }
 0x251   :  { %v6966_v23 = vpack.c.bf16 %v5484_v55, %v5484_v55  ;;  %v5485_v36 = vmax.f32 %v5351_v15, 0.0  ;;  %v5079_v7 = vmax.f32 %v4945_v27, %v11011_v33  ;;  %v4946_v41 = vmax.f32 %v11012_v53, %v3491_v17  ;;  %v11022_v27 = vld [vmem:[#allocation64_spill] sm:$0xff] }
 0x252   :  { %6157 = vst.msk [vmem:[%s10732_s3 + $0xc0] sm:$0xf] %vm6108_vm3, %v6968_v50  ;;  %v6969_v63 = vpack.c.bf16 %v5487_v58, %v5487_v58  ;;  %v5215_v37 = vmax.f32 %v5081_v11, %v7782_v1  ;;  %v5082_v51 = vmax.f32 %v4948_v6, %v11013_v42  ;;  %v11019_v1 = vld [vmem:[#allocation60_spill] sm:$0xff] }
 0x253   :  { %6155 = vst.msk [vmem:[%s10732_s3 + $0xb8] sm:$0xf] %vm6108_vm3, %v6966_v23  ;;  %v6967_v8 = vpack.c.bf16 %v5485_v36, %v5485_v36  ;;  %v5213_v9 = vmax.f32 %v5079_v7, %v4560_v10  ;;  %v5080_v43 = vmax.f32 %v4946_v41, %v11014_v59  ;;  %v11021_v10 = vld [vmem:[#allocation74_spill] sm:$0xff]  ;;  %v11024_v41 = vld [vmem:[#allocation67_spill] sm:$0xff] }
 0x254   :  { %6158 = vst.msk [vmem:[%s10732_s3 + $0xc4] sm:$0xf] %vm6108_vm3, %v6969_v63  ;;  %v5356_v12 = vadd.f32 %v9690_v0, %v5215_v37  ;;  %v5216_v28 = vmax.f32 %v5082_v51, %v7783_v35  ;;  %v11015_v0 = vld [vmem:[#allocation69_spill] sm:$0xff] }
 0x255   :  { %6156 = vst.msk [vmem:[%s10732_s3 + $0xbc] sm:$0xf] %vm6108_vm3, %v6967_v8  ;;  %v5354_v61 = vadd.f32 %v10143_v38, %v5213_v9  ;;  %v5214_v45 = vmax.f32 %v5080_v43, %v4563_v22  ;;  %v7518_v49 = vpop.f32.mrb[188].mxu0  ;;  %v7786_v44 = vpop.f32.mrb[188].mxu1  ;;  %v11023_v22 = vld [vmem:[#allocation77_spill] sm:$0xff]  ;;  %v11025_v9 = vld [vmem:[#allocation78_spill] sm:$0xff] }
 0x256   :  { %v5490_v60 = vmax.f32 %v5356_v12, 0.0  ;;  %v5357_v29 = vadd.f32 %v10143_v38, %v5216_v28  ;;  %v4951_v52 = vmax.f32 %v11015_v0, %v7518_v49  ;;  %v3504_v4 = vpop.f32.mrb[189].mxu0  ;;  %v4576_v24 = vpop.f32.mrb[189].mxu1  ;;  %v11026_v43 = vld [vmem:[#allocation81_spill] sm:$0xff] }
 0x257   :  { %v5488_v26 = vmax.f32 %v5354_v61, 0.0  ;;  %v5355_v16 = vadd.f32 %v10143_v38, %v5214_v45  ;;  %v4949_v56 = vmax.f32 %v11016_v40, %v3504_v4  ;;  %v7519_v20 = vpop.f32.mrb[190].mxu0  ;;  %v7787_v57 = vpop.f32.mrb[190].mxu1 }
 0x258   :  { %v6972_v25 = vpack.c.bf16 %v5490_v60, %v5490_v60  ;;  %v5491_v30 = vmax.f32 %v5357_v29, 0.0  ;;  %v5085_v46 = vmax.f32 %v4951_v52, %v11017_v39  ;;  %v4952_v62 = vmax.f32 %v11018_v47, %v7519_v20  ;;  %v3507_v31 = vpop.f32.mrb[191].mxu0  ;;  %v4579_v13 = vpop.f32.mrb[191].mxu1  ;;  %v11028_v29 = vld [vmem:[#allocation71_spill] sm:$0xff] }
 0x259   :  { %v6970_v54 = vpack.c.bf16 %v5488_v26, %v5488_v26  ;;  %v5489_v48 = vmax.f32 %v5355_v16, 0.0  ;;  %v5083_v14 = vmax.f32 %v4949_v56, %v11019_v1  ;;  %v4950_v21 = vmax.f32 %v11020_v32, %v3507_v31  ;;  %v11030_v56 = vld [vmem:[#allocation72_spill] sm:$0xff] }
 0x25a   :  { %6161 = vst.msk [vmem:[%s10732_s3 + $0xd0] sm:$0xf] %vm6108_vm3, %v6972_v25  ;;  %v6973_v2 = vpack.c.bf16 %v5491_v30, %v5491_v30  ;;  %v5219_v5 = vmax.f32 %v5085_v46, %v7786_v44  ;;  %v5086_v55 = vmax.f32 %v4952_v62, %v11021_v10  ;;  %v11027_v44 = vld [vmem:[#allocation68_spill] sm:$0xff] }
 0x25b   :  { %6159 = vst.msk [vmem:[%s10732_s3 + $0xc8] sm:$0xf] %vm6108_vm3, %v6970_v54  ;;  %v6971_v15 = vpack.c.bf16 %v5489_v48, %v5489_v48  ;;  %v5217_v18 = vmax.f32 %v5083_v14, %v4576_v24  ;;  %v5084_v34 = vmax.f32 %v4950_v21, %v11022_v27  ;;  %v11029_v24 = vld [vmem:[#allocation82_spill] sm:$0xff]  ;;  %v11032_v21 = vld [vmem:[#allocation75_spill] sm:$0xff] }
 0x25c   :  { %6162 = vst.msk [vmem:[%s10732_s3 + $0xd4] sm:$0xf] %vm6108_vm3, %v6973_v2  ;;  %v5360_v35 = vadd.f32 %v10143_v38, %v5219_v5  ;;  %v5220_v50 = vmax.f32 %v5086_v55, %v7787_v57 }
 0x25d   :  { %6160 = vst.msk [vmem:[%s10732_s3 + $0xcc] sm:$0xf] %vm6108_vm3, %v6971_v15  ;;  %v5358_v58 = vadd.f32 %v10143_v38, %v5217_v18  ;;  %v5218_v19 = vmax.f32 %v5084_v34, %v4579_v13  ;;  %v7522_v11 = vpop.f32.mrb[192].mxu0  ;;  %v7790_v3 = vpop.f32.mrb[192].mxu1  ;;  %v11031_v13 = vld [vmem:[#allocation85_spill] sm:$0xff]  ;;  %v11033_v18 = vld [vmem:[#allocation86_spill] sm:$0xff] }
 0x25e   :  { %v5494_v6 = vmax.f32 %v5360_v35, 0.0  ;;  %v5361_v17 = vadd.f32 %v10143_v38, %v5220_v50  ;;  %v4955_v23 = vmax.f32 %v11023_v22, %v7522_v11  ;;  %v3520_v36 = vpop.f32.mrb[193].mxu0  ;;  %v4592_v33 = vpop.f32.mrb[193].mxu1  ;;  %v11034_v34 = vld [vmem:[#allocation89_spill] sm:$0xff] }
 0x25f   :  { %v5492_v7 = vmax.f32 %v5358_v58, 0.0  ;;  %v5359_v53 = vadd.f32 %v10143_v38, %v5218_v19  ;;  %v4953_v63 = vmax.f32 %v11024_v41, %v3520_v36  ;;  %v7523_v37 = vpop.f32.mrb[194].mxu0  ;;  %v7791_v42 = vpop.f32.mrb[194].mxu1 }
 0x260   :  { %v6976_v51 = vpack.c.bf16 %v5494_v6, %v5494_v6  ;;  %v5495_v8 = vmax.f32 %v5361_v17, 0.0  ;;  %v5089_v59 = vmax.f32 %v4955_v23, %v11025_v9  ;;  %v4956_v12 = vmax.f32 %v11026_v43, %v7523_v37  ;;  %v3523_v28 = vpop.f32.mrb[195].mxu0  ;;  %v4595_v61 = vpop.f32.mrb[195].mxu1  ;;  %v11036_v17 = vld [vmem:[#allocation79_spill] sm:$0xff] }
 0x261   :  { %v6974_v45 = vpack.c.bf16 %v5492_v7, %v5492_v7  ;;  %v5493_v49 = vmax.f32 %v5359_v53, 0.0  ;;  %v5087_v60 = vmax.f32 %v4953_v63, %v11027_v44  ;;  %v4954_v0 = vmax.f32 %v11028_v29, %v3523_v28  ;;  %v11038_v63 = vld [vmem:[#allocation80_spill] sm:$0xff] }
 0x262   :  { %6165 = vst.msk [vmem:[%s10732_s3 + $0xe0] sm:$0xf] %vm6108_vm3, %v6976_v51  ;;  %v6977_v52 = vpack.c.bf16 %v5495_v8, %v5495_v8  ;;  %v5223_v4 = vmax.f32 %v5089_v59, %v7790_v3  ;;  %v5090_v26 = vmax.f32 %v4956_v12, %v11029_v24  ;;  %v11035_v3 = vld [vmem:[#allocation76_spill] sm:$0xff] }
 0x263   :  { %6163 = vst.msk [vmem:[%s10732_s3 + $0xd8] sm:$0xf] %vm6108_vm3, %v6974_v45  ;;  %v6975_v16 = vpack.c.bf16 %v5493_v49, %v5493_v49  ;;  %v5221_v40 = vmax.f32 %v5087_v60, %v4592_v33  ;;  %v5088_v20 = vmax.f32 %v4954_v0, %v11030_v56  ;;  %v11037_v33 = vld [vmem:[#allocation90_spill] sm:$0xff]  ;;  %v11040_v0 = vld [vmem:[#allocation83_spill] sm:$0xff] }
 0x264   :  { %6166 = vst.msk [vmem:[%s10732_s3 + $0xe4] sm:$0xf] %vm6108_vm3, %v6977_v52  ;;  %v5364_v57 = vadd.f32 %v10143_v38, %v5223_v4  ;;  %v5224_v25 = vmax.f32 %v5090_v26, %v7791_v42 }
 0x265   :  { %6164 = vst.msk [vmem:[%s10732_s3 + $0xdc] sm:$0xf] %vm6108_vm3, %v6975_v16  ;;  %v5362_v30 = vadd.f32 %v10143_v38, %v5221_v40  ;;  %v5222_v39 = vmax.f32 %v5088_v20, %v4595_v61  ;;  %v7526_v46 = vpop.f32.mrb[196].mxu0  ;;  %v7794_v47 = vpop.f32.mrb[196].mxu1  ;;  %v11039_v61 = vld [vmem:[#allocation93_spill] sm:$0xff]  ;;  %v11041_v40 = vld [vmem:[#allocation94_spill] sm:$0xff] }
 0x266   :  { %v5498_v62 = vmax.f32 %v5364_v57, 0.0  ;;  %v5365_v31 = vadd.f32 %v10143_v38, %v5224_v25  ;;  %v4959_v54 = vmax.f32 %v11031_v13, %v7526_v46  ;;  %v3536_v48 = vpop.f32.mrb[197].mxu0  ;;  %v4608_v1 = vpop.f32.mrb[197].mxu1  ;;  %v11042_v20 = vld [vmem:[#allocation97_spill] sm:$0xff] }
 0x267   :  { %v5496_v14 = vmax.f32 %v5362_v30, 0.0  ;;  %v5363_v32 = vadd.f32 %v10143_v38, %v5222_v39  ;;  %v4957_v2 = vmax.f32 %v11032_v21, %v3536_v48  ;;  %v7527_v5 = vpop.f32.mrb[198].mxu0  ;;  %v7795_v10 = vpop.f32.mrb[198].mxu1 }
 0x268   :  { %v6980_v55 = vpack.c.bf16 %v5498_v62, %v5498_v62  ;;  %v5499_v15 = vmax.f32 %v5365_v31, 0.0  ;;  %v5093_v27 = vmax.f32 %v4959_v54, %v11033_v18  ;;  %v4960_v35 = vmax.f32 %v11034_v34, %v7527_v5  ;;  %v3539_v50 = vpop.f32.mrb[199].mxu0  ;;  %v4611_v58 = vpop.f32.mrb[199].mxu1  ;;  %v11044_v31 = vld [vmem:[#allocation87_spill] sm:$0xff] }
 0x269   :  { %v6978_v19 = vpack.c.bf16 %v5496_v14, %v5496_v14  ;;  %v5497_v11 = vmax.f32 %v5363_v32, 0.0  ;;  %v5091_v6 = vmax.f32 %v4957_v2, %v11035_v3  ;;  %v4958_v22 = vmax.f32 %v11036_v17, %v3539_v50  ;;  %v11046_v2 = vld [vmem:[#allocation88_spill] sm:$0xff] }
 0x26a   :  { %6169 = vst.msk [vmem:[%s10732_s3 + $0xf0] sm:$0xf] %vm6108_vm3, %v6980_v55  ;;  %v6981_v23 = vpack.c.bf16 %v5499_v15, %v5499_v15  ;;  %v5227_v36 = vmax.f32 %v5093_v27, %v7794_v47  ;;  %v5094_v7 = vmax.f32 %v4960_v35, %v11037_v33  ;;  %v11043_v47 = vld [vmem:[#allocation84_spill] sm:$0xff] }
 0x26b   :  { %6167 = vst.msk [vmem:[%s10732_s3 + $0xe8] sm:$0xf] %vm6108_vm3, %v6978_v19  ;;  %v6979_v53 = vpack.c.bf16 %v5497_v11, %v5497_v11  ;;  %v5225_v41 = vmax.f32 %v5091_v6, %v4608_v1  ;;  %v5092_v37 = vmax.f32 %v4958_v22, %v11038_v63  ;;  %v11045_v1 = vld [vmem:[#allocation98_spill] sm:$0xff]  ;;  %v11048_v22 = vld [vmem:[#allocation91_spill] sm:$0xff] }
 0x26c   :  { %6170 = vst.msk [vmem:[%s10732_s3 + $0xf4] sm:$0xf] %vm6108_vm3, %v6981_v23  ;;  %v5368_v42 = vadd.f32 %v10143_v38, %v5227_v36  ;;  %v5228_v51 = vmax.f32 %v5094_v7, %v7795_v10 }
 0x26d   :  { %6168 = vst.msk [vmem:[%s10732_s3 + $0xec] sm:$0xf] %vm6108_vm3, %v6979_v53  ;;  %v5366_v8 = vadd.f32 %v10143_v38, %v5225_v41  ;;  %v5226_v9 = vmax.f32 %v5092_v37, %v4611_v58  ;;  %v7530_v59 = vpop.f32.mrb[200].mxu0  ;;  %v7798_v43 = vpop.f32.mrb[200].mxu1  ;;  %v11047_v58 = vld [vmem:[#allocation101_spill] sm:$0xff]  ;;  %v11049_v41 = vld [vmem:[#allocation102_spill] sm:$0xff] }
 0x26e   :  { %v5502_v12 = vmax.f32 %v5368_v42, 0.0  ;;  %v5369_v28 = vadd.f32 %v10143_v38, %v5228_v51  ;;  %v4963_v45 = vmax.f32 %v11039_v61, %v7530_v59  ;;  %v3552_v49 = vpop.f32.mrb[201].mxu0  ;;  %v4624_v44 = vpop.f32.mrb[201].mxu1  ;;  %v11050_v37 = vld [vmem:[#allocation105_spill] sm:$0xff] }
 0x26f   :  { %v5500_v60 = vmax.f32 %v5366_v8, 0.0  ;;  %v5367_v29 = vadd.f32 %v10143_v38, %v5226_v9  ;;  %v4961_v52 = vmax.f32 %v11040_v0, %v3552_v49  ;;  %v7531_v4 = vpop.f32.mrb[202].mxu0  ;;  %v7799_v24 = vpop.f32.mrb[202].mxu1 }
 0x270   :  { %v6984_v26 = vpack.c.bf16 %v5502_v12, %v5502_v12  ;;  %v5503_v16 = vmax.f32 %v5369_v28, 0.0  ;;  %v5097_v56 = vmax.f32 %v4963_v45, %v11041_v40  ;;  %v4964_v57 = vmax.f32 %v11042_v20, %v7531_v4  ;;  %v3555_v25 = vpop.f32.mrb[203].mxu0  ;;  %v4627_v30 = vpop.f32.mrb[203].mxu1  ;;  %v11052_v28 = vld [vmem:[#allocation95_spill] sm:$0xff] }
 0x271   :  { %v6982_v39 = vpack.c.bf16 %v5500_v60, %v5500_v60  ;;  %v5501_v46 = vmax.f32 %v5367_v29, 0.0  ;;  %v5095_v62 = vmax.f32 %v4961_v52, %v11043_v47  ;;  %v4962_v13 = vmax.f32 %v11044_v31, %v3555_v25  ;;  %v11054_v52 = vld [vmem:[#allocation96_spill] sm:$0xff] }
 0x272   :  { %6173 = vst.msk [vmem:[%s10732_s3 + $0x100] sm:$0xf] %vm6108_vm3, %v6984_v26  ;;  %v6985_v54 = vpack.c.bf16 %v5503_v16, %v5503_v16  ;;  %v5231_v48 = vmax.f32 %v5097_v56, %v7798_v43  ;;  %v5098_v14 = vmax.f32 %v4964_v57, %v11045_v1  ;;  %v11051_v43 = vld [vmem:[#allocation92_spill] sm:$0xff] }
 0x273   :  { %6171 = vst.msk [vmem:[%s10732_s3 + $0xf8] sm:$0xf] %vm6108_vm3, %v6982_v39  ;;  %v6983_v32 = vpack.c.bf16 %v5501_v46, %v5501_v46  ;;  %v5229_v21 = vmax.f32 %v5095_v62, %v4624_v44  ;;  %v5096_v5 = vmax.f32 %v4962_v13, %v11046_v2  ;;  %v11053_v44 = vld [vmem:[#allocation106_spill] sm:$0xff]  ;;  %v11056_v13 = vld [vmem:[#allocation99_spill] sm:$0xff] }
 0x274   :  { %6174 = vst.msk [vmem:[%s10732_s3 + $0x104] sm:$0xf] %vm6108_vm3, %v6985_v54  ;;  %v5372_v10 = vadd.f32 %v10143_v38, %v5231_v48  ;;  %v5232_v55 = vmax.f32 %v5098_v14, %v7799_v24 }
 0x275   :  { %6172 = vst.msk [vmem:[%s10732_s3 + $0xfc] sm:$0xf] %vm6108_vm3, %v6983_v32  ;;  %v5370_v15 = vadd.f32 %v10143_v38, %v5229_v21  ;;  %v5230_v18 = vmax.f32 %v5096_v5, %v4627_v30  ;;  %v7534_v27 = vpop.f32.mrb[204].mxu0  ;;  %v7802_v34 = vpop.f32.mrb[204].mxu1  ;;  %v11055_v30 = vld [vmem:[#allocation109_spill] sm:$0xff]  ;;  %v11057_v21 = vld [vmem:[#allocation110_spill] sm:$0xff] }
 0x276   :  { %v5506_v35 = vmax.f32 %v5372_v10, 0.0  ;;  %v5373_v50 = vadd.f32 %v10143_v38, %v5232_v55  ;;  %v4967_v19 = vmax.f32 %v11047_v58, %v7534_v27  ;;  %v3568_v11 = vpop.f32.mrb[205].mxu0  ;;  %v4640_v3 = vpop.f32.mrb[205].mxu1  ;;  %v11058_v5 = vld [vmem:[#allocation113_spill] sm:$0xff] }
 0x277   :  { %v5504_v6 = vmax.f32 %v5370_v15, 0.0  ;;  %v5371_v17 = vadd.f32 %v10143_v38, %v5230_v18  ;;  %v4965_v23 = vmax.f32 %v11048_v22, %v3568_v11  ;;  %v7535_v36 = vpop.f32.mrb[206].mxu0  ;;  %v7803_v33 = vpop.f32.mrb[206].mxu1 }
 0x278   :  { %v6988_v7 = vpack.c.bf16 %v5506_v35, %v5506_v35  ;;  %v5507_v53 = vmax.f32 %v5373_v50, 0.0  ;;  %v5101_v63 = vmax.f32 %v4967_v19, %v11049_v41  ;;  %v4968_v42 = vmax.f32 %v11050_v37, %v7535_v36  ;;  %v3571_v51 = vpop.f32.mrb[207].mxu0  ;;  %v4643_v8 = vpop.f32.mrb[207].mxu1  ;;  %v11060_v50 = vld [vmem:[#allocation103_spill] sm:$0xff] }
 0x279   :  { %v6986_v9 = vpack.c.bf16 %v5504_v6, %v5504_v6  ;;  %v5505_v59 = vmax.f32 %v5371_v17, 0.0  ;;  %v5099_v12 = vmax.f32 %v4965_v23, %v11051_v43  ;;  %v4966_v61 = vmax.f32 %v11052_v28, %v3571_v51  ;;  %v11062_v23 = vld [vmem:[#allocation104_spill] sm:$0xff] }
 0x27a   :  { %6177 = vst.msk [vmem:[%s10732_s3 + $0x110] sm:$0xf] %vm6108_vm3, %v6988_v7  ;;  %v6989_v45 = vpack.c.bf16 %v5507_v53, %v5507_v53  ;;  %v5235_v49 = vmax.f32 %v5101_v63, %v7802_v34  ;;  %v5102_v60 = vmax.f32 %v4968_v42, %v11053_v44  ;;  %v11059_v34 = vld [vmem:[#allocation100_spill] sm:$0xff] }
 0x27b   :  { %6175 = vst.msk [vmem:[%s10732_s3 + $0x108] sm:$0xf] %vm6108_vm3, %v6986_v9  ;;  %v6987_v29 = vpack.c.bf16 %v5505_v59, %v5505_v59  ;;  %v5233_v0 = vmax.f32 %v5099_v12, %v4640_v3  ;;  %v5100_v4 = vmax.f32 %v4966_v61, %v11054_v52  ;;  %v11061_v3 = vld [vmem:[#allocation114_spill] sm:$0xff]  ;;  %v11064_v61 = vld [vmem:[#allocation107_spill] sm:$0xff] }
 0x27c   :  { %6178 = vst.msk [vmem:[%s10732_s3 + $0x114] sm:$0xf] %vm6108_vm3, %v6989_v45  ;;  %v5376_v24 = vadd.f32 %v10143_v38, %v5235_v49  ;;  %v5236_v26 = vmax.f32 %v5102_v60, %v7803_v33 }
 0x27d   :  { %6176 = vst.msk [vmem:[%s10732_s3 + $0x10c] sm:$0xf] %vm6108_vm3, %v6987_v29  ;;  %v5374_v16 = vadd.f32 %v10143_v38, %v5233_v0  ;;  %v5234_v40 = vmax.f32 %v5100_v4, %v4643_v8  ;;  %v7538_v56 = vpop.f32.mrb[208].mxu0  ;;  %v7806_v20 = vpop.f32.mrb[208].mxu1  ;;  %v11063_v8 = vld [vmem:[#allocation117_spill] sm:$0xff]  ;;  %v11065_v0 = vld [vmem:[#allocation118_spill] sm:$0xff] }
 0x27e   :  { %v5510_v57 = vmax.f32 %v5376_v24, 0.0  ;;  %v5377_v25 = vadd.f32 %v10143_v38, %v5236_v26  ;;  %v4971_v39 = vmax.f32 %v11055_v30, %v7538_v56  ;;  %v3584_v46 = vpop.f32.mrb[209].mxu0  ;;  %v4656_v47 = vpop.f32.mrb[209].mxu1  ;;  %v11066_v4 = vld [vmem:[#allocation121_spill] sm:$0xff] }
 0x27f   :  { %v5508_v62 = vmax.f32 %v5374_v16, 0.0  ;;  %v5375_v31 = vadd.f32 %v10143_v38, %v5234_v40  ;;  %v4969_v54 = vmax.f32 %v11056_v13, %v3584_v46  ;;  %v7539_v48 = vpop.f32.mrb[210].mxu0  ;;  %v7807_v1 = vpop.f32.mrb[210].mxu1 }
 0x280   :  { %v6992_v14 = vpack.c.bf16 %v5510_v57, %v5510_v57  ;;  %v5511_v32 = vmax.f32 %v5377_v25, 0.0  ;;  %v5105_v2 = vmax.f32 %v4971_v39, %v11057_v21  ;;  %v4972_v10 = vmax.f32 %v11058_v5, %v7539_v48  ;;  %v3587_v55 = vpop.f32.mrb[211].mxu0  ;;  %v4659_v15 = vpop.f32.mrb[211].mxu1  ;;  %v11068_v25 = vld [vmem:[#allocation111_spill] sm:$0xff] }
 0x281   :  { %v6990_v18 = vpack.c.bf16 %v5508_v62, %v5508_v62  ;;  %v5509_v27 = vmax.f32 %v5375_v31, 0.0  ;;  %v5103_v35 = vmax.f32 %v4969_v54, %v11059_v34  ;;  %v4970_v58 = vmax.f32 %v11060_v50, %v3587_v55  ;;  %v11070_v54 = vld [vmem:[#allocation112_spill] sm:$0xff] }
 0x282   :  { %6181 = vst.msk [vmem:[%s10732_s3 + $0x120] sm:$0xf] %vm6108_vm3, %v6992_v14  ;;  %v6993_v19 = vpack.c.bf16 %v5511_v32, %v5511_v32  ;;  %v5239_v11 = vmax.f32 %v5105_v2, %v7806_v20  ;;  %v5106_v6 = vmax.f32 %v4972_v10, %v11061_v3  ;;  %v11067_v20 = vld [vmem:[#allocation108_spill] sm:$0xff] }
 0x283   :  { %6179 = vst.msk [vmem:[%s10732_s3 + $0x118] sm:$0xf] %vm6108_vm3, %v6990_v18  ;;  %v6991_v17 = vpack.c.bf16 %v5509_v27, %v5509_v27  ;;  %v5237_v22 = vmax.f32 %v5103_v35, %v4656_v47  ;;  %v5104_v36 = vmax.f32 %v4970_v58, %v11062_v23  ;;  %v11069_v47 = vld [vmem:[#allocation122_spill] sm:$0xff]  ;;  %v11072_v58 = vld [vmem:[#allocation115_spill] sm:$0xff] }
 0x284   :  { %6182 = vst.msk [vmem:[%s10732_s3 + $0x124] sm:$0xf] %vm6108_vm3, %v6993_v19  ;;  %v5380_v33 = vadd.f32 %v10143_v38, %v5239_v11  ;;  %v5240_v7 = vmax.f32 %v5106_v6, %v7807_v1 }
 0x285   :  { %6180 = vst.msk [vmem:[%s10732_s3 + $0x11c] sm:$0xf] %vm6108_vm3, %v6991_v17  ;;  %v5378_v53 = vadd.f32 %v10143_v38, %v5237_v22  ;;  %v5238_v41 = vmax.f32 %v5104_v36, %v4659_v15  ;;  %v7542_v63 = vpop.f32.mrb[212].mxu0  ;;  %v7810_v37 = vpop.f32.mrb[212].mxu1  ;;  %v11071_v15 = vld [vmem:[#allocation125_spill] sm:$0xff]  ;;  %v11073_v22 = vld [vmem:[#allocation126_spill] sm:$0xff] }
 0x286   :  { %v5514_v42 = vmax.f32 %v5380_v33, 0.0  ;;  %v5381_v51 = vadd.f32 %v10143_v38, %v5240_v7  ;;  %v4975_v9 = vmax.f32 %v11063_v8, %v7542_v63  ;;  %v3600_v59 = vpop.f32.mrb[213].mxu0  ;;  %v4672_v43 = vpop.f32.mrb[213].mxu1  ;;  %v11074_v36 = vld [vmem:[#allocation129_spill] sm:$0xff] }
 0x287   :  { %v5512_v12 = vmax.f32 %v5378_v53, 0.0  ;;  %v5379_v28 = vadd.f32 %v10143_v38, %v5238_v41  ;;  %v4973_v45 = vmax.f32 %v11064_v61, %v3600_v59  ;;  %v7543_v49 = vpop.f32.mrb[214].mxu0  ;;  %v7811_v44 = vpop.f32.mrb[214].mxu1 }
 0x288   :  { %v6996_v60 = vpack.c.bf16 %v5514_v42, %v5514_v42  ;;  %v5515_v29 = vmax.f32 %v5381_v51, 0.0  ;;  %v5109_v52 = vmax.f32 %v4975_v9, %v11065_v0  ;;  %v4976_v24 = vmax.f32 %v11066_v4, %v7543_v49  ;;  %v3603_v26 = vpop.f32.mrb[215].mxu0  ;;  %v4675_v16 = vpop.f32.mrb[215].mxu1  ;;  %v11076_v51 = vld [vmem:[#allocation119_spill] sm:$0xff] }
 0x289   :  { %v6994_v40 = vpack.c.bf16 %v5512_v12, %v5512_v12  ;;  %v5513_v56 = vmax.f32 %v5379_v28, 0.0  ;;  %v5107_v57 = vmax.f32 %v4973_v45, %v11067_v20  ;;  %v4974_v30 = vmax.f32 %v11068_v25, %v3603_v26  ;;  %v11078_v45 = vld [vmem:[#allocation120_spill] sm:$0xff] }
 0x28a   :  { %6185 = vst.msk [vmem:[%s10732_s3 + $0x130] sm:$0xf] %vm6108_vm3, %v6996_v60  ;;  %v6997_v39 = vpack.c.bf16 %v5515_v29, %v5515_v29  ;;  %v5243_v46 = vmax.f32 %v5109_v52, %v7810_v37  ;;  %v5110_v62 = vmax.f32 %v4976_v24, %v11069_v47  ;;  %v11075_v37 = vld [vmem:[#allocation116_spill] sm:$0xff] }
 0x28b   :  { %6183 = vst.msk [vmem:[%s10732_s3 + $0x128] sm:$0xf] %vm6108_vm3, %v6994_v40  ;;  %v6995_v31 = vpack.c.bf16 %v5513_v56, %v5513_v56  ;;  %v5241_v13 = vmax.f32 %v5107_v57, %v4672_v43  ;;  %v5108_v48 = vmax.f32 %v4974_v30, %v11070_v54  ;;  %v11077_v43 = vld [vmem:[#allocation130_spill] sm:$0xff]  ;;  %v11080_v30 = vld [vmem:[#allocation123_spill] sm:$0xff] }
 0x28c   :  { %6186 = vst.msk [vmem:[%s10732_s3 + $0x134] sm:$0xf] %vm6108_vm3, %v6997_v39  ;;  %v5384_v1 = vadd.f32 %v10143_v38, %v5243_v46  ;;  %v5244_v14 = vmax.f32 %v5110_v62, %v7811_v44 }
 0x28d   :  { %6184 = vst.msk [vmem:[%s10732_s3 + $0x12c] sm:$0xf] %vm6108_vm3, %v6995_v31  ;;  %v5382_v32 = vadd.f32 %v10143_v38, %v5241_v13  ;;  %v5242_v21 = vmax.f32 %v5108_v48, %v4675_v16  ;;  %v7546_v2 = vpop.f32.mrb[216].mxu0  ;;  %v7814_v5 = vpop.f32.mrb[216].mxu1  ;;  %v11079_v16 = vld [vmem:[#allocation133_spill] sm:$0xff]  ;;  %v11081_v13 = vld [vmem:[#allocation134_spill] sm:$0xff] }
 0x28e   :  { %v5518_v10 = vmax.f32 %v5384_v1, 0.0  ;;  %v5385_v55 = vadd.f32 %v10143_v38, %v5244_v14  ;;  %v4979_v18 = vmax.f32 %v11071_v15, %v7546_v2  ;;  %v3616_v27 = vpop.f32.mrb[217].mxu0  ;;  %v4688_v34 = vpop.f32.mrb[217].mxu1  ;;  %v11082_v48 = vld [vmem:[#allocation137_spill] sm:$0xff] }
 0x28f   :  { %v5516_v35 = vmax.f32 %v5382_v32, 0.0  ;;  %v5383_v50 = vadd.f32 %v10143_v38, %v5242_v21  ;;  %v4977_v19 = vmax.f32 %v11072_v58, %v3616_v27  ;;  %v7547_v11 = vpop.f32.mrb[218].mxu0  ;;  %v7815_v3 = vpop.f32.mrb[218].mxu1 }
 0x290   :  { %v7000_v6 = vpack.c.bf16 %v5518_v10, %v5518_v10  ;;  %v5519_v17 = vmax.f32 %v5385_v55, 0.0  ;;  %v5113_v23 = vmax.f32 %v4979_v18, %v11073_v22  ;;  %v4980_v33 = vmax.f32 %v11074_v36, %v7547_v11  ;;  %v3619_v7 = vpop.f32.mrb[219].mxu0  ;;  %v4691_v53 = vpop.f32.mrb[219].mxu1  ;;  %v11084_v55 = vld [vmem:[#allocation127_spill] sm:$0xff] }
 0x291   :  { %v6998_v41 = vpack.c.bf16 %v5516_v35, %v5516_v35  ;;  %v5517_v63 = vmax.f32 %v5383_v50, 0.0  ;;  %v5111_v42 = vmax.f32 %v4977_v19, %v11075_v37  ;;  %v4978_v8 = vmax.f32 %v11076_v51, %v3619_v7  ;;  %v11086_v19 = vld [vmem:[#allocation128_spill] sm:$0xff] }
 0x292   :  { %6189 = vst.msk [vmem:[%s10732_s3 + $0x140] sm:$0xf] %vm6108_vm3, %v7000_v6  ;;  %v7001_v9 = vpack.c.bf16 %v5519_v17, %v5519_v17  ;;  %v5247_v59 = vmax.f32 %v5113_v23, %v7814_v5  ;;  %v5114_v12 = vmax.f32 %v4980_v33, %v11077_v43  ;;  %v11083_v5 = vld [vmem:[#allocation124_spill] sm:$0xff] }
 0x293   :  { %6187 = vst.msk [vmem:[%s10732_s3 + $0x138] sm:$0xf] %vm6108_vm3, %v6998_v41  ;;  %v6999_v28 = vpack.c.bf16 %v5517_v63, %v5517_v63  ;;  %v5245_v61 = vmax.f32 %v5111_v42, %v4688_v34  ;;  %v5112_v49 = vmax.f32 %v4978_v8, %v11078_v45  ;;  %v11085_v34 = vld [vmem:[#allocation138_spill] sm:$0xff]  ;;  %v11088_v8 = vld [vmem:[#allocation131_spill] sm:$0xff] }
 0x294   :  { %6190 = vst.msk [vmem:[%s10732_s3 + $0x144] sm:$0xf] %vm6108_vm3, %v7001_v9  ;;  %v5388_v44 = vadd.f32 %v10143_v38, %v5247_v59  ;;  %v5248_v60 = vmax.f32 %v5114_v12, %v7815_v3 }
 0x295   :  { %6188 = vst.msk [vmem:[%s10732_s3 + $0x13c] sm:$0xf] %vm6108_vm3, %v6999_v28  ;;  %v5386_v29 = vadd.f32 %v10143_v38, %v5245_v61  ;;  %v5246_v0 = vmax.f32 %v5112_v49, %v4691_v53  ;;  %v7550_v52 = vpop.f32.mrb[220].mxu0  ;;  %v7818_v4 = vpop.f32.mrb[220].mxu1  ;;  %v11087_v53 = vld [vmem:[#allocation141_spill] sm:$0xff]  ;;  %v11089_v61 = vld [vmem:[#allocation142_spill] sm:$0xff] }
 0x296   :  { %v5522_v24 = vmax.f32 %v5388_v44, 0.0  ;;  %v5389_v26 = vadd.f32 %v10143_v38, %v5248_v60  ;;  %v4983_v40 = vmax.f32 %v11079_v16, %v7550_v52  ;;  %v3632_v56 = vpop.f32.mrb[221].mxu0  ;;  %v4704_v20 = vpop.f32.mrb[221].mxu1  ;;  %v11090_v49 = vld [vmem:[#allocation145_spill] sm:$0xff] }
 0x297   :  { %v5520_v57 = vmax.f32 %v5386_v29, 0.0  ;;  %v5387_v25 = vadd.f32 %v10143_v38, %v5246_v0  ;;  %v4981_v39 = vmax.f32 %v11080_v30, %v3632_v56  ;;  %v7551_v46 = vpop.f32.mrb[222].mxu0  ;;  %v7819_v47 = vpop.f32.mrb[222].mxu1 }
 0x298   :  { %v7004_v62 = vpack.c.bf16 %v5522_v24, %v5522_v24  ;;  %v5523_v31 = vmax.f32 %v5389_v26, 0.0  ;;  %v5117_v54 = vmax.f32 %v4983_v40, %v11081_v13  ;;  %v4984_v1 = vmax.f32 %v11082_v48, %v7551_v46  ;;  %v3635_v14 = vpop.f32.mrb[223].mxu0  ;;  %v4707_v32 = vpop.f32.mrb[223].mxu1  ;;  %v11092_v26 = vld [vmem:[#allocation135_spill] sm:$0xff] }
 0x299   :  { %v7002_v21 = vpack.c.bf16 %v5520_v57, %v5520_v57  ;;  %v5521_v2 = vmax.f32 %v5387_v25, 0.0  ;;  %v5115_v10 = vmax.f32 %v4981_v39, %v11083_v5  ;;  %v4982_v15 = vmax.f32 %v11084_v55, %v3635_v14  ;;  %v11094_v39 = vld [vmem:[#allocation136_spill] sm:$0xff] }
 0x29a   :  { %6193 = vst.msk [vmem:[%s10732_s3 + $0x150] sm:$0xf] %vm6108_vm3, %v7004_v62  ;;  %v7005_v18 = vpack.c.bf16 %v5523_v31, %v5523_v31  ;;  %v5251_v27 = vmax.f32 %v5117_v54, %v7818_v4  ;;  %v5118_v35 = vmax.f32 %v4984_v1, %v11085_v34  ;;  %v11091_v4 = vld [vmem:[#allocation132_spill] sm:$0xff] }
 0x29b   :  { %6191 = vst.msk [vmem:[%s10732_s3 + $0x148] sm:$0xf] %vm6108_vm3, %v7002_v21  ;;  %v7003_v50 = vpack.c.bf16 %v5521_v2, %v5521_v2  ;;  %v5249_v58 = vmax.f32 %v5115_v10, %v4704_v20  ;;  %v5116_v11 = vmax.f32 %v4982_v15, %v11086_v19  ;;  %v11093_v20 = vld [vmem:[#allocation146_spill] sm:$0xff]  ;;  %v11096_v15 = vld [vmem:[#allocation139_spill] sm:$0xff] }
 0x29c   :  { %6194 = vst.msk [vmem:[%s10732_s3 + $0x154] sm:$0xf] %vm6108_vm3, %v7005_v18  ;;  %v5392_v3 = vadd.f32 %v10143_v38, %v5251_v27  ;;  %v5252_v6 = vmax.f32 %v5118_v35, %v7819_v47 }
 0x29d   :  { %6192 = vst.msk [vmem:[%s10732_s3 + $0x14c] sm:$0xf] %vm6108_vm3, %v7003_v50  ;;  %v5390_v17 = vadd.f32 %v10143_v38, %v5249_v58  ;;  %v5250_v22 = vmax.f32 %v5116_v11, %v4707_v32  ;;  %v7554_v23 = vpop.f32.mrb[224].mxu0  ;;  %v7822_v36 = vpop.f32.mrb[224].mxu1  ;;  %v11095_v32 = vld [vmem:[#allocation149_spill] sm:$0xff]  ;;  %v11097_v58 = vld [vmem:[#allocation150_spill] sm:$0xff] }
 0x29e   :  { %v5526_v33 = vmax.f32 %v5392_v3, 0.0  ;;  %v5393_v7 = vadd.f32 %v10143_v38, %v5252_v6  ;;  %v4987_v41 = vmax.f32 %v11087_v53, %v7554_v23  ;;  %v3648_v63 = vpop.f32.mrb[225].mxu0  ;;  %v4720_v37 = vpop.f32.mrb[225].mxu1  ;;  %v11098_v11 = vld [vmem:[#allocation153_spill] sm:$0xff] }
 0x29f   :  { %v5524_v42 = vmax.f32 %v5390_v17, 0.0  ;;  %v5391_v51 = vadd.f32 %v10143_v38, %v5250_v22  ;;  %v4985_v9 = vmax.f32 %v11088_v8, %v3648_v63  ;;  %v7555_v59 = vpop.f32.mrb[226].mxu0  ;;  %v7823_v43 = vpop.f32.mrb[226].mxu1 }
 0x2a0   :  { %v7008_v12 = vpack.c.bf16 %v5526_v33, %v5526_v33  ;;  %v5527_v28 = vmax.f32 %v5393_v7, 0.0  ;;  %v5121_v45 = vmax.f32 %v4987_v41, %v11089_v61  ;;  %v4988_v44 = vmax.f32 %v11090_v49, %v7555_v59  ;;  %v3651_v60 = vpop.f32.mrb[227].mxu0  ;;  %v4723_v29 = vpop.f32.mrb[227].mxu1  ;;  %v11100_v7 = vld [vmem:[#allocation143_spill] sm:$0xff] }
 0x2a1   :  { %v7006_v0 = vpack.c.bf16 %v5524_v42, %v5524_v42  ;;  %v5525_v52 = vmax.f32 %v5391_v51, 0.0  ;;  %v5119_v24 = vmax.f32 %v4985_v9, %v11091_v4  ;;  %v4986_v16 = vmax.f32 %v11092_v26, %v3651_v60  ;;  %v11102_v9 = vld [vmem:[#allocation144_spill] sm:$0xff] }
 0x2a2   :  { %6197 = vst.msk [vmem:[%s10732_s3 + $0x160] sm:$0xf] %vm6108_vm3, %v7008_v12  ;;  %v7009_v40 = vpack.c.bf16 %v5527_v28, %v5527_v28  ;;  %v5255_v56 = vmax.f32 %v5121_v45, %v7822_v36  ;;  %v5122_v57 = vmax.f32 %v4988_v44, %v11093_v20  ;;  %v11099_v36 = vld [vmem:[#allocation140_spill] sm:$0xff] }
 0x2a3   :  { %6195 = vst.msk [vmem:[%s10732_s3 + $0x158] sm:$0xf] %vm6108_vm3, %v7006_v0  ;;  %v7007_v25 = vpack.c.bf16 %v5525_v52, %v5525_v52  ;;  %v5253_v30 = vmax.f32 %v5119_v24, %v4720_v37  ;;  %v5120_v46 = vmax.f32 %v4986_v16, %v11094_v39  ;;  %v11101_v37 = vld [vmem:[#allocation154_spill] sm:$0xff]  ;;  %v11104_v16 = vld [vmem:[#allocation147_spill] sm:$0xff] }
 0x2a4   :  { %6198 = vst.msk [vmem:[%s10732_s3 + $0x164] sm:$0xf] %vm6108_vm3, %v7009_v40  ;;  %v5396_v47 = vadd.f32 %v10143_v38, %v5255_v56  ;;  %v5256_v62 = vmax.f32 %v5122_v57, %v7823_v43 }
 0x2a5   :  { %6196 = vst.msk [vmem:[%s10732_s3 + $0x15c] sm:$0xf] %vm6108_vm3, %v7007_v25  ;;  %v5394_v31 = vadd.f32 %v10143_v38, %v5253_v30  ;;  %v5254_v13 = vmax.f32 %v5120_v46, %v4723_v29  ;;  %v7558_v54 = vpop.f32.mrb[228].mxu0  ;;  %v7826_v48 = vpop.f32.mrb[228].mxu1  ;;  %v11103_v29 = vld [vmem:[#allocation157_spill] sm:$0xff]  ;;  %v11105_v30 = vld [vmem:[#allocation158_spill] sm:$0xff] }
 0x2a6   :  { %v5530_v1 = vmax.f32 %v5396_v47, 0.0  ;;  %v5397_v14 = vadd.f32 %v10143_v38, %v5256_v62  ;;  %v4991_v21 = vmax.f32 %v11095_v32, %v7558_v54  ;;  %v3664_v2 = vpop.f32.mrb[229].mxu0  ;;  %v4736_v5 = vpop.f32.mrb[229].mxu1  ;;  %v11106_v46 = vld [vmem:[#allocation161_spill] sm:$0xff] }
 0x2a7   :  { %v5528_v10 = vmax.f32 %v5394_v31, 0.0  ;;  %v5395_v55 = vadd.f32 %v10143_v38, %v5254_v13  ;;  %v4989_v18 = vmax.f32 %v11096_v15, %v3664_v2  ;;  %v7559_v27 = vpop.f32.mrb[230].mxu0  ;;  %v7827_v34 = vpop.f32.mrb[230].mxu1 }
 0x2a8   :  { %v7012_v35 = vpack.c.bf16 %v5530_v1, %v5530_v1  ;;  %v5531_v50 = vmax.f32 %v5397_v14, 0.0  ;;  %v5125_v19 = vmax.f32 %v4991_v21, %v11097_v58  ;;  %v4992_v3 = vmax.f32 %v11098_v11, %v7559_v27  ;;  %v3667_v6 = vpop.f32.mrb[231].mxu0  ;;  %v4739_v17 = vpop.f32.mrb[231].mxu1  ;;  %v11108_v14 = vld [vmem:[#allocation151_spill] sm:$0xff] }
 0x2a9   :  { %v7010_v22 = vpack.c.bf16 %v5528_v10, %v5528_v10  ;;  %v5529_v23 = vmax.f32 %v5395_v55, 0.0  ;;  %v5123_v33 = vmax.f32 %v4989_v18, %v11099_v36  ;;  %v4990_v53 = vmax.f32 %v11100_v7, %v3667_v6  ;;  %v11110_v18 = vld [vmem:[#allocation152_spill] sm:$0xff] }
 0x2aa   :  { %6201 = vst.msk [vmem:[%s10732_s3 + $0x170] sm:$0xf] %vm6108_vm3, %v7012_v35  ;;  %v7013_v41 = vpack.c.bf16 %v5531_v50, %v5531_v50  ;;  %v5259_v63 = vmax.f32 %v5125_v19, %v7826_v48  ;;  %v5126_v42 = vmax.f32 %v4992_v3, %v11101_v37  ;;  %v11107_v48 = vld [vmem:[#allocation148_spill] sm:$0xff] }
 0x2ab   :  { %6199 = vst.msk [vmem:[%s10732_s3 + $0x168] sm:$0xf] %vm6108_vm3, %v7010_v22  ;;  %v7011_v51 = vpack.c.bf16 %v5529_v23, %v5529_v23  ;;  %v5257_v8 = vmax.f32 %v5123_v33, %v4736_v5  ;;  %v5124_v59 = vmax.f32 %v4990_v53, %v11102_v9  ;;  %v11109_v5 = vld [vmem:[#allocation162_spill] sm:$0xff]  ;;  %v11112_v53 = vld [vmem:[#allocation155_spill] sm:$0xff] }
 0x2ac   :  { %6202 = vst.msk [vmem:[%s10732_s3 + $0x174] sm:$0xf] %vm6108_vm3, %v7013_v41  ;;  %v5400_v43 = vadd.f32 %v10143_v38, %v5259_v63  ;;  %v5260_v12 = vmax.f32 %v5126_v42, %v7827_v34 }
 0x2ad   :  { %6200 = vst.msk [vmem:[%s10732_s3 + $0x16c] sm:$0xf] %vm6108_vm3, %v7011_v51  ;;  %v5398_v28 = vadd.f32 %v10143_v38, %v5257_v8  ;;  %v5258_v61 = vmax.f32 %v5124_v59, %v4739_v17  ;;  %v7562_v45 = vpop.f32.mrb[232].mxu0  ;;  %v7830_v49 = vpop.f32.mrb[232].mxu1  ;;  %v11111_v17 = vld [vmem:[#allocation165_spill] sm:$0xff]  ;;  %v11113_v8 = vld [vmem:[#allocation166_spill] sm:$0xff] }
 0x2ae   :  { %v5534_v44 = vmax.f32 %v5400_v43, 0.0  ;;  %v5401_v60 = vadd.f32 %v10143_v38, %v5260_v12  ;;  %v4995_v0 = vmax.f32 %v11103_v29, %v7562_v45  ;;  %v3680_v52 = vpop.f32.mrb[233].mxu0  ;;  %v4752_v4 = vpop.f32.mrb[233].mxu1  ;;  %v11114_v59 = vld [vmem:[#allocation169_spill] sm:$0xff] }
 0x2af   :  { %v5532_v24 = vmax.f32 %v5398_v28, 0.0  ;;  %v5399_v26 = vadd.f32 %v10143_v38, %v5258_v61  ;;  %v4993_v40 = vmax.f32 %v11104_v16, %v3680_v52  ;;  %v7563_v56 = vpop.f32.mrb[234].mxu0  ;;  %v7831_v20 = vpop.f32.mrb[234].mxu1 }
 0x2b0   :  { %v7016_v57 = vpack.c.bf16 %v5534_v44, %v5534_v44  ;;  %v5535_v25 = vmax.f32 %v5401_v60, 0.0  ;;  %v5129_v39 = vmax.f32 %v4995_v0, %v11105_v30  ;;  %v4996_v47 = vmax.f32 %v11106_v46, %v7563_v56  ;;  %v3683_v62 = vpop.f32.mrb[235].mxu0  ;;  %v4755_v31 = vpop.f32.mrb[235].mxu1  ;;  %v11116_v60 = vld [vmem:[#allocation159_spill] sm:$0xff] }
 0x2b1   :  { %v7014_v13 = vpack.c.bf16 %v5532_v24, %v5532_v24  ;;  %v5533_v54 = vmax.f32 %v5399_v26, 0.0  ;;  %v5127_v1 = vmax.f32 %v4993_v40, %v11107_v48  ;;  %v4994_v32 = vmax.f32 %v11108_v14, %v3683_v62  ;;  %v11118_v40 = vld [vmem:[#allocation160_spill] sm:$0xff] }
 0x2b2   :  { %6205 = vst.msk [vmem:[%s10732_s3 + $0x180] sm:$0xf] %vm6108_vm3, %v7016_v57  ;;  %v7017_v21 = vpack.c.bf16 %v5535_v25, %v5535_v25  ;;  %v5263_v2 = vmax.f32 %v5129_v39, %v7830_v49  ;;  %v5130_v10 = vmax.f32 %v4996_v47, %v11109_v5  ;;  %v11115_v49 = vld [vmem:[#allocation156_spill] sm:$0xff] }
 0x2b3   :  { %6203 = vst.msk [vmem:[%s10732_s3 + $0x178] sm:$0xf] %vm6108_vm3, %v7014_v13  ;;  %v7015_v55 = vpack.c.bf16 %v5533_v54, %v5533_v54  ;;  %v5261_v15 = vmax.f32 %v5127_v1, %v4752_v4  ;;  %v5128_v27 = vmax.f32 %v4994_v32, %v11110_v18  ;;  %v11117_v4 = vld [vmem:[#allocation170_spill] sm:$0xff]  ;;  %v11120_v32 = vld [vmem:[#allocation163_spill] sm:$0xff] }
 0x2b4   :  { %6206 = vst.msk [vmem:[%s10732_s3 + $0x184] sm:$0xf] %vm6108_vm3, %v7017_v21  ;;  %v5404_v34 = vadd.f32 %v10143_v38, %v5263_v2  ;;  %v5264_v35 = vmax.f32 %v5130_v10, %v7831_v20 }
 0x2b5   :  { %6204 = vst.msk [vmem:[%s10732_s3 + $0x17c] sm:$0xf] %vm6108_vm3, %v7015_v55  ;;  %v5402_v50 = vadd.f32 %v10143_v38, %v5261_v15  ;;  %v5262_v58 = vmax.f32 %v5128_v27, %v4755_v31  ;;  %v7566_v19 = vpop.f32.mrb[236].mxu0  ;;  %v7834_v11 = vpop.f32.mrb[236].mxu1  ;;  %v11119_v31 = vld [vmem:[#allocation173_spill] sm:$0xff]  ;;  %v11121_v15 = vld [vmem:[#allocation174_spill] sm:$0xff] }
 0x2b6   :  { %v5538_v3 = vmax.f32 %v5404_v34, 0.0  ;;  %v5405_v6 = vadd.f32 %v10143_v38, %v5264_v35  ;;  %v4999_v22 = vmax.f32 %v11111_v17, %v7566_v19  ;;  %v3696_v23 = vpop.f32.mrb[237].mxu0  ;;  %v4768_v36 = vpop.f32.mrb[237].mxu1  ;;  %v11122_v27 = vld [vmem:[#allocation177_spill] sm:$0xff] }
 0x2b7   :  { %v5536_v33 = vmax.f32 %v5402_v50, 0.0  ;;  %v5403_v7 = vadd.f32 %v10143_v38, %v5262_v58  ;;  %v4997_v41 = vmax.f32 %v11112_v53, %v3696_v23  ;;  %v7567_v63 = vpop.f32.mrb[238].mxu0  ;;  %v7835_v37 = vpop.f32.mrb[238].mxu1 }
 0x2b8   :  { %v7020_v42 = vpack.c.bf16 %v5538_v3, %v5538_v3  ;;  %v5539_v51 = vmax.f32 %v5405_v6, 0.0  ;;  %v5133_v9 = vmax.f32 %v4999_v22, %v11113_v8  ;;  %v5000_v43 = vmax.f32 %v11114_v59, %v7567_v63  ;;  %v3699_v12 = vpop.f32.mrb[239].mxu0  ;;  %v4771_v28 = vpop.f32.mrb[239].mxu1  ;;  %v11124_v6 = vld [vmem:[#allocation167_spill] sm:$0xff] }
 0x2b9   :  { %v7018_v61 = vpack.c.bf16 %v5536_v33, %v5536_v33  ;;  %v5537_v45 = vmax.f32 %v5403_v7, 0.0  ;;  %v5131_v44 = vmax.f32 %v4997_v41, %v11115_v49  ;;  %v4998_v29 = vmax.f32 %v11116_v60, %v3699_v12  ;;  %v11126_v41 = vld [vmem:[#allocation168_spill] sm:$0xff]  ;;  %v10543_v60 = vld [vmem:[%s10731_s2] ss:$0 sm:$0xff] }
 0x2ba   :  { %6209 = vst.msk [vmem:[%s10732_s3 + $0x190] sm:$0xf] %vm6108_vm3, %v7020_v42  ;;  %v7021_v0 = vpack.c.bf16 %v5539_v51, %v5539_v51  ;;  %v5267_v52 = vmax.f32 %v5133_v9, %v7834_v11  ;;  %v5134_v24 = vmax.f32 %v5000_v43, %v11117_v4  ;;  %v11123_v11 = vld [vmem:[#allocation164_spill] sm:$0xff] }
 0x2bb   :  { %6207 = vst.msk [vmem:[%s10732_s3 + $0x188] sm:$0xf] %vm6108_vm3, %v7018_v61  ;;  %v7019_v26 = vpack.c.bf16 %v5537_v45, %v5537_v45  ;;  %v5265_v16 = vmax.f32 %v5131_v44, %v4768_v36  ;;  %v5132_v56 = vmax.f32 %v4998_v29, %v11118_v40  ;;  %v11125_v36 = vld [vmem:[#allocation178_spill] sm:$0xff] }
 0x2bc   :  { %6210 = vst.msk [vmem:[%s10732_s3 + $0x194] sm:$0xf] %vm6108_vm3, %v7021_v0  ;;  %v5408_v20 = vadd.f32 %v10143_v38, %v5267_v52  ;;  %v5268_v57 = vmax.f32 %v5134_v24, %v7835_v37  ;;  %v11128_v0 = vld [vmem:[#allocation171_spill] sm:$0xff]  ;;  %v11129_v40 = vld [vmem:[#allocation182_spill] sm:$0xff] }
 0x2bd   :  { %6208 = vst.msk [vmem:[%s10732_s3 + $0x18c] sm:$0xf] %vm6108_vm3, %v7019_v26  ;;  %v5406_v25 = vadd.f32 %v10143_v38, %v5265_v16  ;;  %v5266_v30 = vmax.f32 %v5132_v56, %v4771_v28  ;;  %v7570_v39 = vpop.f32.mrb[240].mxu0  ;;  %v7838_v46 = vpop.f32.mrb[240].mxu1  ;;  %v11127_v28 = vld [vmem:[#allocation181_spill] sm:$0xff] }
 0x2be   :  { %v5542_v47 = vmax.f32 %v5408_v20, 0.0  ;;  %v5409_v62 = vadd.f32 %v10143_v38, %v5268_v57  ;;  %v5003_v13 = vmax.f32 %v11119_v31, %v7570_v39  ;;  %v3712_v54 = vpop.f32.mrb[241].mxu0  ;;  %v4784_v48 = vpop.f32.mrb[241].mxu1  ;;  %v11130_v56 = vld [vmem:[#allocation185_spill] sm:$0xff] }
 0x2bf   :  { %v5540_v1 = vmax.f32 %v5406_v25, 0.0  ;;  %v5407_v14 = vadd.f32 %v10143_v38, %v5266_v30  ;;  %v5001_v21 = vmax.f32 %v11120_v32, %v3712_v54  ;;  %v7571_v2 = vpop.f32.mrb[242].mxu0  ;;  %v7839_v5 = vpop.f32.mrb[242].mxu1 }
 0x2c0   :  { %v7024_v10 = vpack.c.bf16 %v5542_v47, %v5542_v47  ;;  %v5543_v55 = vmax.f32 %v5409_v62, 0.0  ;;  %v5137_v18 = vmax.f32 %v5003_v13, %v11121_v15  ;;  %v5004_v34 = vmax.f32 %v11122_v27, %v7571_v2  ;;  %v3715_v35 = vpop.f32.mrb[243].mxu0  ;;  %v4787_v50 = vpop.f32.mrb[243].mxu1  ;;  %v11132_v62 = vld [vmem:[#allocation175_spill] sm:$0xff] }
 0x2c1   :  { %v7022_v58 = vpack.c.bf16 %v5540_v1, %v5540_v1  ;;  %v5541_v19 = vmax.f32 %v5407_v14, 0.0  ;;  %v5135_v3 = vmax.f32 %v5001_v21, %v11123_v11  ;;  %v5002_v17 = vmax.f32 %v11124_v6, %v3715_v35  ;;  %v11134_v21 = vld [vmem:[#allocation176_spill] sm:$0xff] }
 0x2c2   :  { %6213 = vst.msk [vmem:[%s10732_s3 + $0x1a0] sm:$0xf] %vm6108_vm3, %v7024_v10  ;;  %v7025_v22 = vpack.c.bf16 %v5543_v55, %v5543_v55  ;;  %v5271_v23 = vmax.f32 %v5137_v18, %v7838_v46  ;;  %v5138_v33 = vmax.f32 %v5004_v34, %v11125_v36  ;;  %v11131_v46 = vld [vmem:[#allocation172_spill] sm:$0xff] }
 0x2c3   :  { %6211 = vst.msk [vmem:[%s10732_s3 + $0x198] sm:$0xf] %vm6108_vm3, %v7022_v58  ;;  %v7023_v7 = vpack.c.bf16 %v5541_v19, %v5541_v19  ;;  %v5269_v53 = vmax.f32 %v5135_v3, %v4784_v48  ;;  %v5136_v63 = vmax.f32 %v5002_v17, %v11126_v41  ;;  %v11133_v48 = vld [vmem:[#allocation186_spill] sm:$0xff]  ;;  %v11136_v17 = vld [vmem:[#allocation179_spill] sm:$0xff] }
 0x2c4   :  { %6214 = vst.msk [vmem:[%s10732_s3 + $0x1a4] sm:$0xf] %vm6108_vm3, %v7025_v22  ;;  %v5412_v37 = vadd.f32 %v10143_v38, %v5271_v23  ;;  %v5272_v42 = vmax.f32 %v5138_v33, %v7839_v5 }
 0x2c5   :  { %6212 = vst.msk [vmem:[%s10732_s3 + $0x19c] sm:$0xf] %vm6108_vm3, %v7023_v7  ;;  %v5410_v51 = vadd.f32 %v10143_v38, %v5269_v53  ;;  %v5270_v8 = vmax.f32 %v5136_v63, %v4787_v50  ;;  %v7574_v9 = vpop.f32.mrb[244].mxu0  ;;  %v11135_v50 = vld [vmem:[#allocation189_spill] sm:$0xff]  ;;  %v11137_v53 = vld [vmem:[#allocation190_spill] sm:$0xff] }
 0x2c6   :  { %v7842_v59 = vpop.f32.mrb[244].mxu1  ;;  %v5546_v43 = vmax.f32 %v5412_v37, 0.0  ;;  %v5413_v12 = vadd.f32 %v10143_v38, %v5272_v42  ;;  %v5007_v61 = vmax.f32 %v11127_v28, %v7574_v9  ;;  %v3728_v45 = vpop.f32.mrb[245].mxu0  ;;  %v11138_v63 = vld [vmem:[#allocation193_spill] sm:$0xff] }
 0x2c7   :  { %v4800_v49 = vpop.f32.mrb[245].mxu1  ;;  %v5544_v44 = vmax.f32 %v5410_v51, 0.0  ;;  %v5411_v29 = vadd.f32 %v10543_v60, %v5270_v8  ;;  %v5005_v52 = vmax.f32 %v11128_v0, %v3728_v45  ;;  %v7575_v4 = vpop.f32.mrb[246].mxu0 }
 0x2c8   :  { %v7843_v24 = vpop.f32.mrb[246].mxu1  ;;  %v7028_v26 = vpack.c.bf16 %v5546_v43, %v5546_v43  ;;  %v5547_v16 = vmax.f32 %v5413_v12, 0.0  ;;  %v5141_v38 = vmax.f32 %v5007_v61, %v11129_v40  ;;  %v5008_v20 = vmax.f32 %v11130_v56, %v7575_v4  ;;  %v3731_v57 = vpop.f32.mrb[247].mxu0  ;;  %v11140_v12 = vld [vmem:[#allocation183_spill] sm:$0xff] }
 0x2c9   :  { %v4803_v25 = vpop.f32.mrb[247].mxu1  ;;  %v7026_v30 = vpack.c.bf16 %v5544_v44, %v5544_v44  ;;  %v5545_v39 = vmax.f32 %v5411_v29, 0.0  ;;  %v5139_v47 = vmax.f32 %v5005_v52, %v11131_v46  ;;  %v5006_v31 = vmax.f32 %v11132_v62, %v3731_v57  ;;  %v11142_v52 = vld [vmem:[#allocation184_spill] sm:$0xff] }
 0x2ca   :  { %6217 = vst.msk [vmem:[%s10732_s3 + $0x1b0] sm:$0xf] %vm6108_vm3, %v7028_v26  ;;  %v7029_v13 = vpack.c.bf16 %v5547_v16, %v5547_v16  ;;  %v5275_v54 = vmax.f32 %v5141_v38, %v7842_v59  ;;  %v5142_v1 = vmax.f32 %v5008_v20, %v11133_v48  ;;  %v11139_v59 = vld [vmem:[#allocation180_spill] sm:$0xff] }
 0x2cb   :  { %6215 = vst.msk [vmem:[%s10732_s3 + $0x1a8] sm:$0xf] %vm6108_vm3, %v7026_v30  ;;  %v7027_v14 = vpack.c.bf16 %v5545_v39, %v5545_v39  ;;  %v5273_v32 = vmax.f32 %v5139_v47, %v4800_v49  ;;  %v5140_v2 = vmax.f32 %v5006_v31, %v11134_v21  ;;  %v11141_v49 = vld [vmem:[#allocation194_spill] sm:$0xff]  ;;  %v11144_v31 = vld [vmem:[#allocation187_spill] sm:$0xff] }
 0x2cc   :  { %6218 = vst.msk [vmem:[%s10732_s3 + $0x1b4] sm:$0xf] %vm6108_vm3, %v7029_v13  ;;  %v5416_v5 = vadd.f32 %v10543_v60, %v5275_v54  ;;  %v5276_v10 = vmax.f32 %v5142_v1, %v7843_v24 }
 0x2cd   :  { %6216 = vst.msk [vmem:[%s10732_s3 + $0x1ac] sm:$0xf] %vm6108_vm3, %v7027_v14  ;;  %v5414_v55 = vadd.f32 %v10543_v60, %v5273_v32  ;;  %v5274_v15 = vmax.f32 %v5140_v2, %v4803_v25  ;;  %v7578_v18 = vpop.f32.mrb[248].mxu0  ;;  %v11143_v25 = vld [vmem:[#allocation197_spill] sm:$0xff]  ;;  %v11145_v32 = vld [vmem:[#allocation198_spill] sm:$0xff] }
 0x2ce   :  { %v7846_v27 = vpop.f32.mrb[248].mxu1  ;;  %v5550_v34 = vmax.f32 %v5416_v5, 0.0  ;;  %v5417_v35 = vadd.f32 %v10543_v60, %v5276_v10  ;;  %v5011_v58 = vmax.f32 %v11135_v50, %v7578_v18  ;;  %v3744_v19 = vpop.f32.mrb[249].mxu0  ;;  %v11146_v2 = vld [vmem:[#allocation201_spill] sm:$0xff] }
 0x2cf   :  { %v4816_v11 = vpop.f32.mrb[249].mxu1  ;;  %v5548_v3 = vmax.f32 %v5414_v55, 0.0  ;;  %v5415_v6 = vadd.f32 %v10543_v60, %v5274_v15  ;;  %v5009_v22 = vmax.f32 %v11136_v17, %v3744_v19  ;;  %v7579_v23 = vpop.f32.mrb[250].mxu0 }
 0x2d0   :  { %v7847_v36 = vpop.f32.mrb[250].mxu1  ;;  %v7032_v33 = vpack.c.bf16 %v5550_v34, %v5550_v34  ;;  %v5551_v7 = vmax.f32 %v5417_v35, 0.0  ;;  %v5145_v41 = vmax.f32 %v5011_v58, %v11137_v53  ;;  %v5012_v37 = vmax.f32 %v11138_v63, %v7579_v23  ;;  %v3747_v42 = vpop.f32.mrb[251].mxu0  ;;  %v11148_v35 = vld [vmem:[#allocation191_spill] sm:$0xff] }
 0x2d1   :  { %v4819_v51 = vpop.f32.mrb[251].mxu1  ;;  %v7030_v8 = vpack.c.bf16 %v5548_v3, %v5548_v3  ;;  %v5549_v9 = vmax.f32 %v5415_v6, 0.0  ;;  %v5143_v43 = vmax.f32 %v5009_v22, %v11139_v59  ;;  %v5010_v28 = vmax.f32 %v11140_v12, %v3747_v42  ;;  %v11150_v22 = vld [vmem:[#allocation192_spill] sm:$0xff] }
 0x2d2   :  { %6221 = vst.msk [vmem:[%s10732_s3 + $0x1c0] sm:$0xf] %vm6108_vm3, %v7032_v33  ;;  %v7033_v61 = vpack.c.bf16 %v5551_v7, %v5551_v7  ;;  %v5279_v45 = vmax.f32 %v5145_v41, %v7846_v27  ;;  %v5146_v44 = vmax.f32 %v5012_v37, %v11141_v49  ;;  %v11147_v27 = vld [vmem:[#allocation188_spill] sm:$0xff] }
 0x2d3   :  { %6219 = vst.msk [vmem:[%s10732_s3 + $0x1b8] sm:$0xf] %vm6108_vm3, %v7030_v8  ;;  %v7031_v29 = vpack.c.bf16 %v5549_v9, %v5549_v9  ;;  %v5277_v0 = vmax.f32 %v5143_v43, %v4816_v11  ;;  %v5144_v4 = vmax.f32 %v5010_v28, %v11142_v52  ;;  %v11149_v11 = vld [vmem:[#allocation202_spill] sm:$0xff]  ;;  %v11152_v28 = vld [vmem:[#allocation195_spill] sm:$0xff] }
 0x2d4   :  { %6222 = vst.msk [vmem:[%s10732_s3 + $0x1c4] sm:$0xf] %vm6108_vm3, %v7033_v61  ;;  %v5420_v24 = vadd.f32 %v10543_v60, %v5279_v45  ;;  %v5280_v26 = vmax.f32 %v5146_v44, %v7847_v36 }
 0x2d5   :  { %6220 = vst.msk [vmem:[%s10732_s3 + $0x1bc] sm:$0xf] %vm6108_vm3, %v7031_v29  ;;  %v5418_v16 = vadd.f32 %v10543_v60, %v5277_v0  ;;  %v5278_v40 = vmax.f32 %v5144_v4, %v4819_v51  ;;  %v7582_v38 = vpop.f32.mrb[252].mxu0  ;;  %v11151_v51 = vld [vmem:[#allocation205_spill] sm:$0xff]  ;;  %v11153_v0 = vld [vmem:[#allocation206_spill] sm:$0xff] }
 0x2d6   :  { %v7850_v56 = vpop.f32.mrb[252].mxu1  ;;  %v5554_v20 = vmax.f32 %v5420_v24, 0.0  ;;  %v5421_v57 = vadd.f32 %v10543_v60, %v5280_v26  ;;  %v5015_v30 = vmax.f32 %v11143_v25, %v7582_v38  ;;  %v3760_v39 = vpop.f32.mrb[253].mxu0  ;;  %v11154_v4 = vld [vmem:[#allocation209_spill] sm:$0xff] }
 0x2d7   :  { %v4832_v46 = vpop.f32.mrb[253].mxu1  ;;  %v5552_v47 = vmax.f32 %v5418_v16, 0.0  ;;  %v5419_v62 = vadd.f32 %v10543_v60, %v5278_v40  ;;  %v5013_v13 = vmax.f32 %v11144_v31, %v3760_v39  ;;  %v7583_v54 = vpop.f32.mrb[254].mxu0 }
 0x2d8   :  { %v7851_v48 = vpop.f32.mrb[254].mxu1  ;;  %v7036_v1 = vpack.c.bf16 %v5554_v20, %v5554_v20  ;;  %v5555_v14 = vmax.f32 %v5421_v57, 0.0  ;;  %v5149_v21 = vmax.f32 %v5015_v30, %v11145_v32  ;;  %v5016_v5 = vmax.f32 %v11146_v2, %v7583_v54  ;;  %v3763_v10 = vpop.f32.mrb[255].mxu0  ;;  %v11156_v57 = vld [vmem:[#allocation199_spill] sm:$0xff] }
 0x2d9   :  { %v4835_v55 = vpop.f32.mrb[255].mxu1  ;;  %v7034_v15 = vpack.c.bf16 %v5552_v47, %v5552_v47  ;;  %v5553_v18 = vmax.f32 %v5419_v62, 0.0  ;;  %v5147_v34 = vmax.f32 %v5013_v13, %v11147_v27  ;;  %v5014_v50 = vmax.f32 %v11148_v35, %v3763_v10  ;;  %v11158_v13 = vld [vmem:[#allocation200_spill] sm:$0xff] }
 0x2da   :  { %6225 = vst.msk [vmem:[%s10732_s3 + $0x1d0] sm:$0xf] %vm6108_vm3, %v7036_v1  ;;  %v7037_v58 = vpack.c.bf16 %v5555_v14, %v5555_v14  ;;  %v5283_v19 = vmax.f32 %v5149_v21, %v7850_v56  ;;  %v5150_v3 = vmax.f32 %v5016_v5, %v11149_v11  ;;  %v11155_v56 = vld [vmem:[#allocation196_spill] sm:$0xff] }
 0x2db   :  { %6223 = vst.msk [vmem:[%s10732_s3 + $0x1c8] sm:$0xf] %vm6108_vm3, %v7034_v15  ;;  %v7035_v6 = vpack.c.bf16 %v5553_v18, %v5553_v18  ;;  %v5281_v17 = vmax.f32 %v5147_v34, %v4832_v46  ;;  %v5148_v23 = vmax.f32 %v5014_v50, %v11150_v22  ;;  %v11157_v46 = vld [vmem:[#allocation210_spill] sm:$0xff]  ;;  %v11160_v50 = vld [vmem:[#allocation203_spill] sm:$0xff] }
 0x2dc   :  { %6226 = vst.msk [vmem:[%s10732_s3 + $0x1d4] sm:$0xf] %vm6108_vm3, %v7037_v58  ;;  %v5424_v36 = vadd.f32 %v10543_v60, %v5283_v19  ;;  %v5284_v33 = vmax.f32 %v5150_v3, %v7851_v48 }
 0x2dd   :  { %6224 = vst.msk [vmem:[%s10732_s3 + $0x1cc] sm:$0xf] %vm6108_vm3, %v7035_v6  ;;  %v5422_v7 = vadd.f32 %v10543_v60, %v5281_v17  ;;  %v5282_v53 = vmax.f32 %v5148_v23, %v4835_v55  ;;  %v7586_v41 = vpop.f32.mrb[0].mxu0  ;;  %v11159_v55 = vld [vmem:[#allocation213_spill] sm:$0xff]  ;;  %v11161_v17 = vld [vmem:[#allocation214_spill] sm:$0xff] }
 0x2de   :  { %v7854_v63 = vpop.f32.mrb[0].mxu1  ;;  %v5558_v37 = vmax.f32 %v5424_v36, 0.0  ;;  %v5425_v42 = vadd.f32 %v10543_v60, %v5284_v33  ;;  %v5019_v8 = vmax.f32 %v11151_v51, %v7586_v41  ;;  %v3776_v9 = vpop.f32.mrb[1].mxu0  ;;  %v11162_v23 = vld [vmem:[#allocation217_spill] sm:$0xff] }
 0x2df   :  { %v4848_v59 = vpop.f32.mrb[1].mxu1  ;;  %v5556_v43 = vmax.f32 %v5422_v7, 0.0  ;;  %v5423_v12 = vadd.f32 %v10543_v60, %v5282_v53  ;;  %v5017_v61 = vmax.f32 %v11152_v28, %v3776_v9  ;;  %v7587_v45 = vpop.f32.mrb[2].mxu0 }
 0x2e0   :  { %v7855_v49 = vpop.f32.mrb[2].mxu1  ;;  %v7040_v44 = vpack.c.bf16 %v5558_v37, %v5558_v37  ;;  %v5559_v29 = vmax.f32 %v5425_v42, 0.0  ;;  %v5153_v52 = vmax.f32 %v5019_v8, %v11153_v0  ;;  %v5020_v24 = vmax.f32 %v11154_v4, %v7587_v45  ;;  %v3779_v26 = vpop.f32.mrb[3].mxu0  ;;  %v11164_v42 = vld [vmem:[#allocation207_spill] sm:$0xff] }
 0x2e1   :  { %v4851_v16 = vpop.f32.mrb[3].mxu1  ;;  %v7038_v40 = vpack.c.bf16 %v5556_v43, %v5556_v43  ;;  %v5557_v38 = vmax.f32 %v5423_v12, 0.0  ;;  %v5151_v20 = vmax.f32 %v5017_v61, %v11155_v56  ;;  %v5018_v25 = vmax.f32 %v11156_v57, %v3779_v26  ;;  %v11166_v61 = vld [vmem:[#allocation208_spill] sm:$0xff] }
 0x2e2   :  { %6229 = vst.msk [vmem:[%s10732_s3 + $0x1e0] sm:$0xf] %vm6108_vm3, %v7040_v44  ;;  %v7041_v30 = vpack.c.bf16 %v5559_v29, %v5559_v29  ;;  %v5287_v39 = vmax.f32 %v5153_v52, %v7854_v63  ;;  %v5154_v47 = vmax.f32 %v5020_v24, %v11157_v46  ;;  %v11163_v63 = vld [vmem:[#allocation204_spill] sm:$0xff] }
 0x2e3   :  { %6227 = vst.msk [vmem:[%s10732_s3 + $0x1d8] sm:$0xf] %vm6108_vm3, %v7038_v40  ;;  %v7039_v62 = vpack.c.bf16 %v5557_v38, %v5557_v38  ;;  %v5285_v31 = vmax.f32 %v5151_v20, %v4848_v59  ;;  %v5152_v54 = vmax.f32 %v5018_v25, %v11158_v13  ;;  %v11165_v59 = vld [vmem:[#allocation218_spill] sm:$0xff]  ;;  %v11168_v25 = vld [vmem:[#allocation211_spill] sm:$0xff] }
 0x2e4   :  { %6230 = vst.msk [vmem:[%s10732_s3 + $0x1e4] sm:$0xf] %vm6108_vm3, %v7041_v30  ;;  %v5428_v48 = vadd.f32 %v10543_v60, %v5287_v39  ;;  %v5288_v1 = vmax.f32 %v5154_v47, %v7855_v49 }
 0x2e5   :  { %6228 = vst.msk [vmem:[%s10732_s3 + $0x1dc] sm:$0xf] %vm6108_vm3, %v7039_v62  ;;  %v5426_v14 = vadd.f32 %v10543_v60, %v5285_v31  ;;  %v5286_v32 = vmax.f32 %v5152_v54, %v4851_v16  ;;  %v7590_v21 = vpop.f32.mrb[4].mxu0  ;;  %v11167_v16 = vld [vmem:[#allocation219_spill] sm:$0xff]  ;;  %v11169_v31 = vld [vmem:[#allocation220_spill] sm:$0xff]  ;;  %v11170_v54 = vld [vmem:[#allocation221_spill] sm:$0xff] }
 0x2e6   :  { %v7858_v2 = vpop.f32.mrb[4].mxu1  ;;  %v5562_v5 = vmax.f32 %v5428_v48, 0.0  ;;  %v5429_v10 = vadd.f32 %v10543_v60, %v5288_v1  ;;  %v5023_v15 = vmax.f32 %v11159_v55, %v7590_v21  ;;  %v3792_v18 = vpop.f32.mrb[5].mxu0 }
 0x2e7   :  { %v4864_v27 = vpop.f32.mrb[5].mxu1  ;;  %v5560_v34 = vmax.f32 %v5426_v14, 0.0  ;;  %v5427_v35 = vadd.f32 %v10543_v60, %v5286_v32  ;;  %v5021_v58 = vmax.f32 %v11160_v50, %v3792_v18  ;;  %v7591_v19 = vpop.f32.mrb[6].mxu0 }
 0x2e8   :  { %v7859_v11 = vpop.f32.mrb[6].mxu1  ;;  %v7044_v3 = vpack.c.bf16 %v5562_v5, %v5562_v5  ;;  %v5563_v6 = vmax.f32 %v5429_v10, 0.0  ;;  %v5157_v22 = vmax.f32 %v5023_v15, %v11161_v17  ;;  %v5024_v36 = vmax.f32 %v11162_v23, %v7591_v19  ;;  %v3795_v33 = vpop.f32.mrb[7].mxu0  ;;  %v11172_v10 = vld [vmem:[#allocation215_spill] sm:$0xff] }
 0x2e9   :  { %v4867_v7 = vpop.f32.mrb[7].mxu1  ;;  %v7042_v53 = vpack.c.bf16 %v5560_v34, %v5560_v34  ;;  %v5561_v41 = vmax.f32 %v5427_v35, 0.0  ;;  %v5155_v37 = vmax.f32 %v5021_v58, %v11163_v63  ;;  %v5022_v51 = vmax.f32 %v11164_v42, %v3795_v33  ;;  %v11174_v58 = vld [vmem:[#allocation216_spill] sm:$0xff] }
 0x2ea   :  { %6233 = vst.msk [vmem:[%s10732_s3 + $0x1f0] sm:$0xf] %vm6108_vm3, %v7044_v3  ;;  %v7045_v8 = vpack.c.bf16 %v5563_v6, %v5563_v6  ;;  %v5291_v9 = vmax.f32 %v5157_v22, %v7858_v2  ;;  %v5158_v43 = vmax.f32 %v5024_v36, %v11165_v59  ;;  %v11171_v2 = vld [vmem:[#allocation212_spill] sm:$0xff] }
 0x2eb   :  { %6231 = vst.msk [vmem:[%s10732_s3 + $0x1e8] sm:$0xf] %vm6108_vm3, %v7042_v53  ;;  %v7043_v12 = vpack.c.bf16 %v5561_v41, %v5561_v41  ;;  %v5289_v28 = vmax.f32 %v5155_v37, %v4864_v27  ;;  %v5156_v45 = vmax.f32 %v5022_v51, %v11166_v61  ;;  %v11173_v27 = vld [vmem:[#allocation222_spill] sm:$0xff] }
 0x2ec   :  { %6234 = vst.msk [vmem:[%s10732_s3 + $0x1f4] sm:$0xf] %vm6108_vm3, %v7045_v8  ;;  %v5432_v49 = vadd.f32 %v10543_v60, %v5291_v9  ;;  %v5292_v44 = vmax.f32 %v5158_v43, %v7859_v11 }
 0x2ed   :  { %6232 = vst.msk [vmem:[%s10732_s3 + $0x1ec] sm:$0xf] %vm6108_vm3, %v7043_v12  ;;  %v5430_v29 = vadd.f32 %v10543_v60, %v5289_v28  ;;  %v5290_v0 = vmax.f32 %v5156_v45, %v4867_v7  ;;  %v7594_v52 = vpop.f32.mrb[8].mxu0 }
 0x2ee   :  { %v7862_v4 = vpop.f32.mrb[8].mxu1  ;;  %v5566_v24 = vmax.f32 %v5432_v49, 0.0  ;;  %v5433_v26 = vadd.f32 %v10543_v60, %v5292_v44  ;;  %v5027_v40 = vmax.f32 %v11167_v16, %v7594_v52  ;;  %v3808_v38 = vpop.f32.mrb[9].mxu0 }
 0x2ef   :  { %v4880_v56 = vpop.f32.mrb[9].mxu1  ;;  %v5564_v20 = vmax.f32 %v5430_v29, 0.0  ;;  %v5431_v57 = vadd.f32 %v10543_v60, %v5290_v0  ;;  %v5025_v30 = vmax.f32 %v11168_v25, %v3808_v38  ;;  %v7595_v39 = vpop.f32.mrb[10].mxu0 }
 0x2f0   :  { %v7863_v46 = vpop.f32.mrb[10].mxu1  ;;  %v7048_v47 = vpack.c.bf16 %v5566_v24, %v5566_v24  ;;  %v5567_v62 = vmax.f32 %v5433_v26, 0.0  ;;  %v5161_v13 = vmax.f32 %v5027_v40, %v11169_v31  ;;  %v5028_v48 = vmax.f32 %v11170_v54, %v7595_v39  ;;  %v3811_v1 = vpop.f32.mrb[11].mxu0 }
 0x2f1   :  { %v4883_v14 = vpop.f32.mrb[11].mxu1  ;;  %v7046_v32 = vpack.c.bf16 %v5564_v20, %v5564_v20  ;;  %v5565_v21 = vmax.f32 %v5431_v57, 0.0  ;;  %v5159_v5 = vmax.f32 %v5025_v30, %v11171_v2  ;;  %v5026_v55 = vmax.f32 %v11172_v10, %v3811_v1 }
 0x2f2   :  { %6237 = vst.msk [vmem:[%s10732_s3 + $0x200] sm:$0xf] %vm6108_vm3, %v7048_v47  ;;  %v7049_v15 = vpack.c.bf16 %v5567_v62, %v5567_v62  ;;  %v5295_v18 = vmax.f32 %v5161_v13, %v7862_v4  ;;  %v5162_v34 = vmax.f32 %v5028_v48, %v11173_v27 }
 0x2f3   :  { %6235 = vst.msk [vmem:[%s10732_s3 + $0x1f8] sm:$0xf] %vm6108_vm3, %v7046_v32  ;;  %v7047_v35 = vpack.c.bf16 %v5565_v21, %v5565_v21  ;;  %v5293_v50 = vmax.f32 %v5159_v5, %v4880_v56  ;;  %v5160_v19 = vmax.f32 %v5026_v55, %v11174_v58 }
 0x2f4   :  { %6238 = vst.msk [vmem:[%s10732_s3 + $0x204] sm:$0xf] %vm6108_vm3, %v7049_v15  ;;  %v5436_v11 = vadd.f32 %v10543_v60, %v5295_v18  ;;  %v5296_v3 = vmax.f32 %v5162_v34, %v7863_v46 }
 0x2f5   :  { %6236 = vst.msk [vmem:[%s10732_s3 + $0x1fc] sm:$0xf] %vm6108_vm3, %v7047_v35  ;;  %v5434_v6 = vadd.f32 %v10543_v60, %v5293_v50  ;;  %v5294_v17 = vmax.f32 %v5160_v19, %v4883_v14 }
 0x2f6   :  { %v5570_v22 = vmax.f32 %v5436_v11, 0.0  ;;  %v5437_v23 = vadd.f32 %v10543_v60, %v5296_v3 }
 0x2f7   :  { %v5568_v36 = vmax.f32 %v5434_v6, 0.0  ;;  %v5435_v33 = vadd.f32 %v10543_v60, %v5294_v17 }
 0x2f8   :  { %v7052_v7 = vpack.c.bf16 %v5570_v22, %v5570_v22  ;;  %v5571_v53 = vmax.f32 %v5437_v23, 0.0 }
 0x2f9   :  { %v7050_v41 = vpack.c.bf16 %v5568_v36, %v5568_v36  ;;  %v5569_v63 = vmax.f32 %v5435_v33, 0.0 }
 0x2fa   :  { %6241 = vst.msk [vmem:[%s10732_s3 + $0x210] sm:$0xf] %vm6108_vm3, %v7052_v7  ;;  %v7053_v37 = vpack.c.bf16 %v5571_v53, %v5571_v53 }
 0x2fb   :  { %6239 = vst.msk [vmem:[%s10732_s3 + $0x208] sm:$0xf] %vm6108_vm3, %v7050_v41  ;;  %v7051_v42 = vpack.c.bf16 %v5569_v63, %v5569_v63 }
 0x2fc   :  { %6242 = vst.msk [vmem:[%s10732_s3 + $0x214] sm:$0xf] %vm6108_vm3, %v7053_v37 }
 0x2fd   :  { %6240 = vst.msk [vmem:[%s10732_s3 + $0x20c] sm:$0xf] %vm6108_vm3, %v7051_v42 }

// kernel: net_forward.4
= control target key start
LH: loop header
LB: loop body
LE: loop exit
PB: predicated region body
PF: predicated region fallthrough
CT: control target
= control target key end

     0   :  { %v5584_v0 = vmov 0   ;;  %vm2307_vm0 = vcmask 261120   ;;  %vm4185_vm1 = vcmask 519168   ;;  %s7738_s1 = inlined_call_operand.vmem [shape: bf16[800,64], index: 1, kind: input, shape index: {}]   ;;  %s7739_s0 = inlined_call_operand.vmem [shape: bf16[704,800], index: 0, kind: input, shape index: {}]   ;;  %s7740_s2 = inlined_call_operand.vmem [shape: f32[1,64], index: 2, kind: input, shape index: {}]   ;;  %s7741_s3 = inlined_call_operand.vmem [shape: bf16[176,64], index: 3, kind: output, shape index: {}]  }
   0x1   :  { %2440 = vmatprep.subr.bf16.mxu1 %v5584_v0  ;;  %2825 = vmatprep.subr.bf16.mxu0 %v5584_v0  ;;  %v5094_v1 = vld [vmem:[%s7738_s1] sm:$0xff]   ;;  %v5096_v3 = vld [vmem:[%s7738_s1 + $0x8] sm:$0xff]   ;;  %v5098_v5 = vld [vmem:[%s7738_s1 + $0x10] sm:$0xff]  }
   0x2   :  { %v5613_v2 = vld [vmem:[%s7738_s1 + $0x80] sm:$0xff]   ;;  %2441 = vmatpush1.bf16.msra.mxu1 %v5094_v1  ;;  %v5623_v4 = vld [vmem:[%s7738_s1 + $0x88] sm:$0xff]   ;;  %v5634_v6 = vld [vmem:[%s7738_s1 + $0x90] sm:$0xff]  }
   0x3   :  { %2826 = vmatpush1.bf16.msra.mxu0 %v5613_v2  ;;  %2442 = vmatprep.subr.bf16.mxu1 %v5584_v0  ;;  %v5100_v7 = vld [vmem:[%s7738_s1 + $0x18] sm:$0xff]   ;;  %v5102_v9 = vld [vmem:[%s7738_s1 + $0x20] sm:$0xff]   ;;  %v5104_v11 = vld [vmem:[%s7738_s1 + $0x28] sm:$0xff]  }
   0x4   :  { %2827 = vmatprep.subr.bf16.mxu0 %v5584_v0  ;;  %v5645_v8 = vld [vmem:[%s7738_s1 + $0x98] sm:$0xff]   ;;  %v5656_v10 = vld [vmem:[%s7738_s1 + $0xa0] sm:$0xff]   ;;  %v5667_v12 = vld [vmem:[%s7738_s1 + $0xa8] sm:$0xff]  }
   0x5   :  { %v5106_v13 = vld [vmem:[%s7738_s1 + $0x30] sm:$0xff]   ;;  %v5108_v15 = vld [vmem:[%s7738_s1 + $0x38] sm:$0xff]   ;;  %v5110_v17 = vld [vmem:[%s7738_s1 + $0x40] sm:$0xff]  }
   0x6   :  { %2443 = vmatpush1.bf16.msra.mxu1 %v5096_v3  ;;  %v5678_v14 = vld [vmem:[%s7738_s1 + $0xb0] sm:$0xff]   ;;  %v5689_v16 = vld [vmem:[%s7738_s1 + $0xb8] sm:$0xff]   ;;  %v5700_v18 = vld [vmem:[%s7738_s1 + $0xc0] sm:$0xff]  }
   0x7   :  { %2828 = vmatpush1.bf16.msra.mxu0 %v5623_v4  ;;  %2444 = vmatprep.subr.bf16.mxu1 %v5584_v0  ;;  %v5128_v19 = vld [vmem:[%s7739_s0 + $0x4] ss:$28 sps:$4 sm:$0xff]   ;;  %v5112_v20 = vld [vmem:[%s7738_s1 + $0x48] sm:$0xff]   ;;  %v5114_v23 = vld [vmem:[%s7738_s1 + $0x50] sm:$0xff]  }
   0x8   :  { %2829 = vmatprep.subr.bf16.mxu0 %v5584_v0  ;;  %v5131_v21 = vld [vmem:[%s7739_s0 + $0xc] ss:$28 sps:$4 sm:$0xff]   ;;  %2472 = vmatprep.mubr.bf16.mxu1 %v5128_v19  ;;  %v5728_v24 = vld [vmem:[%s7738_s1 + $0xd0] sm:$0xff]   ;;  %v5116_v25 = vld [vmem:[%s7738_s1 + $0x58] sm:$0xff]  }
   0x9   :  { %v5717_v22 = vld [vmem:[%s7738_s1 + $0xc8] sm:$0xff]   ;;  %2857 = vmatprep.mubr.bf16.mxu0 %v5131_v21  ;;  %v5739_v26 = vld [vmem:[%s7738_s1 + $0xd8] sm:$0xff]   ;;  %v5118_v27 = vld [vmem:[%s7738_s1 + $0x60] sm:$0xff]  }
   0xa   :  { %2445 = vmatpush1.bf16.msra.mxu1 %v5098_v5  ;;  %v5750_v28 = vld [vmem:[%s7738_s1 + $0xe0] sm:$0xff]   ;;  %v5120_v29 = vld [vmem:[%s7738_s1 + $0x68] sm:$0xff]   ;;  %v5122_v31 = vld [vmem:[%s7738_s1 + $0x70] sm:$0xff]  }
   0xb   :  { %2830 = vmatpush1.bf16.msra.mxu0 %v5634_v6  ;;  %2446 = vmatprep.subr.bf16.mxu1 %v5584_v0  ;;  %v5761_v30 = vld [vmem:[%s7738_s1 + $0xe8] sm:$0xff]   ;;  %v5772_v32 = vld [vmem:[%s7738_s1 + $0xf0] sm:$0xff]   ;;  %v5124_v33 = vld [vmem:[%s7738_s1 + $0x78] sm:$0xff]  }
   0xc   :  { %2831 = vmatprep.subr.bf16.mxu0 %v5584_v0  ;;  %v5783_v34 = vld [vmem:[%s7738_s1 + $0xf8] sm:$0xff]   ;;  %v5129_v36 = vld [vmem:[%s7739_s0 + $0x8] ss:$28 sps:$4 sm:$0xff]   ;;  %v5139_v43 = vld [vmem:[%s7739_s0 + $0x74] ss:$28 sps:$4 sm:$0xff]  }
   0xd   :  { %v5126_v35 = vld [vmem:[%s7739_s0] ss:$28 sps:$4 sm:$0xff]   ;;  %v5145_v40 = vld [vmem:[%s7738_s1 + $0x108] sm:$0xff]   ;;  %v5137_v41 = vld [vmem:[%s7739_s0 + $0x38] ss:$28 sps:$4 sm:$0xff]  }
   0xe   :  { %2447 = vmatpush1.bf16.msra.mxu1 %v5100_v7  ;;  %v5132_v37 = vld [vmem:[%s7738_s1 + $0x100] sm:$0xff]   ;;  %v5133_v38 = vld [vmem:[%s7739_s0 + $0x3c] ss:$28 sps:$4 sm:$0xff]   ;;  %v5158_v45 = vld [vmem:[%s7738_s1 + $0x110] sm:$0xff]  }
   0xf   :  { %2832 = vmatpush1.bf16.msra.mxu0 %v5645_v8  ;;  %2448 = vmatprep.subr.bf16.mxu1 %v5584_v0  ;;  %v5135_v39 = vld [vmem:[%s7739_s0 + $0x44] ss:$28 sps:$4 sm:$0xff]   ;;  %v5141_v44 = vld [vmem:[%s7739_s0 + $0x7c] ss:$28 sps:$4 sm:$0xff]   ;;  %v5143_v47 = vld [vmem:[%s7739_s0 + $0x70] ss:$28 sps:$4 sm:$0xff]  }
  0x10   :  { %2833 = vmatprep.subr.bf16.mxu0 %v5584_v0  ;;  %v5138_v42 = vld [vmem:[%s7739_s0 + $0x40] ss:$28 sps:$4 sm:$0xff]   ;;  %v5144_v48 = vld [vmem:[%s7739_s0 + $0x78] ss:$28 sps:$4 sm:$0xff]   ;;  %v5146_v49 = vld [vmem:[%s7739_s0 + $0xac] ss:$28 sps:$4 sm:$0xff]  }
  0x11   :  { %v5171_v46 = vld [vmem:[%s7738_s1 + $0x118] sm:$0xff]   ;;  %v5148_v50 = vld [vmem:[%s7739_s0 + $0xb4] ss:$28 sps:$4 sm:$0xff]   ;;  %v5184_v51 = vld [vmem:[%s7738_s1 + $0x120] sm:$0xff]  }
  0x12   :  { %2449 = vmatpush1.bf16.msra.mxu1 %v5102_v9  ;;  %v5197_v52 = vld [vmem:[%s7738_s1 + $0x128] sm:$0xff]   ;;  %v5152_v55 = vld [vmem:[%s7739_s0 + $0xe4] ss:$28 sps:$4 sm:$0xff]   ;;  %v5210_v57 = vld [vmem:[%s7738_s1 + $0x130] sm:$0xff]  }
  0x13   :  { %2834 = vmatpush1.bf16.msra.mxu0 %v5656_v10  ;;  %2450 = vmatprep.subr.bf16.mxu1 %v5584_v0  ;;  %v5150_v53 = vld [vmem:[%s7739_s0 + $0xa8] ss:$28 sps:$4 sm:$0xff]   ;;  %v5151_v54 = vld [vmem:[%s7739_s0 + $0xb0] ss:$28 sps:$4 sm:$0xff]   ;;  %v5223_v58 = vld [vmem:[%s7738_s1 + $0x138] sm:$0xff]  }
  0x14   :  { %2835 = vmatprep.subr.bf16.mxu0 %v5584_v0  ;;  %v5154_v56 = vld [vmem:[%s7739_s0 + $0xec] ss:$28 sps:$4 sm:$0xff]   ;;  %v5156_v59 = vld [vmem:[%s7739_s0 + $0xe0] ss:$28 sps:$4 sm:$0xff]   ;;  %v5163_v1 = vld [vmem:[%s7739_s0 + $0x118] ss:$28 sps:$4 sm:$0xff]  }
  0x15   :  { %v5157_v60 = vld [vmem:[%s7739_s0 + $0xe8] ss:$28 sps:$4 sm:$0xff]   ;;  %v5159_v61 = vld [vmem:[%s7739_s0 + $0x11c] ss:$28 sps:$4 sm:$0xff]   ;;  %v5169_v7 = vld [vmem:[%s7739_s0 + $0x150] ss:$28 sps:$4 sm:$0xff]  }
  0x16   :  { %2451 = vmatpush1.bf16.msra.mxu1 %v5104_v11  ;;  %v5161_v62 = vld [vmem:[%s7739_s0 + $0x124] ss:$28 sps:$4 sm:$0xff]   ;;  %v5167_v5 = vld [vmem:[%s7739_s0 + $0x15c] ss:$28 sps:$4 sm:$0xff]   ;;  %v5172_v9 = vld [vmem:[%s7739_s0 + $0x18c] ss:$28 sps:$4 sm:$0xff]  }
  0x17   :  { %2836 = vmatpush1.bf16.msra.mxu0 %v5667_v12  ;;  %2452 = vmatprep.subr.bf16.mxu1 %v5584_v0  ;;  %v5236_v63 = vld [vmem:[%s7738_s1 + $0x140] sm:$0xff]  }
  0x18   :  { %2837 = vmatprep.subr.bf16.mxu0 %v5584_v0  ;;  %v5164_v3 = vld [vmem:[%s7739_s0 + $0x120] ss:$28 sps:$4 sm:$0xff]   ;;  %v5176_v11 = vld [vmem:[%s7739_s0 + $0x188] ss:$28 sps:$4 sm:$0xff]  }
  0x19   :  { %v5187_v19 = vld [vmem:[%s7739_s0 + $0x204] ss:$28 sps:$4 sm:$0xff]  }
  0x1a   :  { %2453 = vmatpush1.bf16.msra.mxu1 %v5106_v13  ;;  %v5177_v13 = vld [vmem:[%s7739_s0 + $0x190] ss:$28 sps:$4 sm:$0xff]   ;;  %v5292_v21 = vld [vmem:[%s7738_s1 + $0x160] sm:$0xff]  }
  0x1b   :  { %2838 = vmatpush1.bf16.msra.mxu0 %v5678_v14  ;;  %2454 = vmatprep.subr.bf16.mxu1 %v5584_v0 }
  0x1c   :  { %2839 = vmatprep.subr.bf16.mxu0 %v5584_v0 }
  0x1e   :  { %2455 = vmatpush1.bf16.msra.mxu1 %v5108_v15  ;;  %v5180_v15 = vld [vmem:[%s7739_s0 + $0x1cc] ss:$28 sps:$4 sm:$0xff]  }
  0x1f   :  { %2840 = vmatpush1.bf16.msra.mxu0 %v5689_v16  ;;  %2456 = vmatprep.subr.bf16.mxu1 %v5584_v0 }
  0x20   :  { %2841 = vmatprep.subr.bf16.mxu0 %v5584_v0 }
  0x22   :  { %2457 = vmatpush1.bf16.msra.mxu1 %v5110_v17  ;;  %v5183_v17 = vld [vmem:[%s7739_s0 + $0x1c8] ss:$28 sps:$4 sm:$0xff]  }
  0x23   :  { %2842 = vmatpush1.bf16.msra.mxu0 %v5700_v18  ;;  %2458 = vmatprep.subr.bf16.mxu1 %v5584_v0 }
  0x24   :  { %2843 = vmatprep.subr.bf16.mxu0 %v5584_v0 }
  0x26   :  { %2459 = vmatpush1.bf16.msra.mxu1 %v5112_v20  ;;  %v5189_v20 = vld [vmem:[%s7739_s0 + $0x1f8] ss:$28 sps:$4 sm:$0xff]  }
  0x27   :  { %2844 = vmatpush1.bf16.msra.mxu0 %v5717_v22  ;;  %2460 = vmatprep.subr.bf16.mxu1 %v5584_v0 }
  0x28   :  { %2845 = vmatprep.subr.bf16.mxu0 %v5584_v0 }
  0x2a   :  { %2461 = vmatpush1.bf16.msra.mxu1 %v5114_v23  ;;  %v5191_v23 = vld [vmem:[%s7739_s0 + $0x234] ss:$28 sps:$4 sm:$0xff]  }
  0x2b   :  { %2846 = vmatpush1.bf16.msra.mxu0 %v5728_v24  ;;  %2462 = vmatprep.subr.bf16.mxu1 %v5584_v0 }
  0x2c   :  { %2847 = vmatprep.subr.bf16.mxu0 %v5584_v0 }
  0x2e   :  { %2463 = vmatpush1.bf16.msra.mxu1 %v5116_v25  ;;  %v5195_v25 = vld [vmem:[%s7739_s0 + $0x230] ss:$28 sps:$4 sm:$0xff]  }
  0x2f   :  { %2848 = vmatpush1.bf16.msra.mxu0 %v5739_v26  ;;  %2464 = vmatprep.subr.bf16.mxu1 %v5584_v0 }
  0x30   :  { %2849 = vmatprep.subr.bf16.mxu0 %v5584_v0 }
  0x32   :  { %2465 = vmatpush1.bf16.msra.mxu1 %v5118_v27  ;;  %v5198_v27 = vld [vmem:[%s7739_s0 + $0x26c] ss:$28 sps:$4 sm:$0xff]  }
  0x33   :  { %2850 = vmatpush1.bf16.msra.mxu0 %v5750_v28  ;;  %2466 = vmatprep.subr.bf16.mxu1 %v5584_v0 }
  0x34   :  { %2851 = vmatprep.subr.bf16.mxu0 %v5584_v0 }
  0x36   :  { %2467 = vmatpush1.bf16.msra.mxu1 %v5120_v29  ;;  %v5202_v29 = vld [vmem:[%s7739_s0 + $0x268] ss:$28 sps:$4 sm:$0xff]  }
  0x37   :  { %2852 = vmatpush1.bf16.msra.mxu0 %v5761_v30  ;;  %2468 = vmatprep.subr.bf16.mxu1 %v5584_v0 }
  0x38   :  { %2853 = vmatprep.subr.bf16.mxu0 %v5584_v0 }
  0x3a   :  { %2469 = vmatpush1.bf16.msra.mxu1 %v5122_v31  ;;  %v5204_v31 = vld [vmem:[%s7739_s0 + $0x2a4] ss:$28 sps:$4 sm:$0xff]  }
  0x3b   :  { %2854 = vmatpush1.bf16.msra.mxu0 %v5772_v32  ;;  %2470 = vmatprep.subr.bf16.mxu1 %v5584_v0 }
  0x3c   :  { %2855 = vmatprep.subr.bf16.mxu0 %v5584_v0 }
  0x3e   :  { %2471 = vmatpush1.bf16.msra.mxu1 %v5124_v33  ;;  %v5307_v33 = vld [vmem:[%s7738_s1 + $0x168] sm:$0xff]  }
  0x3f   :  { %2856 = vmatpush1.bf16.msra.mxu0 %v5783_v34  ;;  %4797 = vmatprep.subr.bf16.mxu1 %v5584_v0 }
  0x40   :  { %3210 = vmatprep.subr.bf16.mxu0 %v5584_v0 }
  0x41   :  { %2473 = vmatmul.mubr.bf16.vlgmr.msra.gmra.mrb[0].mxu1 %v5126_v35  ;;  %v5209_v35 = vld [vmem:[%s7739_s0 + $0x2a8] ss:$28 sps:$4 sm:$0xff]  }
  0x42   :  { %2858 = vmatmul.mubr.bf16.vlgmr.msra.gmra.mrb[0].mxu0 %v5129_v36  ;;  %4813 = vmatpush1.bf16.msra.mxu1 %v5613_v2  ;;  %v5249_v2 = vld [vmem:[%s7738_s1 + $0x148] sm:$0xff]   ;;  %v5211_v36 = vld [vmem:[%s7739_s0 + $0x2dc] ss:$28 sps:$4 sm:$0xff]  }
  0x43   :  { %3211 = vmatpush1.bf16.msra.mxu0 %v5132_v37  ;;  %2480 = vmatprep.mubr.bf16.mxu1 %v5133_v38  ;;  %v5213_v37 = vld [vmem:[%s7739_s0 + $0x2e4] ss:$28 sps:$4 sm:$0xff]   ;;  %v5215_v38 = vld [vmem:[%s7739_s0 + $0x2d8] ss:$28 sps:$4 sm:$0xff]  }
  0x44   :  { %2865 = vmatprep.mubr.bf16.mxu0 %v5135_v39  ;;  %3212 = vmatprep.subr.bf16.mxu0 %v5584_v0  ;;  %v5216_v39 = vld [vmem:[%s7739_s0 + $0x2e0] ss:$28 sps:$4 sm:$0xff]  }
  0x45   :  { %4798 = vmatprep.subr.bf16.mxu1 %v5584_v0 }
  0x46   :  { %4814 = vmatpush1.bf16.msra.mxu1 %v5623_v4  ;;  %v5165_v4 = vld [vmem:[%s7739_s0 + $0x154] ss:$28 sps:$4 sm:$0xff]  }
  0x47   :  { %3213 = vmatpush1.bf16.msra.mxu0 %v5145_v40  ;;  %4799 = vmatprep.subr.bf16.mxu1 %v5584_v0  ;;  %v5217_v40 = vld [vmem:[%s7739_s0 + $0x314] ss:$28 sps:$4 sm:$0xff]  }
  0x48   :  { %3214 = vmatprep.subr.bf16.mxu0 %v5584_v0 }
  0x49   :  { %2481 = vmatmul.mubr.bf16.gmra.mrb[4].mxu1 %v5137_v41  ;;  %v5219_v41 = vld [vmem:[%s7739_s0 + $0x31c] ss:$28 sps:$4 sm:$0xff]  }
  0x4a   :  { %2866 = vmatmul.mubr.bf16.gmra.mrb[4].mxu0 %v5138_v42  ;;  %2488 = vmatprep.mubr.bf16.mxu1 %v5139_v43  ;;  %v5320_v42 = vld [vmem:[%s7738_s1 + $0x170] sm:$0xff]  }
  0x4b   :  { %2873 = vmatprep.mubr.bf16.mxu0 %v5141_v44  ;;  %3215 = vmatpush1.bf16.msra.mxu0 %v5158_v45  ;;  %v5221_v43 = vld [vmem:[%s7739_s0 + $0x310] ss:$28 sps:$4 sm:$0xff]   ;;  %v5222_v44 = vld [vmem:[%s7739_s0 + $0x318] ss:$28 sps:$4 sm:$0xff]  }
  0x4c   :  { %4815 = vmatpush1.bf16.msra.mxu1 %v5634_v6  ;;  %3216 = vmatprep.subr.bf16.mxu0 %v5584_v0  ;;  %v5262_v6 = vld [vmem:[%s7738_s1 + $0x150] sm:$0xff]   ;;  %v5224_v45 = vld [vmem:[%s7739_s0 + $0x34c] ss:$28 sps:$4 sm:$0xff]  }
  0x4d   :  { %4800 = vmatprep.subr.bf16.mxu1 %v5584_v0 }
  0x4f   :  { %3217 = vmatpush1.bf16.msra.mxu0 %v5171_v46  ;;  %v5226_v46 = vld [vmem:[%s7739_s0 + $0x354] ss:$28 sps:$4 sm:$0xff]  }
  0x50   :  { %3218 = vmatprep.subr.bf16.mxu0 %v5584_v0  ;;  %4816 = vmatpush1.bf16.msra.mxu1 %v5645_v8  ;;  %v5170_v8 = vld [vmem:[%s7739_s0 + $0x158] ss:$28 sps:$4 sm:$0xff]  }
  0x51   :  { %2489 = vmatmul.mubr.bf16.gmra.mrb[8].mxu1 %v5143_v47  ;;  %4801 = vmatprep.subr.bf16.mxu1 %v5584_v0  ;;  %v5228_v47 = vld [vmem:[%s7739_s0 + $0x348] ss:$28 sps:$4 sm:$0xff]  }
  0x52   :  { %2874 = vmatmul.mubr.bf16.gmra.mrb[8].mxu0 %v5144_v48  ;;  %2496 = vmatprep.mubr.bf16.mxu1 %v5146_v49  ;;  %v5229_v48 = vld [vmem:[%s7739_s0 + $0x350] ss:$28 sps:$4 sm:$0xff]  }
  0x53   :  { %2881 = vmatprep.mubr.bf16.mxu0 %v5148_v50  ;;  %3219 = vmatpush1.bf16.msra.mxu0 %v5184_v51  ;;  %v5232_v49 = vld [vmem:[%s7739_s0 + $0x38c] ss:$28 sps:$4 sm:$0xff]   ;;  %v5333_v50 = vld [vmem:[%s7738_s1 + $0x178] sm:$0xff]  }
  0x54   :  { %3220 = vmatprep.subr.bf16.mxu0 %v5584_v0  ;;  %4817 = vmatpush1.bf16.msra.mxu1 %v5656_v10  ;;  %v5174_v10 = vld [vmem:[%s7739_s0 + $0x194] ss:$28 sps:$4 sm:$0xff]   ;;  %v5234_v51 = vld [vmem:[%s7739_s0 + $0x380] ss:$28 sps:$4 sm:$0xff]  }
  0x55   :  { %4802 = vmatprep.subr.bf16.mxu1 %v5584_v0 }
  0x57   :  { %3221 = vmatpush1.bf16.msra.mxu0 %v5197_v52  ;;  %v5235_v52 = vld [vmem:[%s7739_s0 + $0x388] ss:$28 sps:$4 sm:$0xff]  }
  0x58   :  { %3222 = vmatprep.subr.bf16.mxu0 %v5584_v0  ;;  %4818 = vmatpush1.bf16.msra.mxu1 %v5667_v12  ;;  %v5279_v12 = vld [vmem:[%s7738_s1 + $0x158] sm:$0xff]  }
  0x59   :  { %2497 = vmatmul.mubr.bf16.gmra.mrb[12].mxu1 %v5150_v53  ;;  %4803 = vmatprep.subr.bf16.mxu1 %v5584_v0  ;;  %v5237_v53 = vld [vmem:[%s7739_s0 + $0x3bc] ss:$28 sps:$4 sm:$0xff]  }
  0x5a   :  { %2882 = vmatmul.mubr.bf16.gmra.mrb[12].mxu0 %v5151_v54  ;;  %2504 = vmatprep.mubr.bf16.mxu1 %v5152_v55  ;;  %v5239_v54 = vld [vmem:[%s7739_s0 + $0x3c4] ss:$28 sps:$4 sm:$0xff]   ;;  %v5241_v55 = vld [vmem:[%s7739_s0 + $0x3b8] ss:$28 sps:$4 sm:$0xff]  }
  0x5b   :  { %2889 = vmatprep.mubr.bf16.mxu0 %v5154_v56  ;;  %3223 = vmatpush1.bf16.msra.mxu0 %v5210_v57  ;;  %v5242_v56 = vld [vmem:[%s7739_s0 + $0x3c0] ss:$28 sps:$4 sm:$0xff]   ;;  %v5243_v57 = vld [vmem:[%s7739_s0 + $0x3f4] ss:$28 sps:$4 sm:$0xff]  }
  0x5c   :  { %3224 = vmatprep.subr.bf16.mxu0 %v5584_v0  ;;  %4819 = vmatpush1.bf16.msra.mxu1 %v5678_v14  ;;  %v5178_v14 = vld [vmem:[%s7739_s0 + $0x1c4] ss:$28 sps:$4 sm:$0xff]  }
  0x5d   :  { %4804 = vmatprep.subr.bf16.mxu1 %v5584_v0 }
  0x5f   :  { %3225 = vmatpush1.bf16.msra.mxu0 %v5223_v58  ;;  %v5245_v58 = vld [vmem:[%s7739_s0 + $0x3fc] ss:$28 sps:$4 sm:$0xff]  }
  0x60   :  { %3226 = vmatprep.subr.bf16.mxu0 %v5584_v0  ;;  %4820 = vmatpush1.bf16.msra.mxu1 %v5689_v16  ;;  %v5182_v16 = vld [vmem:[%s7739_s0 + $0x1c0] ss:$28 sps:$4 sm:$0xff]  }
  0x61   :  { %2505 = vmatmul.mubr.bf16.gmra.mrb[16].mxu1 %v5156_v59  ;;  %4805 = vmatprep.subr.bf16.mxu1 %v5584_v0  ;;  %v5247_v59 = vld [vmem:[%s7739_s0 + $0x3f0] ss:$28 sps:$4 sm:$0xff]  }
  0x62   :  { %2890 = vmatmul.mubr.bf16.gmra.mrb[16].mxu0 %v5157_v60  ;;  %2512 = vmatprep.mubr.bf16.mxu1 %v5159_v61  ;;  %v5248_v60 = vld [vmem:[%s7739_s0 + $0x3f8] ss:$28 sps:$4 sm:$0xff]   ;;  %v5250_v61 = vld [vmem:[%s7739_s0 + $0x42c] ss:$28 sps:$4 sm:$0xff]  }
  0x63   :  { %2897 = vmatprep.mubr.bf16.mxu0 %v5161_v62  ;;  %3227 = vmatpush1.bf16.msra.mxu0 %v5236_v63  ;;  %v5252_v62 = vld [vmem:[%s7739_s0 + $0x434] ss:$28 sps:$4 sm:$0xff]   ;;  %v5254_v63 = vld [vmem:[%s7739_s0 + $0x428] ss:$28 sps:$4 sm:$0xff]  }
  0x64   :  { %3228 = vmatprep.subr.bf16.mxu0 %v5584_v0  ;;  %4821 = vmatpush1.bf16.msra.mxu1 %v5700_v18  ;;  %v5185_v18 = vld [vmem:[%s7739_s0 + $0x1fc] ss:$28 sps:$4 sm:$0xff]  }
  0x65   :  { %4806 = vmatprep.subr.bf16.mxu1 %v5584_v0 }
  0x67   :  { %3229 = vmatpush1.bf16.msra.mxu0 %v5249_v2  ;;  %v5256_v2 = vld [vmem:[%s7739_s0 + $0x464] ss:$28 sps:$4 sm:$0xff]  }
  0x68   :  { %3230 = vmatprep.subr.bf16.mxu0 %v5584_v0  ;;  %4822 = vmatpush1.bf16.msra.mxu1 %v5717_v22  ;;  %v5190_v22 = vld [vmem:[%s7739_s0 + $0x200] ss:$28 sps:$4 sm:$0xff]  }
  0x69   :  { %2513 = vmatmul.mubr.bf16.gmra.mrb[20].mxu1 %v5163_v1  ;;  %4807 = vmatprep.subr.bf16.mxu1 %v5584_v0  ;;  %v5255_v1 = vld [vmem:[%s7739_s0 + $0x430] ss:$28 sps:$4 sm:$0xff]  }
  0x6a   :  { %2898 = vmatmul.mubr.bf16.gmra.mrb[20].mxu0 %v5164_v3  ;;  %2520 = vmatprep.mubr.bf16.mxu1 %v5165_v4  ;;  %v5258_v3 = vld [vmem:[%s7739_s0 + $0x46c] ss:$28 sps:$4 sm:$0xff]   ;;  %v5260_v4 = vld [vmem:[%s7739_s0 + $0x460] ss:$28 sps:$4 sm:$0xff]  }
  0x6b   :  { %2905 = vmatprep.mubr.bf16.mxu0 %v5167_v5  ;;  %3231 = vmatpush1.bf16.msra.mxu0 %v5262_v6  ;;  %v5261_v5 = vld [vmem:[%s7739_s0 + $0x468] ss:$28 sps:$4 sm:$0xff]   ;;  %v5263_v6 = vld [vmem:[%s7739_s0 + $0x49c] ss:$28 sps:$4 sm:$0xff]  }
  0x6c   :  { %3232 = vmatprep.subr.bf16.mxu0 %v5584_v0  ;;  %4823 = vmatpush1.bf16.msra.mxu1 %v5728_v24  ;;  %v5193_v24 = vld [vmem:[%s7739_s0 + $0x23c] ss:$28 sps:$4 sm:$0xff]  }
  0x6d   :  { %4808 = vmatprep.subr.bf16.mxu1 %v5584_v0 }
  0x6f   :  { %3233 = vmatpush1.bf16.msra.mxu0 %v5279_v12  ;;  %v5273_v12 = vld [vmem:[%s7739_s0 + $0x4d0] ss:$28 sps:$4 sm:$0xff]  }
  0x70   :  { %4824 = vmatpush1.bf16.msra.mxu1 %v5739_v26  ;;  %3234 = vmatprep.subr.bf16.mxu0 %v5584_v0  ;;  %v5196_v26 = vld [vmem:[%s7739_s0 + $0x238] ss:$28 sps:$4 sm:$0xff]  }
  0x71   :  { %2521 = vmatmul.mubr.bf16.gmra.mrb[24].mxu1 %v5169_v7  ;;  %4809 = vmatprep.subr.bf16.mxu1 %v5584_v0  ;;  %v5265_v7 = vld [vmem:[%s7739_s0 + $0x4a4] ss:$28 sps:$4 sm:$0xff]  }
  0x72   :  { %2906 = vmatmul.mubr.bf16.gmra.mrb[24].mxu0 %v5170_v8  ;;  %2528 = vmatprep.mubr.bf16.mxu1 %v5172_v9  ;;  %v5267_v8 = vld [vmem:[%s7739_s0 + $0x498] ss:$28 sps:$4 sm:$0xff]   ;;  %v5268_v9 = vld [vmem:[%s7739_s0 + $0x4a0] ss:$28 sps:$4 sm:$0xff]  }
  0x73   :  { %2913 = vmatprep.mubr.bf16.mxu0 %v5174_v10  ;;  %3235 = vmatpush1.bf16.msra.mxu0 %v5292_v21  ;;  %v5269_v10 = vld [vmem:[%s7739_s0 + $0x4d4] ss:$28 sps:$4 sm:$0xff]   ;;  %v5287_v21 = vld [vmem:[%s7739_s0 + $0x548] ss:$28 sps:$4 sm:$0xff]  }
  0x74   :  { %4825 = vmatpush1.bf16.msra.mxu1 %v5750_v28  ;;  %3236 = vmatprep.subr.bf16.mxu0 %v5584_v0  ;;  %v5200_v28 = vld [vmem:[%s7739_s0 + $0x274] ss:$28 sps:$4 sm:$0xff]  }
  0x75   :  { %4810 = vmatprep.subr.bf16.mxu1 %v5584_v0 }
  0x77   :  { %3237 = vmatpush1.bf16.msra.mxu0 %v5307_v33 }
  0x78   :  { %4826 = vmatpush1.bf16.msra.mxu1 %v5761_v30  ;;  %v5203_v30 = vld [vmem:[%s7739_s0 + $0x270] ss:$28 sps:$4 sm:$0xff]   ;;  %3238 = vmatprep.subr.bf16.mxu0 %v5584_v0 }
  0x79   :  { %2529 = vmatmul.mubr.bf16.gmra.mrb[28].mxu1 %v5176_v11  ;;  %4811 = vmatprep.subr.bf16.mxu1 %v5584_v0  ;;  %v5271_v11 = vld [vmem:[%s7739_s0 + $0x4dc] ss:$28 sps:$4 sm:$0xff]  }
  0x7a   :  { %2914 = vmatmul.mubr.bf16.gmra.mrb[28].mxu0 %v5177_v13  ;;  %2536 = vmatprep.mubr.bf16.mxu1 %v5178_v14  ;;  %v5274_v13 = vld [vmem:[%s7739_s0 + $0x4d8] ss:$28 sps:$4 sm:$0xff]   ;;  %v5275_v14 = vld [vmem:[%s7739_s0 + $0x50c] ss:$28 sps:$4 sm:$0xff]  }
  0x7b   :  { %2921 = vmatprep.mubr.bf16.mxu0 %v5180_v15  ;;  %3239 = vmatpush1.bf16.msra.mxu0 %v5320_v42  ;;  %v5277_v15 = vld [vmem:[%s7739_s0 + $0x514] ss:$28 sps:$4 sm:$0xff]   ;;  %v5312_v42 = vld [vmem:[%s7739_s0 + $0x620] ss:$28 sps:$4 sm:$0xff]  }
  0x7c   :  { %4827 = vmatpush1.bf16.msra.mxu1 %v5772_v32  ;;  %v5206_v32 = vld [vmem:[%s7739_s0 + $0x2ac] ss:$28 sps:$4 sm:$0xff]   ;;  %3240 = vmatprep.subr.bf16.mxu0 %v5584_v0 }
  0x7d   :  { %4812 = vmatprep.subr.bf16.mxu1 %v5584_v0  ;;  %v5230_v0 = vld [vmem:[%s7739_s0 + $0x384] ss:$28 sps:$4 sm:$0xff]  }
  0x7f   :  { %3241 = vmatpush1.bf16.msra.mxu0 %v5333_v50  ;;  %v5318_v50 = vld [vmem:[%s7739_s0 + $0x658] ss:$28 sps:$4 sm:$0xff]  }
  0x80   :  { %4828 = vmatpush1.bf16.msra.mxu1 %v5783_v34  ;;  %v5208_v34 = vld [vmem:[%s7739_s0 + $0x2a0] ss:$28 sps:$4 sm:$0xff]  }
  0x81   :  { %2537 = vmatmul.mubr.bf16.gmra.mrb[32].mxu1 %v5182_v16  ;;  %v5280_v16 = vld [vmem:[%s7739_s0 + $0x508] ss:$28 sps:$4 sm:$0xff]  }
  0x82   :  { %2922 = vmatmul.mubr.bf16.gmra.mrb[32].mxu0 %v5183_v17  ;;  %2544 = vmatprep.mubr.bf16.mxu1 %v5185_v18  ;;  %v5281_v17 = vld [vmem:[%s7739_s0 + $0x510] ss:$28 sps:$4 sm:$0xff]   ;;  %v5282_v18 = vld [vmem:[%s7739_s0 + $0x544] ss:$28 sps:$4 sm:$0xff]  }
  0x83   :  { %2929 = vmatprep.mubr.bf16.mxu0 %v5187_v19  ;;  %v5284_v19 = vld [vmem:[%s7739_s0 + $0x54c] ss:$28 sps:$4 sm:$0xff]  }
  0x89   :  { %2545 = vmatmul.mubr.bf16.gmra.mrb[36].mxu1 %v5189_v20  ;;  %v5286_v20 = vld [vmem:[%s7739_s0 + $0x540] ss:$28 sps:$4 sm:$0xff]  }
  0x8a   :  { %2930 = vmatmul.mubr.bf16.gmra.mrb[36].mxu0 %v5190_v22  ;;  %2552 = vmatprep.mubr.bf16.mxu1 %v5191_v23  ;;  %v5288_v22 = vld [vmem:[%s7739_s0 + $0x57c] ss:$28 sps:$4 sm:$0xff]   ;;  %v5290_v23 = vld [vmem:[%s7739_s0 + $0x584] ss:$28 sps:$4 sm:$0xff]  }
  0x8b   :  { %2937 = vmatprep.mubr.bf16.mxu0 %v5193_v24  ;;  %v5293_v24 = vld [vmem:[%s7739_s0 + $0x578] ss:$28 sps:$4 sm:$0xff]  }
  0x91   :  { %2553 = vmatmul.mubr.bf16.gmra.mrb[40].mxu1 %v5195_v25  ;;  %v5294_v25 = vld [vmem:[%s7739_s0 + $0x580] ss:$28 sps:$4 sm:$0xff]  }
  0x92   :  { %2938 = vmatmul.mubr.bf16.gmra.mrb[40].mxu0 %v5196_v26  ;;  %2560 = vmatprep.mubr.bf16.mxu1 %v5198_v27  ;;  %v5295_v26 = vld [vmem:[%s7739_s0 + $0x5b4] ss:$28 sps:$4 sm:$0xff]   ;;  %v5297_v27 = vld [vmem:[%s7739_s0 + $0x5bc] ss:$28 sps:$4 sm:$0xff]  }
  0x93   :  { %2945 = vmatprep.mubr.bf16.mxu0 %v5200_v28  ;;  %v5299_v28 = vld [vmem:[%s7739_s0 + $0x5b0] ss:$28 sps:$4 sm:$0xff]  }
  0x99   :  { %2561 = vmatmul.mubr.bf16.gmra.mrb[44].mxu1 %v5202_v29  ;;  %v5300_v29 = vld [vmem:[%s7739_s0 + $0x5b8] ss:$28 sps:$4 sm:$0xff]  }
  0x9a   :  { %2946 = vmatmul.mubr.bf16.gmra.mrb[44].mxu0 %v5203_v30  ;;  %2568 = vmatprep.mubr.bf16.mxu1 %v5204_v31  ;;  %v5301_v30 = vld [vmem:[%s7739_s0 + $0x5ec] ss:$28 sps:$4 sm:$0xff]   ;;  %v5303_v31 = vld [vmem:[%s7739_s0 + $0x5f4] ss:$28 sps:$4 sm:$0xff]  }
  0x9b   :  { %2953 = vmatprep.mubr.bf16.mxu0 %v5206_v32 }
  0xa1   :  { %2569 = vmatmul.mubr.bf16.gmra.mrb[48].mxu1 %v5208_v34  ;;  %v5305_v34 = vld [vmem:[%s7739_s0 + $0x5e8] ss:$28 sps:$4 sm:$0xff]  }
  0xa2   :  { %2954 = vmatmul.mubr.bf16.gmra.mrb[48].mxu0 %v5209_v35  ;;  %2576 = vmatprep.mubr.bf16.mxu1 %v5211_v36  ;;  %v5306_v36 = vld [vmem:[%s7739_s0 + $0x5f0] ss:$28 sps:$4 sm:$0xff]  }
  0xa3   :  { %2961 = vmatprep.mubr.bf16.mxu0 %v5213_v37  ;;  %v5308_v37 = vld [vmem:[%s7739_s0 + $0x624] ss:$28 sps:$4 sm:$0xff]  }
  0xa9   :  { %2577 = vmatmul.mubr.bf16.gmra.mrb[52].mxu1 %v5215_v38 }
  0xaa   :  { %2962 = vmatmul.mubr.bf16.gmra.mrb[52].mxu0 %v5216_v39  ;;  %2584 = vmatprep.mubr.bf16.mxu1 %v5217_v40  ;;  %v5310_v39 = vld [vmem:[%s7739_s0 + $0x62c] ss:$28 sps:$4 sm:$0xff]  }
  0xab   :  { %2969 = vmatprep.mubr.bf16.mxu0 %v5219_v41 }
  0xb1   :  { %2585 = vmatmul.mubr.bf16.gmra.mrb[56].mxu1 %v5221_v43 }
  0xb2   :  { %2970 = vmatmul.mubr.bf16.gmra.mrb[56].mxu0 %v5222_v44  ;;  %2592 = vmatprep.mubr.bf16.mxu1 %v5224_v45  ;;  %v5313_v44 = vld [vmem:[%s7739_s0 + $0x628] ss:$28 sps:$4 sm:$0xff]   ;;  %v5314_v45 = vld [vmem:[%s7739_s0 + $0x65c] ss:$28 sps:$4 sm:$0xff]  }
  0xb3   :  { %2977 = vmatprep.mubr.bf16.mxu0 %v5226_v46 }
  0xb9   :  { %2593 = vmatmul.mubr.bf16.gmra.mrb[60].mxu1 %v5228_v47  ;;  %v5316_v47 = vld [vmem:[%s7739_s0 + $0x664] ss:$28 sps:$4 sm:$0xff]  }
  0xba   :  { %2978 = vmatmul.mubr.bf16.gmra.mrb[60].mxu0 %v5229_v48  ;;  %2600 = vmatprep.mubr.bf16.mxu1 %v5230_v0  ;;  %v6242_v48 = vld [vmem:[%s7738_s1 + $0x180] sm:$0xff]  }
  0xbb   :  { %2985 = vmatprep.mubr.bf16.mxu0 %v5232_v49  ;;  %4705 = vmatprep.subr.bf16.mxu1 %v6242_v48 }
  0xc1   :  { %2601 = vmatmul.mubr.bf16.gmra.mrb[64].mxu1 %v5234_v51 }
  0xc2   :  { %2986 = vmatmul.mubr.bf16.gmra.mrb[64].mxu0 %v5235_v52  ;;  %2608 = vmatprep.mubr.bf16.mxu1 %v5237_v53  ;;  %v5319_v52 = vld [vmem:[%s7739_s0 + $0x660] ss:$28 sps:$4 sm:$0xff]   ;;  %v5321_v53 = vld [vmem:[%s7739_s0 + $0x694] ss:$28 sps:$4 sm:$0xff]  }
  0xc3   :  { %2993 = vmatprep.mubr.bf16.mxu0 %v5239_v54 }
  0xc9   :  { %2609 = vmatmul.mubr.bf16.gmra.mrb[68].mxu1 %v5241_v55  ;;  %v5323_v55 = vld [vmem:[%s7739_s0 + $0x69c] ss:$28 sps:$4 sm:$0xff]  }
  0xca   :  { %2994 = vmatmul.mubr.bf16.gmra.mrb[68].mxu0 %v5242_v56  ;;  %2616 = vmatprep.mubr.bf16.mxu1 %v5243_v57 }
  0xcb   :  { %3001 = vmatprep.mubr.bf16.mxu0 %v5245_v58  ;;  %v5325_v58 = vld [vmem:[%s7739_s0 + $0x690] ss:$28 sps:$4 sm:$0xff]  }
  0xd1   :  { %2617 = vmatmul.mubr.bf16.gmra.mrb[72].mxu1 %v5247_v59 }
  0xd2   :  { %3002 = vmatmul.mubr.bf16.gmra.mrb[72].mxu0 %v5248_v60  ;;  %2624 = vmatprep.mubr.bf16.mxu1 %v5250_v61  ;;  %v5326_v60 = vld [vmem:[%s7739_s0 + $0x698] ss:$28 sps:$4 sm:$0xff]   ;;  %v5327_v61 = vld [vmem:[%s7739_s0 + $0x6cc] ss:$28 sps:$4 sm:$0xff]  }
  0xd3   :  { %3009 = vmatprep.mubr.bf16.mxu0 %v5252_v62 }
  0xd9   :  { %2625 = vmatmul.mubr.bf16.gmra.mrb[76].mxu1 %v5254_v63  ;;  %v5329_v63 = vld [vmem:[%s7739_s0 + $0x6d4] ss:$28 sps:$4 sm:$0xff]  }
  0xda   :  { %3010 = vmatmul.mubr.bf16.gmra.mrb[76].mxu0 %v5255_v1  ;;  %2632 = vmatprep.mubr.bf16.mxu1 %v5256_v2 }
  0xdb   :  { %3017 = vmatprep.mubr.bf16.mxu0 %v5258_v3  ;;  %v5331_v3 = vld [vmem:[%s7739_s0 + $0x6c8] ss:$28 sps:$4 sm:$0xff]  }
  0xe1   :  { %2633 = vmatmul.mubr.bf16.gmra.mrb[80].mxu1 %v5260_v4 }
  0xe2   :  { %3018 = vmatmul.mubr.bf16.gmra.mrb[80].mxu0 %v5261_v5  ;;  %2640 = vmatprep.mubr.bf16.mxu1 %v5263_v6  ;;  %v5332_v5 = vld [vmem:[%s7739_s0 + $0x6d0] ss:$28 sps:$4 sm:$0xff]   ;;  %v5334_v6 = vld [vmem:[%s7739_s0 + $0x704] ss:$28 sps:$4 sm:$0xff]  }
  0xe3   :  { %3025 = vmatprep.mubr.bf16.mxu0 %v5265_v7 }
  0xe9   :  { %2641 = vmatmul.mubr.bf16.gmra.mrb[84].mxu1 %v5267_v8  ;;  %v5336_v8 = vld [vmem:[%s7739_s0 + $0x70c] ss:$28 sps:$4 sm:$0xff]  }
  0xea   :  { %3026 = vmatmul.mubr.bf16.gmra.mrb[84].mxu0 %v5268_v9  ;;  %2648 = vmatprep.mubr.bf16.mxu1 %v5269_v10 }
  0xeb   :  { %3033 = vmatprep.mubr.bf16.mxu0 %v5271_v11  ;;  %v5338_v11 = vld [vmem:[%s7739_s0 + $0x700] ss:$28 sps:$4 sm:$0xff]  }
  0xf1   :  { %2649 = vmatmul.mubr.bf16.gmra.mrb[88].mxu1 %v5273_v12 }
  0xf2   :  { %3034 = vmatmul.mubr.bf16.gmra.mrb[88].mxu0 %v5274_v13  ;;  %2656 = vmatprep.mubr.bf16.mxu1 %v5275_v14  ;;  %v5339_v13 = vld [vmem:[%s7739_s0 + $0x708] ss:$28 sps:$4 sm:$0xff]   ;;  %v5340_v14 = vld [vmem:[%s7739_s0 + $0x73c] ss:$28 sps:$4 sm:$0xff]  }
  0xf3   :  { %3041 = vmatprep.mubr.bf16.mxu0 %v5277_v15 }
  0xf9   :  { %2657 = vmatmul.mubr.bf16.gmra.mrb[92].mxu1 %v5280_v16  ;;  %v5344_v16 = vld [vmem:[%s7739_s0 + $0x14] ss:$28 sps:$4 sm:$0xff]  }
  0xfa   :  { %3042 = vmatmul.mubr.bf16.gmra.mrb[92].mxu0 %v5281_v17  ;;  %2664 = vmatprep.mubr.bf16.mxu1 %v5282_v18 }
  0xfb   :  { %3049 = vmatprep.mubr.bf16.mxu0 %v5284_v19  ;;  %v5345_v19 = vld [vmem:[%s7739_s0 + $0x738] ss:$28 sps:$4 sm:$0xff]  }
 0x101   :  { %2665 = vmatmul.mubr.bf16.gmra.mrb[96].mxu1 %v5286_v20 }
 0x102   :  { %3050 = vmatmul.mubr.bf16.gmra.mrb[96].mxu0 %v5287_v21  ;;  %2672 = vmatprep.mubr.bf16.mxu1 %v5288_v22  ;;  %v5342_v21 = vld [vmem:[%s7739_s0 + $0x10] ss:$28 sps:$4 sm:$0xff]  }
 0x103   :  { %3057 = vmatprep.mubr.bf16.mxu0 %v5290_v23  ;;  %v5346_v22 = vld [vmem:[%s7739_s0 + $0x774] ss:$28 sps:$4 sm:$0xff]  }
 0x109   :  { %2673 = vmatmul.mubr.bf16.gmra.mrb[100].mxu1 %v5293_v24  ;;  %v5348_v24 = vld [vmem:[%s7739_s0 + $0x4c] ss:$28 sps:$4 sm:$0xff]  }
 0x10a   :  { %3058 = vmatmul.mubr.bf16.gmra.mrb[100].mxu0 %v5294_v25  ;;  %2680 = vmatprep.mubr.bf16.mxu1 %v5295_v26 }
 0x10b   :  { %3065 = vmatprep.mubr.bf16.mxu0 %v5297_v27  ;;  %v5350_v27 = vld [vmem:[%s7739_s0 + $0x770] ss:$28 sps:$4 sm:$0xff]  }
 0x111   :  { %2681 = vmatmul.mubr.bf16.gmra.mrb[104].mxu1 %v5299_v28 }
 0x112   :  { %3066 = vmatmul.mubr.bf16.gmra.mrb[104].mxu0 %v5300_v29  ;;  %2688 = vmatprep.mubr.bf16.mxu1 %v5301_v30  ;;  %v5351_v29 = vld [vmem:[%s7739_s0 + $0x48] ss:$28 sps:$4 sm:$0xff]  }
 0x113   :  { %3073 = vmatprep.mubr.bf16.mxu0 %v5303_v31  ;;  %v5352_v30 = vld [vmem:[%s7739_s0 + $0x7ac] ss:$28 sps:$4 sm:$0xff]  }
 0x114   :  { %v6207_v32 = vpop.f32.mrb[0].mxu1 }
 0x115   :  { %v2476_v33 = vpop.f32.mrb[1].mxu1 }
 0x116   :  { %v6212_v35 = vpop.f32.mrb[2].mxu1  ;;  %v5354_v33 = vld [vmem:[%s7739_s0 + $0x84] ss:$28 sps:$4 sm:$0xff]  }
 0x117   :  { %v2479_v38 = vpop.f32.mrb[3].mxu1 }
 0x119   :  { %2689 = vmatmul.mubr.bf16.gmra.mrb[108].mxu1 %v5305_v34 }
 0x11a   :  { %3074 = vmatmul.mubr.bf16.gmra.mrb[108].mxu0 %v5306_v36  ;;  %2696 = vmatprep.mubr.bf16.mxu1 %v5308_v37  ;;  %v5356_v37 = vld [vmem:[%s7739_s0 + $0x7a8] ss:$28 sps:$4 sm:$0xff]  }
 0x11b   :  { %3081 = vmatprep.mubr.bf16.mxu0 %v5310_v39  ;;  %v5357_v39 = vld [vmem:[%s7739_s0 + $0x80] ss:$28 sps:$4 sm:$0xff]  }
 0x11c   :  { %v6223_v40 = vpop.f32.mrb[4].mxu1 }
 0x11d   :  { %v2484_v41 = vpop.f32.mrb[5].mxu1 }
 0x11e   :  { %v6228_v43 = vpop.f32.mrb[6].mxu1  ;;  %v5358_v41 = vld [vmem:[%s7739_s0 + $0x7e4] ss:$28 sps:$4 sm:$0xff]  }
 0x11f   :  { %v2487_v46 = vpop.f32.mrb[7].mxu1 }
 0x121   :  { %2697 = vmatmul.mubr.bf16.gmra.mrb[112].mxu1 %v5312_v42 }
 0x122   :  { %3082 = vmatmul.mubr.bf16.gmra.mrb[112].mxu0 %v5313_v44  ;;  %2704 = vmatprep.mubr.bf16.mxu1 %v5314_v45  ;;  %v5360_v44 = vld [vmem:[%s7739_s0 + $0xbc] ss:$28 sps:$4 sm:$0xff]  }
 0x123   :  { %3089 = vmatprep.mubr.bf16.mxu0 %v5316_v47  ;;  %v5362_v47 = vld [vmem:[%s7739_s0 + $0x7e0] ss:$28 sps:$4 sm:$0xff]  }
 0x124   :  { %v6244_v0 = vpop.f32.mrb[8].mxu1 }
 0x125   :  { %v2492_v49 = vpop.f32.mrb[9].mxu1 }
 0x126   :  { %v6250_v51 = vpop.f32.mrb[10].mxu1 }
 0x127   :  { %v2495_v54 = vpop.f32.mrb[11].mxu1 }
 0x128   :  { %v5366_v54 = vld [vmem:[%s7739_s0 + $0xf4] ss:$28 sps:$4 sm:$0xff]  }
 0x129   :  { %2705 = vmatmul.mubr.bf16.gmra.mrb[116].mxu1 %v5318_v50  ;;  %v5363_v50 = vld [vmem:[%s7739_s0 + $0xb8] ss:$28 sps:$4 sm:$0xff]  }
 0x12a   :  { %3090 = vmatmul.mubr.bf16.gmra.mrb[116].mxu0 %v5319_v52  ;;  %2712 = vmatprep.mubr.bf16.mxu1 %v5321_v53  ;;  %v5364_v52 = vld [vmem:[%s7739_s0 + $0x81c] ss:$28 sps:$4 sm:$0xff]  }
 0x12b   :  { %3097 = vmatprep.mubr.bf16.mxu0 %v5323_v55 }
 0x12c   :  { %v6261_v56 = vpop.f32.mrb[12].mxu1 }
 0x12d   :  { %v2500_v57 = vpop.f32.mrb[13].mxu1 }
 0x12e   :  { %v6266_v59 = vpop.f32.mrb[14].mxu1 }
 0x12f   :  { %v2503_v62 = vpop.f32.mrb[15].mxu1 }
 0x130   :  { %v5370_v62 = vld [vmem:[%s7739_s0 + $0x854] ss:$28 sps:$4 sm:$0xff]  }
 0x131   :  { %2713 = vmatmul.mubr.bf16.gmra.mrb[120].mxu1 %v5325_v58  ;;  %v5368_v58 = vld [vmem:[%s7739_s0 + $0x818] ss:$28 sps:$4 sm:$0xff]  }
 0x132   :  { %3098 = vmatmul.mubr.bf16.gmra.mrb[120].mxu0 %v5326_v60  ;;  %2720 = vmatprep.mubr.bf16.mxu1 %v5327_v61  ;;  %v5369_v61 = vld [vmem:[%s7739_s0 + $0xf0] ss:$28 sps:$4 sm:$0xff]  }
 0x133   :  { %3105 = vmatprep.mubr.bf16.mxu0 %v5329_v63 }
 0x134   :  { %v6277_v1 = vpop.f32.mrb[16].mxu1 }
 0x135   :  { %v2508_v2 = vpop.f32.mrb[17].mxu1 }
 0x136   :  { %v6282_v4 = vpop.f32.mrb[18].mxu1  ;;  %v5372_v2 = vld [vmem:[%s7739_s0 + $0x12c] ss:$28 sps:$4 sm:$0xff]  }
 0x137   :  { %v2511_v7 = vpop.f32.mrb[19].mxu1 }
 0x139   :  { %2721 = vmatmul.mubr.bf16.gmra.mrb[124].mxu1 %v5331_v3 }
 0x13a   :  { %3106 = vmatmul.mubr.bf16.gmra.mrb[124].mxu0 %v5332_v5  ;;  %2728 = vmatprep.mubr.bf16.mxu1 %v5334_v6  ;;  %v5374_v6 = vld [vmem:[%s7739_s0 + $0x850] ss:$28 sps:$4 sm:$0xff]  }
 0x13b   :  { %3113 = vmatprep.mubr.bf16.mxu0 %v5336_v8  ;;  %v5375_v8 = vld [vmem:[%s7739_s0 + $0x128] ss:$28 sps:$4 sm:$0xff]  }
 0x13c   :  { %v6293_v9 = vpop.f32.mrb[20].mxu1 }
 0x13d   :  { %v2516_v10 = vpop.f32.mrb[21].mxu1 }
 0x13e   :  { %v6298_v12 = vpop.f32.mrb[22].mxu1  ;;  %v5376_v10 = vld [vmem:[%s7739_s0 + $0x88c] ss:$28 sps:$4 sm:$0xff]  }
 0x13f   :  { %v2519_v15 = vpop.f32.mrb[23].mxu1 }
 0x141   :  { %2729 = vmatmul.mubr.bf16.gmra.mrb[128].mxu1 %v5338_v11 }
 0x142   :  { %3114 = vmatmul.mubr.bf16.gmra.mrb[128].mxu0 %v5339_v13  ;;  %2736 = vmatprep.mubr.bf16.mxu1 %v5340_v14  ;;  %v5378_v13 = vld [vmem:[%s7739_s0 + $0x164] ss:$28 sps:$4 sm:$0xff]  }
 0x143   :  { %3242 = vmatprep.mubr.bf16.mxu0 %v5344_v16  ;;  %v5380_v16 = vld [vmem:[%s7739_s0 + $0x888] ss:$28 sps:$4 sm:$0xff]  }
 0x144   :  { %v6309_v17 = vpop.f32.mrb[24].mxu1 }
 0x145   :  { %v2524_v18 = vpop.f32.mrb[25].mxu1 }
 0x146   :  { %v6314_v20 = vpop.f32.mrb[26].mxu1 }
 0x147   :  { %v2527_v23 = vpop.f32.mrb[27].mxu1 }
 0x148   :  { %v5384_v23 = vld [vmem:[%s7739_s0 + $0x19c] ss:$28 sps:$4 sm:$0xff]  }
 0x149   :  { %2737 = vmatmul.mubr.bf16.gmra.mrb[132].mxu1 %v5345_v19  ;;  %v5381_v19 = vld [vmem:[%s7739_s0 + $0x160] ss:$28 sps:$4 sm:$0xff]  }
 0x14a   :  { %3243 = vmatmul.mubr.bf16.vlgmr.msra.gmra.mrb[0].mxu0 %v5342_v21  ;;  %2744 = vmatprep.mubr.bf16.mxu1 %v5346_v22  ;;  %v5382_v21 = vld [vmem:[%s7739_s0 + $0x8c4] ss:$28 sps:$4 sm:$0xff]  }
 0x14b   :  { %3250 = vmatprep.mubr.bf16.mxu0 %v5348_v24 }
 0x14c   :  { %v6325_v25 = vpop.f32.mrb[28].mxu1 }
 0x14d   :  { %v2532_v26 = vpop.f32.mrb[29].mxu1 }
 0x14e   :  { %v6330_v28 = vpop.f32.mrb[30].mxu1 }
 0x14f   :  { %v2535_v31 = vpop.f32.mrb[31].mxu1 }
 0x150   :  { %v5388_v31 = vld [vmem:[%s7739_s0 + $0x8fc] ss:$28 sps:$4 sm:$0xff]  }
 0x151   :  { %2745 = vmatmul.mubr.bf16.gmra.mrb[136].mxu1 %v5350_v27  ;;  %v5386_v27 = vld [vmem:[%s7739_s0 + $0x8c0] ss:$28 sps:$4 sm:$0xff]  }
 0x152   :  { %3251 = vmatmul.mubr.bf16.gmra.mrb[4].mxu0 %v5351_v29  ;;  %2752 = vmatprep.mubr.bf16.mxu1 %v5352_v30  ;;  %v5387_v30 = vld [vmem:[%s7739_s0 + $0x198] ss:$28 sps:$4 sm:$0xff]  }
 0x153   :  { %3258 = vmatprep.mubr.bf16.mxu0 %v5354_v33 }
 0x154   :  { %v6341_v34 = vpop.f32.mrb[32].mxu1 }
 0x155   :  { %v2540_v36 = vpop.f32.mrb[33].mxu1 }
 0x156   :  { %v6346_v38 = vpop.f32.mrb[34].mxu1  ;;  %v5390_v36 = vld [vmem:[%s7739_s0 + $0x1d4] ss:$28 sps:$4 sm:$0xff]  }
 0x157   :  { %v2543_v42 = vpop.f32.mrb[35].mxu1 }
 0x159   :  { %2753 = vmatmul.mubr.bf16.gmra.mrb[140].mxu1 %v5356_v37 }
 0x15a   :  { %3259 = vmatmul.mubr.bf16.gmra.mrb[8].mxu0 %v5357_v39  ;;  %2760 = vmatprep.mubr.bf16.mxu1 %v5358_v41  ;;  %v5392_v41 = vld [vmem:[%s7739_s0 + $0x8f8] ss:$28 sps:$4 sm:$0xff]  }
 0x15b   :  { %3266 = vmatprep.mubr.bf16.mxu0 %v5360_v44  ;;  %v5393_v44 = vld [vmem:[%s7739_s0 + $0x1d0] ss:$28 sps:$4 sm:$0xff]  }
 0x15c   :  { %v6357_v45 = vpop.f32.mrb[36].mxu1 }
 0x15d   :  { %v2548_v46 = vpop.f32.mrb[37].mxu1 }
 0x15e   :  { %v6362_v49 = vpop.f32.mrb[38].mxu1  ;;  %v5394_v46 = vld [vmem:[%s7739_s0 + $0x934] ss:$28 sps:$4 sm:$0xff]  }
 0x15f   :  { %v2551_v53 = vpop.f32.mrb[39].mxu1 }
 0x161   :  { %2761 = vmatmul.mubr.bf16.gmra.mrb[144].mxu1 %v5362_v47 }
 0x162   :  { %3267 = vmatmul.mubr.bf16.gmra.mrb[12].mxu0 %v5363_v50  ;;  %2768 = vmatprep.mubr.bf16.mxu1 %v5364_v52  ;;  %v5396_v50 = vld [vmem:[%s7739_s0 + $0x20c] ss:$28 sps:$4 sm:$0xff]  }
 0x163   :  { %3274 = vmatprep.mubr.bf16.mxu0 %v5366_v54  ;;  %v5398_v54 = vld [vmem:[%s7739_s0 + $0x930] ss:$28 sps:$4 sm:$0xff]  }
 0x164   :  { %v6373_v55 = vpop.f32.mrb[40].mxu1 }
 0x165   :  { %v2556_v57 = vpop.f32.mrb[41].mxu1 }
 0x166   :  { %v6378_v60 = vpop.f32.mrb[42].mxu1 }
 0x167   :  { %v2559_v63 = vpop.f32.mrb[43].mxu1 }
 0x168   :  { %v5402_v63 = vld [vmem:[%s7739_s0 + $0x244] ss:$28 sps:$4 sm:$0xff]  }
 0x169   :  { %2769 = vmatmul.mubr.bf16.gmra.mrb[148].mxu1 %v5368_v58  ;;  %v5399_v58 = vld [vmem:[%s7739_s0 + $0x208] ss:$28 sps:$4 sm:$0xff]  }
 0x16a   :  { %3275 = vmatmul.mubr.bf16.gmra.mrb[16].mxu0 %v5369_v61  ;;  %2776 = vmatprep.mubr.bf16.mxu1 %v5370_v62  ;;  %v5400_v61 = vld [vmem:[%s7739_s0 + $0x96c] ss:$28 sps:$4 sm:$0xff]  }
 0x16b   :  { %3282 = vmatprep.mubr.bf16.mxu0 %v5372_v2 }
 0x16c   :  { %v6389_v3 = vpop.f32.mrb[44].mxu1 }
 0x16d   :  { %v2564_v5 = vpop.f32.mrb[45].mxu1 }
 0x16e   :  { %v6394_v7 = vpop.f32.mrb[46].mxu1 }
 0x16f   :  { %v2567_v11 = vpop.f32.mrb[47].mxu1 }
 0x170   :  { %v5408_v11 = vld [vmem:[%s7739_s0 + $0x744] ss:$28 sps:$4 sm:$0xff]  }
 0x171   :  { %2777 = vmatmul.mubr.bf16.gmra.mrb[152].mxu1 %v5374_v6  ;;  %v5404_v6 = vld [vmem:[%s7739_s0 + $0x968] ss:$28 sps:$4 sm:$0xff]  }
 0x172   :  { %3283 = vmatmul.mubr.bf16.gmra.mrb[20].mxu0 %v5375_v8  ;;  %2784 = vmatprep.mubr.bf16.mxu1 %v5376_v10  ;;  %v5405_v10 = vld [vmem:[%s7739_s0 + $0x240] ss:$28 sps:$4 sm:$0xff]  }
 0x173   :  { %3290 = vmatprep.mubr.bf16.mxu0 %v5378_v13 }
 0x174   :  { %v6405_v14 = vpop.f32.mrb[48].mxu1 }
 0x175   :  { %v2572_v15 = vpop.f32.mrb[49].mxu1 }
 0x176   :  { %v6410_v18 = vpop.f32.mrb[50].mxu1  ;;  %v5409_v15 = vld [vmem:[%s7739_s0 + $0x27c] ss:$28 sps:$4 sm:$0xff]  }
 0x177   :  { %v2575_v22 = vpop.f32.mrb[51].mxu1 }
 0x179   :  { %2785 = vmatmul.mubr.bf16.gmra.mrb[156].mxu1 %v5380_v16 }
 0x17a   :  { %3291 = vmatmul.mubr.bf16.gmra.mrb[24].mxu0 %v5381_v19  ;;  %2792 = vmatprep.mubr.bf16.mxu1 %v5382_v21  ;;  %v5406_v21 = vld [vmem:[%s7739_s0 + $0x740] ss:$28 sps:$4 sm:$0xff]  }
 0x17b   :  { %3298 = vmatprep.mubr.bf16.mxu0 %v5384_v23  ;;  %v5411_v23 = vld [vmem:[%s7739_s0 + $0x278] ss:$28 sps:$4 sm:$0xff]  }
 0x17c   :  { %v6421_v24 = vpop.f32.mrb[52].mxu1 }
 0x17d   :  { %v2580_v26 = vpop.f32.mrb[53].mxu1 }
 0x17e   :  { %v6426_v29 = vpop.f32.mrb[54].mxu1 }
 0x17f   :  { %v2583_v33 = vpop.f32.mrb[55].mxu1 }
 0x181   :  { %2793 = vmatmul.mubr.bf16.gmra.mrb[160].mxu1 %v5386_v27  ;;  %v5413_v27 = vld [vmem:[%s7739_s0 + $0x77c] ss:$28 sps:$4 sm:$0xff]  }
 0x182   :  { %3299 = vmatmul.mubr.bf16.gmra.mrb[28].mxu0 %v5387_v30  ;;  %2800 = vmatprep.mubr.bf16.mxu1 %v5388_v31  ;;  %v5415_v30 = vld [vmem:[%s7739_s0 + $0x2b4] ss:$28 sps:$4 sm:$0xff]   ;;  %v5443_v31 = vld [vmem:[%s7738_s1 + $0x188] sm:$0xff]  }
 0x183   :  { %3306 = vmatprep.mubr.bf16.mxu0 %v5390_v36 }
 0x184   :  { %v6437_v37 = vpop.f32.mrb[56].mxu1 }
 0x185   :  { %v2588_v39 = vpop.f32.mrb[57].mxu1 }
 0x186   :  { %v6442_v42 = vpop.f32.mrb[58].mxu1  ;;  %v5417_v39 = vld [vmem:[%s7739_s0 + $0x778] ss:$28 sps:$4 sm:$0xff]  }
 0x187   :  { %v2591_v47 = vpop.f32.mrb[59].mxu1 }
 0x188   :  { %v5421_v47 = vld [vmem:[%s7739_s0 + $0x2ec] ss:$28 sps:$4 sm:$0xff]  }
 0x189   :  { %2801 = vmatmul.mubr.bf16.gmra.mrb[164].mxu1 %v5392_v41 }
 0x18a   :  { %3307 = vmatmul.mubr.bf16.gmra.mrb[32].mxu0 %v5393_v44  ;;  %2808 = vmatprep.mubr.bf16.mxu1 %v5394_v46  ;;  %v5418_v44 = vld [vmem:[%s7739_s0 + $0x2b0] ss:$28 sps:$4 sm:$0xff]  }
 0x18b   :  { %3314 = vmatprep.mubr.bf16.mxu0 %v5396_v50 }
 0x18c   :  { %v6453_v52 = vpop.f32.mrb[60].mxu1 }
 0x18d   :  { %v2596_v53 = vpop.f32.mrb[61].mxu1 }
 0x18e   :  { %v6458_v57 = vpop.f32.mrb[62].mxu1 }
 0x18f   :  { %v2599_v62 = vpop.f32.mrb[63].mxu1 }
 0x190   :  { %v5425_v62 = vld [vmem:[%s7739_s0 + $0x7ec] ss:$28 sps:$4 sm:$0xff]  }
 0x191   :  { %2809 = vmatmul.mubr.bf16.gmra.mrb[168].mxu1 %v5398_v54  ;;  %v5423_v54 = vld [vmem:[%s7739_s0 + $0x7b0] ss:$28 sps:$4 sm:$0xff]  }
 0x192   :  { %3315 = vmatmul.mubr.bf16.gmra.mrb[36].mxu0 %v5399_v58  ;;  %2816 = vmatprep.mubr.bf16.mxu1 %v5400_v61  ;;  %v5424_v61 = vld [vmem:[%s7739_s0 + $0x2e8] ss:$28 sps:$4 sm:$0xff]  }
 0x193   :  { %3322 = vmatprep.mubr.bf16.mxu0 %v5402_v63 }
 0x194   :  { %v6469_v2 = vpop.f32.mrb[64].mxu1 }
 0x195   :  { %v2604_v5 = vpop.f32.mrb[65].mxu1 }
 0x196   :  { %v6474_v8 = vpop.f32.mrb[66].mxu1  ;;  %v5427_v5 = vld [vmem:[%s7739_s0 + $0x324] ss:$28 sps:$4 sm:$0xff]  }
 0x197   :  { %v2607_v13 = vpop.f32.mrb[67].mxu1 }
 0x199   :  { %2817 = vmatmul.mubr.bf16.gmra.mrb[172].mxu1 %v5404_v6 }
 0x19a   :  { %3323 = vmatmul.mubr.bf16.gmra.mrb[40].mxu0 %v5405_v10  ;;  %3121 = vmatprep.mubr.bf16.mxu1 %v5408_v11  ;;  %v5429_v11 = vld [vmem:[%s7739_s0 + $0x7e8] ss:$28 sps:$4 sm:$0xff]  }
 0x19b   :  { %3330 = vmatprep.mubr.bf16.mxu0 %v5409_v15  ;;  %v5430_v15 = vld [vmem:[%s7739_s0 + $0x320] ss:$28 sps:$4 sm:$0xff]  }
 0x19c   :  { %v6485_v16 = vpop.f32.mrb[68].mxu1 }
 0x19d   :  { %v2612_v19 = vpop.f32.mrb[69].mxu1 }
 0x19e   :  { %v6490_v22 = vpop.f32.mrb[70].mxu1  ;;  %v5431_v19 = vld [vmem:[%s7739_s0 + $0x824] ss:$28 sps:$4 sm:$0xff]  }
 0x19f   :  { %v2615_v26 = vpop.f32.mrb[71].mxu1 }
 0x1a1   :  { %3122 = vmatmul.mubr.bf16.vlgmr.msra.gmra.mrb[132].mxu1 %v5406_v21 }
 0x1a2   :  { %3331 = vmatmul.mubr.bf16.gmra.mrb[44].mxu0 %v5411_v23  ;;  %4706 = vmatpush3.bf16.msra.mxu1 %v6242_v48  ;;  %v5419_v48 = vld [vmem:[%s7739_s0 + $0x7b4] ss:$28 sps:$4 sm:$0xff]   ;;  %v5433_v23 = vld [vmem:[%s7739_s0 + $0x35c] ss:$28 sps:$4 sm:$0xff]  }
 0x1a3   :  { %3129 = vmatprep.mubr.bf16.mxu1 %v5413_v27  ;;  %3338 = vmatprep.mubr.bf16.mxu0 %v5415_v30  ;;  %v5435_v30 = vld [vmem:[%s7739_s0 + $0x820] ss:$28 sps:$4 sm:$0xff]  }
 0x1a4   :  { %v6505_v33 = vpop.f32.mrb[72].mxu1  ;;  %4707 = vmatprep.subr.bf16.mxu1 %v5443_v31 }
 0x1a5   :  { %v2620_v36 = vpop.f32.mrb[73].mxu1 }
 0x1a6   :  { %v6510_v41 = vpop.f32.mrb[74].mxu1  ;;  %4708 = vmatpush3.bf16.msra.mxu1 %v5443_v31  ;;  %v5436_v36 = vld [vmem:[%s7739_s0 + $0x358] ss:$28 sps:$4 sm:$0xff]  }
 0x1a7   :  { %v2623_v46 = vpop.f32.mrb[75].mxu1 }
 0x1a9   :  { %3130 = vmatmul.mubr.bf16.gmra.mrb[136].mxu1 %v5417_v39  ;;  %v5437_v39 = vld [vmem:[%s7739_s0 + $0x85c] ss:$28 sps:$4 sm:$0xff]  }
 0x1aa   :  { %3339 = vmatmul.mubr.bf16.gmra.mrb[48].mxu0 %v5418_v44  ;;  %3137 = vmatprep.mubr.bf16.mxu1 %v5419_v48  ;;  %v5439_v48 = vld [vmem:[%s7739_s0 + $0x394] ss:$28 sps:$4 sm:$0xff]  }
 0x1ab   :  { %3346 = vmatprep.mubr.bf16.mxu0 %v5421_v47 }
 0x1ac   :  { %v6521_v50 = vpop.f32.mrb[76].mxu1 }
 0x1ad   :  { %v2628_v53 = vpop.f32.mrb[77].mxu1 }
 0x1ae   :  { %v6526_v58 = vpop.f32.mrb[78].mxu1  ;;  %v5441_v53 = vld [vmem:[%s7739_s0 + $0x858] ss:$28 sps:$4 sm:$0xff]  }
 0x1af   :  { %v2631_v63 = vpop.f32.mrb[79].mxu1 }
 0x1b1   :  { %3138 = vmatmul.mubr.bf16.gmra.mrb[140].mxu1 %v5423_v54 }
 0x1b2   :  { %3347 = vmatmul.mubr.bf16.gmra.mrb[52].mxu0 %v5424_v61  ;;  %3145 = vmatprep.mubr.bf16.mxu1 %v5425_v62  ;;  %v5442_v61 = vld [vmem:[%s7739_s0 + $0x390] ss:$28 sps:$4 sm:$0xff]  }
 0x1b3   :  { %3354 = vmatprep.mubr.bf16.mxu0 %v5427_v5  ;;  %v5444_v62 = vld [vmem:[%s7739_s0 + $0x894] ss:$28 sps:$4 sm:$0xff]   ;;  %v5446_v5 = vld [vmem:[%s7739_s0 + $0x3cc] ss:$28 sps:$4 sm:$0xff]  }
 0x1b4   :  { %v6537_v6 = vpop.f32.mrb[80].mxu1 }
 0x1b5   :  { %v2636_v10 = vpop.f32.mrb[81].mxu1 }
 0x1b6   :  { %v6542_v13 = vpop.f32.mrb[82].mxu1 }
 0x1b7   :  { %v2639_v21 = vpop.f32.mrb[83].mxu1 }
 0x1b8   :  { %v5449_v21 = vld [vmem:[%s7739_s0 + $0x3c8] ss:$28 sps:$4 sm:$0xff]  }
 0x1b9   :  { %3146 = vmatmul.mubr.bf16.gmra.mrb[144].mxu1 %v5429_v11 }
 0x1ba   :  { %3355 = vmatmul.mubr.bf16.gmra.mrb[56].mxu0 %v5430_v15  ;;  %3153 = vmatprep.mubr.bf16.mxu1 %v5431_v19  ;;  %v5448_v15 = vld [vmem:[%s7739_s0 + $0x890] ss:$28 sps:$4 sm:$0xff]  }
 0x1bb   :  { %3362 = vmatprep.mubr.bf16.mxu0 %v5433_v23  ;;  %v5450_v23 = vld [vmem:[%s7739_s0 + $0x8cc] ss:$28 sps:$4 sm:$0xff]  }
 0x1bc   :  { %v6553_v26 = vpop.f32.mrb[84].mxu1 }
 0x1bd   :  { %v2644_v27 = vpop.f32.mrb[85].mxu1 }
 0x1be   :  { %v6558_v31 = vpop.f32.mrb[86].mxu1 }
 0x1bf   :  { %v2647_v44 = vpop.f32.mrb[87].mxu1 }
 0x1c0   :  { %v5454_v44 = vld [vmem:[%s7739_s0 + $0x8c8] ss:$28 sps:$4 sm:$0xff]  }
 0x1c1   :  { %3154 = vmatmul.mubr.bf16.gmra.mrb[148].mxu1 %v5435_v30  ;;  %v5452_v30 = vld [vmem:[%s7739_s0 + $0x404] ss:$28 sps:$4 sm:$0xff]  }
 0x1c2   :  { %3363 = vmatmul.mubr.bf16.gmra.mrb[60].mxu0 %v5436_v36  ;;  %3161 = vmatprep.mubr.bf16.mxu1 %v5437_v39 }
 0x1c3   :  { %3370 = vmatprep.mubr.bf16.mxu0 %v5439_v48 }
 0x1c4   :  { %v6569_v46 = vpop.f32.mrb[88].mxu1 }
 0x1c5   :  { %v2652_v47 = vpop.f32.mrb[89].mxu1 }
 0x1c6   :  { %v6574_v54 = vpop.f32.mrb[90].mxu1  ;;  %v5455_v47 = vld [vmem:[%s7739_s0 + $0x400] ss:$28 sps:$4 sm:$0xff]  }
 0x1c7   :  { %v2655_v63 = vpop.f32.mrb[91].mxu1 }
 0x1c9   :  { %3162 = vmatmul.mubr.bf16.gmra.mrb[152].mxu1 %v5441_v53  ;;  %v5456_v53 = vld [vmem:[%s7739_s0 + $0x904] ss:$28 sps:$4 sm:$0xff]  }
 0x1ca   :  { %3371 = vmatmul.mubr.bf16.gmra.mrb[64].mxu0 %v5442_v61  ;;  %3169 = vmatprep.mubr.bf16.mxu1 %v5444_v62  ;;  %v5458_v62 = vld [vmem:[%s7739_s0 + $0x43c] ss:$28 sps:$4 sm:$0xff]  }
 0x1cb   :  { %3378 = vmatprep.mubr.bf16.mxu0 %v5446_v5 }
 0x1cc   :  { %v6585_v10 = vpop.f32.mrb[92].mxu1 }
 0x1cd   :  { %v2660_v11 = vpop.f32.mrb[93].mxu1 }
 0x1ce   :  { %v6590_v19 = vpop.f32.mrb[94].mxu1  ;;  %v5460_v11 = vld [vmem:[%s7739_s0 + $0x900] ss:$28 sps:$4 sm:$0xff]  }
 0x1cf   :  { %v2663_v27 = vpop.f32.mrb[95].mxu1 }
 0x1d1   :  { %3170 = vmatmul.mubr.bf16.gmra.mrb[156].mxu1 %v5448_v15 }
 0x1d2   :  { %3379 = vmatmul.mubr.bf16.gmra.mrb[68].mxu0 %v5449_v21  ;;  %3177 = vmatprep.mubr.bf16.mxu1 %v5450_v23  ;;  %v5461_v21 = vld [vmem:[%s7739_s0 + $0x438] ss:$28 sps:$4 sm:$0xff]  }
 0x1d3   :  { %3386 = vmatprep.mubr.bf16.mxu0 %v5452_v30  ;;  %v5462_v23 = vld [vmem:[%s7739_s0 + $0x93c] ss:$28 sps:$4 sm:$0xff]   ;;  %v5464_v30 = vld [vmem:[%s7739_s0 + $0x474] ss:$28 sps:$4 sm:$0xff]  }
 0x1d4   :  { %v6601_v36 = vpop.f32.mrb[96].mxu1 }
 0x1d5   :  { %v2668_v39 = vpop.f32.mrb[97].mxu1 }
 0x1d6   :  { %v6606_v48 = vpop.f32.mrb[98].mxu1 }
 0x1d7   :  { %v2671_v61 = vpop.f32.mrb[99].mxu1 }
 0x1d8   :  { %v5467_v61 = vld [vmem:[%s7739_s0 + $0x470] ss:$28 sps:$4 sm:$0xff]  }
 0x1d9   :  { %3178 = vmatmul.mubr.bf16.gmra.mrb[160].mxu1 %v5454_v44 }
 0x1da   :  { %3387 = vmatmul.mubr.bf16.gmra.mrb[72].mxu0 %v5455_v47  ;;  %3185 = vmatprep.mubr.bf16.mxu1 %v5456_v53  ;;  %v5466_v47 = vld [vmem:[%s7739_s0 + $0x938] ss:$28 sps:$4 sm:$0xff]  }
 0x1db   :  { %3394 = vmatprep.mubr.bf16.mxu0 %v5458_v62  ;;  %v5468_v62 = vld [vmem:[%s7739_s0 + $0x974] ss:$28 sps:$4 sm:$0xff]  }
 0x1dc   :  { %v6617_v63 = vpop.f32.mrb[100].mxu1 }
 0x1dd   :  { %v2676_v5 = vpop.f32.mrb[101].mxu1 }
 0x1de   :  { %v6622_v15 = vpop.f32.mrb[102].mxu1 }
 0x1df   :  { %v2679_v27 = vpop.f32.mrb[103].mxu1 }
 0x1e0   :  { %v5472_v27 = vld [vmem:[%s7739_s0 + $0x970] ss:$28 sps:$4 sm:$0xff]  }
 0x1e1   :  { %3186 = vmatmul.mubr.bf16.gmra.mrb[164].mxu1 %v5460_v11  ;;  %v5470_v11 = vld [vmem:[%s7739_s0 + $0x4ac] ss:$28 sps:$4 sm:$0xff]  }
 0x1e2   :  { %3395 = vmatmul.mubr.bf16.gmra.mrb[76].mxu0 %v5461_v21  ;;  %3193 = vmatprep.mubr.bf16.mxu1 %v5462_v23 }
 0x1e3   :  { %3402 = vmatprep.mubr.bf16.mxu0 %v5464_v30 }
 0x1e4   :  { %v6633_v39 = vpop.f32.mrb[104].mxu1 }
 0x1e5   :  { %v2684_v44 = vpop.f32.mrb[105].mxu1 }
 0x1e6   :  { %v6638_v53 = vpop.f32.mrb[106].mxu1  ;;  %v5473_v44 = vld [vmem:[%s7739_s0 + $0x4a8] ss:$28 sps:$4 sm:$0xff]  }
 0x1e7   :  { %7748 = vst [vmem:[#allocation2_spill] sm:$0xff] %v6638_v53  ;;  %v2687_v5 = vpop.f32.mrb[107].mxu1 }
 0x1e9   :  { %3194 = vmatmul.mubr.bf16.gmra.mrb[168].mxu1 %v5466_v47  ;;  %v5476_v47 = vld [vmem:[%s7739_s0 + $0x18] ss:$28 sps:$4 sm:$0xff]  }
 0x1ea   :  { %3403 = vmatmul.mubr.bf16.gmra.mrb[80].mxu0 %v5467_v61  ;;  %3201 = vmatprep.mubr.bf16.mxu1 %v5468_v62  ;;  %v5474_v62 = vld [vmem:[%s7739_s0 + $0x4e4] ss:$28 sps:$4 sm:$0xff]  }
 0x1eb   :  { %3410 = vmatprep.mubr.bf16.mxu0 %v5470_v11 }
 0x1ec   :  { %v6649_v21 = vpop.f32.mrb[108].mxu1 }
 0x1ed   :  { %7749 = vst [vmem:[#allocation3_spill] sm:$0xff] %v6649_v21  ;;  %v2692_v23 = vpop.f32.mrb[109].mxu1 }
 0x1ee   :  { %v6654_v30 = vpop.f32.mrb[110].mxu1  ;;  %v5478_v23 = vld [vmem:[%s7739_s0 + $0x50] ss:$28 sps:$4 sm:$0xff]  }
 0x1ef   :  { %7750 = vst [vmem:[#allocation4_spill] sm:$0xff] %v6654_v30  ;;  %v2695_v61 = vpop.f32.mrb[111].mxu1 }
 0x1f0   :  { %v5477_v61 = vld [vmem:[%s7739_s0 + $0x4e0] ss:$28 sps:$4 sm:$0xff]  }
 0x1f1   :  { %3202 = vmatmul.mubr.bf16.gmra.mrb[172].mxu1 %v5472_v27  ;;  %v5481_v27 = vld [vmem:[%s7739_s0 + $0x88] ss:$28 sps:$4 sm:$0xff]  }
 0x1f2   :  { %3411 = vmatmul.mubr.bf16.gmra.mrb[84].mxu0 %v5473_v44  ;;  %4709 = vmatprep.mubr.msk.bf16.mxu1 %vm2307_vm0, %v5476_v47  ;;  %v5479_v47 = vld [vmem:[%s7739_s0 + $0x51c] ss:$28 sps:$4 sm:$0xff]  }
 0x1f3   :  { %3418 = vmatprep.mubr.bf16.mxu0 %v5474_v62 }
 0x1f4   :  { %v6666_v5 = vpop.f32.mrb[112].mxu1 }
 0x1f5   :  { %7751 = vst [vmem:[#allocation5_spill] sm:$0xff] %v6666_v5  ;;  %v2700_v11 = vpop.f32.mrb[113].mxu1 }
 0x1f6   :  { %v6671_v30 = vpop.f32.mrb[114].mxu1 }
 0x1f7   :  { %7752 = vst [vmem:[#allocation6_spill] sm:$0xff] %v6671_v30  ;;  %v2703_v44 = vpop.f32.mrb[115].mxu1  ;;  %v5483_v30 = vld [vmem:[%s7739_s0 + $0xc0] ss:$28 sps:$4 sm:$0xff]  }
 0x1f8   :  { %v5482_v44 = vld [vmem:[%s7739_s0 + $0x518] ss:$28 sps:$4 sm:$0xff]  }
 0x1f9   :  { %4710 = vmatmul.mubr.msk.bf16.vlgmr.msra.gmra.mrb[176].mxu1 %vm2307_vm0, %v5478_v23  ;;  %v5486_v23 = vld [vmem:[%s7739_s0 + $0xf8] ss:$28 sps:$4 sm:$0xff]  }
 0x1fa   :  { %3419 = vmatmul.mubr.bf16.gmra.mrb[88].mxu0 %v5477_v61  ;;  %4713 = vmatprep.mubr.msk.bf16.mxu1 %vm2307_vm0, %v5481_v27  ;;  %v5484_v27 = vld [vmem:[%s7739_s0 + $0x554] ss:$28 sps:$4 sm:$0xff]  }
 0x1fb   :  { %3426 = vmatprep.mubr.bf16.mxu0 %v5479_v47 }
 0x1fc   :  { %v6684_v62 = vpop.f32.mrb[116].mxu1 }
 0x1fd   :  { %7753 = vst [vmem:[#allocation7_spill] sm:$0xff] %v6684_v62  ;;  %v2708_v11 = vpop.f32.mrb[117].mxu1 }
 0x1fe   :  { %v6689_v5 = vpop.f32.mrb[118].mxu1 }
 0x1ff   :  { %7754 = vst [vmem:[#allocation8_spill] sm:$0xff] %v6689_v5  ;;  %v2711_v61 = vpop.f32.mrb[119].mxu1  ;;  %v5488_v5 = vld [vmem:[%s7739_s0 + $0x130] ss:$28 sps:$4 sm:$0xff]  }
 0x200   :  { %v5487_v61 = vld [vmem:[%s7739_s0 + $0x550] ss:$28 sps:$4 sm:$0xff]  }
 0x201   :  { %4714 = vmatmul.mubr.msk.bf16.gmra.mrb[180].mxu1 %vm2307_vm0, %v5483_v30  ;;  %v5491_v30 = vld [vmem:[%s7739_s0 + $0x168] ss:$28 sps:$4 sm:$0xff]  }
 0x202   :  { %3427 = vmatmul.mubr.bf16.gmra.mrb[92].mxu0 %v5482_v44  ;;  %4717 = vmatprep.mubr.msk.bf16.mxu1 %vm2307_vm0, %v5486_v23  ;;  %v5489_v23 = vld [vmem:[%s7739_s0 + $0x58c] ss:$28 sps:$4 sm:$0xff]  }
 0x203   :  { %3434 = vmatprep.mubr.bf16.mxu0 %v5484_v27 }
 0x204   :  { %v6702_v47 = vpop.f32.mrb[120].mxu1 }
 0x205   :  { %7755 = vst [vmem:[#allocation9_spill] sm:$0xff] %v6702_v47  ;;  %v2716_v11 = vpop.f32.mrb[121].mxu1 }
 0x206   :  { %v6707_v62 = vpop.f32.mrb[122].mxu1 }
 0x207   :  { %7756 = vst [vmem:[#allocation10_spill] sm:$0xff] %v6707_v62  ;;  %v2719_v44 = vpop.f32.mrb[123].mxu1  ;;  %v5493_v62 = vld [vmem:[%s7739_s0 + $0x1a0] ss:$28 sps:$4 sm:$0xff]  }
 0x208   :  { %v5492_v44 = vld [vmem:[%s7739_s0 + $0x588] ss:$28 sps:$4 sm:$0xff]  }
 0x209   :  { %4718 = vmatmul.mubr.msk.bf16.gmra.mrb[184].mxu1 %vm2307_vm0, %v5488_v5  ;;  %v5496_v5 = vld [vmem:[%s7739_s0 + $0x1d8] ss:$28 sps:$4 sm:$0xff]  }
 0x20a   :  { %3435 = vmatmul.mubr.bf16.gmra.mrb[96].mxu0 %v5487_v61  ;;  %4721 = vmatprep.mubr.msk.bf16.mxu1 %vm2307_vm0, %v5491_v30  ;;  %v5494_v30 = vld [vmem:[%s7739_s0 + $0x5c4] ss:$28 sps:$4 sm:$0xff]  }
 0x20b   :  { %3442 = vmatprep.mubr.bf16.mxu0 %v5489_v23 }
 0x20c   :  { %v6720_v27 = vpop.f32.mrb[124].mxu1 }
 0x20d   :  { %7757 = vst [vmem:[#allocation11_spill] sm:$0xff] %v6720_v27  ;;  %v2724_v11 = vpop.f32.mrb[125].mxu1 }
 0x20e   :  { %v6725_v47 = vpop.f32.mrb[126].mxu1 }
 0x20f   :  { %7758 = vst [vmem:[#allocation12_spill] sm:$0xff] %v6725_v47  ;;  %v2727_v61 = vpop.f32.mrb[127].mxu1  ;;  %v5498_v47 = vld [vmem:[%s7739_s0 + $0x210] ss:$28 sps:$4 sm:$0xff]  }
 0x210   :  { %v5497_v61 = vld [vmem:[%s7739_s0 + $0x5c0] ss:$28 sps:$4 sm:$0xff]  }
 0x211   :  { %4722 = vmatmul.mubr.msk.bf16.gmra.mrb[188].mxu1 %vm2307_vm0, %v5493_v62  ;;  %v5501_v62 = vld [vmem:[%s7739_s0 + $0x248] ss:$28 sps:$4 sm:$0xff]  }
 0x212   :  { %3443 = vmatmul.mubr.bf16.gmra.mrb[100].mxu0 %v5492_v44  ;;  %4725 = vmatprep.mubr.msk.bf16.mxu1 %vm2307_vm0, %v5496_v5  ;;  %v5499_v5 = vld [vmem:[%s7739_s0 + $0x5fc] ss:$28 sps:$4 sm:$0xff]  }
 0x213   :  { %3450 = vmatprep.mubr.bf16.mxu0 %v5494_v30 }
 0x214   :  { %v6738_v23 = vpop.f32.mrb[128].mxu1 }
 0x215   :  { %7759 = vst [vmem:[#allocation13_spill] sm:$0xff] %v6738_v23  ;;  %v2732_v11 = vpop.f32.mrb[129].mxu1 }
 0x216   :  { %v6743_v27 = vpop.f32.mrb[130].mxu1  ;;  %v5503_v11 = vld [vmem:[%s7739_s0 + $0x280] ss:$28 sps:$4 sm:$0xff]  }
 0x217   :  { %7760 = vst [vmem:[#allocation14_spill] sm:$0xff] %v6743_v27  ;;  %v2735_v44 = vpop.f32.mrb[131].mxu1 }
 0x218   :  { %v5502_v44 = vld [vmem:[%s7739_s0 + $0x5f8] ss:$28 sps:$4 sm:$0xff]  }
 0x219   :  { %4726 = vmatmul.mubr.msk.bf16.gmra.mrb[192].mxu1 %vm2307_vm0, %v5498_v47  ;;  %v5506_v47 = vld [vmem:[%s7739_s0 + $0x2b8] ss:$28 sps:$4 sm:$0xff]  }
 0x21a   :  { %3451 = vmatmul.mubr.bf16.gmra.mrb[104].mxu0 %v5497_v61  ;;  %4729 = vmatprep.mubr.msk.bf16.mxu1 %vm2307_vm0, %v5501_v62  ;;  %v5504_v62 = vld [vmem:[%s7739_s0 + $0x634] ss:$28 sps:$4 sm:$0xff]  }
 0x21b   :  { %3458 = vmatprep.mubr.bf16.mxu0 %v5499_v5 }
 0x21d   :  { %v3244_v30 = vpop.f32.mrb[0].mxu0 }
 0x21e   :  { %v6760_v27 = vadd.f32 %v3244_v30, %v6207_v32  ;;  %v3246_v23 = vpop.f32.mrb[1].mxu0 }
 0x21f   :  { %v3247_v61 = vpop.f32.mrb[2].mxu0  ;;  %v5508_v23 = vld [vmem:[%s7739_s0 + $0x2f0] ss:$28 sps:$4 sm:$0xff]  }
 0x220   :  { %v6772_v5 = vadd.f32 %v3247_v61, %v6212_v35  ;;  %v3249_v21 = vpop.f32.mrb[3].mxu0  ;;  %v5507_v35 = vld [vmem:[%s7739_s0 + $0x630] ss:$28 sps:$4 sm:$0xff]  }
 0x221   :  { %4730 = vmatmul.mubr.msk.bf16.gmra.mrb[196].mxu1 %vm2307_vm0, %v5503_v11  ;;  %v5511_v21 = vld [vmem:[%s7739_s0 + $0x328] ss:$28 sps:$4 sm:$0xff]  }
 0x222   :  { %3459 = vmatmul.mubr.bf16.gmra.mrb[108].mxu0 %v5502_v44  ;;  %4733 = vmatprep.mubr.msk.bf16.mxu1 %vm2307_vm0, %v5506_v47  ;;  %v5509_v44 = vld [vmem:[%s7739_s0 + $0x66c] ss:$28 sps:$4 sm:$0xff]  }
 0x223   :  { %3466 = vmatprep.mubr.bf16.mxu0 %v5504_v62 }
 0x225   :  { %v3252_v32 = vpop.f32.mrb[4].mxu0 }
 0x226   :  { %v6780_v30 = vadd.f32 %v3252_v32, %v6223_v40  ;;  %v3254_v53 = vpop.f32.mrb[5].mxu0 }
 0x227   :  { %v3255_v11 = vpop.f32.mrb[6].mxu0  ;;  %v5513_v53 = vld [vmem:[%s7739_s0 + $0x360] ss:$28 sps:$4 sm:$0xff]  }
 0x228   :  { %v6792_v47 = vadd.f32 %v3255_v11, %v6228_v43  ;;  %v3257_v61 = vpop.f32.mrb[7].mxu0  ;;  %v5512_v43 = vld [vmem:[%s7739_s0 + $0x668] ss:$28 sps:$4 sm:$0xff]  }
 0x229   :  { %4734 = vmatmul.mubr.msk.bf16.gmra.mrb[200].mxu1 %vm2307_vm0, %v5508_v23  ;;  %v5516_v23 = vld [vmem:[%s7739_s0 + $0x398] ss:$28 sps:$4 sm:$0xff]   ;;  %v5518_v61 = vld [vmem:[%s7739_s0 + $0x3d0] ss:$28 sps:$4 sm:$0xff]  }
 0x22a   :  { %3467 = vmatmul.mubr.bf16.gmra.mrb[112].mxu0 %v5507_v35  ;;  %4737 = vmatprep.mubr.msk.bf16.mxu1 %vm2307_vm0, %v5511_v21  ;;  %v5514_v21 = vld [vmem:[%s7739_s0 + $0x6a4] ss:$28 sps:$4 sm:$0xff]  }
 0x22b   :  { %3474 = vmatprep.mubr.bf16.mxu0 %v5509_v44 }
 0x22d   :  { %v3260_v40 = vpop.f32.mrb[8].mxu0 }
 0x22e   :  { %v6800_v62 = vadd.f32 %v3260_v40, %v6244_v0  ;;  %v3262_v32 = vpop.f32.mrb[9].mxu0 }
 0x22f   :  { %v3263_v35 = vpop.f32.mrb[10].mxu0 }
 0x230   :  { %v6812_v11 = vadd.f32 %v3263_v35, %v6250_v51  ;;  %v3265_v44 = vpop.f32.mrb[11].mxu0  ;;  %v5517_v51 = vld [vmem:[%s7739_s0 + $0x6a0] ss:$28 sps:$4 sm:$0xff]  }
 0x231   :  { %4738 = vmatmul.mubr.msk.bf16.gmra.mrb[204].mxu1 %vm2307_vm0, %v5513_v53  ;;  %v5521_v53 = vld [vmem:[%s7739_s0 + $0x408] ss:$28 sps:$4 sm:$0xff]   ;;  %v5523_v44 = vld [vmem:[%s7739_s0 + $0x440] ss:$28 sps:$4 sm:$0xff]  }
 0x232   :  { %3475 = vmatmul.mubr.bf16.gmra.mrb[116].mxu0 %v5512_v43  ;;  %4741 = vmatprep.mubr.msk.bf16.mxu1 %vm2307_vm0, %v5516_v23  ;;  %v5519_v23 = vld [vmem:[%s7739_s0 + $0x6dc] ss:$28 sps:$4 sm:$0xff]  }
 0x233   :  { %3482 = vmatprep.mubr.bf16.mxu0 %v5514_v21 }
 0x235   :  { %v3268_v0 = vpop.f32.mrb[12].mxu0 }
 0x236   :  { %v6820_v40 = vadd.f32 %v3268_v0, %v6261_v56  ;;  %v3270_v32 = vpop.f32.mrb[13].mxu0 }
 0x237   :  { %v3271_v43 = vpop.f32.mrb[14].mxu0 }
 0x238   :  { %v6832_v35 = vadd.f32 %v3271_v43, %v6266_v59  ;;  %v3273_v21 = vpop.f32.mrb[15].mxu0  ;;  %v5522_v59 = vld [vmem:[%s7739_s0 + $0x6d8] ss:$28 sps:$4 sm:$0xff]  }
 0x239   :  { %4742 = vmatmul.mubr.msk.bf16.gmra.mrb[208].mxu1 %vm2307_vm0, %v5518_v61  ;;  %v5526_v61 = vld [vmem:[%s7739_s0 + $0x478] ss:$28 sps:$4 sm:$0xff]   ;;  %v5528_v21 = vld [vmem:[%s7739_s0 + $0x4b0] ss:$28 sps:$4 sm:$0xff]  }
 0x23a   :  { %3483 = vmatmul.mubr.bf16.gmra.mrb[120].mxu0 %v5517_v51  ;;  %4745 = vmatprep.mubr.msk.bf16.mxu1 %vm2307_vm0, %v5521_v53  ;;  %v5524_v53 = vld [vmem:[%s7739_s0 + $0x714] ss:$28 sps:$4 sm:$0xff]  }
 0x23b   :  { %3490 = vmatprep.mubr.bf16.mxu0 %v5519_v23 }
 0x23d   :  { %v3276_v56 = vpop.f32.mrb[16].mxu0 }
 0x23e   :  { %v6840_v0 = vadd.f32 %v3276_v56, %v6277_v1  ;;  %v3278_v32 = vpop.f32.mrb[17].mxu0 }
 0x23f   :  { %v3279_v51 = vpop.f32.mrb[18].mxu0 }
 0x240   :  { %v6852_v43 = vadd.f32 %v3279_v51, %v6282_v4  ;;  %v3281_v23 = vpop.f32.mrb[19].mxu0  ;;  %v5527_v4 = vld [vmem:[%s7739_s0 + $0x710] ss:$28 sps:$4 sm:$0xff]  }
 0x241   :  { %4746 = vmatmul.mubr.msk.bf16.gmra.mrb[212].mxu1 %vm2307_vm0, %v5523_v44  ;;  %v5531_v44 = vld [vmem:[%s7739_s0 + $0x4e8] ss:$28 sps:$4 sm:$0xff]   ;;  %v5533_v23 = vld [vmem:[%s7739_s0 + $0x520] ss:$28 sps:$4 sm:$0xff]  }
 0x242   :  { %3491 = vmatmul.mubr.bf16.gmra.mrb[124].mxu0 %v5522_v59  ;;  %4749 = vmatprep.mubr.msk.bf16.mxu1 %vm2307_vm0, %v5526_v61  ;;  %v5529_v61 = vld [vmem:[%s7739_s0 + $0x74c] ss:$28 sps:$4 sm:$0xff]  }
 0x243   :  { %3498 = vmatprep.mubr.bf16.mxu0 %v5524_v53 }
 0x245   :  { %v3284_v1 = vpop.f32.mrb[20].mxu0 }
 0x246   :  { %v6860_v56 = vadd.f32 %v3284_v1, %v6293_v9  ;;  %v3286_v32 = vpop.f32.mrb[21].mxu0 }
 0x247   :  { %v3287_v59 = vpop.f32.mrb[22].mxu0 }
 0x248   :  { %v6872_v51 = vadd.f32 %v3287_v59, %v6298_v12  ;;  %v3289_v53 = vpop.f32.mrb[23].mxu0  ;;  %v5532_v12 = vld [vmem:[%s7739_s0 + $0x748] ss:$28 sps:$4 sm:$0xff]  }
 0x249   :  { %4750 = vmatmul.mubr.msk.bf16.gmra.mrb[216].mxu1 %vm2307_vm0, %v5528_v21  ;;  %v5536_v21 = vld [vmem:[%s7739_s0 + $0x558] ss:$28 sps:$4 sm:$0xff]   ;;  %v5538_v53 = vld [vmem:[%s7739_s0 + $0x590] ss:$28 sps:$4 sm:$0xff]  }
 0x24a   :  { %3499 = vmatmul.mubr.bf16.gmra.mrb[128].mxu0 %v5527_v4  ;;  %4753 = vmatprep.mubr.msk.bf16.mxu1 %vm2307_vm0, %v5531_v44  ;;  %v5534_v44 = vld [vmem:[%s7739_s0 + $0x784] ss:$28 sps:$4 sm:$0xff]  }
 0x24b   :  { %3506 = vmatprep.mubr.bf16.mxu0 %v5529_v61 }
 0x24d   :  { %v3292_v9 = vpop.f32.mrb[24].mxu0 }
 0x24e   :  { %v6880_v1 = vadd.f32 %v3292_v9, %v6309_v17  ;;  %v3294_v32 = vpop.f32.mrb[25].mxu0 }
 0x24f   :  { %v3295_v4 = vpop.f32.mrb[26].mxu0 }
 0x250   :  { %v6892_v59 = vadd.f32 %v3295_v4, %v6314_v20  ;;  %v3297_v61 = vpop.f32.mrb[27].mxu0  ;;  %v5537_v20 = vld [vmem:[%s7739_s0 + $0x780] ss:$28 sps:$4 sm:$0xff]  }
 0x251   :  { %4754 = vmatmul.mubr.msk.bf16.gmra.mrb[220].mxu1 %vm2307_vm0, %v5533_v23  ;;  %v5541_v23 = vld [vmem:[%s7739_s0 + $0x5c8] ss:$28 sps:$4 sm:$0xff]   ;;  %v5543_v61 = vld [vmem:[%s7739_s0 + $0x600] ss:$28 sps:$4 sm:$0xff]  }
 0x252   :  { %3507 = vmatmul.mubr.bf16.gmra.mrb[132].mxu0 %v5532_v12  ;;  %4757 = vmatprep.mubr.msk.bf16.mxu1 %vm2307_vm0, %v5536_v21  ;;  %v5539_v21 = vld [vmem:[%s7739_s0 + $0x7bc] ss:$28 sps:$4 sm:$0xff]  }
 0x253   :  { %3514 = vmatprep.mubr.bf16.mxu0 %v5534_v44 }
 0x255   :  { %v3300_v17 = vpop.f32.mrb[28].mxu0 }
 0x256   :  { %v6900_v9 = vadd.f32 %v3300_v17, %v6325_v25  ;;  %v3302_v32 = vpop.f32.mrb[29].mxu0 }
 0x257   :  { %v3303_v12 = vpop.f32.mrb[30].mxu0 }
 0x258   :  { %v6912_v4 = vadd.f32 %v3303_v12, %v6330_v28  ;;  %v3305_v44 = vpop.f32.mrb[31].mxu0  ;;  %v5542_v28 = vld [vmem:[%s7739_s0 + $0x7b8] ss:$28 sps:$4 sm:$0xff]  }
 0x259   :  { %4758 = vmatmul.mubr.msk.bf16.gmra.mrb[224].mxu1 %vm2307_vm0, %v5538_v53  ;;  %v5546_v53 = vld [vmem:[%s7739_s0 + $0x638] ss:$28 sps:$4 sm:$0xff]   ;;  %v5548_v44 = vld [vmem:[%s7739_s0 + $0x670] ss:$28 sps:$4 sm:$0xff]  }
 0x25a   :  { %3515 = vmatmul.mubr.bf16.gmra.mrb[136].mxu0 %v5537_v20  ;;  %4761 = vmatprep.mubr.msk.bf16.mxu1 %vm2307_vm0, %v5541_v23  ;;  %v5544_v23 = vld [vmem:[%s7739_s0 + $0x7f4] ss:$28 sps:$4 sm:$0xff]  }
 0x25b   :  { %3522 = vmatprep.mubr.bf16.mxu0 %v5539_v21 }
 0x25d   :  { %v3308_v25 = vpop.f32.mrb[32].mxu0 }
 0x25e   :  { %v6920_v17 = vadd.f32 %v3308_v25, %v6341_v34  ;;  %v3310_v32 = vpop.f32.mrb[33].mxu0 }
 0x25f   :  { %v3311_v20 = vpop.f32.mrb[34].mxu0 }
 0x260   :  { %v6932_v12 = vadd.f32 %v3311_v20, %v6346_v38  ;;  %v3313_v21 = vpop.f32.mrb[35].mxu0  ;;  %v5547_v38 = vld [vmem:[%s7739_s0 + $0x7f0] ss:$28 sps:$4 sm:$0xff]  }
 0x261   :  { %4762 = vmatmul.mubr.msk.bf16.gmra.mrb[228].mxu1 %vm2307_vm0, %v5543_v61  ;;  %v5551_v61 = vld [vmem:[%s7739_s0 + $0x6a8] ss:$28 sps:$4 sm:$0xff]   ;;  %v5553_v21 = vld [vmem:[%s7739_s0 + $0x6e0] ss:$28 sps:$4 sm:$0xff]  }
 0x262   :  { %3523 = vmatmul.mubr.bf16.gmra.mrb[140].mxu0 %v5542_v28  ;;  %4765 = vmatprep.mubr.msk.bf16.mxu1 %vm2307_vm0, %v5546_v53  ;;  %v5549_v53 = vld [vmem:[%s7739_s0 + $0x82c] ss:$28 sps:$4 sm:$0xff]  }
 0x263   :  { %3530 = vmatprep.mubr.bf16.mxu0 %v5544_v23 }
 0x265   :  { %v3316_v34 = vpop.f32.mrb[36].mxu0 }
 0x266   :  { %v6940_v25 = vadd.f32 %v3316_v34, %v6357_v45  ;;  %v3318_v32 = vpop.f32.mrb[37].mxu0 }
 0x267   :  { %v3319_v28 = vpop.f32.mrb[38].mxu0 }
 0x268   :  { %v6952_v20 = vadd.f32 %v3319_v28, %v6362_v49  ;;  %v3321_v23 = vpop.f32.mrb[39].mxu0  ;;  %v5552_v49 = vld [vmem:[%s7739_s0 + $0x828] ss:$28 sps:$4 sm:$0xff]  }
 0x269   :  { %4766 = vmatmul.mubr.msk.bf16.gmra.mrb[232].mxu1 %vm2307_vm0, %v5548_v44  ;;  %v5556_v44 = vld [vmem:[%s7739_s0 + $0x718] ss:$28 sps:$4 sm:$0xff]  }
 0x26a   :  { %3531 = vmatmul.mubr.bf16.gmra.mrb[144].mxu0 %v5547_v38  ;;  %4769 = vmatprep.mubr.msk.bf16.mxu1 %vm2307_vm0, %v5551_v61  ;;  %v5554_v61 = vld [vmem:[%s7739_s0 + $0x864] ss:$28 sps:$4 sm:$0xff]  }
 0x26b   :  { %3538 = vmatprep.mubr.bf16.mxu0 %v5549_v53 }
 0x26d   :  { %v3324_v45 = vpop.f32.mrb[40].mxu0 }
 0x26e   :  { %v6960_v34 = vadd.f32 %v3324_v45, %v6373_v55  ;;  %v3326_v32 = vpop.f32.mrb[41].mxu0 }
 0x26f   :  { %v3327_v38 = vpop.f32.mrb[42].mxu0  ;;  %v5558_v32 = vld [vmem:[%s7739_s0 + $0x750] ss:$28 sps:$4 sm:$0xff]  }
 0x270   :  { %7761 = vst [vmem:[#allocation15_spill] sm:$0xff] %v6960_v34  ;;  %v6972_v28 = vadd.f32 %v3327_v38, %v6378_v60  ;;  %v3329_v53 = vpop.f32.mrb[43].mxu0 }
 0x271   :  { %4770 = vmatmul.mubr.msk.bf16.gmra.mrb[236].mxu1 %vm2307_vm0, %v5553_v21  ;;  %v5557_v21 = vld [vmem:[%s7739_s0 + $0x860] ss:$28 sps:$4 sm:$0xff]  }
 0x272   :  { %3539 = vmatmul.mubr.bf16.gmra.mrb[148].mxu0 %v5552_v49  ;;  %4773 = vmatprep.mubr.msk.bf16.mxu1 %vm2307_vm0, %v5556_v44  ;;  %v5561_v49 = vld [vmem:[%s7739_s0 + $0x788] ss:$28 sps:$4 sm:$0xff]   ;;  %v5559_v53 = vld [vmem:[%s7739_s0 + $0x89c] ss:$28 sps:$4 sm:$0xff]  }
 0x273   :  { %3546 = vmatprep.mubr.bf16.mxu0 %v5554_v61 }
 0x274   :  { %v6976_v55 = vpop.f32.mrb[132].mxu1 }
 0x275   :  { %7762 = vst [vmem:[#allocation16_spill] sm:$0xff] %v6976_v55  ;;  %v3332_v23 = vpop.f32.mrb[44].mxu0  ;;  %v3125_v45 = vpop.f32.mrb[133].mxu1 }
 0x276   :  { %v6982_v34 = vadd.f32 %v3332_v23, %v6389_v3  ;;  %v3334_v60 = vpop.f32.mrb[45].mxu0  ;;  %v6984_v38 = vpop.f32.mrb[134].mxu1 }
 0x277   :  { %7763 = vst [vmem:[#allocation17_spill] sm:$0xff] %v6984_v38  ;;  %v3335_v44 = vpop.f32.mrb[46].mxu0  ;;  %v3128_v61 = vpop.f32.mrb[135].mxu1 }
 0x278   :  { %v6996_v3 = vadd.f32 %v3335_v44, %v6394_v7  ;;  %v3337_v23 = vpop.f32.mrb[47].mxu0  ;;  %v5563_v61 = vld [vmem:[%s7739_s0 + $0x7c0] ss:$28 sps:$4 sm:$0xff]  }
 0x279   :  { %4774 = vmatmul.mubr.msk.bf16.gmra.mrb[240].mxu1 %vm2307_vm0, %v5558_v32  ;;  %v5562_v32 = vld [vmem:[%s7739_s0 + $0x898] ss:$28 sps:$4 sm:$0xff]  }
 0x27a   :  { %3547 = vmatmul.mubr.bf16.gmra.mrb[152].mxu0 %v5557_v21  ;;  %4777 = vmatprep.mubr.msk.bf16.mxu1 %vm2307_vm0, %v5561_v49  ;;  %v5566_v21 = vld [vmem:[%s7739_s0 + $0x7f8] ss:$28 sps:$4 sm:$0xff]  }
 0x27b   :  { %3554 = vmatprep.mubr.bf16.mxu0 %v5559_v53  ;;  %v5564_v53 = vld [vmem:[%s7739_s0 + $0x8d4] ss:$28 sps:$4 sm:$0xff]  }
 0x27c   :  { %v7000_v45 = vpop.f32.mrb[136].mxu1 }
 0x27d   :  { %7764 = vst [vmem:[#allocation18_spill] sm:$0xff] %v7000_v45  ;;  %v3340_v60 = vpop.f32.mrb[48].mxu0  ;;  %v3133_v38 = vpop.f32.mrb[137].mxu1 }
 0x27e   :  { %v7006_v55 = vadd.f32 %v3340_v60, %v6405_v14  ;;  %v3342_v7 = vpop.f32.mrb[49].mxu0  ;;  %v7008_v44 = vpop.f32.mrb[138].mxu1 }
 0x27f   :  { %7765 = vst [vmem:[#allocation19_spill] sm:$0xff] %v7008_v44  ;;  %v3343_v49 = vpop.f32.mrb[50].mxu0  ;;  %v3136_v38 = vpop.f32.mrb[139].mxu1 }
 0x280   :  { %v7020_v14 = vadd.f32 %v3343_v49, %v6410_v18  ;;  %v3345_v23 = vpop.f32.mrb[51].mxu0  ;;  %v5568_v38 = vld [vmem:[%s7739_s0 + $0x830] ss:$28 sps:$4 sm:$0xff]  }
 0x281   :  { %4778 = vmatmul.mubr.msk.bf16.gmra.mrb[244].mxu1 %vm2307_vm0, %v5563_v61  ;;  %v5567_v61 = vld [vmem:[%s7739_s0 + $0x8d0] ss:$28 sps:$4 sm:$0xff]  }
 0x282   :  { %3555 = vmatmul.mubr.bf16.gmra.mrb[156].mxu0 %v5562_v32  ;;  %4781 = vmatprep.mubr.msk.bf16.mxu1 %vm2307_vm0, %v5566_v21  ;;  %v5571_v32 = vld [vmem:[%s7739_s0 + $0x868] ss:$28 sps:$4 sm:$0xff]  }
 0x283   :  { %3562 = vmatprep.mubr.bf16.mxu0 %v5564_v53  ;;  %v5569_v53 = vld [vmem:[%s7739_s0 + $0x90c] ss:$28 sps:$4 sm:$0xff]  }
 0x284   :  { %v7024_v60 = vpop.f32.mrb[140].mxu1 }
 0x285   :  { %7766 = vst [vmem:[#allocation20_spill] sm:$0xff] %v7024_v60  ;;  %v3348_v7 = vpop.f32.mrb[52].mxu0  ;;  %v3141_v44 = vpop.f32.mrb[141].mxu1 }
 0x286   :  { %v7030_v45 = vadd.f32 %v3348_v7, %v6421_v24  ;;  %v3350_v18 = vpop.f32.mrb[53].mxu0  ;;  %v7032_v49 = vpop.f32.mrb[142].mxu1 }
 0x287   :  { %7767 = vst [vmem:[#allocation21_spill] sm:$0xff] %v7032_v49  ;;  %v3351_v21 = vpop.f32.mrb[54].mxu0  ;;  %v3144_v44 = vpop.f32.mrb[143].mxu1 }
 0x288   :  { %v7044_v24 = vadd.f32 %v3351_v21, %v6426_v29  ;;  %v3353_v23 = vpop.f32.mrb[55].mxu0  ;;  %v5573_v44 = vld [vmem:[%s7739_s0 + $0x8a0] ss:$28 sps:$4 sm:$0xff]  }
 0x289   :  { %4782 = vmatmul.mubr.msk.bf16.gmra.mrb[248].mxu1 %vm2307_vm0, %v5568_v38  ;;  %v5572_v38 = vld [vmem:[%s7739_s0 + $0x908] ss:$28 sps:$4 sm:$0xff]  }
 0x28a   :  { %3563 = vmatmul.mubr.bf16.gmra.mrb[160].mxu0 %v5567_v61  ;;  %4785 = vmatprep.mubr.msk.bf16.mxu1 %vm2307_vm0, %v5571_v32  ;;  %v5576_v61 = vld [vmem:[%s7739_s0 + $0x8d8] ss:$28 sps:$4 sm:$0xff]  }
 0x28b   :  { %3570 = vmatprep.mubr.bf16.mxu0 %v5569_v53  ;;  %v5574_v53 = vld [vmem:[%s7739_s0 + $0x944] ss:$28 sps:$4 sm:$0xff]  }
 0x28c   :  { %v7048_v7 = vpop.f32.mrb[144].mxu1 }
 0x28d   :  { %7768 = vst [vmem:[#allocation22_spill] sm:$0xff] %v7048_v7  ;;  %v3356_v18 = vpop.f32.mrb[56].mxu0  ;;  %v3149_v49 = vpop.f32.mrb[145].mxu1 }
 0x28e   :  { %v7054_v60 = vadd.f32 %v3356_v18, %v6437_v37  ;;  %v3358_v29 = vpop.f32.mrb[57].mxu0  ;;  %v7056_v21 = vpop.f32.mrb[146].mxu1 }
 0x28f   :  { %7769 = vst [vmem:[#allocation23_spill] sm:$0xff] %v7056_v21  ;;  %v3359_v32 = vpop.f32.mrb[58].mxu0  ;;  %v3152_v49 = vpop.f32.mrb[147].mxu1 }
 0x290   :  { %v7068_v37 = vadd.f32 %v3359_v32, %v6442_v42  ;;  %v3361_v23 = vpop.f32.mrb[59].mxu0  ;;  %v5578_v49 = vld [vmem:[%s7739_s0 + $0x910] ss:$28 sps:$4 sm:$0xff]  }
 0x291   :  { %4786 = vmatmul.mubr.msk.bf16.gmra.mrb[252].mxu1 %vm2307_vm0, %v5573_v44  ;;  %v5577_v44 = vld [vmem:[%s7739_s0 + $0x940] ss:$28 sps:$4 sm:$0xff]  }
 0x292   :  { %7770 = vst [vmem:[#allocation24_spill] sm:$0xff] %v7068_v37  ;;  %3571 = vmatmul.mubr.bf16.gmra.mrb[164].mxu0 %v5572_v38  ;;  %4789 = vmatprep.mubr.msk.bf16.mxu1 %vm2307_vm0, %v5576_v61  ;;  %v5581_v38 = vld [vmem:[%s7739_s0 + $0x948] ss:$28 sps:$4 sm:$0xff]  }
 0x293   :  { %3578 = vmatprep.mubr.bf16.mxu0 %v5574_v53  ;;  %v5579_v53 = vld [vmem:[%s7739_s0 + $0x97c] ss:$28 sps:$4 sm:$0xff]  }
 0x294   :  { %v7072_v18 = vpop.f32.mrb[148].mxu1 }
 0x295   :  { %7771 = vst [vmem:[#allocation25_spill] sm:$0xff] %v7072_v18  ;;  %v3364_v29 = vpop.f32.mrb[60].mxu0  ;;  %v3157_v21 = vpop.f32.mrb[149].mxu1 }
 0x296   :  { %v7078_v7 = vadd.f32 %v3364_v29, %v6453_v52  ;;  %v3366_v42 = vpop.f32.mrb[61].mxu0  ;;  %v7080_v32 = vpop.f32.mrb[150].mxu1 }
 0x297   :  { %7772 = vst [vmem:[#allocation26_spill] sm:$0xff] %v7080_v32  ;;  %v3367_v61 = vpop.f32.mrb[62].mxu0  ;;  %v3160_v21 = vpop.f32.mrb[151].mxu1 }
 0x298   :  { %v7092_v52 = vadd.f32 %v3367_v61, %v6458_v57  ;;  %v3369_v23 = vpop.f32.mrb[63].mxu0  ;;  %v5583_v21 = vld [vmem:[%s7739_s0 + $0x980] ss:$28 sps:$4 sm:$0xff]  }
 0x299   :  { %4790 = vmatmul.mubr.msk.bf16.gmra.mrb[0].mxu1 %vm2307_vm0, %v5578_v49  ;;  %v5582_v49 = vld [vmem:[%s7739_s0 + $0x978] ss:$28 sps:$4 sm:$0xff]  }
 0x29a   :  { %3579 = vmatmul.mubr.bf16.gmra.mrb[168].mxu0 %v5577_v44  ;;  %4793 = vmatprep.mubr.msk.bf16.mxu1 %vm2307_vm0, %v5581_v38 }
 0x29b   :  { %3586 = vmatprep.mubr.bf16.mxu0 %v5579_v53 }
 0x29c   :  { %v7096_v29 = vpop.f32.mrb[152].mxu1 }
 0x29d   :  { %7773 = vst [vmem:[#allocation27_spill] sm:$0xff] %v7096_v29  ;;  %v3372_v42 = vpop.f32.mrb[64].mxu0  ;;  %v3165_v32 = vpop.f32.mrb[153].mxu1 }
 0x29e   :  { %v7102_v18 = vadd.f32 %v3372_v42, %v6469_v2  ;;  %v3374_v57 = vpop.f32.mrb[65].mxu0  ;;  %v7104_v61 = vpop.f32.mrb[154].mxu1 }
 0x29f   :  { %7775 = vst [vmem:[#allocation29_spill] sm:$0xff] %v7104_v61  ;;  %v3375_v44 = vpop.f32.mrb[66].mxu0  ;;  %v3168_v38 = vpop.f32.mrb[155].mxu1 }
 0x2a0   :  { %7774 = vst [vmem:[#allocation28_spill] sm:$0xff] %v7102_v18  ;;  %v7110_v53 = vadd.f32 %v3375_v44, %v6474_v8  ;;  %v3377_v32 = vpop.f32.mrb[67].mxu0 }
 0x2a1   :  { %4794 = vmatmul.mubr.msk.bf16.gmra.mrb[4].mxu1 %vm2307_vm0, %v5583_v21 }
 0x2a2   :  { %3587 = vmatmul.mubr.bf16.gmra.mrb[172].mxu0 %v5582_v49 }
 0x2a4   :  { %v7113_v23 = vpop.f32.mrb[156].mxu1 }
 0x2a5   :  { %7776 = vst [vmem:[#allocation30_spill] sm:$0xff] %v7113_v23  ;;  %v3380_v2 = vpop.f32.mrb[68].mxu0  ;;  %v3173_v42 = vpop.f32.mrb[157].mxu1 }
 0x2a6   :  { %v7116_v57 = vadd.f32 %v3380_v2, %v6485_v16  ;;  %v3382_v61 = vpop.f32.mrb[69].mxu0  ;;  %v7118_v29 = vpop.f32.mrb[158].mxu1 }
 0x2a7   :  { %7777 = vst [vmem:[#allocation31_spill] sm:$0xff] %v7118_v29  ;;  %v3383_v18 = vpop.f32.mrb[70].mxu0  ;;  %v3176_v37 = vpop.f32.mrb[159].mxu1 }
 0x2a8   :  { %v7121_v38 = vadd.f32 %v3383_v18, %v6490_v22  ;;  %v3385_v8 = vpop.f32.mrb[71].mxu0 }
 0x2ac   :  { %v7123_v44 = vpop.f32.mrb[160].mxu1 }
 0x2ad   :  { %7778 = vst [vmem:[#allocation32_spill] sm:$0xff] %v7123_v44  ;;  %v3388_v21 = vpop.f32.mrb[72].mxu0  ;;  %v3181_v49 = vpop.f32.mrb[161].mxu1 }
 0x2ae   :  { %v7126_v32 = vadd.f32 %v3388_v21, %v6505_v33  ;;  %v3390_v42 = vpop.f32.mrb[73].mxu0  ;;  %v7128_v23 = vpop.f32.mrb[162].mxu1 }
 0x2af   :  { %7779 = vst [vmem:[#allocation33_spill] sm:$0xff] %v7128_v23  ;;  %v3391_v16 = vpop.f32.mrb[74].mxu0  ;;  %v3184_v61 = vpop.f32.mrb[163].mxu1 }
 0x2b0   :  { %v7131_v2 = vadd.f32 %v3391_v16, %v6510_v41  ;;  %v3393_v37 = vpop.f32.mrb[75].mxu0 }
 0x2b4   :  { %v7133_v29 = vpop.f32.mrb[164].mxu1 }
 0x2b5   :  { %7780 = vst [vmem:[#allocation34_spill] sm:$0xff] %v7133_v29  ;;  %v3396_v22 = vpop.f32.mrb[76].mxu0  ;;  %v3189_v18 = vpop.f32.mrb[165].mxu1 }
 0x2b6   :  { %v7136_v8 = vadd.f32 %v3396_v22, %v6521_v50  ;;  %v3398_v49 = vpop.f32.mrb[77].mxu0  ;;  %v7138_v44 = vpop.f32.mrb[166].mxu1 }
 0x2b7   :  { %7781 = vst [vmem:[#allocation35_spill] sm:$0xff] %v7138_v44  ;;  %v3399_v33 = vpop.f32.mrb[78].mxu0  ;;  %v3192_v21 = vpop.f32.mrb[167].mxu1 }
 0x2b8   :  { %v7141_v42 = vadd.f32 %v3399_v33, %v6526_v58  ;;  %v3401_v61 = vpop.f32.mrb[79].mxu0 }
 0x2bc   :  { %v7143_v23 = vpop.f32.mrb[168].mxu1 }
 0x2bd   :  { %7782 = vst [vmem:[#allocation36_spill] sm:$0xff] %v7143_v23  ;;  %v3404_v41 = vpop.f32.mrb[80].mxu0  ;;  %v3197_v16 = vpop.f32.mrb[169].mxu1 }
 0x2be   :  { %v7146_v37 = vadd.f32 %v3404_v41, %v6537_v6  ;;  %v3406_v18 = vpop.f32.mrb[81].mxu0  ;;  %v7148_v29 = vpop.f32.mrb[170].mxu1 }
 0x2bf   :  { %7783 = vst [vmem:[#allocation37_spill] sm:$0xff] %v7148_v29  ;;  %v3407_v50 = vpop.f32.mrb[82].mxu0  ;;  %v3200_v22 = vpop.f32.mrb[171].mxu1 }
 0x2c0   :  { %v7151_v49 = vadd.f32 %v3407_v50, %v6542_v13  ;;  %v3409_v21 = vpop.f32.mrb[83].mxu0 }
 0x2c4   :  { %v7153_v44 = vpop.f32.mrb[172].mxu1 }
 0x2c5   :  { %7784 = vst [vmem:[#allocation38_spill] sm:$0xff] %v7153_v44  ;;  %v3412_v58 = vpop.f32.mrb[84].mxu0  ;;  %v3205_v33 = vpop.f32.mrb[173].mxu1 }
 0x2c6   :  { %v7156_v61 = vadd.f32 %v3412_v58, %v6553_v26  ;;  %v3414_v16 = vpop.f32.mrb[85].mxu0  ;;  %v7158_v23 = vpop.f32.mrb[174].mxu1 }
 0x2c7   :  { %7785 = vst [vmem:[#allocation39_spill] sm:$0xff] %v7158_v23  ;;  %v3415_v6 = vpop.f32.mrb[86].mxu0  ;;  %v3208_v41 = vpop.f32.mrb[175].mxu1 }
 0x2c8   :  { %v7161_v18 = vadd.f32 %v3415_v6, %v6558_v31  ;;  %v3417_v22 = vpop.f32.mrb[87].mxu0 }
 0x2cc   :  { %v4711_v29 = vpop.f32.mrb[176].mxu1 }
 0x2cd   :  { %v3420_v13 = vpop.f32.mrb[88].mxu0  ;;  %v7164_v50 = vadd.f32 %v6780_v30, %v4711_v29  ;;  %v3629_v21 = vpop.f32.mrb[177].mxu1 }
 0x2ce   :  { %v7167_v33 = vadd.f32 %v3420_v13, %v6569_v46  ;;  %v3422_v26 = vpop.f32.mrb[89].mxu0  ;;  %v7170_v58 = vadd.f32 %v6760_v27, %v3629_v21  ;;  %v4712_v16 = vpop.f32.mrb[178].mxu1 }
 0x2cf   :  { %v3423_v23 = vpop.f32.mrb[90].mxu0  ;;  %v7173_v41 = vadd.f32 %v6792_v47, %v4712_v16  ;;  %v3632_v31 = vpop.f32.mrb[179].mxu1 }
 0x2d0   :  { %v7176_v6 = vadd.f32 %v3423_v23, %v6574_v54  ;;  %v3425_v22 = vpop.f32.mrb[91].mxu0  ;;  %v7179_v30 = vadd.f32 %v6772_v5, %v3632_v31 }
 0x2d4   :  { %v4715_v29 = vpop.f32.mrb[180].mxu1 }
 0x2d5   :  { %v3428_v46 = vpop.f32.mrb[92].mxu0  ;;  %v7182_v13 = vadd.f32 %v6820_v40, %v4715_v29  ;;  %v3645_v27 = vpop.f32.mrb[181].mxu1 }
 0x2d6   :  { %v7185_v21 = vadd.f32 %v3428_v46, %v6585_v10  ;;  %v3430_v26 = vpop.f32.mrb[93].mxu0  ;;  %v7188_v47 = vadd.f32 %v6800_v62, %v3645_v27  ;;  %v4716_v16 = vpop.f32.mrb[182].mxu1 }
 0x2d7   :  { %v3431_v54 = vpop.f32.mrb[94].mxu0  ;;  %v7191_v23 = vadd.f32 %v6832_v35, %v4716_v16  ;;  %v3648_v5 = vpop.f32.mrb[183].mxu1 }
 0x2d8   :  { %v7194_v31 = vadd.f32 %v3431_v54, %v6590_v19  ;;  %v3433_v22 = vpop.f32.mrb[95].mxu0  ;;  %v7197_v40 = vadd.f32 %v6812_v11, %v3648_v5 }
 0x2dc   :  { %v4719_v29 = vpop.f32.mrb[184].mxu1 }
 0x2dd   :  { %v3436_v10 = vpop.f32.mrb[96].mxu0  ;;  %v7200_v46 = vadd.f32 %v6860_v56, %v4719_v29  ;;  %v3661_v62 = vpop.f32.mrb[185].mxu1 }
 0x2de   :  { %v7203_v27 = vadd.f32 %v3436_v10, %v6601_v36  ;;  %v3438_v26 = vpop.f32.mrb[97].mxu0  ;;  %v7206_v35 = vadd.f32 %v6840_v0, %v3661_v62  ;;  %v4720_v16 = vpop.f32.mrb[186].mxu1 }
 0x2df   :  { %v3439_v19 = vpop.f32.mrb[98].mxu0  ;;  %v7209_v54 = vadd.f32 %v6872_v51, %v4720_v16  ;;  %v3664_v11 = vpop.f32.mrb[187].mxu1 }
 0x2e0   :  { %v7212_v5 = vadd.f32 %v3439_v19, %v6606_v48  ;;  %v3441_v22 = vpop.f32.mrb[99].mxu0  ;;  %v7215_v56 = vadd.f32 %v6852_v43, %v3664_v11 }
 0x2e2   :  { %7786 = vst [vmem:[#allocation40_spill] sm:$0xff] %v7212_v5 }
 0x2e4   :  { %v4723_v29 = vpop.f32.mrb[188].mxu1 }
 0x2e5   :  { %v3444_v36 = vpop.f32.mrb[100].mxu0  ;;  %v7218_v10 = vadd.f32 %v6900_v9, %v4723_v29  ;;  %v3677_v0 = vpop.f32.mrb[189].mxu1 }
 0x2e6   :  { %v7221_v62 = vadd.f32 %v3444_v36, %v6617_v63  ;;  %v3446_v26 = vpop.f32.mrb[101].mxu0  ;;  %v7224_v51 = vadd.f32 %v6880_v1, %v3677_v0  ;;  %v4724_v16 = vpop.f32.mrb[190].mxu1 }
 0x2e7   :  { %v3447_v48 = vpop.f32.mrb[102].mxu0  ;;  %v7227_v19 = vadd.f32 %v6912_v4, %v4724_v16  ;;  %v3680_v43 = vpop.f32.mrb[191].mxu1 }
 0x2e8   :  { %v7230_v11 = vadd.f32 %v3447_v48, %v6622_v15  ;;  %v3449_v22 = vpop.f32.mrb[103].mxu0  ;;  %v7233_v9 = vadd.f32 %v6892_v59, %v3680_v43  ;;  %v7788_v43 = vld [vmem:[#allocation2_spill] sm:$0xff] }
 0x2ec   :  { %v4727_v29 = vpop.f32.mrb[192].mxu1 }
 0x2ed   :  { %v3452_v63 = vpop.f32.mrb[104].mxu0  ;;  %v7236_v36 = vadd.f32 %v6940_v25, %v4727_v29  ;;  %v3693_v1 = vpop.f32.mrb[193].mxu1 }
 0x2ee   :  { %v7239_v0 = vadd.f32 %v3452_v63, %v6633_v39  ;;  %v3454_v26 = vpop.f32.mrb[105].mxu0  ;;  %v7242_v4 = vadd.f32 %v6920_v17, %v3693_v1  ;;  %v4728_v16 = vpop.f32.mrb[194].mxu1  ;;  %v7790_v1 = vld [vmem:[#allocation3_spill] sm:$0xff] }
 0x2ef   :  { %v3455_v15 = vpop.f32.mrb[106].mxu0  ;;  %v7245_v48 = vadd.f32 %v6952_v20, %v4728_v16  ;;  %v3696_v59 = vpop.f32.mrb[195].mxu1  ;;  %v7791_v20 = vld [vmem:[#allocation15_spill] sm:$0xff] }
 0x2f0   :  { %7787 = vst [vmem:[#allocation41_spill] sm:$0xff] %v7239_v0  ;;  %v7248_v22 = vadd.f32 %v3455_v15, %v7788_v43  ;;  %v3457_v44 = vpop.f32.mrb[107].mxu0  ;;  %v7251_v25 = vadd.f32 %v6932_v12, %v3696_v59  ;;  %v7792_v43 = vld [vmem:[#allocation4_spill] sm:$0xff] }
 0x2f2   :  { %7789 = vst [vmem:[#allocation2_spill] sm:$0xff] %v7248_v22  ;;  %v7794_v22 = vld [vmem:[#allocation5_spill] sm:$0xff] }
 0x2f4   :  { %v4731_v29 = vpop.f32.mrb[196].mxu1 }
 0x2f5   :  { %v3460_v39 = vpop.f32.mrb[108].mxu0  ;;  %v7254_v63 = vadd.f32 %v6982_v34, %v4731_v29  ;;  %v3709_v17 = vpop.f32.mrb[197].mxu1 }
 0x2f6   :  { %v7257_v26 = vadd.f32 %v3460_v39, %v7790_v1  ;;  %v3462_v0 = vpop.f32.mrb[109].mxu0  ;;  %v7260_v16 = vadd.f32 %v7791_v20, %v3709_v17  ;;  %v4732_v5 = vpop.f32.mrb[198].mxu1 }
 0x2f7   :  { %v3463_v15 = vpop.f32.mrb[110].mxu0  ;;  %v7265_v12 = vadd.f32 %v6996_v3, %v4732_v5  ;;  %v3712_v59 = vpop.f32.mrb[199].mxu1 }
 0x2f8   :  { %v7268_v34 = vadd.f32 %v3463_v15, %v7792_v43  ;;  %v3465_v29 = vpop.f32.mrb[111].mxu0  ;;  %v7271_v39 = vadd.f32 %v6972_v28, %v3712_v59 }
 0x2fa   :  { %7793 = vst [vmem:[#allocation3_spill] sm:$0xff] %v7268_v34 }
 0x2fc   :  { %v4735_v17 = vpop.f32.mrb[200].mxu1 }
 0x2fd   :  { %v3468_v1 = vpop.f32.mrb[112].mxu0  ;;  %v7276_v20 = vadd.f32 %v7030_v45, %v4735_v17  ;;  %v3725_v44 = vpop.f32.mrb[201].mxu1  ;;  %v7796_v17 = vld [vmem:[#allocation6_spill] sm:$0xff]  ;;  %v7799_v45 = vld [vmem:[#allocation7_spill] sm:$0xff] }
 0x2fe   :  { %v7279_v3 = vadd.f32 %v3468_v1, %v7794_v22  ;;  %v3470_v5 = vpop.f32.mrb[113].mxu0  ;;  %v7282_v15 = vadd.f32 %v7006_v55, %v3725_v44  ;;  %v4736_v43 = vpop.f32.mrb[202].mxu1 }
 0x2ff   :  { %v3471_v59 = vpop.f32.mrb[114].mxu0  ;;  %v7287_v29 = vadd.f32 %v7044_v24, %v4736_v43  ;;  %v3728_v0 = vpop.f32.mrb[203].mxu1 }
 0x300   :  { %7795 = vst [vmem:[#allocation15_spill] sm:$0xff] %v7279_v3  ;;  %v7292_v34 = vadd.f32 %v3471_v59, %v7796_v17  ;;  %v3473_v22 = vpop.f32.mrb[115].mxu0  ;;  %v7295_v1 = vadd.f32 %v7020_v14, %v3728_v0 }
 0x302   :  { %7797 = vst [vmem:[#allocation4_spill] sm:$0xff] %v7292_v34 }
 0x304   :  { %v4739_v5 = vpop.f32.mrb[204].mxu1 }
 0x305   :  { %v3476_v24 = vpop.f32.mrb[116].mxu0  ;;  %v7302_v43 = vadd.f32 %v7078_v7, %v4739_v5  ;;  %v3741_v28 = vpop.f32.mrb[205].mxu1  ;;  %v7802_v5 = vld [vmem:[#allocation8_spill] sm:$0xff]  ;;  %v7805_v7 = vld [vmem:[#allocation9_spill] sm:$0xff] }
 0x306   :  { %v7305_v3 = vadd.f32 %v3476_v24, %v7799_v45  ;;  %v3478_v59 = vpop.f32.mrb[117].mxu0  ;;  %v7308_v17 = vadd.f32 %v7054_v60, %v3741_v28  ;;  %v4740_v14 = vpop.f32.mrb[206].mxu1  ;;  %v7804_v24 = vld [vmem:[#allocation24_spill] sm:$0xff] }
 0x307   :  { %7798 = vst [vmem:[#allocation5_spill] sm:$0xff] %v7302_v43  ;;  %v3479_v22 = vpop.f32.mrb[118].mxu0  ;;  %v7313_v55 = vadd.f32 %v7092_v52, %v4740_v14  ;;  %v3744_v44 = vpop.f32.mrb[207].mxu1 }
 0x308   :  { %7800 = vst [vmem:[#allocation6_spill] sm:$0xff] %v7305_v3  ;;  %v7318_v34 = vadd.f32 %v3479_v22, %v7802_v5  ;;  %v3481_v45 = vpop.f32.mrb[119].mxu0  ;;  %v7321_v59 = vadd.f32 %v7804_v24, %v3744_v44  ;;  %v7807_v5 = vld [vmem:[#allocation28_spill] sm:$0xff] }
 0x309   :  { %7801 = vst [vmem:[#allocation7_spill] sm:$0xff] %v7313_v55 }
 0x30a   :  { %7803 = vst [vmem:[#allocation8_spill] sm:$0xff] %v7318_v34 }
 0x30c   :  { %v4743_v0 = vpop.f32.mrb[208].mxu1 }
 0x30d   :  { %v3484_v52 = vpop.f32.mrb[120].mxu0  ;;  %v7328_v14 = vadd.f32 %v7116_v57, %v4743_v0  ;;  %v3757_v3 = vpop.f32.mrb[209].mxu1  ;;  %v7808_v0 = vld [vmem:[#allocation10_spill] sm:$0xff]  ;;  %v7811_v57 = vld [vmem:[#allocation11_spill] sm:$0xff] }
 0x30e   :  { %v7331_v43 = vadd.f32 %v3484_v52, %v7805_v7  ;;  %v3486_v22 = vpop.f32.mrb[121].mxu0  ;;  %v7334_v45 = vadd.f32 %v7807_v5, %v3757_v3  ;;  %v4744_v44 = vpop.f32.mrb[210].mxu1 }
 0x30f   :  { %v3487_v60 = vpop.f32.mrb[122].mxu0  ;;  %v7339_v28 = vadd.f32 %v7121_v38, %v4744_v44  ;;  %v3760_v34 = vpop.f32.mrb[211].mxu1 }
 0x310   :  { %7806 = vst [vmem:[#allocation24_spill] sm:$0xff] %v7331_v43  ;;  %v7344_v55 = vadd.f32 %v3487_v60, %v7808_v0  ;;  %v3489_v7 = vpop.f32.mrb[123].mxu0  ;;  %v7347_v52 = vadd.f32 %v7110_v53, %v3760_v34 }
 0x312   :  { %7809 = vst [vmem:[#allocation9_spill] sm:$0xff] %v7344_v55 }
 0x314   :  { %v4747_v5 = vpop.f32.mrb[212].mxu1 }
 0x315   :  { %v3492_v38 = vpop.f32.mrb[124].mxu0  ;;  %v7354_v44 = vadd.f32 %v7136_v8, %v4747_v5  ;;  %v3773_v24 = vpop.f32.mrb[213].mxu1  ;;  %v7813_v5 = vld [vmem:[#allocation12_spill] sm:$0xff]  ;;  %v7815_v8 = vld [vmem:[#allocation13_spill] sm:$0xff] }
 0x316   :  { %v7357_v43 = vadd.f32 %v3492_v38, %v7811_v57  ;;  %v3494_v60 = vpop.f32.mrb[125].mxu0  ;;  %v7360_v0 = vadd.f32 %v7126_v32, %v3773_v24  ;;  %v4748_v53 = vpop.f32.mrb[214].mxu1 }
 0x317   :  { %7810 = vst [vmem:[#allocation28_spill] sm:$0xff] %v7354_v44  ;;  %v3495_v7 = vpop.f32.mrb[126].mxu0  ;;  %v7365_v3 = vadd.f32 %v7141_v42, %v4748_v53  ;;  %v3776_v22 = vpop.f32.mrb[215].mxu1 }
 0x318   :  { %v7370_v55 = vadd.f32 %v3495_v7, %v7813_v5  ;;  %v3497_v57 = vpop.f32.mrb[127].mxu0  ;;  %v7373_v38 = vadd.f32 %v7131_v2, %v3776_v22 }
 0x319   :  { %7812 = vst [vmem:[#allocation10_spill] sm:$0xff] %v7365_v3 }
 0x31c   :  { %v4751_v60 = vpop.f32.mrb[216].mxu1 }
 0x31d   :  { %v3500_v42 = vpop.f32.mrb[128].mxu0  ;;  %v7380_v53 = vadd.f32 %v7156_v61, %v4751_v60  ;;  %v3789_v34 = vpop.f32.mrb[217].mxu1  ;;  %v7817_v60 = vld [vmem:[#allocation14_spill] sm:$0xff] }
 0x31e   :  { %v7383_v44 = vadd.f32 %v3500_v42, %v7815_v8  ;;  %v3502_v7 = vpop.f32.mrb[129].mxu0  ;;  %v7386_v5 = vadd.f32 %v7146_v37, %v3789_v34  ;;  %v4752_v2 = vpop.f32.mrb[218].mxu1 }
 0x31f   :  { %7814 = vst [vmem:[#allocation11_spill] sm:$0xff] %v7380_v53  ;;  %v3503_v57 = vpop.f32.mrb[130].mxu0  ;;  %v7391_v32 = vadd.f32 %v7161_v18, %v4752_v2  ;;  %v3792_v24 = vpop.f32.mrb[219].mxu1  ;;  %v7818_v53 = vld [vmem:[#allocation16_spill] sm:$0xff] }
 0x320   :  { %v7396_v3 = vadd.f32 %v3503_v57, %v7817_v60  ;;  %v3505_v8 = vpop.f32.mrb[131].mxu0  ;;  %v7399_v42 = vadd.f32 %v7151_v49, %v3792_v24  ;;  %v7819_v49 = vmax.f32 %v7164_v50, %v7282_v15  ;;  %v7822_v50 = vmax.f32 %v7173_v41, %v7295_v1 }
 0x321   :  { %7816 = vst [vmem:[#allocation12_spill] sm:$0xff] %v7391_v32  ;;  %v7825_v41 = vmax.f32 %v7182_v13, %v7308_v17  ;;  %v7829_v13 = vmax.f32 %v7191_v23, %v7321_v59  ;;  %v7833_v23 = vmax.f32 %v7200_v46, %v7334_v45  ;;  %v7839_v46 = vmax.f32 %v7209_v54, %v7347_v52 }
 0x322   :  { %v7845_v54 = vmax.f32 %v7218_v10, %v7360_v0  ;;  %v7850_v10 = vmax.f32 %v7227_v19, %v7373_v38  ;;  %v7854_v19 = vmax.f32 %v7236_v36, %v7386_v5  ;;  %v7859_v36 = vmax.f32 %v7245_v48, %v7399_v42 }
 0x324   :  { %v4755_v7 = vpop.f32.mrb[220].mxu1 }
 0x325   :  { %v3508_v18 = vpop.f32.mrb[132].mxu0  ;;  %v3814_v2 = vadd.f32 %v7185_v21, %v4755_v7  ;;  %v3805_v22 = vpop.f32.mrb[221].mxu1  ;;  %v7820_v21 = vmax.f32 %v7170_v58, %v7254_v63 }
 0x326   :  { %v7407_v61 = vadd.f32 %v3508_v18, %v7818_v53  ;;  %v3510_v57 = vpop.f32.mrb[133].mxu0  ;;  %v3806_v60 = vadd.f32 %v7167_v33, %v3805_v22  ;;  %v4756_v8 = vpop.f32.mrb[222].mxu1  ;;  %v7821_v53 = vld [vmem:[#allocation17_spill] sm:$0xff] }
 0x327   :  { %v7413_v24 = vmax.f32 %v7819_v49, %v3814_v2  ;;  %v3511_v37 = vpop.f32.mrb[134].mxu0  ;;  %v3817_v34 = vadd.f32 %v7194_v31, %v4756_v8  ;;  %v3808_v32 = vpop.f32.mrb[223].mxu1  ;;  %v7823_v31 = vmax.f32 %v7179_v30, %v7265_v12 }
 0x328   :  { %v7419_v7 = vmax.f32 %v7820_v21, %v3806_v60  ;;  %v7422_v18 = vadd.f32 %v3511_v37, %v7821_v53  ;;  %v3513_v57 = vpop.f32.mrb[135].mxu0  ;;  %v3809_v33 = vadd.f32 %v7176_v6, %v3808_v32  ;;  %v7824_v37 = vld [vmem:[#allocation18_spill] sm:$0xff]  ;;  %v7827_v53 = vld [vmem:[#allocation19_spill] sm:$0xff] }
 0x329   :  { %v7428_v15 = vmax.f32 %v7822_v50, %v3817_v34 }
 0x32a   :  { %v7433_v22 = vmax.f32 %v7823_v31, %v3809_v33 }
 0x32c   :  { %v4759_v2 = vpop.f32.mrb[224].mxu1 }
 0x32d   :  { %v3516_v58 = vpop.f32.mrb[136].mxu0  ;;  %v3830_v63 = vadd.f32 %v7221_v62, %v4759_v2  ;;  %v3821_v60 = vpop.f32.mrb[225].mxu1  ;;  %v7826_v62 = vmax.f32 %v7188_v47, %v7276_v20 }
 0x32e   :  { %v7437_v8 = vadd.f32 %v3516_v58, %v7824_v37  ;;  %v3518_v49 = vpop.f32.mrb[137].mxu0  ;;  %v3822_v6 = vadd.f32 %v7203_v27, %v3821_v60  ;;  %v4760_v32 = vpop.f32.mrb[226].mxu1  ;;  %v7828_v27 = vld [vmem:[#allocation40_spill] sm:$0xff] }
 0x32f   :  { %v7443_v1 = vmax.f32 %v7825_v41, %v3830_v63  ;;  %v3519_v30 = vpop.f32.mrb[138].mxu0  ;;  %v3833_v12 = vadd.f32 %v7230_v11, %v4760_v32  ;;  %v3824_v34 = vpop.f32.mrb[227].mxu1  ;;  %v7830_v11 = vmax.f32 %v7197_v40, %v7287_v29  ;;  %v7831_v63 = vld [vmem:[#allocation20_spill] sm:$0xff]  ;;  %v7832_v49 = vld [vmem:[#allocation41_spill] sm:$0xff]  ;;  %v7834_v29 = vld [vmem:[#allocation3_spill] sm:$0xff] }
 0x330   :  { %v7449_v21 = vmax.f32 %v7826_v62, %v3822_v6  ;;  %v7452_v57 = vadd.f32 %v3519_v30, %v7827_v53  ;;  %v3521_v33 = vpop.f32.mrb[139].mxu0  ;;  %v3825_v50 = vadd.f32 %v7828_v27, %v3824_v34  ;;  %v7837_v62 = vld [vmem:[#allocation21_spill] sm:$0xff]  ;;  %v7838_v27 = vld [vmem:[#allocation2_spill] sm:$0xff] }
 0x331   :  { %v7458_v17 = vmax.f32 %v7829_v13, %v3833_v12  ;;  %v7835_v12 = vld [vmem:[#allocation5_spill] sm:$0xff]  ;;  %v7840_v13 = vld [vmem:[#allocation7_spill] sm:$0xff] }
 0x332   :  { %v7463_v31 = vmax.f32 %v7830_v11, %v3825_v50  ;;  %v7841_v11 = vmax.f32 %v7215_v56, %v7840_v13  ;;  %v7851_v13 = vmax.f32 %v7233_v9, %v7339_v28 }
 0x334   :  { %v4763_v2 = vpop.f32.mrb[228].mxu1 }
 0x335   :  { %v3524_v47 = vpop.f32.mrb[140].mxu0  ;;  %v3846_v20 = vadd.f32 %v7257_v26, %v4763_v2  ;;  %v3837_v58 = vpop.f32.mrb[229].mxu1  ;;  %v7836_v26 = vmax.f32 %v7206_v35, %v7835_v12  ;;  %v7847_v12 = vmax.f32 %v7224_v51, %v7328_v14 }
 0x336   :  { %v7467_v60 = vadd.f32 %v3524_v47, %v7831_v63  ;;  %v3526_v37 = vpop.f32.mrb[141].mxu0  ;;  %v3838_v6 = vadd.f32 %v7832_v49, %v3837_v58  ;;  %v4764_v32 = vpop.f32.mrb[230].mxu1 }
 0x337   :  { %v7473_v59 = vmax.f32 %v7833_v23, %v3846_v20  ;;  %v3527_v40 = vpop.f32.mrb[142].mxu0  ;;  %v3849_v41 = vadd.f32 %v7834_v29, %v4764_v32  ;;  %v3840_v30 = vpop.f32.mrb[231].mxu1  ;;  %v7842_v20 = vld [vmem:[#allocation6_spill] sm:$0xff]  ;;  %v7844_v32 = vld [vmem:[#allocation15_spill] sm:$0xff]  ;;  %v7846_v29 = vld [vmem:[#allocation8_spill] sm:$0xff] }
 0x338   :  { %v7479_v34 = vmax.f32 %v7836_v26, %v3838_v6  ;;  %v7482_v53 = vadd.f32 %v3527_v40, %v7837_v62  ;;  %v3529_v33 = vpop.f32.mrb[143].mxu0  ;;  %v3841_v50 = vadd.f32 %v7838_v27, %v3840_v30  ;;  %v7843_v37 = vld [vmem:[#allocation22_spill] sm:$0xff]  ;;  %v7848_v62 = vld [vmem:[#allocation23_spill] sm:$0xff] }
 0x339   :  { %v7488_v45 = vmax.f32 %v7839_v46, %v3849_v41 }
 0x33a   :  { %v7493_v2 = vmax.f32 %v7841_v11, %v3841_v50  ;;  %v7849_v50 = vld [vmem:[#allocation4_spill] sm:$0xff] }
 0x33c   :  { %v4767_v47 = vpop.f32.mrb[232].mxu1 }
 0x33d   :  { %v3532_v35 = vpop.f32.mrb[144].mxu0  ;;  %v3862_v58 = vadd.f32 %v7842_v20, %v4767_v47  ;;  %v3853_v63 = vpop.f32.mrb[233].mxu1  ;;  %v7852_v20 = vld [vmem:[#allocation25_spill] sm:$0xff] }
 0x33e   :  { %v7497_v49 = vadd.f32 %v3532_v35, %v7843_v37  ;;  %v3534_v6 = vpop.f32.mrb[145].mxu0  ;;  %v3854_v23 = vadd.f32 %v7844_v32, %v3853_v63  ;;  %v4768_v40 = vpop.f32.mrb[234].mxu1  ;;  %v7853_v37 = vld [vmem:[#allocation24_spill] sm:$0xff] }
 0x33f   :  { %v7503_v52 = vmax.f32 %v7845_v54, %v3862_v58  ;;  %v3535_v56 = vpop.f32.mrb[146].mxu0  ;;  %v3865_v41 = vadd.f32 %v7846_v29, %v4768_v40  ;;  %v3856_v30 = vpop.f32.mrb[235].mxu1  ;;  %v7855_v40 = vld [vmem:[#allocation28_spill] sm:$0xff] }
 0x340   :  { %v7509_v26 = vmax.f32 %v7847_v12, %v3854_v23  ;;  %v7512_v33 = vadd.f32 %v3535_v56, %v7848_v62  ;;  %v3537_v27 = vpop.f32.mrb[147].mxu0  ;;  %v3857_v46 = vadd.f32 %v7849_v50, %v3856_v30  ;;  %v7857_v56 = vld [vmem:[#allocation26_spill] sm:$0xff]  ;;  %v7858_v30 = vld [vmem:[#allocation9_spill] sm:$0xff] }
 0x341   :  { %v7518_v0 = vmax.f32 %v7850_v10, %v3865_v41  ;;  %v7860_v62 = vld [vmem:[#allocation10_spill] sm:$0xff] }
 0x342   :  { %v7523_v11 = vmax.f32 %v7851_v13, %v3857_v46  ;;  %v7862_v13 = vld [vmem:[#allocation27_spill] sm:$0xff] }
 0x344   :  { %v4771_v47 = vpop.f32.mrb[236].mxu1 }
 0x345   :  { %v3540_v51 = vpop.f32.mrb[148].mxu0  ;;  %v3878_v14 = vadd.f32 %v7357_v43, %v4771_v47  ;;  %v3869_v35 = vpop.f32.mrb[237].mxu1  ;;  %v7856_v43 = vmax.f32 %v7242_v4, %v7855_v40 }
 0x346   :  { %v7527_v58 = vadd.f32 %v3540_v51, %v7852_v20  ;;  %v3542_v63 = vpop.f32.mrb[149].mxu0  ;;  %v3870_v6 = vadd.f32 %v7853_v37, %v3869_v35  ;;  %v4772_v32 = vpop.f32.mrb[238].mxu1  ;;  %v7562_v51 = vld [vmem:[%s7740_s2] ss:$0 sm:$0xff] }
 0x347   :  { %v7533_v38 = vmax.f32 %v7854_v19, %v3878_v14  ;;  %v3543_v9 = vpop.f32.mrb[150].mxu0  ;;  %v3881_v28 = vadd.f32 %v7370_v55, %v4772_v32  ;;  %v3872_v23 = vpop.f32.mrb[239].mxu1  ;;  %v7861_v55 = vmax.f32 %v7251_v25, %v7860_v62  ;;  %v7865_v32 = vld [vmem:[#allocation29_spill] sm:$0xff]  ;;  %v7868_v62 = vld [vmem:[#allocation30_spill] sm:$0xff] }
 0x348   :  { %v7539_v54 = vmax.f32 %v7856_v43, %v3870_v6  ;;  %v7542_v29 = vadd.f32 %v3543_v9, %v7857_v56  ;;  %v3545_v41 = vpop.f32.mrb[151].mxu0  ;;  %v3873_v12 = vadd.f32 %v7858_v30, %v3872_v23 }
 0x349   :  { %v7548_v5 = vmax.f32 %v7859_v36, %v3881_v28 }
 0x34a   :  { %v7553_v27 = vmax.f32 %v7861_v55, %v3873_v12 }
 0x34c   :  { %v4775_v50 = vpop.f32.mrb[240].mxu1 }
 0x34d   :  { %v3548_v4 = vpop.f32.mrb[152].mxu0  ;;  %v3894_v46 = vadd.f32 %v7407_v61, %v4775_v50  ;;  %v3885_v10 = vpop.f32.mrb[241].mxu1  ;;  %v7863_v61 = vld [vmem:[#allocation11_spill] sm:$0xff] }
 0x34e   :  { %v7557_v47 = vadd.f32 %v3548_v4, %v7862_v13  ;;  %v3550_v48 = vpop.f32.mrb[153].mxu0  ;;  %v3886_v42 = vadd.f32 %v7383_v44, %v3885_v10  ;;  %v4776_v14 = vpop.f32.mrb[242].mxu1  ;;  %v7864_v37 = vmax.f32 %v7260_v16, %v7863_v61 }
 0x34f   :  { %v4024_v25 = vmax.f32 %v7419_v7, %v3894_v46  ;;  %v3551_v35 = vpop.f32.mrb[154].mxu0  ;;  %v3897_v20 = vadd.f32 %v7422_v18, %v4776_v14  ;;  %v3888_v63 = vpop.f32.mrb[243].mxu1  ;;  %v7866_v7 = vld [vmem:[#allocation12_spill] sm:$0xff] }
 0x350   :  { %v7570_v6 = vmax.f32 %v7864_v37, %v3886_v42  ;;  %v7573_v19 = vadd.f32 %v3551_v35, %v7865_v32  ;;  %v3553_v9 = vpop.f32.mrb[155].mxu0  ;;  %v3889_v28 = vadd.f32 %v7396_v3, %v3888_v63  ;;  %v7867_v40 = vmax.f32 %v7271_v39, %v7866_v7  ;;  %v7869_v42 = vld [vmem:[#allocation31_spill] sm:$0xff] }
 0x351   :  { %v4053_v44 = vadd.f32 %v7562_v51, %v4024_v25  ;;  %v4025_v23 = vmax.f32 %v7433_v22, %v3897_v20 }
 0x352   :  { %v7581_v18 = vmax.f32 %v7867_v40, %v3889_v28 }
 0x353   :  { %v4075_v43 = vmax.f32 %v4053_v44, 0.0  ;;  %v4054_v16 = vadd.f32 %v7562_v51, %v4025_v23 }
 0x354   :  { %v4779_v56 = vpop.f32.mrb[244].mxu1 }
 0x355   :  { %v4637_v41 = vpack.c.bf16 %v4075_v43, %v4075_v43  ;;  %v4076_v30 = vmax.f32 %v4054_v16, 0.0  ;;  %v3556_v12 = vpop.f32.mrb[156].mxu0  ;;  %v3910_v36 = vadd.f32 %v7467_v60, %v4779_v56  ;;  %v3901_v3 = vpop.f32.mrb[245].mxu1 }
 0x356   :  { %v4907_v55 = vadd.f32 %v3556_v12, %v7868_v62  ;;  %v3558_v50 = vpop.f32.mrb[157].mxu0  ;;  %v3902_v22 = vadd.f32 %v7437_v8, %v3901_v3  ;;  %v4780_v4 = vpop.f32.mrb[246].mxu1  ;;  %v7871_v62 = vld [vmem:[#allocation33_spill] sm:$0xff] }
 0x357   :  { %4186 = vst.msk [vmem:[%s7741_s3] sm:$0xf] %vm4185_vm1, %v4637_v41  ;;  %v4638_v39 = vpack.c.bf16 %v4076_v30, %v4076_v30  ;;  %v4028_v46 = vmax.f32 %v7449_v21, %v3910_v36  ;;  %v3559_v10 = vpop.f32.mrb[158].mxu0  ;;  %v3913_v13 = vadd.f32 %v7482_v53, %v4780_v4  ;;  %v3904_v48 = vpop.f32.mrb[247].mxu1 }
 0x358   :  { %v4026_v60 = vmax.f32 %v7413_v24, %v3902_v22  ;;  %v4908_v14 = vadd.f32 %v3559_v10, %v7869_v42  ;;  %v3561_v25 = vpop.f32.mrb[159].mxu0  ;;  %v3905_v8 = vadd.f32 %v7452_v57, %v3904_v48 }
 0x359   :  { %4187 = vst.msk [vmem:[%s7741_s3 + $0x4] sm:$0xf] %vm4185_vm1, %v4638_v39  ;;  %v4057_v35 = vadd.f32 %v7562_v51, %v4028_v46  ;;  %v4029_v21 = vmax.f32 %v7463_v31, %v3913_v13  ;;  %v7870_v31 = vld [vmem:[#allocation32_spill] sm:$0xff] }
 0x35a   :  { %v4055_v20 = vadd.f32 %v7562_v51, %v4026_v60  ;;  %v4027_v53 = vmax.f32 %v7428_v15, %v3905_v8 }
 0x35b   :  { %v4079_v63 = vmax.f32 %v4057_v35, 0.0  ;;  %v4058_v24 = vadd.f32 %v7562_v51, %v4029_v21 }
 0x35c   :  { %v4077_v61 = vmax.f32 %v4055_v20, 0.0  ;;  %v4056_v37 = vadd.f32 %v7562_v51, %v4027_v53  ;;  %v4783_v57 = vpop.f32.mrb[248].mxu1  ;;  %v7872_v20 = vld [vmem:[#allocation34_spill] sm:$0xff] }
 0x35d   :  { %v4641_v32 = vpack.c.bf16 %v4079_v63, %v4079_v63  ;;  %v4080_v9 = vmax.f32 %v4058_v24, 0.0  ;;  %v3564_v28 = vpop.f32.mrb[160].mxu0  ;;  %v3926_v44 = vadd.f32 %v7527_v58, %v4783_v57  ;;  %v3917_v23 = vpop.f32.mrb[249].mxu1 }
 0x35e   :  { %v4639_v7 = vpack.c.bf16 %v4077_v61, %v4077_v61  ;;  %v4078_v40 = vmax.f32 %v4056_v37, 0.0  ;;  %v7608_v43 = vadd.f32 %v3564_v28, %v7870_v31  ;;  %v3566_v16 = vpop.f32.mrb[161].mxu0  ;;  %v3918_v15 = vadd.f32 %v7497_v49, %v3917_v23  ;;  %v4784_v56 = vpop.f32.mrb[250].mxu1  ;;  %v7873_v28 = vld [vmem:[#allocation35_spill] sm:$0xff] }
 0x35f   :  { %4190 = vst.msk [vmem:[%s7741_s3 + $0x10] sm:$0xf] %vm4185_vm1, %v4641_v32  ;;  %v4642_v41 = vpack.c.bf16 %v4080_v9, %v4080_v9  ;;  %v4032_v30 = vmax.f32 %v7479_v34, %v3926_v44  ;;  %v3567_v12 = vpop.f32.mrb[162].mxu0  ;;  %v3929_v58 = vadd.f32 %v7542_v29, %v4784_v56  ;;  %v3920_v36 = vpop.f32.mrb[251].mxu1 }
 0x360   :  { %4188 = vst.msk [vmem:[%s7741_s3 + $0x8] sm:$0xf] %vm4185_vm1, %v4639_v7  ;;  %v4640_v3 = vpack.c.bf16 %v4078_v40, %v4078_v40  ;;  %v4030_v49 = vmax.f32 %v7443_v1, %v3918_v15  ;;  %v7623_v50 = vadd.f32 %v3567_v12, %v7871_v62  ;;  %v3569_v22 = vpop.f32.mrb[163].mxu0  ;;  %v3921_v4 = vadd.f32 %v7512_v33, %v3920_v36 }
 0x361   :  { %4191 = vst.msk [vmem:[%s7741_s3 + $0x14] sm:$0xf] %vm4185_vm1, %v4642_v41  ;;  %v4061_v34 = vadd.f32 %v7562_v51, %v4032_v30  ;;  %v4033_v29 = vmax.f32 %v7493_v2, %v3929_v58 }
 0x362   :  { %4189 = vst.msk [vmem:[%s7741_s3 + $0xc] sm:$0xf] %vm4185_vm1, %v4640_v3  ;;  %v4059_v1 = vadd.f32 %v7562_v51, %v4030_v49  ;;  %v4031_v39 = vmax.f32 %v7458_v17, %v3921_v4  ;;  %v7874_v49 = vld [vmem:[#allocation36_spill] sm:$0xff] }
 0x363   :  { %v4083_v46 = vmax.f32 %v4061_v34, 0.0  ;;  %v4062_v33 = vadd.f32 %v7562_v51, %v4033_v29 }
 0x364   :  { %v4081_v10 = vmax.f32 %v4059_v1, 0.0  ;;  %v4060_v13 = vadd.f32 %v7562_v51, %v4031_v39  ;;  %v4787_v48 = vpop.f32.mrb[252].mxu1 }
 0x365   :  { %v4645_v60 = vpack.c.bf16 %v4083_v46, %v4083_v46  ;;  %v4084_v42 = vmax.f32 %v4062_v33, 0.0  ;;  %v3572_v25 = vpop.f32.mrb[164].mxu0  ;;  %v3942_v2 = vadd.f32 %v4907_v55, %v4787_v48  ;;  %v3933_v8 = vpop.f32.mrb[253].mxu1 }
 0x366   :  { %v4643_v35 = vpack.c.bf16 %v4081_v10, %v4081_v10  ;;  %v4082_v21 = vmax.f32 %v4060_v13, 0.0  ;;  %v4911_v53 = vadd.f32 %v3572_v25, %v7872_v20  ;;  %v3574_v63 = vpop.f32.mrb[165].mxu0  ;;  %v3934_v24 = vadd.f32 %v7557_v47, %v3933_v8  ;;  %v4788_v17 = vpop.f32.mrb[254].mxu1  ;;  %v7875_v10 = vld [vmem:[#allocation37_spill] sm:$0xff] }
 0x367   :  { %4194 = vst.msk [vmem:[%s7741_s3 + $0x20] sm:$0xf] %vm4185_vm1, %v4645_v60  ;;  %v4646_v61 = vpack.c.bf16 %v4084_v42, %v4084_v42  ;;  %v4036_v37 = vmax.f32 %v7509_v26, %v3942_v2  ;;  %v3575_v57 = vpop.f32.mrb[166].mxu0  ;;  %v3945_v32 = vadd.f32 %v4908_v14, %v4788_v17  ;;  %v3936_v55 = vpop.f32.mrb[255].mxu1 }
 0x368   :  { %4192 = vst.msk [vmem:[%s7741_s3 + $0x18] sm:$0xf] %vm4185_vm1, %v4643_v35  ;;  %v4644_v9 = vpack.c.bf16 %v4082_v21, %v4082_v21  ;;  %v4034_v47 = vmax.f32 %v7473_v59, %v3934_v24  ;;  %v4912_v44 = vadd.f32 %v3575_v57, %v7873_v28  ;;  %v3577_v23 = vpop.f32.mrb[167].mxu0  ;;  %v3937_v7 = vadd.f32 %v7573_v19, %v3936_v55 }
 0x369   :  { %4195 = vst.msk [vmem:[%s7741_s3 + $0x24] sm:$0xf] %vm4185_vm1, %v4646_v61  ;;  %v4065_v26 = vadd.f32 %v7562_v51, %v4036_v37  ;;  %v4037_v14 = vmax.f32 %v7523_v11, %v3945_v32  ;;  %v7876_v61 = vld [vmem:[#allocation38_spill] sm:$0xff] }
 0x36a   :  { %4193 = vst.msk [vmem:[%s7741_s3 + $0x1c] sm:$0xf] %vm4185_vm1, %v4644_v9  ;;  %v4063_v59 = vadd.f32 %v7562_v51, %v4034_v47  ;;  %v4035_v40 = vmax.f32 %v7488_v45, %v3937_v7  ;;  %v7877_v7 = vld [vmem:[#allocation39_spill] sm:$0xff] }
 0x36b   :  { %v4087_v31 = vmax.f32 %v4065_v26, 0.0  ;;  %v4066_v19 = vadd.f32 %v7562_v51, %v4037_v14 }
 0x36c   :  { %v4085_v16 = vmax.f32 %v4063_v59, 0.0  ;;  %v4064_v15 = vadd.f32 %v7562_v51, %v4035_v40  ;;  %v4791_v56 = vpop.f32.mrb[0].mxu1 }
 0x36d   :  { %v4649_v41 = vpack.c.bf16 %v4087_v31, %v4087_v31  ;;  %v4088_v30 = vmax.f32 %v4066_v19, 0.0  ;;  %v3580_v12 = vpop.f32.mrb[168].mxu0  ;;  %v3958_v11 = vadd.f32 %v4911_v53, %v4791_v56  ;;  %v3949_v58 = vpop.f32.mrb[1].mxu1 }
 0x36e   :  { %v4647_v36 = vpack.c.bf16 %v4085_v16, %v4085_v16  ;;  %v4086_v3 = vmax.f32 %v4064_v15, 0.0  ;;  %v4913_v62 = vadd.f32 %v3580_v12, %v7874_v49  ;;  %v3582_v22 = vpop.f32.mrb[169].mxu0  ;;  %v3950_v4 = vadd.f32 %v7608_v43, %v3949_v58  ;;  %v4792_v45 = vpop.f32.mrb[2].mxu1 }
 0x36f   :  { %4198 = vst.msk [vmem:[%s7741_s3 + $0x30] sm:$0xf] %vm4185_vm1, %v4649_v41  ;;  %v4650_v34 = vpack.c.bf16 %v4088_v30, %v4088_v30  ;;  %v4040_v29 = vmax.f32 %v7539_v54, %v3958_v11  ;;  %v3583_v1 = vpop.f32.mrb[170].mxu0  ;;  %v3961_v39 = vadd.f32 %v4912_v44, %v4792_v45  ;;  %v3952_v46 = vpop.f32.mrb[3].mxu1 }
 0x370   :  { %4196 = vst.msk [vmem:[%s7741_s3 + $0x28] sm:$0xf] %vm4185_vm1, %v4647_v36  ;;  %v4648_v33 = vpack.c.bf16 %v4086_v3, %v4086_v3  ;;  %v4038_v43 = vmax.f32 %v7503_v52, %v3950_v4  ;;  %v4914_v13 = vadd.f32 %v3583_v1, %v7875_v10  ;;  %v3585_v48 = vpop.f32.mrb[171].mxu0  ;;  %v3953_v60 = vadd.f32 %v7623_v50, %v3952_v46 }
 0x371   :  { %4199 = vst.msk [vmem:[%s7741_s3 + $0x34] sm:$0xf] %vm4185_vm1, %v4650_v34  ;;  %v4069_v54 = vadd.f32 %v7562_v51, %v4040_v29  ;;  %v4041_v42 = vmax.f32 %v7553_v27, %v3961_v39 }
 0x372   :  { %4197 = vst.msk [vmem:[%s7741_s3 + $0x2c] sm:$0xf] %vm4185_vm1, %v4648_v33  ;;  %v4067_v52 = vadd.f32 %v7562_v51, %v4038_v43  ;;  %v4039_v25 = vmax.f32 %v7518_v0, %v3953_v60 }
 0x373   :  { %v4091_v2 = vmax.f32 %v4069_v54, 0.0  ;;  %v4070_v50 = vadd.f32 %v7562_v51, %v4041_v42 }
 0x374   :  { %v4089_v8 = vmax.f32 %v4067_v52, 0.0  ;;  %v4068_v35 = vadd.f32 %v7562_v51, %v4039_v25  ;;  %v4795_v21 = vpop.f32.mrb[4].mxu1 }
 0x375   :  { %v4653_v20 = vpack.c.bf16 %v4091_v2, %v4091_v2  ;;  %v4092_v53 = vmax.f32 %v4070_v50, 0.0  ;;  %v3588_v63 = vpop.f32.mrb[172].mxu0  ;;  %v3965_v27 = vpop.f32.mrb[5].mxu1 }
 0x376   :  { %v4651_v24 = vpack.c.bf16 %v4089_v8, %v4089_v8  ;;  %v4090_v17 = vmax.f32 %v4068_v35, 0.0  ;;  %v4915_v37 = vadd.f32 %v3588_v63, %v7876_v61  ;;  %v3590_v57 = vpop.f32.mrb[173].mxu0  ;;  %v3966_v32 = vadd.f32 %v4913_v62, %v3965_v27  ;;  %v4796_v55 = vpop.f32.mrb[6].mxu1 }
 0x377   :  { %4202 = vst.msk [vmem:[%s7741_s3 + $0x40] sm:$0xf] %vm4185_vm1, %v4653_v20  ;;  %v4654_v0 = vpack.c.bf16 %v4092_v53, %v4092_v53  ;;  %v3591_v9 = vpop.f32.mrb[174].mxu0  ;;  %v3968_v47 = vpop.f32.mrb[7].mxu1 }
 0x378   :  { %4200 = vst.msk [vmem:[%s7741_s3 + $0x38] sm:$0xf] %vm4185_vm1, %v4651_v24  ;;  %v4652_v28 = vpack.c.bf16 %v4090_v17, %v4090_v17  ;;  %v3974_v44 = vadd.f32 %v4915_v37, %v4795_v21  ;;  %v4042_v23 = vmax.f32 %v7533_v38, %v3966_v32  ;;  %v4916_v26 = vadd.f32 %v3591_v9, %v7877_v7  ;;  %v3593_v14 = vpop.f32.mrb[175].mxu0 }
 0x379   :  { %4203 = vst.msk [vmem:[%s7741_s3 + $0x44] sm:$0xf] %vm4185_vm1, %v4654_v0  ;;  %v3969_v59 = vadd.f32 %v4914_v13, %v3968_v47 }
 0x37a   :  { %4201 = vst.msk [vmem:[%s7741_s3 + $0x3c] sm:$0xf] %vm4185_vm1, %v4652_v28  ;;  %v4044_v40 = vmax.f32 %v7570_v6, %v3974_v44  ;;  %v4071_v31 = vadd.f32 %v7562_v51, %v4042_v23  ;;  %v3977_v19 = vadd.f32 %v4916_v26, %v4796_v55 }
 0x37b   :  { %v4043_v38 = vmax.f32 %v7548_v5, %v3969_v59 }
 0x37c   :  { %v4073_v16 = vadd.f32 %v7562_v51, %v4044_v40  ;;  %v4093_v15 = vmax.f32 %v4071_v31, 0.0  ;;  %v4045_v56 = vmax.f32 %v7581_v18, %v3977_v19 }
 0x37d   :  { %v4072_v41 = vadd.f32 %v7562_v51, %v4043_v38 }
 0x37e   :  { %v4095_v30 = vmax.f32 %v4073_v16, 0.0  ;;  %v4655_v12 = vpack.c.bf16 %v4093_v15, %v4093_v15  ;;  %v4074_v11 = vadd.f32 %v7562_v51, %v4045_v56 }
 0x37f   :  { %v4094_v58 = vmax.f32 %v4072_v41, 0.0 }
 0x380   :  { %v4657_v36 = vpack.c.bf16 %v4095_v30, %v4095_v30  ;;  %4204 = vst.msk [vmem:[%s7741_s3 + $0x48] sm:$0xf] %vm4185_vm1, %v4655_v12  ;;  %v4096_v6 = vmax.f32 %v4074_v11, 0.0 }
 0x381   :  { %v4656_v5 = vpack.c.bf16 %v4094_v58, %v4094_v58 }
 0x382   :  { %4206 = vst.msk [vmem:[%s7741_s3 + $0x50] sm:$0xf] %vm4185_vm1, %v4657_v36  ;;  %v4658_v18 = vpack.c.bf16 %v4096_v6, %v4096_v6 }
 0x383   :  { %4205 = vst.msk [vmem:[%s7741_s3 + $0x4c] sm:$0xf] %vm4185_vm1, %v4656_v5 }
 0x384   :  { %4207 = vst.msk [vmem:[%s7741_s3 + $0x54] sm:$0xf] %vm4185_vm1, %v4658_v18 }

// kernel: net_forward.5
= control target key start
LH: loop header
LB: loop body
LE: loop exit
PB: predicated region body
PF: predicated region fallthrough
CT: control target
= control target key end

     0   :  { %vm986_vm0 = vcmask 523264   ;;  %s4814_s0 = inlined_call_operand.vmem [shape: bf16[32,1600], index: 0, kind: input, shape index: {}]   ;;  %s4815_s1 = inlined_call_operand.vmem [shape: bf16[1600,128], index: 1, kind: input, shape index: {}]   ;;  %s4816_s2 = inlined_call_operand.vmem [shape: f32[1,128], index: 2, kind: input, shape index: {}]   ;;  %s4817_s3 = inlined_call_operand.vmem [shape: bf16[4,128,512], index: 3, kind: input, shape index: {}]   ;;  %s4818_s4 = inlined_call_operand.vmem [shape: f32[1,512], index: 4, kind: input, shape index: {}]   ;;  %s4819_s5 = inlined_call_operand.vmem [shape: bf16[512,2], index: 5, kind: input, shape index: {}]   ;;  %s4820_s6 = inlined_call_operand.vmem [shape: f32[1,2], index: 6, kind: input, shape index: {}]   ;;  %s4821_s7 = inlined_call_operand.hbm [shape: f32[2,2], index: 7, kind: output, shape index: {}]  }
   0x1   :  { %v3485_v0 = vld [vmem:[%s4815_s1 + $0x40] sm:$0xff]   ;;  %v3489_v4 = vld [vmem:[%s4815_s1 + $0x48] sm:$0xff]   ;;  %v3493_v8 = vld [vmem:[%s4815_s1 + $0x50] sm:$0xff]  }
   0x2   :  { %v3486_v1 = vld [vmem:[%s4815_s1 + $0xc0] sm:$0xff]   ;;  %3253 = vmatprep.subr.bf16.mxu0 %v3485_v0  ;;  %v3490_v5 = vld [vmem:[%s4815_s1 + $0xc8] sm:$0xff]   ;;  %v3494_v9 = vld [vmem:[%s4815_s1 + $0xd0] sm:$0xff]  }
   0x3   :  { %v3487_v2 = vld [vmem:[%s4815_s1] sm:$0xff]   ;;  %3281 = vmatprep.subr.bf16.mxu1 %v3486_v1  ;;  %v3491_v6 = vld [vmem:[%s4815_s1 + $0x8] sm:$0xff]   ;;  %v3495_v10 = vld [vmem:[%s4815_s1 + $0x10] sm:$0xff]  }
   0x4   :  { %v3488_v3 = vld [vmem:[%s4815_s1 + $0x80] sm:$0xff]   ;;  %3254 = vmatpush3.bf16.msra.mxu0 %v3487_v2  ;;  %v3492_v7 = vld [vmem:[%s4815_s1 + $0x88] sm:$0xff]   ;;  %v3496_v11 = vld [vmem:[%s4815_s1 + $0x90] sm:$0xff]  }
   0x5   :  { %3282 = vmatpush3.bf16.msra.mxu1 %v3488_v3  ;;  %3255 = vmatprep.subr.bf16.mxu0 %v3489_v4  ;;  %v3497_v12 = vld [vmem:[%s4815_s1 + $0x58] sm:$0xff]   ;;  %v3501_v16 = vld [vmem:[%s4815_s1 + $0x60] sm:$0xff]   ;;  %v3505_v20 = vld [vmem:[%s4815_s1 + $0x68] sm:$0xff]  }
   0x6   :  { %3283 = vmatprep.subr.bf16.mxu1 %v3490_v5  ;;  %v3498_v13 = vld [vmem:[%s4815_s1 + $0xd8] sm:$0xff]   ;;  %v3502_v17 = vld [vmem:[%s4815_s1 + $0xe0] sm:$0xff]   ;;  %v3506_v21 = vld [vmem:[%s4815_s1 + $0xe8] sm:$0xff]  }
   0x7   :  { %v3499_v14 = vld [vmem:[%s4815_s1 + $0x18] sm:$0xff]   ;;  %v3503_v18 = vld [vmem:[%s4815_s1 + $0x20] sm:$0xff]   ;;  %v3507_v22 = vld [vmem:[%s4815_s1 + $0x28] sm:$0xff]  }
   0x8   :  { %3256 = vmatpush3.bf16.msra.mxu0 %v3491_v6  ;;  %v3500_v15 = vld [vmem:[%s4815_s1 + $0x98] sm:$0xff]   ;;  %v3504_v19 = vld [vmem:[%s4815_s1 + $0xa0] sm:$0xff]   ;;  %v3508_v23 = vld [vmem:[%s4815_s1 + $0xa8] sm:$0xff]  }
   0x9   :  { %3284 = vmatpush3.bf16.msra.mxu1 %v3492_v7  ;;  %3257 = vmatprep.subr.bf16.mxu0 %v3493_v8  ;;  %v3509_v24 = vld [vmem:[%s4815_s1 + $0x70] sm:$0xff]   ;;  %v3513_v28 = vld [vmem:[%s4815_s1 + $0x78] sm:$0xff]   ;;  %v3522_v35 = vld [vmem:[%s4814_s0 + $0xc] ss:$52 sps:$4 sm:$0xff]  }
   0xa   :  { %3285 = vmatprep.subr.bf16.mxu1 %v3494_v9  ;;  %v3510_v25 = vld [vmem:[%s4815_s1 + $0xf0] sm:$0xff]   ;;  %v3514_v29 = vld [vmem:[%s4815_s1 + $0xf8] sm:$0xff]   ;;  %v3523_v36 = vld [vmem:[%s4815_s1 + $0x140] sm:$0xff]   ;;  %1074 = vmatprep.mubr.bf16.mxu1 %v3522_v35 }
   0xb   :  { %v3511_v26 = vld [vmem:[%s4815_s1 + $0x30] sm:$0xff]   ;;  %v3515_v30 = vld [vmem:[%s4815_s1 + $0x38] sm:$0xff]   ;;  %v3524_v37 = vld [vmem:[%s4815_s1 + $0x100] sm:$0xff]  }
   0xc   :  { %3258 = vmatpush3.bf16.msra.mxu0 %v3495_v10  ;;  %v3512_v27 = vld [vmem:[%s4815_s1 + $0xb0] sm:$0xff]   ;;  %v3516_v31 = vld [vmem:[%s4815_s1 + $0xb8] sm:$0xff]   ;;  %v3525_v38 = vld [vmem:[%s4815_s1 + $0x1c0] sm:$0xff]  }
   0xd   :  { %3286 = vmatpush3.bf16.msra.mxu1 %v3496_v11  ;;  %3259 = vmatprep.subr.bf16.mxu0 %v3497_v12  ;;  %v3517_v32 = vld [vmem:[%s4814_s0] ss:$52 sps:$4 sm:$0xff]   ;;  %v3519_v33 = vld [vmem:[%s4814_s0 + $0x4] ss:$52 sps:$4 sm:$0xff]   ;;  %v3520_v34 = vld [vmem:[%s4814_s0 + $0x8] ss:$52 sps:$4 sm:$0xff]  }
   0xe   :  { %3287 = vmatprep.subr.bf16.mxu1 %v3498_v13  ;;  %1025 = vmatprep.mubr.bf16.mxu0 %v3519_v33  ;;  %v3526_v39 = vld [vmem:[%s4815_s1 + $0x180] sm:$0xff]   ;;  %v3527_v40 = vld [vmem:[%s4815_s1 + $0x148] sm:$0xff]   ;;  %v3531_v44 = vld [vmem:[%s4815_s1 + $0x150] sm:$0xff]  }
   0xf   :  { %v3528_v41 = vld [vmem:[%s4815_s1 + $0x108] sm:$0xff]   ;;  %v3532_v45 = vld [vmem:[%s4815_s1 + $0x110] sm:$0xff]   ;;  %v3535_v48 = vld [vmem:[%s4815_s1 + $0x158] sm:$0xff]  }
  0x10   :  { %3260 = vmatpush3.bf16.msra.mxu0 %v3499_v14  ;;  %v3529_v42 = vld [vmem:[%s4815_s1 + $0x1c8] sm:$0xff]   ;;  %v3533_v46 = vld [vmem:[%s4815_s1 + $0x1d0] sm:$0xff]   ;;  %v3536_v49 = vld [vmem:[%s4815_s1 + $0x118] sm:$0xff]  }
  0x11   :  { %3288 = vmatpush3.bf16.msra.mxu1 %v3500_v15  ;;  %3261 = vmatprep.subr.bf16.mxu0 %v3501_v16  ;;  %v3530_v43 = vld [vmem:[%s4815_s1 + $0x188] sm:$0xff]   ;;  %v3534_v47 = vld [vmem:[%s4815_s1 + $0x190] sm:$0xff]   ;;  %v3537_v50 = vld [vmem:[%s4815_s1 + $0x1d8] sm:$0xff]  }
  0x12   :  { %3289 = vmatprep.subr.bf16.mxu1 %v3502_v17  ;;  %v3538_v51 = vld [vmem:[%s4815_s1 + $0x198] sm:$0xff]   ;;  %v3539_v52 = vld [vmem:[%s4815_s1 + $0x160] sm:$0xff]   ;;  %v3543_v56 = vld [vmem:[%s4815_s1 + $0x168] sm:$0xff]  }
  0x13   :  { %v3540_v53 = vld [vmem:[%s4815_s1 + $0x120] sm:$0xff]   ;;  %v3546_v58 = vld [vmem:[%s4814_s0 + $0x74] ss:$52 sps:$4 sm:$0xff]   ;;  %v3557_v4 = vld [vmem:[%s4815_s1 + $0x178] sm:$0xff]  }
  0x14   :  { %3262 = vmatpush3.bf16.msra.mxu0 %v3503_v18  ;;  %v3541_v54 = vld [vmem:[%s4815_s1 + $0x1e0] sm:$0xff]   ;;  %v3548_v59 = vld [vmem:[%s4815_s1 + $0x128] sm:$0xff]   ;;  %v3553_v0 = vld [vmem:[%s4815_s1 + $0x170] sm:$0xff]  }
  0x15   :  { %3290 = vmatpush3.bf16.msra.mxu1 %v3504_v19  ;;  %3263 = vmatprep.subr.bf16.mxu0 %v3505_v20  ;;  %v3542_v55 = vld [vmem:[%s4815_s1 + $0x1a0] sm:$0xff]   ;;  %v3549_v60 = vld [vmem:[%s4814_s0 + $0x68] ss:$52 sps:$4 sm:$0xff]   ;;  %v3554_v1 = vld [vmem:[%s4815_s1 + $0x130] sm:$0xff]  }
  0x16   :  { %3291 = vmatprep.subr.bf16.mxu1 %v3506_v21  ;;  %v3544_v57 = vld [vmem:[%s4814_s0 + $0x6c] ss:$52 sps:$4 sm:$0xff]   ;;  %v3550_v61 = vld [vmem:[%s4814_s0 + $0x70] ss:$52 sps:$4 sm:$0xff]   ;;  %v3558_v5 = vld [vmem:[%s4815_s1 + $0x138] sm:$0xff]  }
  0x17   :  { %v3551_v62 = vld [vmem:[%s4815_s1 + $0x1e8] sm:$0xff]   ;;  %v3555_v2 = vld [vmem:[%s4815_s1 + $0x1f0] sm:$0xff]   ;;  %v3559_v6 = vld [vmem:[%s4815_s1 + $0x1f8] sm:$0xff]  }
  0x18   :  { %3264 = vmatpush3.bf16.msra.mxu0 %v3507_v22  ;;  %v3552_v63 = vld [vmem:[%s4815_s1 + $0x1a8] sm:$0xff]   ;;  %v3556_v3 = vld [vmem:[%s4815_s1 + $0x1b0] sm:$0xff]   ;;  %v3563_v9 = vld [vmem:[%s4815_s1 + $0x1b8] sm:$0xff]  }
  0x19   :  { %3292 = vmatpush3.bf16.msra.mxu1 %v3508_v23  ;;  %3265 = vmatprep.subr.bf16.mxu0 %v3509_v24  ;;  %v3560_v7 = vld [vmem:[%s4814_s0 + $0x10] ss:$52 sps:$4 sm:$0xff]   ;;  %v3562_v8 = vld [vmem:[%s4814_s0 + $0x14] ss:$52 sps:$4 sm:$0xff]   ;;  %v3565_v11 = vld [vmem:[%s4814_s0 + $0x18] ss:$52 sps:$4 sm:$0xff]  }
  0x1a   :  { %3293 = vmatprep.subr.bf16.mxu1 %v3510_v25  ;;  %v3564_v10 = vld [vmem:[%s4815_s1 + $0x240] sm:$0xff]   ;;  %v3567_v12 = vld [vmem:[%s4814_s0 + $0x1c] ss:$52 sps:$4 sm:$0xff]   ;;  %v3571_v16 = vld [vmem:[%s4815_s1 + $0x248] sm:$0xff]  }
  0x1b   :  { %v3568_v13 = vld [vmem:[%s4815_s1 + $0x200] sm:$0xff]   ;;  %v3572_v17 = vld [vmem:[%s4815_s1 + $0x208] sm:$0xff]   ;;  %v3574_v19 = vld [vmem:[%s4814_s0 + $0x7c] ss:$52 sps:$4 sm:$0xff]  }
  0x1c   :  { %3266 = vmatpush3.bf16.msra.mxu0 %v3511_v26  ;;  %v3569_v14 = vld [vmem:[%s4815_s1 + $0x2c0] sm:$0xff]   ;;  %v3573_v18 = vld [vmem:[%s4815_s1 + $0x2c8] sm:$0xff]   ;;  %v3578_v22 = vld [vmem:[%s4815_s1 + $0x250] sm:$0xff]  }
  0x1d   :  { %3294 = vmatpush3.bf16.msra.mxu1 %v3512_v27  ;;  %3267 = vmatprep.subr.bf16.mxu0 %v3513_v28  ;;  %v3570_v15 = vld [vmem:[%s4815_s1 + $0x280] sm:$0xff]   ;;  %v3576_v20 = vld [vmem:[%s4815_s1 + $0x288] sm:$0xff]   ;;  %v3581_v24 = vld [vmem:[%s4815_s1 + $0x210] sm:$0xff]  }
  0x1e   :  { %3295 = vmatprep.subr.bf16.mxu1 %v3514_v29  ;;  %v3577_v21 = vld [vmem:[%s4814_s0 + $0x78] ss:$52 sps:$4 sm:$0xff]   ;;  %v3582_v25 = vld [vmem:[%s4814_s0 + $0x80] ss:$52 sps:$4 sm:$0xff]  }
  0x1f   :  { %v3579_v23 = vld [vmem:[%s4814_s0 + $0x84] ss:$52 sps:$4 sm:$0xff]   ;;  %v3583_v26 = vld [vmem:[%s4815_s1 + $0x2d0] sm:$0xff]  }
  0x20   :  { %3268 = vmatpush3.bf16.msra.mxu0 %v3515_v30  ;;  %v3584_v27 = vld [vmem:[%s4815_s1 + $0x290] sm:$0xff]   ;;  %v3585_v28 = vld [vmem:[%s4815_s1 + $0x258] sm:$0xff]   ;;  %v3590_v33 = vld [vmem:[%s4815_s1 + $0x220] sm:$0xff]  }
  0x21   :  { %3296 = vmatpush3.bf16.msra.mxu1 %v3516_v31  ;;  %3309 = vmatprep.subr.bf16.mxu0 %v3523_v36  ;;  %v3586_v29 = vld [vmem:[%s4815_s1 + $0x218] sm:$0xff]   ;;  %v3592_v35 = vld [vmem:[%s4815_s1 + $0x2a0] sm:$0xff]   ;;  %v3593_v36 = vld [vmem:[%s4815_s1 + $0x268] sm:$0xff]  }
  0x22   :  { %3337 = vmatprep.subr.bf16.mxu1 %v3525_v38  ;;  %v3587_v30 = vld [vmem:[%s4815_s1 + $0x2d8] sm:$0xff]   ;;  %v3595_v38 = vld [vmem:[%s4815_s1 + $0x2e8] sm:$0xff]  }
  0x23   :  { %1026 = vmatmul.mubr.bf16.vlgmr.msra.gmra.mrb[0].mxu0 %v3517_v32  ;;  %v3588_v31 = vld [vmem:[%s4815_s1 + $0x298] sm:$0xff]   ;;  %v3589_v32 = vld [vmem:[%s4815_s1 + $0x260] sm:$0xff]  }
  0x24   :  { %1075 = vmatmul.mubr.bf16.vlgmr.msra.gmra.mrb[0].mxu1 %v3520_v34  ;;  %3310 = vmatpush3.bf16.msra.mxu0 %v3524_v37  ;;  %v3591_v34 = vld [vmem:[%s4815_s1 + $0x2e0] sm:$0xff]   ;;  %v3594_v37 = vld [vmem:[%s4815_s1 + $0x228] sm:$0xff]  }
  0x25   :  { %3338 = vmatpush3.bf16.msra.mxu1 %v3526_v39  ;;  %3311 = vmatprep.subr.bf16.mxu0 %v3527_v40  ;;  %v3596_v39 = vld [vmem:[%s4815_s1 + $0x2a8] sm:$0xff]   ;;  %v3597_v40 = vld [vmem:[%s4815_s1 + $0x270] sm:$0xff]  }
  0x26   :  { %3339 = vmatprep.subr.bf16.mxu1 %v3529_v42  ;;  %1033 = vmatprep.mubr.bf16.mxu0 %v3544_v57  ;;  %v3599_v42 = vld [vmem:[%s4815_s1 + $0x2f0] sm:$0xff]  }
  0x27   :  { %1082 = vmatprep.mubr.bf16.mxu1 %v3546_v58  ;;  %v3617_v57 = vld [vmem:[%s4814_s0 + $0x94] ss:$52 sps:$4 sm:$0xff]   ;;  %v3620_v58 = vld [vmem:[%s4815_s1 + $0x318] sm:$0xff]  }
  0x28   :  { %3312 = vmatpush3.bf16.msra.mxu0 %v3528_v41  ;;  %v3598_v41 = vld [vmem:[%s4815_s1 + $0x230] sm:$0xff]  }
  0x29   :  { %3340 = vmatpush3.bf16.msra.mxu1 %v3530_v43  ;;  %3313 = vmatprep.subr.bf16.mxu0 %v3531_v44  ;;  %v3600_v43 = vld [vmem:[%s4815_s1 + $0x2b0] sm:$0xff]   ;;  %v3601_v44 = vld [vmem:[%s4815_s1 + $0x278] sm:$0xff]  }
  0x2a   :  { %3341 = vmatprep.subr.bf16.mxu1 %v3533_v46  ;;  %v3603_v46 = vld [vmem:[%s4815_s1 + $0x2f8] sm:$0xff]  }
  0x2b   :  { %1034 = vmatmul.mubr.bf16.gmra.mrb[4].mxu0 %v3549_v60  ;;  %v3619_v60 = vld [vmem:[%s4814_s0 + $0x90] ss:$52 sps:$4 sm:$0xff]  }
  0x2c   :  { %3314 = vmatpush3.bf16.msra.mxu0 %v3532_v45  ;;  %1083 = vmatmul.mubr.bf16.gmra.mrb[4].mxu1 %v3550_v61  ;;  %v3602_v45 = vld [vmem:[%s4815_s1 + $0x238] sm:$0xff]  }
  0x2d   :  { %3342 = vmatpush3.bf16.msra.mxu1 %v3534_v47  ;;  %3315 = vmatprep.subr.bf16.mxu0 %v3535_v48  ;;  %v3604_v47 = vld [vmem:[%s4814_s0 + $0x20] ss:$52 sps:$4 sm:$0xff]   ;;  %v3606_v48 = vld [vmem:[%s4814_s0 + $0x24] ss:$52 sps:$4 sm:$0xff]  }
  0x2e   :  { %3343 = vmatprep.subr.bf16.mxu1 %v3537_v50  ;;  %1123 = vmatprep.mubr.bf16.mxu0 %v3562_v8  ;;  %v3608_v50 = vld [vmem:[%s4815_s1 + $0x300] sm:$0xff]   ;;  %v3622_v61 = vld [vmem:[%s4814_s0 + $0x98] ss:$52 sps:$4 sm:$0xff]  }
  0x2f   :  { %1172 = vmatprep.mubr.bf16.mxu1 %v3567_v12 }
  0x30   :  { %3316 = vmatpush3.bf16.msra.mxu0 %v3536_v49  ;;  %v3607_v49 = vld [vmem:[%s4815_s1 + $0x2b8] sm:$0xff]  }
  0x31   :  { %3344 = vmatpush3.bf16.msra.mxu1 %v3538_v51  ;;  %3317 = vmatprep.subr.bf16.mxu0 %v3539_v52  ;;  %v3609_v51 = vld [vmem:[%s4814_s0 + $0x28] ss:$52 sps:$4 sm:$0xff]   ;;  %v3611_v52 = vld [vmem:[%s4814_s0 + $0x2c] ss:$52 sps:$4 sm:$0xff]  }
  0x32   :  { %3345 = vmatprep.subr.bf16.mxu1 %v3541_v54  ;;  %v3613_v54 = vld [vmem:[%s4814_s0 + $0x8c] ss:$52 sps:$4 sm:$0xff]  }
  0x34   :  { %3318 = vmatpush3.bf16.msra.mxu0 %v3540_v53  ;;  %v3612_v53 = vld [vmem:[%s4815_s1 + $0x308] sm:$0xff]  }
  0x35   :  { %3346 = vmatpush3.bf16.msra.mxu1 %v3542_v55  ;;  %3319 = vmatprep.subr.bf16.mxu0 %v3543_v56  ;;  %v3615_v55 = vld [vmem:[%s4814_s0 + $0x88] ss:$52 sps:$4 sm:$0xff]   ;;  %v3616_v56 = vld [vmem:[%s4815_s1 + $0x310] sm:$0xff]  }
  0x36   :  { %3347 = vmatprep.subr.bf16.mxu1 %v3551_v62 }
  0x38   :  { %3320 = vmatpush3.bf16.msra.mxu0 %v3548_v59  ;;  %v3621_v59 = vld [vmem:[%s4814_s0 + $0x30] ss:$52 sps:$4 sm:$0xff]  }
  0x39   :  { %3348 = vmatpush3.bf16.msra.mxu1 %v3552_v63  ;;  %3321 = vmatprep.subr.bf16.mxu0 %v3553_v0 }
  0x3a   :  { %3349 = vmatprep.subr.bf16.mxu1 %v3555_v2 }
  0x3c   :  { %3322 = vmatpush3.bf16.msra.mxu0 %v3554_v1 }
  0x3d   :  { %3350 = vmatpush3.bf16.msra.mxu1 %v3556_v3  ;;  %3323 = vmatprep.subr.bf16.mxu0 %v3557_v4 }
  0x3e   :  { %3351 = vmatprep.subr.bf16.mxu1 %v3559_v6 }
  0x40   :  { %3324 = vmatpush3.bf16.msra.mxu0 %v3558_v5 }
  0x41   :  { %3352 = vmatpush3.bf16.msra.mxu1 %v3563_v9  ;;  %3365 = vmatprep.subr.bf16.mxu0 %v3564_v10 }
  0x42   :  { %3393 = vmatprep.subr.bf16.mxu1 %v3569_v14 }
  0x43   :  { %1124 = vmatmul.mubr.bf16.vlgmr.msra.gmra.mrb[8].mxu0 %v3560_v7 }
  0x44   :  { %3366 = vmatpush3.bf16.msra.mxu0 %v3568_v13  ;;  %1173 = vmatmul.mubr.bf16.vlgmr.msra.gmra.mrb[8].mxu1 %v3565_v11 }
  0x45   :  { %3394 = vmatpush3.bf16.msra.mxu1 %v3570_v15  ;;  %3367 = vmatprep.subr.bf16.mxu0 %v3571_v16 }
  0x46   :  { %3395 = vmatprep.subr.bf16.mxu1 %v3573_v18  ;;  %1131 = vmatprep.mubr.bf16.mxu0 %v3574_v19 }
  0x47   :  { %1180 = vmatprep.mubr.bf16.mxu1 %v3579_v23 }
  0x48   :  { %3368 = vmatpush3.bf16.msra.mxu0 %v3572_v17 }
  0x49   :  { %3396 = vmatpush3.bf16.msra.mxu1 %v3576_v20  ;;  %3369 = vmatprep.subr.bf16.mxu0 %v3578_v22 }
  0x4a   :  { %3397 = vmatprep.subr.bf16.mxu1 %v3583_v26 }
  0x4b   :  { %1132 = vmatmul.mubr.bf16.gmra.mrb[12].mxu0 %v3577_v21 }
  0x4c   :  { %3370 = vmatpush3.bf16.msra.mxu0 %v3581_v24  ;;  %1181 = vmatmul.mubr.bf16.gmra.mrb[12].mxu1 %v3582_v25 }
  0x4d   :  { %3398 = vmatpush3.bf16.msra.mxu1 %v3584_v27  ;;  %3371 = vmatprep.subr.bf16.mxu0 %v3585_v28 }
  0x4e   :  { %3399 = vmatprep.subr.bf16.mxu1 %v3587_v30  ;;  %1221 = vmatprep.mubr.bf16.mxu0 %v3606_v48 }
  0x4f   :  { %1270 = vmatprep.mubr.bf16.mxu1 %v3611_v52 }
  0x50   :  { %3372 = vmatpush3.bf16.msra.mxu0 %v3586_v29 }
  0x51   :  { %3400 = vmatpush3.bf16.msra.mxu1 %v3588_v31  ;;  %3373 = vmatprep.subr.bf16.mxu0 %v3589_v32 }
  0x52   :  { %3401 = vmatprep.subr.bf16.mxu1 %v3591_v34 }
  0x54   :  { %3374 = vmatpush3.bf16.msra.mxu0 %v3590_v33 }
  0x55   :  { %3402 = vmatpush3.bf16.msra.mxu1 %v3592_v35  ;;  %3375 = vmatprep.subr.bf16.mxu0 %v3593_v36 }
  0x56   :  { %3403 = vmatprep.subr.bf16.mxu1 %v3595_v38 }
  0x58   :  { %3376 = vmatpush3.bf16.msra.mxu0 %v3594_v37 }
  0x59   :  { %3404 = vmatpush3.bf16.msra.mxu1 %v3596_v39  ;;  %3377 = vmatprep.subr.bf16.mxu0 %v3597_v40 }
  0x5a   :  { %3405 = vmatprep.subr.bf16.mxu1 %v3599_v42 }
  0x5c   :  { %3378 = vmatpush3.bf16.msra.mxu0 %v3598_v41 }
  0x5d   :  { %3406 = vmatpush3.bf16.msra.mxu1 %v3600_v43  ;;  %3379 = vmatprep.subr.bf16.mxu0 %v3601_v44 }
  0x5e   :  { %3407 = vmatprep.subr.bf16.mxu1 %v3603_v46 }
  0x60   :  { %3380 = vmatpush3.bf16.msra.mxu0 %v3602_v45 }
  0x61   :  { %3408 = vmatpush3.bf16.msra.mxu1 %v3607_v49  ;;  %3471 = vmatprep.subr.bf16.mxu0 %v3608_v50 }
  0x63   :  { %1222 = vmatmul.mubr.bf16.vlgmr.msra.gmra.mrb[16].mxu0 %v3604_v47 }
  0x64   :  { %3472 = vmatpush3.bf16.msra.mxu0 %v3608_v50  ;;  %1271 = vmatmul.mubr.bf16.vlgmr.msra.gmra.mrb[16].mxu1 %v3609_v51 }
  0x65   :  { %3473 = vmatprep.subr.bf16.mxu0 %v3612_v53  ;;  %1229 = vmatprep.mubr.bf16.mxu0 %v3613_v54 }
  0x66   :  { %1278 = vmatprep.mubr.bf16.mxu1 %v3617_v57 }
  0x68   :  { %3474 = vmatpush3.bf16.msra.mxu0 %v3612_v53 }
  0x69   :  { %3475 = vmatprep.subr.bf16.mxu0 %v3616_v56 }
  0x6b   :  { %1230 = vmatmul.mubr.bf16.gmra.mrb[20].mxu0 %v3615_v55 }
  0x6c   :  { %3479 = vmatprep.mubr.msk.bf16.mxu0 %vm986_vm0, %v3621_v59  ;;  %3476 = vmatpush3.bf16.msra.mxu0 %v3616_v56 }
  0x6d   :  { %3477 = vmatprep.subr.bf16.mxu0 %v3620_v58  ;;  %1279 = vmatmul.mubr.bf16.gmra.mrb[20].mxu1 %v3619_v60 }
  0x70   :  { %3478 = vmatpush3.bf16.msra.mxu0 %v3620_v58 }
  0x73   :  { %3480 = vmatmul.mubr.msk.bf16.vlgmr.msra.gmra.mrb[24].mxu0 %vm986_vm0, %v3622_v61 }
  0x74   :  { %12 = vsyncpa [#allocation3], 0  ;;  %v3625_v62 = vld [vmem:[%s4817_s3 + $0x104] ss:$16 sps:$4 sm:$0xff]   ;;  %v3628_v63 = vld [vmem:[%s4817_s3 + $0x10c] ss:$16 sps:$4 sm:$0xff]  }
  0x75   :  { %v3623_v0 = vld [vmem:[%s4817_s3 + $0x100] ss:$16 sps:$4 sm:$0xff]   ;;  %v3626_v1 = vld [vmem:[%s4817_s3 + $0x108] ss:$16 sps:$4 sm:$0xff]   ;;  %1577 = vmatprep.subr.bf16.mxu1 %v3625_v62  ;;  %1618 = vmatprep.subr.bf16.mxu0 %v3628_v63  ;;  %v3631_v2 = vld [vmem:[%s4817_s3 + $0x124] ss:$16 sps:$4 sm:$0xff]  }
  0x76   :  { %1578 = vmatpush1.bf16.msra.mxu1 %v3623_v0  ;;  %1619 = vmatpush1.bf16.msra.mxu0 %v3626_v1  ;;  %v3634_v3 = vld [vmem:[%s4817_s3 + $0x12c] ss:$16 sps:$4 sm:$0xff]   ;;  %v3629_v4 = vld [vmem:[%s4817_s3 + $0x120] ss:$16 sps:$4 sm:$0xff]   ;;  %v3632_v5 = vld [vmem:[%s4817_s3 + $0x128] ss:$16 sps:$4 sm:$0xff]  }
  0x77   :  { %1579 = vmatprep.subr.bf16.mxu1 %v3631_v2  ;;  %1620 = vmatprep.subr.bf16.mxu0 %v3634_v3  ;;  %v3637_v6 = vld [vmem:[%s4817_s3 + $0x144] ss:$16 sps:$4 sm:$0xff]   ;;  %v3640_v7 = vld [vmem:[%s4817_s3 + $0x14c] ss:$16 sps:$4 sm:$0xff]   ;;  %v3635_v8 = vld [vmem:[%s4817_s3 + $0x140] ss:$16 sps:$4 sm:$0xff]  }
  0x78   :  { %v3638_v9 = vld [vmem:[%s4817_s3 + $0x148] ss:$16 sps:$4 sm:$0xff]   ;;  %v3643_v10 = vld [vmem:[%s4817_s3 + $0x164] ss:$16 sps:$4 sm:$0xff]   ;;  %v3646_v11 = vld [vmem:[%s4817_s3 + $0x16c] ss:$16 sps:$4 sm:$0xff]  }
  0x79   :  { %v3641_v12 = vld [vmem:[%s4817_s3 + $0x160] ss:$16 sps:$4 sm:$0xff]   ;;  %v3644_v13 = vld [vmem:[%s4817_s3 + $0x168] ss:$16 sps:$4 sm:$0xff]   ;;  %v3649_v14 = vld [vmem:[%s4817_s3 + $0x184] ss:$16 sps:$4 sm:$0xff]  }
  0x7a   :  { %1580 = vmatpush1.bf16.msra.mxu1 %v3629_v4  ;;  %1621 = vmatpush1.bf16.msra.mxu0 %v3632_v5  ;;  %v3652_v15 = vld [vmem:[%s4817_s3 + $0x18c] ss:$16 sps:$4 sm:$0xff]   ;;  %v3647_v16 = vld [vmem:[%s4817_s3 + $0x180] ss:$16 sps:$4 sm:$0xff]   ;;  %v3650_v17 = vld [vmem:[%s4817_s3 + $0x188] ss:$16 sps:$4 sm:$0xff]  }
  0x7b   :  { %1581 = vmatprep.subr.bf16.mxu1 %v3637_v6  ;;  %1622 = vmatprep.subr.bf16.mxu0 %v3640_v7  ;;  %v3655_v18 = vld [vmem:[%s4817_s3 + $0x1a4] ss:$16 sps:$4 sm:$0xff]   ;;  %v3658_v19 = vld [vmem:[%s4817_s3 + $0x1ac] ss:$16 sps:$4 sm:$0xff]   ;;  %v3653_v20 = vld [vmem:[%s4817_s3 + $0x1a0] ss:$16 sps:$4 sm:$0xff]  }
  0x7c   :  { %v3656_v21 = vld [vmem:[%s4817_s3 + $0x1a8] ss:$16 sps:$4 sm:$0xff]   ;;  %v3661_v22 = vld [vmem:[%s4817_s3 + $0x1c4] ss:$16 sps:$4 sm:$0xff]   ;;  %v3664_v23 = vld [vmem:[%s4817_s3 + $0x1cc] ss:$16 sps:$4 sm:$0xff]  }
  0x7d   :  { %v3659_v24 = vld [vmem:[%s4817_s3 + $0x1c0] ss:$16 sps:$4 sm:$0xff]   ;;  %v3662_v25 = vld [vmem:[%s4817_s3 + $0x1c8] ss:$16 sps:$4 sm:$0xff]   ;;  %v3667_v26 = vld [vmem:[%s4817_s3 + $0x1e4] ss:$16 sps:$4 sm:$0xff]  }
  0x7e   :  { %1582 = vmatpush1.bf16.msra.mxu1 %v3635_v8  ;;  %1623 = vmatpush1.bf16.msra.mxu0 %v3638_v9  ;;  %v3670_v27 = vld [vmem:[%s4817_s3 + $0x1ec] ss:$16 sps:$4 sm:$0xff]   ;;  %v3665_v28 = vld [vmem:[%s4817_s3 + $0x1e0] ss:$16 sps:$4 sm:$0xff]   ;;  %v3668_v29 = vld [vmem:[%s4817_s3 + $0x1e8] ss:$16 sps:$4 sm:$0xff]  }
  0x7f   :  { %1583 = vmatprep.subr.bf16.mxu1 %v3643_v10  ;;  %1624 = vmatprep.subr.bf16.mxu0 %v3646_v11  ;;  %v3673_v30 = vld [vmem:[%s4817_s3 + $0x4] ss:$16 sps:$4 sm:$0xff]   ;;  %v3676_v31 = vld [vmem:[%s4817_s3 + $0xc] ss:$16 sps:$4 sm:$0xff]   ;;  %v3875_v32 = vmov 0   ;;  %vm2840_vm1 = vcmask 9216  }
  0x80   :  { %1609 = vmatprep.mubr.bf16.mxu1 %v3875_v32  ;;  %1650 = vmatprep.mubr.bf16.mxu0 %v3875_v32 }
  0x82   :  { %1584 = vmatpush1.bf16.msra.mxu1 %v3641_v12  ;;  %1625 = vmatpush1.bf16.msra.mxu0 %v3644_v13 }
  0x83   :  { %1585 = vmatprep.subr.bf16.mxu1 %v3649_v14  ;;  %1626 = vmatprep.subr.bf16.mxu0 %v3652_v15 }
  0x86   :  { %1586 = vmatpush1.bf16.msra.mxu1 %v3647_v16  ;;  %1627 = vmatpush1.bf16.msra.mxu0 %v3650_v17 }
  0x87   :  { %1587 = vmatprep.subr.bf16.mxu1 %v3655_v18  ;;  %1628 = vmatprep.subr.bf16.mxu0 %v3658_v19 }
  0x8a   :  { %1588 = vmatpush1.bf16.msra.mxu1 %v3653_v20  ;;  %1629 = vmatpush1.bf16.msra.mxu0 %v3656_v21 }
  0x8b   :  { %1589 = vmatprep.subr.bf16.mxu1 %v3661_v22  ;;  %1630 = vmatprep.subr.bf16.mxu0 %v3664_v23 }
  0x8e   :  { %1590 = vmatpush1.bf16.msra.mxu1 %v3659_v24  ;;  %1631 = vmatpush1.bf16.msra.mxu0 %v3662_v25 }
  0x8f   :  { %1591 = vmatprep.subr.bf16.mxu1 %v3667_v26  ;;  %1632 = vmatprep.subr.bf16.mxu0 %v3670_v27 }
  0x92   :  { %1592 = vmatpush1.bf16.msra.mxu1 %v3665_v28  ;;  %1633 = vmatpush1.bf16.msra.mxu0 %v3668_v29 }
  0x93   :  { %1819 = vmatprep.subr.bf16.mxu1 %v3673_v30  ;;  %1860 = vmatprep.subr.bf16.mxu0 %v3676_v31 }
  0xf6   :  { %v3269_v33 = vpop.f32.mrb[0].mxu0 }
  0xf7   :  { %v3297_v34 = vpop.f32.mrb[0].mxu1  ;;  %v3270_v35 = vpop.f32.mrb[1].mxu0 }
  0xf8   :  { %v3271_v36 = vadd.f32 %v3270_v35, %v3269_v33  ;;  %v3298_v37 = vpop.f32.mrb[1].mxu1  ;;  %v3272_v38 = vpop.f32.mrb[2].mxu0 }
  0xf9   :  { %v3299_v39 = vadd.f32 %v3298_v37, %v3297_v34  ;;  %v3300_v40 = vpop.f32.mrb[2].mxu1  ;;  %v3273_v41 = vpop.f32.mrb[3].mxu0 }
  0xfa   :  { %v3274_v42 = vadd.f32 %v3273_v41, %v3272_v38  ;;  %v3301_v43 = vpop.f32.mrb[3].mxu1 }
  0xfb   :  { %v1077_v44 = vadd.f32 %v3299_v39, %v3271_v36  ;;  %v3302_v45 = vadd.f32 %v3301_v43, %v3300_v40 }
  0xfd   :  { %v1080_v46 = vadd.f32 %v3302_v45, %v3274_v42 }
  0xfe   :  { %v3275_v47 = vpop.f32.mrb[4].mxu0 }
  0xff   :  { %v3303_v48 = vpop.f32.mrb[4].mxu1  ;;  %v3276_v49 = vpop.f32.mrb[5].mxu0 }
 0x100   :  { %v3304_v50 = vpop.f32.mrb[5].mxu1  ;;  %v3277_v51 = vadd.f32 %v3276_v49, %v3275_v47  ;;  %v3278_v53 = vpop.f32.mrb[6].mxu0 }
 0x101   :  { %v3305_v52 = vadd.f32 %v3304_v50, %v3303_v48  ;;  %v3306_v54 = vpop.f32.mrb[6].mxu1  ;;  %v3279_v55 = vpop.f32.mrb[7].mxu0 }
 0x102   :  { %v3307_v56 = vpop.f32.mrb[7].mxu1  ;;  %v3280_v58 = vadd.f32 %v3279_v55, %v3278_v53 }
 0x103   :  { %v1085_v57 = vadd.f32 %v3305_v52, %v3277_v51  ;;  %v3308_v59 = vadd.f32 %v3307_v56, %v3306_v54 }
 0x105   :  { %v1088_v60 = vadd.f32 %v3308_v59, %v3280_v58 }
 0x116   :  { %v3325_v61 = vpop.f32.mrb[8].mxu0 }
 0x117   :  { %v3326_v62 = vpop.f32.mrb[9].mxu0  ;;  %v3353_v1 = vpop.f32.mrb[8].mxu1 }
 0x118   :  { %v3327_v63 = vadd.f32 %v3326_v62, %v3325_v61  ;;  %v3328_v0 = vpop.f32.mrb[10].mxu0  ;;  %v3354_v5 = vpop.f32.mrb[9].mxu1 }
 0x119   :  { %v3329_v2 = vpop.f32.mrb[11].mxu0  ;;  %v3355_v6 = vadd.f32 %v3354_v5, %v3353_v1  ;;  %v3356_v7 = vpop.f32.mrb[10].mxu1 }
 0x11a   :  { %v1126_v3 = vadd.f32 %v3327_v63, %v1077_v44  ;;  %v3330_v4 = vadd.f32 %v3329_v2, %v3328_v0  ;;  %v3357_v9 = vpop.f32.mrb[11].mxu1 }
 0x11b   :  { %v3358_v11 = vadd.f32 %v3357_v9, %v3356_v7 }
 0x11c   :  { %v1129_v8 = vadd.f32 %v3330_v4, %v1080_v46  ;;  %v1175_v10 = vadd.f32 %v3355_v6, %v1126_v3 }
 0x11e   :  { %v1178_v12 = vadd.f32 %v3358_v11, %v1129_v8  ;;  %v3331_v13 = vpop.f32.mrb[12].mxu0  ;;  %v2995_v8 = vld [vmem:[%s4816_s2] ss:$0 sm:$0xff] }
 0x11f   :  { %v3332_v14 = vpop.f32.mrb[13].mxu0  ;;  %v3359_v17 = vpop.f32.mrb[12].mxu1 }
 0x120   :  { %v3333_v15 = vadd.f32 %v3332_v14, %v3331_v13  ;;  %v3334_v16 = vpop.f32.mrb[14].mxu0  ;;  %v3360_v21 = vpop.f32.mrb[13].mxu1  ;;  %v3671_v13 = vld [vmem:[%s4817_s3] ss:$16 sps:$4 sm:$0xff]   ;;  %v3674_v14 = vld [vmem:[%s4817_s3 + $0x8] ss:$16 sps:$4 sm:$0xff]  }
 0x121   :  { %v3335_v18 = vpop.f32.mrb[15].mxu0  ;;  %v3361_v22 = vadd.f32 %v3360_v21, %v3359_v17  ;;  %v3362_v23 = vpop.f32.mrb[14].mxu1  ;;  %v3682_v17 = vld [vmem:[%s4817_s3 + $0x2c] ss:$16 sps:$4 sm:$0xff]  }
 0x122   :  { %v1134_v19 = vadd.f32 %v3333_v15, %v1085_v57  ;;  %v3336_v20 = vadd.f32 %v3335_v18, %v3334_v16  ;;  %v3363_v25 = vpop.f32.mrb[15].mxu1  ;;  %v3679_v16 = vld [vmem:[%s4817_s3 + $0x24] ss:$16 sps:$4 sm:$0xff]   ;;  %v3677_v18 = vld [vmem:[%s4817_s3 + $0x20] ss:$16 sps:$4 sm:$0xff]  }
 0x123   :  { %v3364_v27 = vadd.f32 %v3363_v25, %v3362_v23  ;;  %v3688_v21 = vld [vmem:[%s4817_s3 + $0x4c] ss:$16 sps:$4 sm:$0xff]   ;;  %v3686_v23 = vld [vmem:[%s4817_s3 + $0x48] ss:$16 sps:$4 sm:$0xff]  }
 0x124   :  { %v1137_v24 = vadd.f32 %v3336_v20, %v1088_v60  ;;  %v1183_v26 = vadd.f32 %v3361_v22, %v1134_v19  ;;  %v3680_v19 = vld [vmem:[%s4817_s3 + $0x28] ss:$16 sps:$4 sm:$0xff]   ;;  %v3685_v20 = vld [vmem:[%s4817_s3 + $0x44] ss:$16 sps:$4 sm:$0xff]   ;;  %v3683_v22 = vld [vmem:[%s4817_s3 + $0x40] ss:$16 sps:$4 sm:$0xff]  }
 0x125   :  { %v3694_v25 = vld [vmem:[%s4817_s3 + $0x6c] ss:$16 sps:$4 sm:$0xff]  }
 0x126   :  { %v1186_v28 = vadd.f32 %v3364_v27, %v1137_v24  ;;  %v3691_v24 = vld [vmem:[%s4817_s3 + $0x64] ss:$16 sps:$4 sm:$0xff]   ;;  %v3692_v27 = vld [vmem:[%s4817_s3 + $0x68] ss:$16 sps:$4 sm:$0xff]  }
 0x136   :  { %v3381_v29 = vpop.f32.mrb[16].mxu0 }
 0x137   :  { %v3382_v30 = vpop.f32.mrb[17].mxu0  ;;  %v3409_v36 = vpop.f32.mrb[16].mxu1 }
 0x138   :  { %v3383_v31 = vadd.f32 %v3382_v30, %v3381_v29  ;;  %v3384_v33 = vpop.f32.mrb[18].mxu0  ;;  %v3410_v38 = vpop.f32.mrb[17].mxu1  ;;  %v3700_v29 = vld [vmem:[%s4817_s3 + $0x8c] ss:$16 sps:$4 sm:$0xff]   ;;  %v3695_v30 = vld [vmem:[%s4817_s3 + $0x80] ss:$16 sps:$4 sm:$0xff]  }
 0x139   :  { %v3385_v34 = vpop.f32.mrb[19].mxu0  ;;  %v3411_v40 = vadd.f32 %v3410_v38, %v3409_v36  ;;  %v3412_v41 = vpop.f32.mrb[18].mxu1  ;;  %v3704_v36 = vld [vmem:[%s4817_s3 + $0xa8] ss:$16 sps:$4 sm:$0xff]   ;;  %v3712_v38 = vld [vmem:[%s4817_s3 + $0xcc] ss:$16 sps:$4 sm:$0xff]  }
 0x13a   :  { %v1224_v35 = vadd.f32 %v3383_v31, %v1175_v10  ;;  %v3386_v37 = vadd.f32 %v3385_v34, %v3384_v33  ;;  %v3413_v42 = vpop.f32.mrb[19].mxu1  ;;  %v3698_v31 = vld [vmem:[%s4817_s3 + $0x88] ss:$16 sps:$4 sm:$0xff]   ;;  %v3703_v33 = vld [vmem:[%s4817_s3 + $0xa4] ss:$16 sps:$4 sm:$0xff]  }
 0x13b   :  { %v3414_v43 = vadd.f32 %v3413_v42, %v3412_v41  ;;  %v3706_v34 = vld [vmem:[%s4817_s3 + $0xac] ss:$16 sps:$4 sm:$0xff]   ;;  %v3715_v41 = vld [vmem:[%s4817_s3 + $0xe4] ss:$16 sps:$4 sm:$0xff]  }
 0x13c   :  { %v1227_v39 = vadd.f32 %v3386_v37, %v1178_v12  ;;  %v1273_v45 = vadd.f32 %v3411_v40, %v1224_v35  ;;  %v3701_v35 = vld [vmem:[%s4817_s3 + $0xa0] ss:$16 sps:$4 sm:$0xff]   ;;  %v3709_v37 = vld [vmem:[%s4817_s3 + $0xc4] ss:$16 sps:$4 sm:$0xff]   ;;  %v3710_v40 = vld [vmem:[%s4817_s3 + $0xc8] ss:$16 sps:$4 sm:$0xff]  }
 0x13d   :  { %v3718_v42 = vld [vmem:[%s4817_s3 + $0xec] ss:$16 sps:$4 sm:$0xff]  }
 0x13e   :  { %v3387_v44 = vpop.f32.mrb[20].mxu0  ;;  %v1276_v49 = vadd.f32 %v3414_v43, %v1227_v39  ;;  %v3707_v39 = vld [vmem:[%s4817_s3 + $0xc0] ss:$16 sps:$4 sm:$0xff]  }
 0x13f   :  { %v3388_v46 = vpop.f32.mrb[21].mxu0  ;;  %v3713_v43 = vld [vmem:[%s4817_s3 + $0xe0] ss:$16 sps:$4 sm:$0xff]  }
 0x140   :  { %v3389_v47 = vadd.f32 %v3388_v46, %v3387_v44  ;;  %v3390_v48 = vpop.f32.mrb[22].mxu0  ;;  %v3415_v52 = vpop.f32.mrb[20].mxu1  ;;  %v3716_v44 = vld [vmem:[%s4817_s3 + $0xe8] ss:$16 sps:$4 sm:$0xff]   ;;  %v3724_v46 = vld [vmem:[%s4817_s3 + $0x20c] ss:$16 sps:$4 sm:$0xff]  }
 0x141   :  { %v3391_v50 = vpop.f32.mrb[23].mxu0  ;;  %v3416_v54 = vpop.f32.mrb[21].mxu1 }
 0x142   :  { %v1232_v51 = vadd.f32 %v3389_v47, %v1183_v26  ;;  %v3392_v53 = vadd.f32 %v3391_v50, %v3390_v48  ;;  %v3417_v56 = vadd.f32 %v3416_v54, %v3415_v52  ;;  %v3418_v57 = vpop.f32.mrb[22].mxu1  ;;  %v3689_v26 = vld [vmem:[%s4817_s3 + $0x60] ss:$16 sps:$4 sm:$0xff]   ;;  %v3722_v48 = vld [vmem:[%s4817_s3 + $0x208] ss:$16 sps:$4 sm:$0xff]  }
 0x143   :  { %v3419_v58 = vpop.f32.mrb[23].mxu1  ;;  %v3719_v47 = vld [vmem:[%s4817_s3 + $0x200] ss:$16 sps:$4 sm:$0xff]   ;;  %v3730_v50 = vld [vmem:[%s4817_s3 + $0x22c] ss:$16 sps:$4 sm:$0xff]  }
 0x144   :  { %v1235_v55 = vadd.f32 %v3392_v53, %v1186_v28  ;;  %v3420_v59 = vadd.f32 %v3419_v58, %v3418_v57  ;;  %v1281_v60 = vadd.f32 %v3417_v56, %v1232_v51  ;;  %v3697_v28 = vld [vmem:[%s4817_s3 + $0x84] ss:$16 sps:$4 sm:$0xff]   ;;  %v3725_v51 = vld [vmem:[%s4817_s3 + $0x220] ss:$16 sps:$4 sm:$0xff]   ;;  %v3728_v52 = vld [vmem:[%s4817_s3 + $0x228] ss:$16 sps:$4 sm:$0xff]  }
 0x145   :  { %v3733_v53 = vld [vmem:[%s4817_s3 + $0x244] ss:$16 sps:$4 sm:$0xff]   ;;  %v3736_v54 = vld [vmem:[%s4817_s3 + $0x24c] ss:$16 sps:$4 sm:$0xff]   ;;  %v3734_v56 = vld [vmem:[%s4817_s3 + $0x248] ss:$16 sps:$4 sm:$0xff]  }
 0x146   :  { %v3481_v61 = vpop.f32.mrb[24].mxu0  ;;  %v1284_v0 = vadd.f32 %v3420_v59, %v1235_v55  ;;  %v3731_v55 = vld [vmem:[%s4817_s3 + $0x240] ss:$16 sps:$4 sm:$0xff]   ;;  %v3739_v57 = vld [vmem:[%s4817_s3 + $0x264] ss:$16 sps:$4 sm:$0xff]  }
 0x147   :  { %v1330_v62 = vadd.f32 %v3481_v61, %v1281_v60  ;;  %v1321_v63 = vpop.f32.mrb[25].mxu0  ;;  %v3742_v58 = vld [vmem:[%s4817_s3 + $0x26c] ss:$16 sps:$4 sm:$0xff]   ;;  %v3737_v59 = vld [vmem:[%s4817_s3 + $0x260] ss:$16 sps:$4 sm:$0xff]  }
 0x148   :  { %v1322_v1 = vadd.f32 %v1321_v63, %v1273_v45  ;;  %v3482_v2 = vpop.f32.mrb[26].mxu0  ;;  %v3721_v45 = vld [vmem:[%s4817_s3 + $0x204] ss:$16 sps:$4 sm:$0xff]   ;;  %v3740_v60 = vld [vmem:[%s4817_s3 + $0x268] ss:$16 sps:$4 sm:$0xff]  }
 0x149   :  { %v1333_v3 = vadd.f32 %v3482_v2, %v1284_v0  ;;  %v1324_v4 = vpop.f32.mrb[27].mxu0  ;;  %v3745_v61 = vld [vmem:[%s4817_s3 + $0x284] ss:$16 sps:$4 sm:$0xff]   ;;  %v3743_v63 = vld [vmem:[%s4817_s3 + $0x280] ss:$16 sps:$4 sm:$0xff]  }
 0x14a   :  { %v1325_v5 = vadd.f32 %v1324_v4, %v1276_v49  ;;  %v3727_v49 = vld [vmem:[%s4817_s3 + $0x224] ss:$16 sps:$4 sm:$0xff]   ;;  %v3746_v0 = vld [vmem:[%s4817_s3 + $0x288] ss:$16 sps:$4 sm:$0xff]   ;;  %v3754_v2 = vld [vmem:[%s4817_s3 + $0x2ac] ss:$16 sps:$4 sm:$0xff]  }
 0x14b   :  { %v3752_v4 = vld [vmem:[%s4817_s3 + $0x2a8] ss:$16 sps:$4 sm:$0xff]  }
 0x14c   :  { %v1336_v6 = vmax.f32 %v1322_v1, %v1325_v5  ;;  %v3751_v1 = vld [vmem:[%s4817_s3 + $0x2a4] ss:$16 sps:$4 sm:$0xff]  }
 0x14d   :  { %v3757_v5 = vld [vmem:[%s4817_s3 + $0x2c4] ss:$16 sps:$4 sm:$0xff]  }
 0x14e   :  { %v1337_v7 = vmax.f32 %v1336_v6, %v1330_v62  ;;  %v3748_v62 = vld [vmem:[%s4817_s3 + $0x28c] ss:$16 sps:$4 sm:$0xff]  }
 0x14f   :  { %v3760_v6 = vld [vmem:[%s4817_s3 + $0x2cc] ss:$16 sps:$4 sm:$0xff]  }
 0x150   :  { %v1338_v9 = vmax.f32 %v1337_v7, %v1333_v3  ;;  %v3749_v3 = vld [vmem:[%s4817_s3 + $0x2a0] ss:$16 sps:$4 sm:$0xff]  }
 0x151   :  { %v3755_v7 = vld [vmem:[%s4817_s3 + $0x2c0] ss:$16 sps:$4 sm:$0xff]  }
 0x152   :  { %v1346_v10 = vadd.f32 %v2995_v8, %v1338_v9  ;;  %v3758_v8 = vld [vmem:[%s4817_s3 + $0x2c8] ss:$16 sps:$4 sm:$0xff]   ;;  %v3763_v9 = vld [vmem:[%s4817_s3 + $0x2e4] ss:$16 sps:$4 sm:$0xff]  }
 0x154   :  { %v1347_v11 = vmax.f32 %v1346_v10, 0.0  ;;  %v3766_v10 = vld [vmem:[%s4817_s3 + $0x2ec] ss:$16 sps:$4 sm:$0xff]  }
 0x156   :  { %v4402_v12 = vpack.c.bf16 %v1347_v11, %v1347_v11  ;;  %v3761_v11 = vld [vmem:[%s4817_s3 + $0x2e0] ss:$16 sps:$4 sm:$0xff]  }
 0x158   :  { %v1415_v15 = vrot.slane %v4402_v12, 1 }
 0x15a   :  { %1610 = vmatmul.mubr.bf16.vlgmr.msra.gmra.mrb[24].mxu1 %v1415_v15  ;;  %1651 = vmatmul.mubr.bf16.vlgmr.msra.gmra.mrb[28].mxu0 %v1415_v15  ;;  %v3772_v15 = vld [vmem:[%s4817_s3 + $0x30c] ss:$16 sps:$4 sm:$0xff]  }
 0x15b   :  { %1820 = vmatpush1.bf16.msra.mxu1 %v3671_v13  ;;  %1861 = vmatpush1.bf16.msra.mxu0 %v3674_v14  ;;  %v3764_v13 = vld [vmem:[%s4817_s3 + $0x2e8] ss:$16 sps:$4 sm:$0xff]   ;;  %v3769_v14 = vld [vmem:[%s4817_s3 + $0x304] ss:$16 sps:$4 sm:$0xff]  }
 0x15c   :  { %1821 = vmatprep.subr.bf16.mxu1 %v3679_v16  ;;  %1862 = vmatprep.subr.bf16.mxu0 %v3682_v17  ;;  %v3767_v16 = vld [vmem:[%s4817_s3 + $0x300] ss:$16 sps:$4 sm:$0xff]   ;;  %v3770_v17 = vld [vmem:[%s4817_s3 + $0x308] ss:$16 sps:$4 sm:$0xff]  }
 0x15d   :  { %1851 = vmatprep.mubr.bf16.mxu1 %v3875_v32  ;;  %1892 = vmatprep.mubr.bf16.mxu0 %v3875_v32 }
 0x15f   :  { %1822 = vmatpush1.bf16.msra.mxu1 %v3677_v18  ;;  %1863 = vmatpush1.bf16.msra.mxu0 %v3680_v19  ;;  %v1934_v18 = vrot.slane %v4402_v12, 2  ;;  %v3775_v19 = vld [vmem:[%s4817_s3 + $0x324] ss:$16 sps:$4 sm:$0xff]  }
 0x160   :  { %1823 = vmatprep.subr.bf16.mxu1 %v3685_v20  ;;  %1864 = vmatprep.subr.bf16.mxu0 %v3688_v21  ;;  %v3778_v20 = vld [vmem:[%s4817_s3 + $0x32c] ss:$16 sps:$4 sm:$0xff]   ;;  %v3773_v21 = vld [vmem:[%s4817_s3 + $0x320] ss:$16 sps:$4 sm:$0xff]  }
 0x163   :  { %1824 = vmatpush1.bf16.msra.mxu1 %v3683_v22  ;;  %1865 = vmatpush1.bf16.msra.mxu0 %v3686_v23  ;;  %v3776_v22 = vld [vmem:[%s4817_s3 + $0x328] ss:$16 sps:$4 sm:$0xff]   ;;  %v3781_v23 = vld [vmem:[%s4817_s3 + $0x344] ss:$16 sps:$4 sm:$0xff]  }
 0x164   :  { %1825 = vmatprep.subr.bf16.mxu1 %v3691_v24  ;;  %1866 = vmatprep.subr.bf16.mxu0 %v3694_v25  ;;  %v3784_v24 = vld [vmem:[%s4817_s3 + $0x34c] ss:$16 sps:$4 sm:$0xff]   ;;  %v3779_v25 = vld [vmem:[%s4817_s3 + $0x340] ss:$16 sps:$4 sm:$0xff]  }
 0x167   :  { %1826 = vmatpush1.bf16.msra.mxu1 %v3689_v26  ;;  %1867 = vmatpush1.bf16.msra.mxu0 %v3692_v27  ;;  %v3782_v26 = vld [vmem:[%s4817_s3 + $0x348] ss:$16 sps:$4 sm:$0xff]   ;;  %v3787_v27 = vld [vmem:[%s4817_s3 + $0x364] ss:$16 sps:$4 sm:$0xff]  }
 0x168   :  { %1827 = vmatprep.subr.bf16.mxu1 %v3697_v28  ;;  %1868 = vmatprep.subr.bf16.mxu0 %v3700_v29  ;;  %v3785_v28 = vld [vmem:[%s4817_s3 + $0x360] ss:$16 sps:$4 sm:$0xff]   ;;  %v3788_v29 = vld [vmem:[%s4817_s3 + $0x368] ss:$16 sps:$4 sm:$0xff]  }
 0x16b   :  { %1828 = vmatpush1.bf16.msra.mxu1 %v3695_v30  ;;  %1869 = vmatpush1.bf16.msra.mxu0 %v3698_v31  ;;  %v3793_v30 = vld [vmem:[%s4817_s3 + $0x384] ss:$16 sps:$4 sm:$0xff]   ;;  %v3796_v31 = vld [vmem:[%s4817_s3 + $0x38c] ss:$16 sps:$4 sm:$0xff]  }
 0x16c   :  { %1829 = vmatprep.subr.bf16.mxu1 %v3703_v33  ;;  %1870 = vmatprep.subr.bf16.mxu0 %v3706_v34  ;;  %v3791_v33 = vld [vmem:[%s4817_s3 + $0x380] ss:$16 sps:$4 sm:$0xff]   ;;  %v3794_v34 = vld [vmem:[%s4817_s3 + $0x388] ss:$16 sps:$4 sm:$0xff]  }
 0x16f   :  { %1830 = vmatpush1.bf16.msra.mxu1 %v3701_v35  ;;  %1871 = vmatpush1.bf16.msra.mxu0 %v3704_v36  ;;  %v3799_v35 = vld [vmem:[%s4817_s3 + $0x3a4] ss:$16 sps:$4 sm:$0xff]   ;;  %v3802_v36 = vld [vmem:[%s4817_s3 + $0x3ac] ss:$16 sps:$4 sm:$0xff]  }
 0x170   :  { %1831 = vmatprep.subr.bf16.mxu1 %v3709_v37  ;;  %1872 = vmatprep.subr.bf16.mxu0 %v3712_v38  ;;  %v3797_v37 = vld [vmem:[%s4817_s3 + $0x3a0] ss:$16 sps:$4 sm:$0xff]   ;;  %v3800_v38 = vld [vmem:[%s4817_s3 + $0x3a8] ss:$16 sps:$4 sm:$0xff]  }
 0x173   :  { %1832 = vmatpush1.bf16.msra.mxu1 %v3707_v39  ;;  %1873 = vmatpush1.bf16.msra.mxu0 %v3710_v40  ;;  %v3805_v39 = vld [vmem:[%s4817_s3 + $0x3c4] ss:$16 sps:$4 sm:$0xff]   ;;  %v3808_v40 = vld [vmem:[%s4817_s3 + $0x3cc] ss:$16 sps:$4 sm:$0xff]  }
 0x174   :  { %1833 = vmatprep.subr.bf16.mxu1 %v3715_v41  ;;  %1874 = vmatprep.subr.bf16.mxu0 %v3718_v42  ;;  %v3803_v41 = vld [vmem:[%s4817_s3 + $0x3c0] ss:$16 sps:$4 sm:$0xff]   ;;  %v3806_v42 = vld [vmem:[%s4817_s3 + $0x3c8] ss:$16 sps:$4 sm:$0xff]  }
 0x177   :  { %1834 = vmatpush1.bf16.msra.mxu1 %v3713_v43  ;;  %1875 = vmatpush1.bf16.msra.mxu0 %v3716_v44  ;;  %v3811_v43 = vld [vmem:[%s4817_s3 + $0x3e4] ss:$16 sps:$4 sm:$0xff]   ;;  %v3814_v44 = vld [vmem:[%s4817_s3 + $0x3ec] ss:$16 sps:$4 sm:$0xff]  }
 0x178   :  { %2096 = vmatprep.subr.bf16.mxu1 %v3721_v45  ;;  %2137 = vmatprep.subr.bf16.mxu0 %v3724_v46  ;;  %v3809_v45 = vld [vmem:[%s4817_s3 + $0x3e0] ss:$16 sps:$4 sm:$0xff]   ;;  %v3812_v46 = vld [vmem:[%s4817_s3 + $0x3e8] ss:$16 sps:$4 sm:$0xff]  }
 0x17a   :  { %1852 = vmatmul.mubr.bf16.vlgmr.msra.gmra.mrb[28].mxu1 %v4402_v12  ;;  %1893 = vmatmul.mubr.bf16.vlgmr.msra.gmra.mrb[32].mxu0 %v4402_v12 }
 0x17b   :  { %2097 = vmatpush1.bf16.msra.mxu1 %v3719_v47  ;;  %2138 = vmatpush1.bf16.msra.mxu0 %v3722_v48  ;;  %v2215_v47 = vrot.slane %v4402_v12, 3  ;;  %v3815_v48 = vld [vmem:[%s4819_s5 + $0x40] sm:$0xff]   ;;  %v3819_v12 = vld [vmem:[%s4819_s5 + $0x48] sm:$0xff]  }
 0x17c   :  { %2098 = vmatprep.subr.bf16.mxu1 %v3727_v49  ;;  %2139 = vmatprep.subr.bf16.mxu0 %v3730_v50  ;;  %v3816_v49 = vld [vmem:[%s4819_s5 + $0xc0] sm:$0xff]  }
 0x17d   :  { %2128 = vmatprep.mubr.bf16.mxu1 %v3875_v32  ;;  %2169 = vmatprep.mubr.bf16.mxu0 %v3875_v32  ;;  %v3817_v50 = vld [vmem:[%s4819_s5] sm:$0xff]  }
 0x17f   :  { %2099 = vmatpush1.bf16.msra.mxu1 %v3725_v51  ;;  %2140 = vmatpush1.bf16.msra.mxu0 %v3728_v52  ;;  %v3818_v51 = vld [vmem:[%s4819_s5 + $0x80] sm:$0xff]   ;;  %v3820_v52 = vld [vmem:[%s4819_s5 + $0xc8] sm:$0xff]  }
 0x180   :  { %2100 = vmatprep.subr.bf16.mxu1 %v3733_v53  ;;  %2141 = vmatprep.subr.bf16.mxu0 %v3736_v54  ;;  %v3821_v53 = vld [vmem:[%s4819_s5 + $0x8] sm:$0xff]  }
 0x181   :  { %v3822_v54 = vld [vmem:[%s4819_s5 + $0x88] sm:$0xff]  }
 0x183   :  { %2101 = vmatpush1.bf16.msra.mxu1 %v3731_v55  ;;  %2142 = vmatpush1.bf16.msra.mxu0 %v3734_v56  ;;  %v3823_v55 = vld [vmem:[%s4819_s5 + $0x50] sm:$0xff]  }
 0x184   :  { %2102 = vmatprep.subr.bf16.mxu1 %v3739_v57  ;;  %2143 = vmatprep.subr.bf16.mxu0 %v3742_v58  ;;  %v3824_v56 = vld [vmem:[%s4819_s5 + $0xd0] sm:$0xff]  }
 0x185   :  { %v3825_v57 = vld [vmem:[%s4819_s5 + $0x10] sm:$0xff]  }
 0x186   :  { %v3826_v58 = vld [vmem:[%s4819_s5 + $0x90] sm:$0xff]  }
 0x187   :  { %2103 = vmatpush1.bf16.msra.mxu1 %v3737_v59  ;;  %2144 = vmatpush1.bf16.msra.mxu0 %v3740_v60  ;;  %v3827_v59 = vld [vmem:[%s4819_s5 + $0x58] sm:$0xff]  }
 0x188   :  { %2104 = vmatprep.subr.bf16.mxu1 %v3745_v61  ;;  %2145 = vmatprep.subr.bf16.mxu0 %v3748_v62  ;;  %v3828_v60 = vld [vmem:[%s4819_s5 + $0xd8] sm:$0xff]  }
 0x189   :  { %v3829_v61 = vld [vmem:[%s4819_s5 + $0x18] sm:$0xff]  }
 0x18a   :  { %v3830_v62 = vld [vmem:[%s4819_s5 + $0x98] sm:$0xff]  }
 0x18b   :  { %2105 = vmatpush1.bf16.msra.mxu1 %v3743_v63  ;;  %2146 = vmatpush1.bf16.msra.mxu0 %v3746_v0  ;;  %v3831_v63 = vld [vmem:[%s4819_s5 + $0x60] sm:$0xff]  }
 0x18c   :  { %2106 = vmatprep.subr.bf16.mxu1 %v3751_v1  ;;  %2147 = vmatprep.subr.bf16.mxu0 %v3754_v2  ;;  %v3832_v0 = vld [vmem:[%s4819_s5 + $0xe0] sm:$0xff]  }
 0x18d   :  { %v3833_v1 = vld [vmem:[%s4819_s5 + $0x20] sm:$0xff]  }
 0x18e   :  { %v3834_v2 = vld [vmem:[%s4819_s5 + $0xa0] sm:$0xff]  }
 0x18f   :  { %2107 = vmatpush1.bf16.msra.mxu1 %v3749_v3  ;;  %2148 = vmatpush1.bf16.msra.mxu0 %v3752_v4  ;;  %v3835_v3 = vld [vmem:[%s4819_s5 + $0x68] sm:$0xff]  }
 0x190   :  { %2108 = vmatprep.subr.bf16.mxu1 %v3757_v5  ;;  %2149 = vmatprep.subr.bf16.mxu0 %v3760_v6  ;;  %v3836_v4 = vld [vmem:[%s4819_s5 + $0xe8] sm:$0xff]  }
 0x191   :  { %v3837_v5 = vld [vmem:[%s4819_s5 + $0x28] sm:$0xff]  }
 0x192   :  { %v3838_v6 = vld [vmem:[%s4819_s5 + $0xa8] sm:$0xff]  }
 0x193   :  { %2109 = vmatpush1.bf16.msra.mxu1 %v3755_v7  ;;  %2150 = vmatpush1.bf16.msra.mxu0 %v3758_v8  ;;  %v3839_v7 = vld [vmem:[%s4819_s5 + $0x70] sm:$0xff]  }
 0x194   :  { %2110 = vmatprep.subr.bf16.mxu1 %v3763_v9  ;;  %2151 = vmatprep.subr.bf16.mxu0 %v3766_v10  ;;  %v3840_v8 = vld [vmem:[%s4819_s5 + $0xf0] sm:$0xff]  }
 0x195   :  { %v3841_v9 = vld [vmem:[%s4819_s5 + $0x30] sm:$0xff]  }
 0x196   :  { %v3842_v10 = vld [vmem:[%s4819_s5 + $0xb0] sm:$0xff]  }
 0x197   :  { %2111 = vmatpush1.bf16.msra.mxu1 %v3761_v11  ;;  %2152 = vmatpush1.bf16.msra.mxu0 %v3764_v13  ;;  %v3843_v11 = vld [vmem:[%s4819_s5 + $0x78] sm:$0xff]  }
 0x198   :  { %2377 = vmatprep.subr.bf16.mxu1 %v3769_v14  ;;  %2418 = vmatprep.subr.bf16.mxu0 %v3772_v15  ;;  %v3844_v13 = vld [vmem:[%s4819_s5 + $0xf8] sm:$0xff]  }
 0x199   :  { %v3845_v14 = vld [vmem:[%s4819_s5 + $0x38] sm:$0xff]  }
 0x19a   :  { %2129 = vmatmul.mubr.bf16.vlgmr.msra.gmra.mrb[32].mxu1 %v1934_v18  ;;  %2170 = vmatmul.mubr.bf16.vlgmr.msra.gmra.mrb[36].mxu0 %v1934_v18  ;;  %v3846_v15 = vld [vmem:[%s4819_s5 + $0xb8] sm:$0xff]  }
 0x19b   :  { %2378 = vmatpush1.bf16.msra.mxu1 %v3767_v16  ;;  %2419 = vmatpush1.bf16.msra.mxu0 %v3770_v17 }
 0x19c   :  { %2379 = vmatprep.subr.bf16.mxu1 %v3775_v19  ;;  %2420 = vmatprep.subr.bf16.mxu0 %v3778_v20 }
 0x19d   :  { %2409 = vmatprep.mubr.bf16.mxu1 %v3875_v32  ;;  %2450 = vmatprep.mubr.bf16.mxu0 %v3875_v32  ;;  %v3790_v32 = vld [vmem:[%s4817_s3 + $0x36c] ss:$16 sps:$4 sm:$0xff]  }
 0x19f   :  { %2380 = vmatpush1.bf16.msra.mxu1 %v3773_v21  ;;  %2421 = vmatpush1.bf16.msra.mxu0 %v3776_v22 }
 0x1a0   :  { %2381 = vmatprep.subr.bf16.mxu1 %v3781_v23  ;;  %2422 = vmatprep.subr.bf16.mxu0 %v3784_v24 }
 0x1a3   :  { %2382 = vmatpush1.bf16.msra.mxu1 %v3779_v25  ;;  %2423 = vmatpush1.bf16.msra.mxu0 %v3782_v26 }
 0x1a4   :  { %2383 = vmatprep.subr.bf16.mxu1 %v3787_v27  ;;  %2424 = vmatprep.subr.bf16.mxu0 %v3790_v32 }
 0x1a7   :  { %2384 = vmatpush1.bf16.msra.mxu1 %v3785_v28  ;;  %2425 = vmatpush1.bf16.msra.mxu0 %v3788_v29 }
 0x1a8   :  { %2385 = vmatprep.subr.bf16.mxu1 %v3793_v30  ;;  %2426 = vmatprep.subr.bf16.mxu0 %v3796_v31 }
 0x1ab   :  { %2386 = vmatpush1.bf16.msra.mxu1 %v3791_v33  ;;  %2427 = vmatpush1.bf16.msra.mxu0 %v3794_v34 }
 0x1ac   :  { %2387 = vmatprep.subr.bf16.mxu1 %v3799_v35  ;;  %2428 = vmatprep.subr.bf16.mxu0 %v3802_v36 }
 0x1af   :  { %2388 = vmatpush1.bf16.msra.mxu1 %v3797_v37  ;;  %2429 = vmatpush1.bf16.msra.mxu0 %v3800_v38 }
 0x1b0   :  { %2389 = vmatprep.subr.bf16.mxu1 %v3805_v39  ;;  %2430 = vmatprep.subr.bf16.mxu0 %v3808_v40 }
 0x1b3   :  { %2390 = vmatpush1.bf16.msra.mxu1 %v3803_v41  ;;  %2431 = vmatpush1.bf16.msra.mxu0 %v3806_v42 }
 0x1b4   :  { %2391 = vmatprep.subr.bf16.mxu1 %v3811_v43  ;;  %2432 = vmatprep.subr.bf16.mxu0 %v3814_v44 }
 0x1b7   :  { %2392 = vmatpush1.bf16.msra.mxu1 %v3809_v45  ;;  %2433 = vmatpush1.bf16.msra.mxu0 %v3812_v46 }
 0x1b8   :  { %3427 = vmatprep.subr.bf16.mxu1 %v3815_v48  ;;  %3449 = vmatprep.subr.bf16.mxu0 %v3816_v49  ;;  %v2465_v48 = vlaneseq }
 0x1ba   :  { %2410 = vmatmul.mubr.bf16.vlgmr.msra.gmra.mrb[36].mxu1 %v2215_v47  ;;  %2451 = vmatmul.mubr.bf16.vlgmr.msra.gmra.mrb[40].mxu0 %v2215_v47  ;;  %v2466_v49 = vshrl.u32 %v2465_v48, 7 }
 0x1bb   :  { %3428 = vmatpush3.bf16.msra.mxu1 %v3817_v50  ;;  %3450 = vmatpush3.bf16.msra.mxu0 %v3818_v51 }
 0x1bc   :  { %3429 = vmatprep.subr.bf16.mxu1 %v3819_v12  ;;  %3451 = vmatprep.subr.bf16.mxu0 %v3820_v52  ;;  %v2467_v50 = vsub.s32 0, %v2466_v49  ;;  %v2475_v51 = vsub.s32 2, %v2466_v49  ;;  %v2463_v12 = vld [vmem:[%s4818_s4] sm:$0xf]  ;;  %v2471_v52 = vsub.s32 1, %v2466_v49 }
 0x1bf   :  { %3430 = vmatpush3.bf16.msra.mxu1 %v3821_v53  ;;  %3452 = vmatpush3.bf16.msra.mxu0 %v3822_v54  ;;  %v2479_v53 = vsub.s32 3, %v2466_v49  ;;  %v2468_v54 = vrot.slane %v2463_v12, %v2467_v50 }
 0x1c0   :  { %3431 = vmatprep.subr.bf16.mxu1 %v3823_v55  ;;  %3453 = vmatprep.subr.bf16.mxu0 %v3824_v56  ;;  %v2476_v55 = vrot.slane %v2463_v12, %v2475_v51 }
 0x1c3   :  { %3432 = vmatpush3.bf16.msra.mxu1 %v3825_v57  ;;  %3454 = vmatpush3.bf16.msra.mxu0 %v3826_v58  ;;  %v2472_v58 = vrot.slane %v2463_v12, %v2471_v52 }
 0x1c4   :  { %3433 = vmatprep.subr.bf16.mxu1 %v3827_v59  ;;  %3455 = vmatprep.subr.bf16.mxu0 %v3828_v60  ;;  %v2480_v59 = vrot.slane %v2463_v12, %v2479_v53 }
 0x1c7   :  { %3434 = vmatpush3.bf16.msra.mxu1 %v3829_v61  ;;  %3456 = vmatpush3.bf16.msra.mxu0 %v3830_v62 }
 0x1c8   :  { %3435 = vmatprep.subr.bf16.mxu1 %v3831_v63  ;;  %3457 = vmatprep.subr.bf16.mxu0 %v3832_v0 }
 0x1cb   :  { %3436 = vmatpush3.bf16.msra.mxu1 %v3833_v1  ;;  %3458 = vmatpush3.bf16.msra.mxu0 %v3834_v2 }
 0x1cc   :  { %3437 = vmatprep.subr.bf16.mxu1 %v3835_v3  ;;  %3459 = vmatprep.subr.bf16.mxu0 %v3836_v4 }
 0x1cf   :  { %3438 = vmatpush3.bf16.msra.mxu1 %v3837_v5  ;;  %3460 = vmatpush3.bf16.msra.mxu0 %v3838_v6 }
 0x1d0   :  { %3439 = vmatprep.subr.bf16.mxu1 %v3839_v7  ;;  %3461 = vmatprep.subr.bf16.mxu0 %v3840_v8 }
 0x1d3   :  { %3440 = vmatpush3.bf16.msra.mxu1 %v3841_v9  ;;  %3462 = vmatpush3.bf16.msra.mxu0 %v3842_v10 }
 0x1d4   :  { %3441 = vmatprep.subr.bf16.mxu1 %v3843_v11  ;;  %3463 = vmatprep.subr.bf16.mxu0 %v3844_v13 }
 0x1d7   :  { %3442 = vmatpush3.bf16.msra.mxu1 %v3845_v14  ;;  %3464 = vmatpush3.bf16.msra.mxu0 %v3846_v15 }
 0x22d   :  { %v1611_v16 = vpop.f32.mrb[24].mxu1  ;;  %v1652_v17 = vpop.f32.mrb[28].mxu0 }
 0x22e   :  { %v1613_v18 = vpop.f32.mrb[25].mxu1  ;;  %v1654_v19 = vpop.f32.mrb[29].mxu0 }
 0x22f   :  { %v1615_v20 = vpop.f32.mrb[26].mxu1  ;;  %v1656_v21 = vpop.f32.mrb[30].mxu0 }
 0x230   :  { %v1616_v22 = vpop.f32.mrb[27].mxu1  ;;  %v1657_v23 = vpop.f32.mrb[31].mxu0  ;;  %v3220_v21 = vld [vmem:[%s4820_s6] ss:$0 sm:$0xff]  ;;  %s3876_s6 = smov [#allocation2]  }
 0x231   :  { %s2859_s9 = sshll.u32 %s3876_s6, 4  ;;  %s2860_s9 = int_to_ptr.vmem [resolvable:$true] %s2859_s9 }
 0x232   :  { %s3851_s10 = scalar_lea.vmem %s2860_s9, 32  ;;  %p3856_p1 = scmp.lt.s32.totalorder %s2860_s9, %s2860_s9 }
 0x233   :  { %p3852_p0 = scmp.ne.s32.totalorder %s2860_s9, %s3851_s10  ;;  %p3857_p2 = scmp.lt.s32.totalorder %s3851_s10, %s3851_s10 }
 0x235   :  { %p3858_p3 = por %p3857_p2, %p3856_p1 }
 0x237   :  { %p3859_p4 = pnand %p3858_p3, %p3852_p0 }
 0x24d   :  { %v1853_v24 = vpop.f32.mrb[28].mxu1  ;;  %v1894_v25 = vpop.f32.mrb[32].mxu0 }
 0x24e   :  { %v1854_v26 = vadd.f32 %v1853_v24, %v1611_v16  ;;  %v1895_v27 = vadd.f32 %v1894_v25, %v1652_v17  ;;  %v1855_v32 = vpop.f32.mrb[29].mxu1  ;;  %v1896_v28 = vpop.f32.mrb[33].mxu0 }
 0x24f   :  { %v1856_v29 = vadd.f32 %v1855_v32, %v1613_v18  ;;  %v1897_v30 = vadd.f32 %v1896_v28, %v1654_v19  ;;  %v1857_v31 = vpop.f32.mrb[30].mxu1  ;;  %v1898_v33 = vpop.f32.mrb[34].mxu0 }
 0x250   :  { %v1858_v34 = vpop.f32.mrb[31].mxu1  ;;  %v1899_v35 = vpop.f32.mrb[35].mxu0 }
 0x26d   :  { %v2130_v36 = vpop.f32.mrb[32].mxu1  ;;  %v2171_v37 = vpop.f32.mrb[36].mxu0 }
 0x26e   :  { %v2178_v38 = vadd.f32 %v2130_v36, %v1854_v26  ;;  %v2180_v39 = vadd.f32 %v2171_v37, %v1895_v27  ;;  %v2132_v40 = vpop.f32.mrb[33].mxu1  ;;  %v2173_v41 = vpop.f32.mrb[37].mxu0 }
 0x26f   :  { %v2179_v42 = vadd.f32 %v2132_v40, %v1856_v29  ;;  %v2181_v43 = vadd.f32 %v2173_v41, %v1897_v30  ;;  %v2134_v44 = vpop.f32.mrb[34].mxu1  ;;  %v2175_v45 = vpop.f32.mrb[38].mxu0 }
 0x270   :  { %v2135_v46 = vpop.f32.mrb[35].mxu1  ;;  %v2176_v47 = vpop.f32.mrb[39].mxu0 }
 0x28d   :  { %v2411_v56 = vpop.f32.mrb[36].mxu1  ;;  %v2452_v57 = vpop.f32.mrb[40].mxu0 }
 0x28e   :  { %v2459_v60 = vadd.f32 %v2411_v56, %v2178_v38  ;;  %v2461_v61 = vadd.f32 %v2452_v57, %v2180_v39  ;;  %v2413_v62 = vpop.f32.mrb[37].mxu1  ;;  %v2454_v63 = vpop.f32.mrb[41].mxu0 }
 0x28f   :  { %v2460_v0 = vadd.f32 %v2413_v62, %v2179_v42  ;;  %v2462_v1 = vadd.f32 %v2454_v63, %v2181_v43  ;;  %v2415_v2 = vpop.f32.mrb[38].mxu1  ;;  %v2456_v3 = vpop.f32.mrb[42].mxu0 }
 0x290   :  { %v2485_v4 = vadd.f32 %v2468_v54, %v2459_v60  ;;  %v2487_v5 = vadd.f32 %v2476_v55, %v2461_v61  ;;  %v2416_v6 = vpop.f32.mrb[39].mxu1  ;;  %v2457_v7 = vpop.f32.mrb[43].mxu0 }
 0x291   :  { %v2486_v8 = vadd.f32 %v2472_v58, %v2460_v0  ;;  %v2488_v9 = vadd.f32 %v2480_v59, %v2462_v1 }
 0x292   :  { %v2489_v10 = vmax.f32 %v2485_v4, 0.0  ;;  %v2491_v11 = vmax.f32 %v2487_v5, 0.0 }
 0x293   :  { %v2490_v13 = vmax.f32 %v2486_v8, 0.0  ;;  %v2492_v14 = vmax.f32 %v2488_v9, 0.0 }
 0x294   :  { %v2493_v17 = vpack.c.bf16 %v2489_v10, %v2489_v10  ;;  %v2495_v18 = vpack.c.bf16 %v2491_v11, %v2491_v11 }
 0x295   :  { %v2494_v15 = vpack.c.bf16 %v2490_v13, %v2490_v13  ;;  %v2496_v16 = vpack.c.bf16 %v2492_v14, %v2492_v14 }
 0x297   :  { %2792 = vmatprep.mubr.bf16.mxu1 %v2494_v15  ;;  %2832 = vmatprep.mubr.bf16.mxu0 %v2496_v16 }
 0x298   :  { %2793 = vmatmul.mubr.bf16.vlgmr.msra.gmra.mrb[40].mxu1 %v2493_v17  ;;  %2833 = vmatmul.mubr.bf16.vlgmr.msra.gmra.mrb[44].mxu0 %v2495_v18 }
 0x36b   :  { %v3443_v19 = vpop.f32.mrb[40].mxu1  ;;  %v3465_v20 = vpop.f32.mrb[44].mxu0 }
 0x36c   :  { %v3444_v22 = vpop.f32.mrb[41].mxu1  ;;  %v3466_v23 = vpop.f32.mrb[45].mxu0 }
 0x36d   :  { %v3445_v24 = vadd.f32 %v3444_v22, %v3443_v19  ;;  %v3467_v25 = vadd.f32 %v3466_v23, %v3465_v20  ;;  %v3446_v26 = vpop.f32.mrb[42].mxu1  ;;  %v3468_v27 = vpop.f32.mrb[46].mxu0 }
 0x36e   :  { %v3447_v32 = vpop.f32.mrb[43].mxu1  ;;  %v3469_v28 = vpop.f32.mrb[47].mxu0 }
 0x36f   :  { %v2795_v29 = vadd.f32 %v3445_v24, %v3220_v21 }
 0x371   :  { %v2835_v30 = vadd.f32 %v3467_v25, %v2795_v29 }
 0x373   :  { %v2841_v31 = vsel %vm2840_vm1, %v2835_v30, -inf }
 0x374   :  { %2842 = vmax.xlane.f32.xlu0 %v2841_v31 }
 0x401   :  { %v2843_v33 = vpop.xlane.xlu0 %2842 }
 0x402   :  { %v2844_v34 = vsub.f32 %v2835_v30, %v2843_v33 }
 0x404   :  { %v2845_v35 = vmul.f32 1.442695, %v2844_v34 }
 0x406   :  { %3847 = vpow2.f32 %v2845_v35 }
 0x410   :  { %v3848_v36 = vpop.eup %3847 }
 0x411   :  { %v2847_v37 = vsel %vm2840_vm1, %v3848_v36, 0.0 }
 0x412   :  { %2848 = vadd.xlane.f32.xlu0 %v2847_v37 }
 0x49f   :  { %v2849_v38 = vpop.xlane.xlu0 %2848 }
 0x4a0   :  { %3849 = vrcp.f32 %v2849_v38 }
 0x4aa   :  { %v3850_v39 = vpop.eup %3849 }
 0x4ab   :  { %v2851_v40 = vmul.f32 %v3850_v39, %v3848_v36 }
 0x4ad   :  { %2852 = vst.msk [vmem:[#allocation2] sm:$0x3] %vm2840_vm1, %v2851_v40 }
 0x4ae   :  { %3862 = shalt.err (!%p3859_p4)
}
 0x4af   :  { %s3863_s13 = scalar_lea.hbm %s4821_s7, 32 }
 0x4b0   :  { %p3864_p5 = scmp.ne.s32.totalorder %s4821_s7, %s3863_s13  ;;  %p3867_p6 = scmp.lt.u32.totalorder %s3863_s13, %s4821_s7 }
 0x4b2   :  { %p3869_p7 = pnand %p3867_p6, %p3864_p5 }
 0x4b4   :  { %3872 = shalt.err (!%p3869_p7)
}
 0x4b5   :  { %2862 = dma.vmem_to_hbm [thread:$0]  %s2860_s9, 32, %s4821_s7, [#allocation3]  }
 0x4b6   :  { %3873 = dma.done.wait [#allocation3], 32  }
 0x4b7   :  { %3874 = vsyncadd [#allocation3], 4294967264 }
 0x4b8   :  { %2866 = vsyncpa [#allocation3], 1 }

</bundles_post_ra>
